<compile_context>
chip_gen: v6e
topology: v6e:2x2x1
jax: 0.10.0
libtpu: 0.0.40
codegen_flags: <defaults>
</compile_context>

<pallas_src>
import jax
import jax.numpy as jnp
from jax import lax
from jax.experimental import pallas as pl
from jax.experimental.pallas import tpu as pltpu

_EPS = 1e-5
_LANE = 128


def _round_up(x, m):
    return ((x + m - 1) // m) * m


def _pick_row_tile(H, W):
    """Largest divisor of H such that one row-chunk has <= 512 output rows."""
    cap = max(1, 512 // max(W, 1))
    th = 1
    for d in range(1, H + 1):
        if H % d == 0 and d <= cap:
            th = d
    return th


def _vmem_limit(est_bytes):
    """Derive a VMEM budget from the device instead of a fixed 64 MiB clamp."""
    try:
        cap = int(pltpu.get_tpu_info().vmem_capacity_bytes)
    except Exception:  # query unavailable (e.g. interpret mode) -> safe default
        cap = 64 << 20
    return int(min(max(2 * est_bytes, 24 << 20), max(cap - (8 << 20), 16 << 20)))


def _pack_w(w_oihw, cp_in, cp_out):
    """torch (Cout,Cin,3,3) -> (9, CP_in, CP_out) bf16, tap index = ky*3 + kx."""
    cout, cin = int(w_oihw.shape[0]), int(w_oihw.shape[1])
    w = jnp.transpose(w_oihw.astype(jnp.float32), (2, 3, 1, 0))     # (ky,kx,ci,co)
    w = jnp.pad(w, ((0, 0), (0, 0), (0, cp_in - cin), (0, cp_out - cout)))
    return w.reshape(9, cp_in, cp_out).astype(jnp.bfloat16)


def _finalize_bn(stats, gamma, beta, c, cp, count):
    """Reduce per-batch partial (sum, sumsq) -> fused BN scale/shift (f32)."""
    # TODO(synk): single-pass E[y^2]-mean^2 can cancel for |mean| >> std; a
    #             shifted-moment / two-pass formulation would be more robust.
    s = jnp.sum(stats, axis=0)                                       # (2, CP)
    mean = s[0] / count
    var = jnp.maximum(s[1] / count - mean * mean, 0.0)
    g = jnp.pad(gamma.astype(jnp.float32), (0, cp - c), constant_values=1.0)
    b = jnp.pad(beta.astype(jnp.float32), (0, cp - c))
    scale = g * lax.rsqrt(var + _EPS)
    shift = b - mean * scale
    return scale[None, :], shift[None, :]                            # (1, CP)


def _make_conv_kernel(H, W, CPin, CPout, apply_act, TH):
    """3x3 conv (pad=1) over one batch element, optionally fused with a
    preceding BN-apply + ReLU on the input. Emits pre-BN output + stats."""
    Wp = _round_up(W + 2, 8)        # sublane-aligned padded width
    n_chunks = H // TH

    def kernel(scale_ref, shift_ref, x_ref, w_ref, y_ref, stats_ref, xpad):
        # ---- 1) input activation (flat (H*W, CPin)) -> padded bf16 VMEM ----
        x = x_ref[0]
        if apply_act:
            a = jnp.maximum(x.astype(jnp.float32) * scale_ref[...]
                            + shift_ref[...], 0.0).astype(jnp.bfloat16)
        else:
            a = x.astype(jnp.bfloat16)

        zrow = jnp.zeros((1, Wp, CPin), jnp.bfloat16)
        xpad[0:1, :, :] = zrow                                       # top halo
        xpad[H + 1:H + 2, :, :] = zrow                               # bottom halo
        xpad[:, 0:1, :] = jnp.zeros((H + 2, 1, CPin), jnp.bfloat16)  # left halo
        xpad[:, W + 1:Wp, :] = jnp.zeros((H + 2, Wp - W - 1, CPin),
                                         jnp.bfloat16)               # right halo
        xpad[1:H + 1, 1:W + 1, :] = a.reshape(H, W, CPin)             # interior

        # ---- 2) conv: 9 accumulating MXU dots per <=512-row output chunk ----
        sum_acc = jnp.zeros((1, CPout), jnp.float32)
        sq_acc = jnp.zeros((1, CPout), jnp.float32)
        for c in range(n_chunks):
            h0 = c * TH
            acc = jnp.zeros((TH * W, CPout), jnp.float32)
            for ky in range(3):
                for kx in range(3):
                    tap = xpad[h0 + ky:h0 + ky + TH, kx:kx + W, :]
                    tap = tap.reshape(TH * W, CPin)
                    acc = acc + jnp.dot(tap, w_ref[ky * 3 + kx],
                                        preferred_element_type=jnp.float32)
            y_ref[0, h0 * W:h0 * W + TH * W, :] = acc.astype(y_ref.dtype)
            sum_acc = sum_acc + jnp.sum(acc, axis=0, keepdims=True)
            sq_acc = sq_acc + jnp.sum(acc * acc, axis=0, keepdims=True)

        stats_ref[0, 0:1, :] = sum_acc
        stats_ref[0, 1:2, :] = sq_acc

    return kernel


def _conv_stage(x_flat, w_packed, scale, shift, *, H, W, apply_act):
    """pallas_call wrapper: per-batch grid, pre-BN output + per-batch stats."""
    N, HW, CPin = x_flat.shape
    CPout = w_packed.shape[-1]
    TH = _pick_row_tile(H, W)
    Wp = _round_up(W + 2, 8)
    kernel = _make_conv_kernel(H, W, CPin, CPout, apply_act, TH)

    grid_spec = pltpu.PrefetchScalarGridSpec(
        num_scalar_prefetch=0,
        grid=(N,),
        in_specs=[
            pl.BlockSpec((1, CPin), lambda n: (0, 0)),            # BN scale (prev)
            pl.BlockSpec((1, CPin), lambda n: (0, 0)),            # BN shift (prev)
            pl.BlockSpec((1, HW, CPin), lambda n: (n, 0, 0)),     # activations
            pl.BlockSpec((9, CPin, CPout), lambda n: (0, 0, 0)),  # per-tap weights
        ],
        out_specs=[
            pl.BlockSpec((1, HW, CPout), lambda n: (n, 0, 0)),    # pre-BN conv out
            pl.BlockSpec((1, 2, CPout), lambda n: (n, 0, 0)),     # per-batch stats
        ],
        scratch_shapes=[pltpu.VMEM((H + 2, Wp, CPin), jnp.bfloat16)],
    )

    est = (2 * HW * CPin * 2 + 2 * HW * CPout * 2        # dbl-buffered act blocks
           + 2 * 9 * CPin * CPout * 2                    # weights
           + (H + 2) * Wp * CPin * 2                     # halo scratch
           + 3 * TH * W * (4 * CPout + 2 * CPin)         # live accumulator/taps
           + (2 << 20))
    cost = pl.CostEstimate(
        flops=2 * N * HW * 9 * CPin * CPout,
        transcendentals=0,
        bytes_accessed=int(x_flat.size * 2 + w_packed.size * 2
                           + N * HW * CPout * 2 + N * 2 * CPout * 4),
    )

    y, stats = pl.pallas_call(
        kernel,
        out_shape=(
            jax.ShapeDtypeStruct((N, HW, CPout), jnp.bfloat16),
            jax.ShapeDtypeStruct((N, 2, CPout), jnp.float32),
        ),
        grid_spec=grid_spec,
        compiler_params=pltpu.CompilerParams(
            dimension_semantics=("parallel",),        # stats are per-batch partials
            vmem_limit_bytes=_vmem_limit(est),
        ),
        cost_estimate=cost,
    )(scale, shift, x_flat, w_packed)
    return y, stats


def _bn_relu_stage(y_flat, scale, shift):
    """Final BN-apply + ReLU, lane-dense f32 output."""
    N, HW, CP = y_flat.shape

    def kernel(scale_ref, shift_ref, x_ref, o_ref):
        o_ref[0] = jnp.maximum(
            x_ref[0].astype(jnp.float32) * scale_ref[...] + shift_ref[...],
            0.0).astype(o_ref.dtype)

    grid_spec = pltpu.PrefetchScalarGridSpec(
        num_scalar_prefetch=0,
        grid=(N,),
        in_specs=[
            pl.BlockSpec((1, CP), lambda n: (0, 0)),
            pl.BlockSpec((1, CP), lambda n: (0, 0)),
            pl.BlockSpec((1, HW, CP), lambda n: (n, 0, 0)),
        ],
        out_specs=pl.BlockSpec((1, HW, CP), lambda n: (n, 0, 0)),
    )
    est = 2 * HW * CP * 2 + 2 * HW * CP * 4 + (1 << 20)
    cost = pl.CostEstimate(flops=2 * N * HW * CP, transcendentals=0,
                           bytes_accessed=int(N * HW * CP * 6))

    return pl.pallas_call(
        kernel,
        out_shape=jax.ShapeDtypeStruct((N, HW, CP), jnp.float32),
        grid_spec=grid_spec,
        compiler_params=pltpu.CompilerParams(
            dimension_semantics=("parallel",),
            vmem_limit_bytes=_vmem_limit(est),
        ),
        cost_estimate=cost,
    )(scale, shift, y_flat)


def double_conv_forward(x_nchw, w1_oihw, w2_oihw, g1, b1, g2, b2):
    """Fused DoubleConv forward. x: (N, Cin, H, W) f32 -> (N, Cout, H, W) f32."""
    N, Cin, H, W = x_nchw.shape
    Cmid = w1_oihw.shape[0]
    Cout = w2_oihw.shape[0]
    CP_in = _round_up(Cin, _LANE)
    CP_mid = _round_up(Cmid, _LANE)
    CP_out = _round_up(Cout, _LANE)
    HW = H * W
    count = float(N * H * W)

    # ------- wrapper-side layout glue: NCHW -> flat (N, H*W, CP) bf16 -------
    x = jnp.transpose(x_nchw, (0, 2, 3, 1)).astype(jnp.float32)
    x = jnp.pad(x, ((0, 0), (0, 0), (0, 0), (0, CP_in - Cin)))
    x = x.reshape(N, HW, CP_in).astype(jnp.bfloat16)

    w1 = _pack_w(w1_oihw, CP_in, CP_mid)
    w2 = _pack_w(w2_oihw, CP_mid, CP_out)

    unit_scale = jnp.ones((1, CP_in), jnp.float32)    # unused (apply_act=False)
    zero_shift = jnp.zeros((1, CP_in), jnp.float32)

    # stage 1: conv1 + per-batch partial stats (no preceding BN/ReLU)
    y1, s1 = _conv_stage(x, w1, unit_scale, zero_shift, H=H, W=W, apply_act=False)
    scale1, shift1 = _finalize_bn(s1, g1, b1, Cmid, CP_mid, count)

    # stage 2: BN1-apply + ReLU fused into conv2 + per-batch partial stats
    y2, s2 = _conv_stage(y1, w2, scale1, shift1, H=H, W=W, apply_act=True)
    scale2, shift2 = _finalize_bn(s2, g2, b2, Cout, CP_out, count)

    # stage 3: BN2-apply + ReLU, lane-dense output
    out = _bn_relu_stage(y2, scale2, shift2)

    # TODO(synk): H-row halo tiling (instead of whole-image blocks) for very
    #             large H*W; per-batch-element blocks are fine at UNet sizes.
    out = out.reshape(N, H, W, CP_out)[..., :Cout]
    return jnp.transpose(out, (0, 3, 1, 2))


_double_conv_fwd = jax.jit(double_conv_forward)


class DoubleConvPallas:
    """JAX/Pallas re-implementation of the PyTorch DoubleConv module."""

    def __init__(self, in_channels, out_channels, mid_channels=None, *, key=None):
        if not mid_channels:
            mid_channels = out_channels
        mid_channels = max(1, mid_channels)
        if key is None:
            key = jax.random.PRNGKey(0)
        k1, k2 = jax.random.split(key)

        # PyTorch Conv2d default init: uniform(-1/sqrt(fan_in), 1/sqrt(fan_in)).
        def init_w(k, cout, cin):
            bound = 1.0 / float(jnp.sqrt(jnp.float32(cin * 9)))
            return jax.random.uniform(k, (cout, cin, 3, 3), jnp.float32,
                                      -bound, bound)

        self.w1 = init_w(k1, mid_channels, in_channels)
        self.w2 = init_w(k2, out_channels, mid_channels)
        # BatchNorm affine params (PyTorch default: gamma=1, beta=0)
        self.g1 = jnp.ones((mid_channels,), jnp.float32)
        self.b1 = jnp.zeros((mid_channels,), jnp.float32)
        self.g2 = jnp.ones((out_channels,), jnp.float32)
        self.b2 = jnp.zeros((out_channels,), jnp.float32)

    def __call__(self, x_nchw):
        return _double_conv_fwd(x_nchw, self.w1, self.w2,
                                self.g1, self.b1, self.g2, self.b2)


def _reference_forward(x, w1, w2, g1, b1, g2, b2):
    """Pure-JAX f32 reference (same training-mode BN semantics)."""
    def conv(x, w):
        return lax.conv_general_dilated(
            x, w, window_strides=(1, 1), padding="SAME",
            dimension_numbers=("NCHW", "OIHW", "NCHW"),
            precision=lax.Precision.HIGHEST)

    def bn_relu(y, g, b):
        mean = jnp.mean(y, axis=(0, 2, 3), keepdims=True)
        var = jnp.mean((y - mean) ** 2, axis=(0, 2, 3), keepdims=True)
        y = (y - mean) * lax.rsqrt(var + _EPS)
        y = y * g[None, :, None, None] + b[None, :, None, None]
        return jnp.maximum(y, 0.0)

    y = bn_relu(conv(x, w1), g1, b1)
    return bn_relu(conv(y, w2), g2, b2)


if __name__ == "__main__":
    key = jax.random.PRNGKey(0)
    k_x, k_p = jax.random.split(key)

    N, Cin, H, W = 2, 4, 16, 16
    Cout = 8
    x = jax.random.normal(k_x, (N, Cin, H, W), jnp.float32)

    module = DoubleConvPallas(Cin, Cout, key=k_p)
    out = jax.block_until_ready(module(x))
    assert out.shape == (N, Cout, H, W), out.shape

    ref = _reference_forward(x, module.w1, module.w2,
                             module.g1, module.b1, module.g2, module.b2)
    max_err = float(jnp.max(jnp.abs(out - ref)))
    # Tolerance covers bf16 MXU operands vs. the f32 HIGHEST-precision reference.
    assert max_err < 5e-2, f"max abs error vs reference: {max_err}"

    print("KERNEL_OK")
</pallas_src>

<mosaic_0001>
module attributes {stable_mosaic.version = 11 : i64} {
  func.func @kernel(%arg0: i32, %arg1: memref<1x128xf32, #tpu.memory_space<vmem>>, %arg2: memref<1x128xf32, #tpu.memory_space<vmem>>, %arg3: memref<1x256x128xbf16, #tpu.memory_space<vmem>>, %arg4: memref<9x128x128xbf16, #tpu.memory_space<vmem>>, %arg5: memref<1x256x128xbf16, #tpu.memory_space<vmem>>, %arg6: memref<1x2x128xf32, #tpu.memory_space<vmem>>, %arg7: memref<18x24x128xbf16, #tpu.memory_space<vmem>>) attributes {dimension_semantics = [#tpu.dimension_semantics<parallel>], iteration_bounds = array<i64: 2>, scalar_prefetch = 0 : i64, scratch_operands = 1 : i64, tpu.core_type = #tpu.core_type<tc>, window_params = [{pipeline_mode = #tpu.pipeline_mode<synchronous>, transform_indices = @transform_0, window_bounds = array<i64: 1, 128>}, {pipeline_mode = #tpu.pipeline_mode<synchronous>, transform_indices = @transform_1, window_bounds = array<i64: 1, 128>}, {transform_indices = @transform_2, window_bounds = array<i64: 1, 256, 128>}, {pipeline_mode = #tpu.pipeline_mode<synchronous>, transform_indices = @transform_3, window_bounds = array<i64: 9, 128, 128>}, {transform_indices = @transform_4, window_bounds = array<i64: 1, 256, 128>}, {transform_indices = @transform_5, window_bounds = array<i64: 1, 2, 128>}]} {
    %c0 = arith.constant 0 : index
    %c0_0 = arith.constant 0 : index
    %c0_1 = arith.constant 0 : index
    %0 = vector.load %arg3[%c0, %c0_0, %c0_1] : memref<1x256x128xbf16, #tpu.memory_space<vmem>>, vector<1x256x128xbf16>
    %1 = vector.shape_cast %0 : vector<1x256x128xbf16> to vector<256x128xbf16>
    %cst = arith.constant 0.000000e+00 : bf16
    %2 = vector.broadcast %cst : bf16 to vector<1x24x128xbf16>
    %c0_2 = arith.constant 0 : index
    %c0_3 = arith.constant 0 : index
    %c0_4 = arith.constant 0 : index
    %3 = vector.load %arg7[%c0_2, %c0_3, %c0_4] : memref<18x24x128xbf16, #tpu.memory_space<vmem>>, vector<1x24x128xbf16>
    tpu.vector_store %arg7[%c0_2, %c0_3, %c0_4], %2 {strides = array<i32>} : memref<18x24x128xbf16, #tpu.memory_space<vmem>>, vector<1x24x128xbf16>,
    %c17 = arith.constant 17 : index
    %c0_5 = arith.constant 0 : index
    %c0_6 = arith.constant 0 : index
    %4 = vector.load %arg7[%c17, %c0_5, %c0_6] : memref<18x24x128xbf16, #tpu.memory_space<vmem>>, vector<1x24x128xbf16>
    tpu.vector_store %arg7[%c17, %c0_5, %c0_6], %2 {strides = array<i32>} : memref<18x24x128xbf16, #tpu.memory_space<vmem>>, vector<1x24x128xbf16>,
    %cst_7 = arith.constant 0.000000e+00 : bf16
    %5 = vector.broadcast %cst_7 : bf16 to vector<18x1x128xbf16>
    %c0_8 = arith.constant 0 : index
    %c0_9 = arith.constant 0 : index
    %c0_10 = arith.constant 0 : index
    %6 = vector.load %arg7[%c0_8, %c0_9, %c0_10] : memref<18x24x128xbf16, #tpu.memory_space<vmem>>, vector<18x1x128xbf16>
    tpu.vector_store %arg7[%c0_8, %c0_9, %c0_10], %5 {strides = array<i32>} : memref<18x24x128xbf16, #tpu.memory_space<vmem>>, vector<18x1x128xbf16>,
    %cst_11 = arith.constant 0.000000e+00 : bf16
    %7 = vector.broadcast %cst_11 : bf16 to vector<18x7x128xbf16>
    %c0_12 = arith.constant 0 : index
    %c17_13 = arith.constant 17 : index
    %c0_14 = arith.constant 0 : index
    %8 = vector.load %arg7[%c0_12, %c17_13, %c0_14] : memref<18x24x128xbf16, #tpu.memory_space<vmem>>, vector<18x7x128xbf16>
    tpu.vector_store %arg7[%c0_12, %c17_13, %c0_14], %7 {strides = array<i32>} : memref<18x24x128xbf16, #tpu.memory_space<vmem>>, vector<18x7x128xbf16>,
    %9 = vector.shape_cast %1 : vector<256x128xbf16> to vector<16x16x128xbf16>
    %c1 = arith.constant 1 : index
    %c1_15 = arith.constant 1 : index
    %c0_16 = arith.constant 0 : index
    %10 = vector.load %arg7[%c1, %c1_15, %c0_16] : memref<18x24x128xbf16, #tpu.memory_space<vmem>>, vector<16x16x128xbf16>
    tpu.vector_store %arg7[%c1, %c1_15, %c0_16], %9 {strides = array<i32>} : memref<18x24x128xbf16, #tpu.memory_space<vmem>>, vector<16x16x128xbf16>,
    %cst_17 = arith.constant 0.000000e+00 : f32
    %11 = vector.broadcast %cst_17 : f32 to vector<1x128xf32>
    %cst_18 = arith.constant 0.000000e+00 : f32
    %12 = vector.broadcast %cst_18 : f32 to vector<1x128xf32>
    %cst_19 = arith.constant 0.000000e+00 : f32
    %13 = vector.broadcast %cst_19 : f32 to vector<256x128xf32>
    %c0_20 = arith.constant 0 : index
    %c0_21 = arith.constant 0 : index
    %c0_22 = arith.constant 0 : index
    %14 = vector.load %arg7[%c0_20, %c0_21, %c0_22] : memref<18x24x128xbf16, #tpu.memory_space<vmem>>, vector<16x16x128xbf16>
    %15 = vector.shape_cast %14 : vector<16x16x128xbf16> to vector<256x128xbf16>
    %c0_23 = arith.constant 0 : index
    %c0_24 = arith.constant 0 : index
    %c0_25 = arith.constant 0 : index
    %16 = vector.load %arg4[%c0_23, %c0_24, %c0_25] : memref<9x128x128xbf16, #tpu.memory_space<vmem>>, vector<1x128x128xbf16>
    %17 = vector.shape_cast %16 : vector<1x128x128xbf16> to vector<128x128xbf16>
    %cst_26 = arith.constant dense<0.000000e+00> : vector<256x128xf32>
    %18 = tpu.matmul %15, %17, %cst_26 {dimension_numbers = #tpu.dot_dimension_numbers<[1], [0], [0], [1], [0, 0, 1, 1], [], []>} : vector<256x128xbf16>, vector<128x128xbf16>, vector<256x128xf32> -> vector<256x128xf32>
    %19 = arith.addf %13, %18 : vector<256x128xf32>
    %c0_27 = arith.constant 0 : index
    %c1_28 = arith.constant 1 : index
    %c0_29 = arith.constant 0 : index
    %20 = vector.load %arg7[%c0_27, %c1_28, %c0_29] : memref<18x24x128xbf16, #tpu.memory_space<vmem>>, vector<16x16x128xbf16>
    %21 = vector.shape_cast %20 : vector<16x16x128xbf16> to vector<256x128xbf16>
    %c1_30 = arith.constant 1 : index
    %c0_31 = arith.constant 0 : index
    %c0_32 = arith.constant 0 : index
    %22 = vector.load %arg4[%c1_30, %c0_31, %c0_32] : memref<9x128x128xbf16, #tpu.memory_space<vmem>>, vector<1x128x128xbf16>
    %23 = vector.shape_cast %22 : vector<1x128x128xbf16> to vector<128x128xbf16>
    %cst_33 = arith.constant dense<0.000000e+00> : vector<256x128xf32>
    %24 = tpu.matmul %21, %23, %cst_33 {dimension_numbers = #tpu.dot_dimension_numbers<[1], [0], [0], [1], [0, 0, 1, 1], [], []>} : vector<256x128xbf16>, vector<128x128xbf16>, vector<256x128xf32> -> vector<256x128xf32>
    %25 = arith.addf %19, %24 : vector<256x128xf32>
    %c0_34 = arith.constant 0 : index
    %c2 = arith.constant 2 : index
    %c0_35 = arith.constant 0 : index
    %26 = vector.load %arg7[%c0_34, %c2, %c0_35] : memref<18x24x128xbf16, #tpu.memory_space<vmem>>, vector<16x16x128xbf16>
    %27 = vector.shape_cast %26 : vector<16x16x128xbf16> to vector<256x128xbf16>
    %c2_36 = arith.constant 2 : index
    %c0_37 = arith.constant 0 : index
    %c0_38 = arith.constant 0 : index
    %28 = vector.load %arg4[%c2_36, %c0_37, %c0_38] : memref<9x128x128xbf16, #tpu.memory_space<vmem>>, vector<1x128x128xbf16>
    %29 = vector.shape_cast %28 : vector<1x128x128xbf16> to vector<128x128xbf16>
    %cst_39 = arith.constant dense<0.000000e+00> : vector<256x128xf32>
    %30 = tpu.matmul %27, %29, %cst_39 {dimension_numbers = #tpu.dot_dimension_numbers<[1], [0], [0], [1], [0, 0, 1, 1], [], []>} : vector<256x128xbf16>, vector<128x128xbf16>, vector<256x128xf32> -> vector<256x128xf32>
    %31 = arith.addf %25, %30 : vector<256x128xf32>
    %c1_40 = arith.constant 1 : index
    %c0_41 = arith.constant 0 : index
    %c0_42 = arith.constant 0 : index
    %32 = vector.load %arg7[%c1_40, %c0_41, %c0_42] : memref<18x24x128xbf16, #tpu.memory_space<vmem>>, vector<16x16x128xbf16>
    %33 = vector.shape_cast %32 : vector<16x16x128xbf16> to vector<256x128xbf16>
    %c3 = arith.constant 3 : index
    %c0_43 = arith.constant 0 : index
    %c0_44 = arith.constant 0 : index
    %34 = vector.load %arg4[%c3, %c0_43, %c0_44] : memref<9x128x128xbf16, #tpu.memory_space<vmem>>, vector<1x128x128xbf16>
    %35 = vector.shape_cast %34 : vector<1x128x128xbf16> to vector<128x128xbf16>
    %cst_45 = arith.constant dense<0.000000e+00> : vector<256x128xf32>
    %36 = tpu.matmul %33, %35, %cst_45 {dimension_numbers = #tpu.dot_dimension_numbers<[1], [0], [0], [1], [0, 0, 1, 1], [], []>} : vector<256x128xbf16>, vector<128x128xbf16>, vector<256x128xf32> -> vector<256x128xf32>
    %37 = arith.addf %31, %36 : vector<256x128xf32>
    %c1_46 = arith.constant 1 : index
    %c1_47 = arith.constant 1 : index
    %c0_48 = arith.constant 0 : index
    %38 = vector.load %arg7[%c1_46, %c1_47, %c0_48] : memref<18x24x128xbf16, #tpu.memory_space<vmem>>, vector<16x16x128xbf16>
    %39 = vector.shape_cast %38 : vector<16x16x128xbf16> to vector<256x128xbf16>
    %c4 = arith.constant 4 : index
    %c0_49 = arith.constant 0 : index
    %c0_50 = arith.constant 0 : index
    %40 = vector.load %arg4[%c4, %c0_49, %c0_50] : memref<9x128x128xbf16, #tpu.memory_space<vmem>>, vector<1x128x128xbf16>
    %41 = vector.shape_cast %40 : vector<1x128x128xbf16> to vector<128x128xbf16>
    %cst_51 = arith.constant dense<0.000000e+00> : vector<256x128xf32>
    %42 = tpu.matmul %39, %41, %cst_51 {dimension_numbers = #tpu.dot_dimension_numbers<[1], [0], [0], [1], [0, 0, 1, 1], [], []>} : vector<256x128xbf16>, vector<128x128xbf16>, vector<256x128xf32> -> vector<256x128xf32>
    %43 = arith.addf %37, %42 : vector<256x128xf32>
    %c1_52 = arith.constant 1 : index
    %c2_53 = arith.constant 2 : index
    %c0_54 = arith.constant 0 : index
    %44 = vector.load %arg7[%c1_52, %c2_53, %c0_54] : memref<18x24x128xbf16, #tpu.memory_space<vmem>>, vector<16x16x128xbf16>
    %45 = vector.shape_cast %44 : vector<16x16x128xbf16> to vector<256x128xbf16>
    %c5 = arith.constant 5 : index
    %c0_55 = arith.constant 0 : index
    %c0_56 = arith.constant 0 : index
    %46 = vector.load %arg4[%c5, %c0_55, %c0_56] : memref<9x128x128xbf16, #tpu.memory_space<vmem>>, vector<1x128x128xbf16>
    %47 = vector.shape_cast %46 : vector<1x128x128xbf16> to vector<128x128xbf16>
    %cst_57 = arith.constant dense<0.000000e+00> : vector<256x128xf32>
    %48 = tpu.matmul %45, %47, %cst_57 {dimension_numbers = #tpu.dot_dimension_numbers<[1], [0], [0], [1], [0, 0, 1, 1], [], []>} : vector<256x128xbf16>, vector<128x128xbf16>, vector<256x128xf32> -> vector<256x128xf32>
    %49 = arith.addf %43, %48 : vector<256x128xf32>
    %c2_58 = arith.constant 2 : index
    %c0_59 = arith.constant 0 : index
    %c0_60 = arith.constant 0 : index
    %50 = vector.load %arg7[%c2_58, %c0_59, %c0_60] : memref<18x24x128xbf16, #tpu.memory_space<vmem>>, vector<16x16x128xbf16>
    %51 = vector.shape_cast %50 : vector<16x16x128xbf16> to vector<256x128xbf16>
    %c6 = arith.constant 6 : index
    %c0_61 = arith.constant 0 : index
    %c0_62 = arith.constant 0 : index
    %52 = vector.load %arg4[%c6, %c0_61, %c0_62] : memref<9x128x128xbf16, #tpu.memory_space<vmem>>, vector<1x128x128xbf16>
    %53 = vector.shape_cast %52 : vector<1x128x128xbf16> to vector<128x128xbf16>
    %cst_63 = arith.constant dense<0.000000e+00> : vector<256x128xf32>
    %54 = tpu.matmul %51, %53, %cst_63 {dimension_numbers = #tpu.dot_dimension_numbers<[1], [0], [0], [1], [0, 0, 1, 1], [], []>} : vector<256x128xbf16>, vector<128x128xbf16>, vector<256x128xf32> -> vector<256x128xf32>
    %55 = arith.addf %49, %54 : vector<256x128xf32>
    %c2_64 = arith.constant 2 : index
    %c1_65 = arith.constant 1 : index
    %c0_66 = arith.constant 0 : index
    %56 = vector.load %arg7[%c2_64, %c1_65, %c0_66] : memref<18x24x128xbf16, #tpu.memory_space<vmem>>, vector<16x16x128xbf16>
    %57 = vector.shape_cast %56 : vector<16x16x128xbf16> to vector<256x128xbf16>
    %c7 = arith.constant 7 : index
    %c0_67 = arith.constant 0 : index
    %c0_68 = arith.constant 0 : index
    %58 = vector.load %arg4[%c7, %c0_67, %c0_68] : memref<9x128x128xbf16, #tpu.memory_space<vmem>>, vector<1x128x128xbf16>
    %59 = vector.shape_cast %58 : vector<1x128x128xbf16> to vector<128x128xbf16>
    %cst_69 = arith.constant dense<0.000000e+00> : vector<256x128xf32>
    %60 = tpu.matmul %57, %59, %cst_69 {dimension_numbers = #tpu.dot_dimension_numbers<[1], [0], [0], [1], [0, 0, 1, 1], [], []>} : vector<256x128xbf16>, vector<128x128xbf16>, vector<256x128xf32> -> vector<256x128xf32>
    %61 = arith.addf %55, %60 : vector<256x128xf32>
    %c2_70 = arith.constant 2 : index
    %c2_71 = arith.constant 2 : index
    %c0_72 = arith.constant 0 : index
    %62 = vector.load %arg7[%c2_70, %c2_71, %c0_72] : memref<18x24x128xbf16, #tpu.memory_space<vmem>>, vector<16x16x128xbf16>
    %63 = vector.shape_cast %62 : vector<16x16x128xbf16> to vector<256x128xbf16>
    %c8 = arith.constant 8 : index
    %c0_73 = arith.constant 0 : index
    %c0_74 = arith.constant 0 : index
    %64 = vector.load %arg4[%c8, %c0_73, %c0_74] : memref<9x128x128xbf16, #tpu.memory_space<vmem>>, vector<1x128x128xbf16>
    %65 = vector.shape_cast %64 : vector<1x128x128xbf16> to vector<128x128xbf16>
    %cst_75 = arith.constant dense<0.000000e+00> : vector<256x128xf32>
    %66 = tpu.matmul %63, %65, %cst_75 {dimension_numbers = #tpu.dot_dimension_numbers<[1], [0], [0], [1], [0, 0, 1, 1], [], []>} : vector<256x128xbf16>, vector<128x128xbf16>, vector<256x128xf32> -> vector<256x128xf32>
    %67 = arith.addf %61, %66 : vector<256x128xf32>
    %68 = arith.truncf %67 : vector<256x128xf32> to vector<256x128xbf16>
    %c0_76 = arith.constant 0 : index
    %c0_77 = arith.constant 0 : index
    %c0_78 = arith.constant 0 : index
    %69 = vector.load %arg5[%c0_76, %c0_77, %c0_78] : memref<1x256x128xbf16, #tpu.memory_space<vmem>>, vector<1x256x128xbf16>
    %70 = vector.shape_cast %69 : vector<1x256x128xbf16> to vector<256x128xbf16>
    %71 = vector.shape_cast %68 : vector<256x128xbf16> to vector<1x256x128xbf16>
    tpu.vector_store %arg5[%c0_76, %c0_77, %c0_78], %71 {strides = array<i32>} : memref<1x256x128xbf16, #tpu.memory_space<vmem>>, vector<1x256x128xbf16>,
    %cst_79 = arith.constant dense<0.000000e+00> : vector<128xf32>
    %72 = vector.multi_reduction <add>, %67, %cst_79 [0] : vector<256x128xf32> to vector<128xf32>
    %73 = vector.shape_cast %72 : vector<128xf32> to vector<1x128xf32>
    %74 = arith.addf %11, %73 : vector<1x128xf32>
    %75 = arith.mulf %67, %67 : vector<256x128xf32>
    %cst_80 = arith.constant dense<0.000000e+00> : vector<128xf32>
    %76 = vector.multi_reduction <add>, %75, %cst_80 [0] : vector<256x128xf32> to vector<128xf32>
    %77 = vector.shape_cast %76 : vector<128xf32> to vector<1x128xf32>
    %78 = arith.addf %12, %77 : vector<1x128xf32>
    %c0_81 = arith.constant 0 : index
    %c0_82 = arith.constant 0 : index
    %c0_83 = arith.constant 0 : index
    %79 = vector.load %arg6[%c0_81, %c0_82, %c0_83] : memref<1x2x128xf32, #tpu.memory_space<vmem>>, vector<1x1x128xf32>
    %80 = vector.shape_cast %79 : vector<1x1x128xf32> to vector<1x128xf32>
    %81 = vector.shape_cast %74 : vector<1x128xf32> to vector<1x1x128xf32>
    tpu.vector_store %arg6[%c0_81, %c0_82, %c0_83], %81 {strides = array<i32>} : memref<1x2x128xf32, #tpu.memory_space<vmem>>, vector<1x1x128xf32>,
    %c0_84 = arith.constant 0 : index
    %c1_85 = arith.constant 1 : index
    %c0_86 = arith.constant 0 : index
    %82 = vector.load %arg6[%c0_84, %c1_85, %c0_86] : memref<1x2x128xf32, #tpu.memory_space<vmem>>, vector<1x1x128xf32>
    %83 = vector.shape_cast %82 : vector<1x1x128xf32> to vector<1x128xf32>
    %84 = vector.shape_cast %78 : vector<1x128xf32> to vector<1x1x128xf32>
    tpu.vector_store %arg6[%c0_84, %c1_85, %c0_86], %84 {strides = array<i32>} : memref<1x2x128xf32, #tpu.memory_space<vmem>>, vector<1x1x128xf32>,
    return
  }
  func.func @transform_0(%arg0: i32) -> (i32, i32) {
    %c0_i32 = arith.constant 0 : i32
    %c0_i32_0 = arith.constant 0 : i32
    %c0_i32_1 = arith.constant 0 : i32
    return %c0_i32, %c0_i32_0 : i32, i32
  }
  func.func @transform_1(%arg0: i32) -> (i32, i32) {
    %c0_i32 = arith.constant 0 : i32
    %c0_i32_0 = arith.constant 0 : i32
    %c0_i32_1 = arith.constant 0 : i32
    return %c0_i32, %c0_i32_0 : i32, i32
  }
  func.func @transform_2(%arg0: i32) -> (i32, i32, i32) {
    %c0_i32 = arith.constant 0 : i32
    %c0_i32_0 = arith.constant 0 : i32
    %c0_i32_1 = arith.constant 0 : i32
    return %arg0, %c0_i32, %c0_i32_0 : i32, i32, i32
  }
  func.func @transform_3(%arg0: i32) -> (i32, i32, i32) {
    %c0_i32 = arith.constant 0 : i32
    %c0_i32_0 = arith.constant 0 : i32
    %c0_i32_1 = arith.constant 0 : i32
    %c0_i32_2 = arith.constant 0 : i32
    return %c0_i32, %c0_i32_0, %c0_i32_1 : i32, i32, i32
  }
  func.func @transform_4(%arg0: i32) -> (i32, i32, i32) {
    %c0_i32 = arith.constant 0 : i32
    %c0_i32_0 = arith.constant 0 : i32
    %c0_i32_1 = arith.constant 0 : i32
    return %arg0, %c0_i32, %c0_i32_0 : i32, i32, i32
  }
  func.func @transform_5(%arg0: i32) -> (i32, i32, i32) {
    %c0_i32 = arith.constant 0 : i32
    %c0_i32_0 = arith.constant 0 : i32
    %c0_i32_1 = arith.constant 0 : i32
    return %arg0, %c0_i32, %c0_i32_0 : i32, i32, i32
  }
}

module attributes {stable_mosaic.version = 11 : i64} {
  func.func @kernel(%arg0: i32, %arg1: memref<1x128xf32, #tpu.memory_space<vmem>>, %arg2: memref<1x128xf32, #tpu.memory_space<vmem>>, %arg3: memref<1x256x128xbf16, #tpu.memory_space<vmem>>, %arg4: memref<1x256x128xf32, #tpu.memory_space<vmem>>) attributes {dimension_semantics = [#tpu.dimension_semantics<parallel>], iteration_bounds = array<i64: 2>, scalar_prefetch = 0 : i64, scratch_operands = 0 : i64, tpu.core_type = #tpu.core_type<tc>, window_params = [{pipeline_mode = #tpu.pipeline_mode<synchronous>, transform_indices = @transform_0, window_bounds = array<i64: 1, 128>}, {pipeline_mode = #tpu.pipeline_mode<synchronous>, transform_indices = @transform_1, window_bounds = array<i64: 1, 128>}, {transform_indices = @transform_2, window_bounds = array<i64: 1, 256, 128>}, {transform_indices = @transform_3, window_bounds = array<i64: 1, 256, 128>}]} {
    %c0 = arith.constant 0 : index
    %c0_0 = arith.constant 0 : index
    %c0_1 = arith.constant 0 : index
    %0 = vector.load %arg3[%c0, %c0_0, %c0_1] : memref<1x256x128xbf16, #tpu.memory_space<vmem>>, vector<1x256x128xbf16>
    %1 = vector.shape_cast %0 : vector<1x256x128xbf16> to vector<256x128xbf16>
    %2 = arith.extf %1 : vector<256x128xbf16> to vector<256x128xf32>
    %c0_2 = arith.constant 0 : index
    %c0_3 = arith.constant 0 : index
    %3 = vector.load %arg1[%c0_2, %c0_3] : memref<1x128xf32, #tpu.memory_space<vmem>>, vector<1x128xf32>
    %4 = vector.broadcast %3 : vector<1x128xf32> to vector<256x128xf32>
    %5 = arith.mulf %2, %4 : vector<256x128xf32>
    %c0_4 = arith.constant 0 : index
    %c0_5 = arith.constant 0 : index
    %6 = vector.load %arg2[%c0_4, %c0_5] : memref<1x128xf32, #tpu.memory_space<vmem>>, vector<1x128xf32>
    %7 = vector.broadcast %6 : vector<1x128xf32> to vector<256x128xf32>
    %8 = arith.addf %5, %7 : vector<256x128xf32>
    %cst = arith.constant 0.000000e+00 : f32
    %9 = vector.broadcast %cst : f32 to vector<256x128xf32>
    %10 = arith.maximumf %8, %9 : vector<256x128xf32>
    %c0_6 = arith.constant 0 : index
    %c0_7 = arith.constant 0 : index
    %c0_8 = arith.constant 0 : index
    %11 = vector.load %arg4[%c0_6, %c0_7, %c0_8] : memref<1x256x128xf32, #tpu.memory_space<vmem>>, vector<1x256x128xf32>
    %12 = vector.shape_cast %11 : vector<1x256x128xf32> to vector<256x128xf32>
    %13 = vector.shape_cast %10 : vector<256x128xf32> to vector<1x256x128xf32>
    tpu.vector_store %arg4[%c0_6, %c0_7, %c0_8], %13 {strides = array<i32>} : memref<1x256x128xf32, #tpu.memory_space<vmem>>, vector<1x256x128xf32>,
    return
  }
  func.func @transform_0(%arg0: i32) -> (i32, i32) {
    %c0_i32 = arith.constant 0 : i32
    %c0_i32_0 = arith.constant 0 : i32
    %c0_i32_1 = arith.constant 0 : i32
    return %c0_i32, %c0_i32_0 : i32, i32
  }
  func.func @transform_1(%arg0: i32) -> (i32, i32) {
    %c0_i32 = arith.constant 0 : i32
    %c0_i32_0 = arith.constant 0 : i32
    %c0_i32_1 = arith.constant 0 : i32
    return %c0_i32, %c0_i32_0 : i32, i32
  }
  func.func @transform_2(%arg0: i32) -> (i32, i32, i32) {
    %c0_i32 = arith.constant 0 : i32
    %c0_i32_0 = arith.constant 0 : i32
    %c0_i32_1 = arith.constant 0 : i32
    return %arg0, %c0_i32, %c0_i32_0 : i32, i32, i32
  }
  func.func @transform_3(%arg0: i32) -> (i32, i32, i32) {
    %c0_i32 = arith.constant 0 : i32
    %c0_i32_0 = arith.constant 0 : i32
    %c0_i32_1 = arith.constant 0 : i32
    return %arg0, %c0_i32, %c0_i32_0 : i32, i32, i32
  }
}

module attributes {stable_mosaic.version = 11 : i64} {
  func.func @kernel(%arg0: i32, %arg1: memref<1x128xf32, #tpu.memory_space<vmem>>, %arg2: memref<1x128xf32, #tpu.memory_space<vmem>>, %arg3: memref<1x256x128xbf16, #tpu.memory_space<vmem>>, %arg4: memref<9x128x128xbf16, #tpu.memory_space<vmem>>, %arg5: memref<1x256x128xbf16, #tpu.memory_space<vmem>>, %arg6: memref<1x2x128xf32, #tpu.memory_space<vmem>>, %arg7: memref<18x24x128xbf16, #tpu.memory_space<vmem>>) attributes {dimension_semantics = [#tpu.dimension_semantics<parallel>], iteration_bounds = array<i64: 2>, scalar_prefetch = 0 : i64, scratch_operands = 1 : i64, tpu.core_type = #tpu.core_type<tc>, window_params = [{pipeline_mode = #tpu.pipeline_mode<synchronous>, transform_indices = @transform_0, window_bounds = array<i64: 1, 128>}, {pipeline_mode = #tpu.pipeline_mode<synchronous>, transform_indices = @transform_1, window_bounds = array<i64: 1, 128>}, {transform_indices = @transform_2, window_bounds = array<i64: 1, 256, 128>}, {pipeline_mode = #tpu.pipeline_mode<synchronous>, transform_indices = @transform_3, window_bounds = array<i64: 9, 128, 128>}, {transform_indices = @transform_4, window_bounds = array<i64: 1, 256, 128>}, {transform_indices = @transform_5, window_bounds = array<i64: 1, 2, 128>}]} {
    %c0 = arith.constant 0 : index
    %c0_0 = arith.constant 0 : index
    %c0_1 = arith.constant 0 : index
    %0 = vector.load %arg3[%c0, %c0_0, %c0_1] : memref<1x256x128xbf16, #tpu.memory_space<vmem>>, vector<1x256x128xbf16>
    %1 = vector.shape_cast %0 : vector<1x256x128xbf16> to vector<256x128xbf16>
    %2 = arith.extf %1 : vector<256x128xbf16> to vector<256x128xf32>
    %c0_2 = arith.constant 0 : index
    %c0_3 = arith.constant 0 : index
    %3 = vector.load %arg1[%c0_2, %c0_3] : memref<1x128xf32, #tpu.memory_space<vmem>>, vector<1x128xf32>
    %4 = vector.broadcast %3 : vector<1x128xf32> to vector<256x128xf32>
    %5 = arith.mulf %2, %4 : vector<256x128xf32>
    %c0_4 = arith.constant 0 : index
    %c0_5 = arith.constant 0 : index
    %6 = vector.load %arg2[%c0_4, %c0_5] : memref<1x128xf32, #tpu.memory_space<vmem>>, vector<1x128xf32>
    %7 = vector.broadcast %6 : vector<1x128xf32> to vector<256x128xf32>
    %8 = arith.addf %5, %7 : vector<256x128xf32>
    %cst = arith.constant 0.000000e+00 : f32
    %9 = vector.broadcast %cst : f32 to vector<256x128xf32>
    %10 = arith.maximumf %8, %9 : vector<256x128xf32>
    %11 = arith.truncf %10 : vector<256x128xf32> to vector<256x128xbf16>
    %cst_6 = arith.constant 0.000000e+00 : bf16
    %12 = vector.broadcast %cst_6 : bf16 to vector<1x24x128xbf16>
    %c0_7 = arith.constant 0 : index
    %c0_8 = arith.constant 0 : index
    %c0_9 = arith.constant 0 : index
    %13 = vector.load %arg7[%c0_7, %c0_8, %c0_9] : memref<18x24x128xbf16, #tpu.memory_space<vmem>>, vector<1x24x128xbf16>
    tpu.vector_store %arg7[%c0_7, %c0_8, %c0_9], %12 {strides = array<i32>} : memref<18x24x128xbf16, #tpu.memory_space<vmem>>, vector<1x24x128xbf16>,
    %c17 = arith.constant 17 : index
    %c0_10 = arith.constant 0 : index
    %c0_11 = arith.constant 0 : index
    %14 = vector.load %arg7[%c17, %c0_10, %c0_11] : memref<18x24x128xbf16, #tpu.memory_space<vmem>>, vector<1x24x128xbf16>
    tpu.vector_store %arg7[%c17, %c0_10, %c0_11], %12 {strides = array<i32>} : memref<18x24x128xbf16, #tpu.memory_space<vmem>>, vector<1x24x128xbf16>,
    %cst_12 = arith.constant 0.000000e+00 : bf16
    %15 = vector.broadcast %cst_12 : bf16 to vector<18x1x128xbf16>
    %c0_13 = arith.constant 0 : index
    %c0_14 = arith.constant 0 : index
    %c0_15 = arith.constant 0 : index
    %16 = vector.load %arg7[%c0_13, %c0_14, %c0_15] : memref<18x24x128xbf16, #tpu.memory_space<vmem>>, vector<18x1x128xbf16>
    tpu.vector_store %arg7[%c0_13, %c0_14, %c0_15], %15 {strides = array<i32>} : memref<18x24x128xbf16, #tpu.memory_space<vmem>>, vector<18x1x128xbf16>,
    %cst_16 = arith.constant 0.000000e+00 : bf16
    %17 = vector.broadcast %cst_16 : bf16 to vector<18x7x128xbf16>
    %c0_17 = arith.constant 0 : index
    %c17_18 = arith.constant 17 : index
    %c0_19 = arith.constant 0 : index
    %18 = vector.load %arg7[%c0_17, %c17_18, %c0_19] : memref<18x24x128xbf16, #tpu.memory_space<vmem>>, vector<18x7x128xbf16>
    tpu.vector_store %arg7[%c0_17, %c17_18, %c0_19], %17 {strides = array<i32>} : memref<18x24x128xbf16, #tpu.memory_space<vmem>>, vector<18x7x128xbf16>,
    %19 = vector.shape_cast %11 : vector<256x128xbf16> to vector<16x16x128xbf16>
    %c1 = arith.constant 1 : index
    %c1_20 = arith.constant 1 : index
    %c0_21 = arith.constant 0 : index
    %20 = vector.load %arg7[%c1, %c1_20, %c0_21] : memref<18x24x128xbf16, #tpu.memory_space<vmem>>, vector<16x16x128xbf16>
    tpu.vector_store %arg7[%c1, %c1_20, %c0_21], %19 {strides = array<i32>} : memref<18x24x128xbf16, #tpu.memory_space<vmem>>, vector<16x16x128xbf16>,
    %cst_22 = arith.constant 0.000000e+00 : f32
    %21 = vector.broadcast %cst_22 : f32 to vector<1x128xf32>
    %cst_23 = arith.constant 0.000000e+00 : f32
    %22 = vector.broadcast %cst_23 : f32 to vector<1x128xf32>
    %cst_24 = arith.constant 0.000000e+00 : f32
    %23 = vector.broadcast %cst_24 : f32 to vector<256x128xf32>
    %c0_25 = arith.constant 0 : index
    %c0_26 = arith.constant 0 : index
    %c0_27 = arith.constant 0 : index
    %24 = vector.load %arg7[%c0_25, %c0_26, %c0_27] : memref<18x24x128xbf16, #tpu.memory_space<vmem>>, vector<16x16x128xbf16>
    %25 = vector.shape_cast %24 : vector<16x16x128xbf16> to vector<256x128xbf16>
    %c0_28 = arith.constant 0 : index
    %c0_29 = arith.constant 0 : index
    %c0_30 = arith.constant 0 : index
    %26 = vector.load %arg4[%c0_28, %c0_29, %c0_30] : memref<9x128x128xbf16, #tpu.memory_space<vmem>>, vector<1x128x128xbf16>
    %27 = vector.shape_cast %26 : vector<1x128x128xbf16> to vector<128x128xbf16>
    %cst_31 = arith.constant dense<0.000000e+00> : vector<256x128xf32>
    %28 = tpu.matmul %25, %27, %cst_31 {dimension_numbers = #tpu.dot_dimension_numbers<[1], [0], [0], [1], [0, 0, 1, 1], [], []>} : vector<256x128xbf16>, vector<128x128xbf16>, vector<256x128xf32> -> vector<256x128xf32>
    %29 = arith.addf %23, %28 : vector<256x128xf32>
    %c0_32 = arith.constant 0 : index
    %c1_33 = arith.constant 1 : index
    %c0_34 = arith.constant 0 : index
    %30 = vector.load %arg7[%c0_32, %c1_33, %c0_34] : memref<18x24x128xbf16, #tpu.memory_space<vmem>>, vector<16x16x128xbf16>
    %31 = vector.shape_cast %30 : vector<16x16x128xbf16> to vector<256x128xbf16>
    %c1_35 = arith.constant 1 : index
    %c0_36 = arith.constant 0 : index
    %c0_37 = arith.constant 0 : index
    %32 = vector.load %arg4[%c1_35, %c0_36, %c0_37] : memref<9x128x128xbf16, #tpu.memory_space<vmem>>, vector<1x128x128xbf16>
    %33 = vector.shape_cast %32 : vector<1x128x128xbf16> to vector<128x128xbf16>
    %cst_38 = arith.constant dense<0.000000e+00> : vector<256x128xf32>
    %34 = tpu.matmul %31, %33, %cst_38 {dimension_numbers = #tpu.dot_dimension_numbers<[1], [0], [0], [1], [0, 0, 1, 1], [], []>} : vector<256x128xbf16>, vector<128x128xbf16>, vector<256x128xf32> -> vector<256x128xf32>
    %35 = arith.addf %29, %34 : vector<256x128xf32>
    %c0_39 = arith.constant 0 : index
    %c2 = arith.constant 2 : index
    %c0_40 = arith.constant 0 : index
    %36 = vector.load %arg7[%c0_39, %c2, %c0_40] : memref<18x24x128xbf16, #tpu.memory_space<vmem>>, vector<16x16x128xbf16>
    %37 = vector.shape_cast %36 : vector<16x16x128xbf16> to vector<256x128xbf16>
    %c2_41 = arith.constant 2 : index
    %c0_42 = arith.constant 0 : index
    %c0_43 = arith.constant 0 : index
    %38 = vector.load %arg4[%c2_41, %c0_42, %c0_43] : memref<9x128x128xbf16, #tpu.memory_space<vmem>>, vector<1x128x128xbf16>
    %39 = vector.shape_cast %38 : vector<1x128x128xbf16> to vector<128x128xbf16>
    %cst_44 = arith.constant dense<0.000000e+00> : vector<256x128xf32>
    %40 = tpu.matmul %37, %39, %cst_44 {dimension_numbers = #tpu.dot_dimension_numbers<[1], [0], [0], [1], [0, 0, 1, 1], [], []>} : vector<256x128xbf16>, vector<128x128xbf16>, vector<256x128xf32> -> vector<256x128xf32>
    %41 = arith.addf %35, %40 : vector<256x128xf32>
    %c1_45 = arith.constant 1 : index
    %c0_46 = arith.constant 0 : index
    %c0_47 = arith.constant 0 : index
    %42 = vector.load %arg7[%c1_45, %c0_46, %c0_47] : memref<18x24x128xbf16, #tpu.memory_space<vmem>>, vector<16x16x128xbf16>
    %43 = vector.shape_cast %42 : vector<16x16x128xbf16> to vector<256x128xbf16>
    %c3 = arith.constant 3 : index
    %c0_48 = arith.constant 0 : index
    %c0_49 = arith.constant 0 : index
    %44 = vector.load %arg4[%c3, %c0_48, %c0_49] : memref<9x128x128xbf16, #tpu.memory_space<vmem>>, vector<1x128x128xbf16>
    %45 = vector.shape_cast %44 : vector<1x128x128xbf16> to vector<128x128xbf16>
    %cst_50 = arith.constant dense<0.000000e+00> : vector<256x128xf32>
    %46 = tpu.matmul %43, %45, %cst_50 {dimension_numbers = #tpu.dot_dimension_numbers<[1], [0], [0], [1], [0, 0, 1, 1], [], []>} : vector<256x128xbf16>, vector<128x128xbf16>, vector<256x128xf32> -> vector<256x128xf32>
    %47 = arith.addf %41, %46 : vector<256x128xf32>
    %c1_51 = arith.constant 1 : index
    %c1_52 = arith.constant 1 : index
    %c0_53 = arith.constant 0 : index
    %48 = vector.load %arg7[%c1_51, %c1_52, %c0_53] : memref<18x24x128xbf16, #tpu.memory_space<vmem>>, vector<16x16x128xbf16>
    %49 = vector.shape_cast %48 : vector<16x16x128xbf16> to vector<256x128xbf16>
    %c4 = arith.constant 4 : index
    %c0_54 = arith.constant 0 : index
    %c0_55 = arith.constant 0 : index
    %50 = vector.load %arg4[%c4, %c0_54, %c0_55] : memref<9x128x128xbf16, #tpu.memory_space<vmem>>, vector<1x128x128xbf16>
    %51 = vector.shape_cast %50 : vector<1x128x128xbf16> to vector<128x128xbf16>
    %cst_56 = arith.constant dense<0.000000e+00> : vector<256x128xf32>
    %52 = tpu.matmul %49, %51, %cst_56 {dimension_numbers = #tpu.dot_dimension_numbers<[1], [0], [0], [1], [0, 0, 1, 1], [], []>} : vector<256x128xbf16>, vector<128x128xbf16>, vector<256x128xf32> -> vector<256x128xf32>
    %53 = arith.addf %47, %52 : vector<256x128xf32>
    %c1_57 = arith.constant 1 : index
    %c2_58 = arith.constant 2 : index
    %c0_59 = arith.constant 0 : index
    %54 = vector.load %arg7[%c1_57, %c2_58, %c0_59] : memref<18x24x128xbf16, #tpu.memory_space<vmem>>, vector<16x16x128xbf16>
    %55 = vector.shape_cast %54 : vector<16x16x128xbf16> to vector<256x128xbf16>
    %c5 = arith.constant 5 : index
    %c0_60 = arith.constant 0 : index
    %c0_61 = arith.constant 0 : index
    %56 = vector.load %arg4[%c5, %c0_60, %c0_61] : memref<9x128x128xbf16, #tpu.memory_space<vmem>>, vector<1x128x128xbf16>
    %57 = vector.shape_cast %56 : vector<1x128x128xbf16> to vector<128x128xbf16>
    %cst_62 = arith.constant dense<0.000000e+00> : vector<256x128xf32>
    %58 = tpu.matmul %55, %57, %cst_62 {dimension_numbers = #tpu.dot_dimension_numbers<[1], [0], [0], [1], [0, 0, 1, 1], [], []>} : vector<256x128xbf16>, vector<128x128xbf16>, vector<256x128xf32> -> vector<256x128xf32>
    %59 = arith.addf %53, %58 : vector<256x128xf32>
    %c2_63 = arith.constant 2 : index
    %c0_64 = arith.constant 0 : index
    %c0_65 = arith.constant 0 : index
    %60 = vector.load %arg7[%c2_63, %c0_64, %c0_65] : memref<18x24x128xbf16, #tpu.memory_space<vmem>>, vector<16x16x128xbf16>
    %61 = vector.shape_cast %60 : vector<16x16x128xbf16> to vector<256x128xbf16>
    %c6 = arith.constant 6 : index
    %c0_66 = arith.constant 0 : index
    %c0_67 = arith.constant 0 : index
    %62 = vector.load %arg4[%c6, %c0_66, %c0_67] : memref<9x128x128xbf16, #tpu.memory_space<vmem>>, vector<1x128x128xbf16>
    %63 = vector.shape_cast %62 : vector<1x128x128xbf16> to vector<128x128xbf16>
    %cst_68 = arith.constant dense<0.000000e+00> : vector<256x128xf32>
    %64 = tpu.matmul %61, %63, %cst_68 {dimension_numbers = #tpu.dot_dimension_numbers<[1], [0], [0], [1], [0, 0, 1, 1], [], []>} : vector<256x128xbf16>, vector<128x128xbf16>, vector<256x128xf32> -> vector<256x128xf32>
    %65 = arith.addf %59, %64 : vector<256x128xf32>
    %c2_69 = arith.constant 2 : index
    %c1_70 = arith.constant 1 : index
    %c0_71 = arith.constant 0 : index
    %66 = vector.load %arg7[%c2_69, %c1_70, %c0_71] : memref<18x24x128xbf16, #tpu.memory_space<vmem>>, vector<16x16x128xbf16>
    %67 = vector.shape_cast %66 : vector<16x16x128xbf16> to vector<256x128xbf16>
    %c7 = arith.constant 7 : index
    %c0_72 = arith.constant 0 : index
    %c0_73 = arith.constant 0 : index
    %68 = vector.load %arg4[%c7, %c0_72, %c0_73] : memref<9x128x128xbf16, #tpu.memory_space<vmem>>, vector<1x128x128xbf16>
    %69 = vector.shape_cast %68 : vector<1x128x128xbf16> to vector<128x128xbf16>
    %cst_74 = arith.constant dense<0.000000e+00> : vector<256x128xf32>
    %70 = tpu.matmul %67, %69, %cst_74 {dimension_numbers = #tpu.dot_dimension_numbers<[1], [0], [0], [1], [0, 0, 1, 1], [], []>} : vector<256x128xbf16>, vector<128x128xbf16>, vector<256x128xf32> -> vector<256x128xf32>
    %71 = arith.addf %65, %70 : vector<256x128xf32>
    %c2_75 = arith.constant 2 : index
    %c2_76 = arith.constant 2 : index
    %c0_77 = arith.constant 0 : index
    %72 = vector.load %arg7[%c2_75, %c2_76, %c0_77] : memref<18x24x128xbf16, #tpu.memory_space<vmem>>, vector<16x16x128xbf16>
    %73 = vector.shape_cast %72 : vector<16x16x128xbf16> to vector<256x128xbf16>
    %c8 = arith.constant 8 : index
    %c0_78 = arith.constant 0 : index
    %c0_79 = arith.constant 0 : index
    %74 = vector.load %arg4[%c8, %c0_78, %c0_79] : memref<9x128x128xbf16, #tpu.memory_space<vmem>>, vector<1x128x128xbf16>
    %75 = vector.shape_cast %74 : vector<1x128x128xbf16> to vector<128x128xbf16>
    %cst_80 = arith.constant dense<0.000000e+00> : vector<256x128xf32>
    %76 = tpu.matmul %73, %75, %cst_80 {dimension_numbers = #tpu.dot_dimension_numbers<[1], [0], [0], [1], [0, 0, 1, 1], [], []>} : vector<256x128xbf16>, vector<128x128xbf16>, vector<256x128xf32> -> vector<256x128xf32>
    %77 = arith.addf %71, %76 : vector<256x128xf32>
    %78 = arith.truncf %77 : vector<256x128xf32> to vector<256x128xbf16>
    %c0_81 = arith.constant 0 : index
    %c0_82 = arith.constant 0 : index
    %c0_83 = arith.constant 0 : index
    %79 = vector.load %arg5[%c0_81, %c0_82, %c0_83] : memref<1x256x128xbf16, #tpu.memory_space<vmem>>, vector<1x256x128xbf16>
    %80 = vector.shape_cast %79 : vector<1x256x128xbf16> to vector<256x128xbf16>
    %81 = vector.shape_cast %78 : vector<256x128xbf16> to vector<1x256x128xbf16>
    tpu.vector_store %arg5[%c0_81, %c0_82, %c0_83], %81 {strides = array<i32>} : memref<1x256x128xbf16, #tpu.memory_space<vmem>>, vector<1x256x128xbf16>,
    %cst_84 = arith.constant dense<0.000000e+00> : vector<128xf32>
    %82 = vector.multi_reduction <add>, %77, %cst_84 [0] : vector<256x128xf32> to vector<128xf32>
    %83 = vector.shape_cast %82 : vector<128xf32> to vector<1x128xf32>
    %84 = arith.addf %21, %83 : vector<1x128xf32>
    %85 = arith.mulf %77, %77 : vector<256x128xf32>
    %cst_85 = arith.constant dense<0.000000e+00> : vector<128xf32>
    %86 = vector.multi_reduction <add>, %85, %cst_85 [0] : vector<256x128xf32> to vector<128xf32>
    %87 = vector.shape_cast %86 : vector<128xf32> to vector<1x128xf32>
    %88 = arith.addf %22, %87 : vector<1x128xf32>
    %c0_86 = arith.constant 0 : index
    %c0_87 = arith.constant 0 : index
    %c0_88 = arith.constant 0 : index
    %89 = vector.load %arg6[%c0_86, %c0_87, %c0_88] : memref<1x2x128xf32, #tpu.memory_space<vmem>>, vector<1x1x128xf32>
    %90 = vector.shape_cast %89 : vector<1x1x128xf32> to vector<1x128xf32>
    %91 = vector.shape_cast %84 : vector<1x128xf32> to vector<1x1x128xf32>
    tpu.vector_store %arg6[%c0_86, %c0_87, %c0_88], %91 {strides = array<i32>} : memref<1x2x128xf32, #tpu.memory_space<vmem>>, vector<1x1x128xf32>,
    %c0_89 = arith.constant 0 : index
    %c1_90 = arith.constant 1 : index
    %c0_91 = arith.constant 0 : index
    %92 = vector.load %arg6[%c0_89, %c1_90, %c0_91] : memref<1x2x128xf32, #tpu.memory_space<vmem>>, vector<1x1x128xf32>
    %93 = vector.shape_cast %92 : vector<1x1x128xf32> to vector<1x128xf32>
    %94 = vector.shape_cast %88 : vector<1x128xf32> to vector<1x1x128xf32>
    tpu.vector_store %arg6[%c0_89, %c1_90, %c0_91], %94 {strides = array<i32>} : memref<1x2x128xf32, #tpu.memory_space<vmem>>, vector<1x1x128xf32>,
    return
  }
  func.func @transform_0(%arg0: i32) -> (i32, i32) {
    %c0_i32 = arith.constant 0 : i32
    %c0_i32_0 = arith.constant 0 : i32
    %c0_i32_1 = arith.constant 0 : i32
    return %c0_i32, %c0_i32_0 : i32, i32
  }
  func.func @transform_1(%arg0: i32) -> (i32, i32) {
    %c0_i32 = arith.constant 0 : i32
    %c0_i32_0 = arith.constant 0 : i32
    %c0_i32_1 = arith.constant 0 : i32
    return %c0_i32, %c0_i32_0 : i32, i32
  }
  func.func @transform_2(%arg0: i32) -> (i32, i32, i32) {
    %c0_i32 = arith.constant 0 : i32
    %c0_i32_0 = arith.constant 0 : i32
    %c0_i32_1 = arith.constant 0 : i32
    return %arg0, %c0_i32, %c0_i32_0 : i32, i32, i32
  }
  func.func @transform_3(%arg0: i32) -> (i32, i32, i32) {
    %c0_i32 = arith.constant 0 : i32
    %c0_i32_0 = arith.constant 0 : i32
    %c0_i32_1 = arith.constant 0 : i32
    %c0_i32_2 = arith.constant 0 : i32
    return %c0_i32, %c0_i32_0, %c0_i32_1 : i32, i32, i32
  }
  func.func @transform_4(%arg0: i32) -> (i32, i32, i32) {
    %c0_i32 = arith.constant 0 : i32
    %c0_i32_0 = arith.constant 0 : i32
    %c0_i32_1 = arith.constant 0 : i32
    return %arg0, %c0_i32, %c0_i32_0 : i32, i32, i32
  }
  func.func @transform_5(%arg0: i32) -> (i32, i32, i32) {
    %c0_i32 = arith.constant 0 : i32
    %c0_i32_0 = arith.constant 0 : i32
    %c0_i32_1 = arith.constant 0 : i32
    return %arg0, %c0_i32, %c0_i32_0 : i32, i32, i32
  }
}

</mosaic_0001>

<bundles_post_ra>
// kernel: double_conv_forward.5
= control target key start
LH: loop header
LB: loop body
LE: loop exit
PB: predicated region body
PF: predicated region fallthrough
CT: control target
= control target key end

     0   :  { %s562_s12 = smov 0   ;;  %s709_s0 = inlined_call_operand.vmem [shape: f32[1,128], index: 0, kind: input, shape index: {}]   ;;  %s710_s1 = inlined_call_operand.vmem [shape: f32[1,128], index: 1, kind: input, shape index: {}]   ;;  %s711_s2 = inlined_call_operand.vmem [shape: bf16[2,256,128], index: 2, kind: input, shape index: {}]   ;;  %s712_s3 = inlined_call_operand.vmem [shape: f32[2,256,128], index: 3, kind: output, shape index: {}]  }
   0x1 LB: > { %s432_s13 = sadd.s32 4294967295, %s540_s12   ;;  %p436_p0 = scmp.ge.s32.totalorder %s540_s12, 1  ;;  %s540_s12 = sphi %s562_s12, %s13_s12  }
   0x2   : > { %p137_p1 = scmp.lt.s32.totalorder %s540_s12, 3 }
   0x4   : > { %p138_p2 = pnand %p436_p0, %p137_p1 }
   0x5   : > { %p161_p3 = scmp.lt.s32.totalorder (!%p138_p2), %s432_s13, 1 }
   0x6   : > { %141 = sbr.rel (%p138_p2) target bundleno = 51 (0x33), region = 32 }
   0xb   : > { %s714_s13 = smov (!%p161_p3, %s432_s13), 1  ;;  %v581_v0 = vld [vmem:[%s709_s0] ss:$0 sm:$0xff] }
   0xc   : > { %s445_s14 = sshll.u32 %s714_s13, 7  ;;  %v590_v9 = vld [vmem:[%s710_s1] ss:$0 sm:$0xff]  ;;  %s446_s22 = sshll.u32 %s714_s13, 8 }
   0xd   : > { %s576_s17 = scalar_lea.vmem %s711_s2, %s445_s14  ;;  %s608_s25 = scalar_lea.vmem %s712_s3, %s446_s22 }
   0xe   : > { %v448_v1 = vld [vmem:[%s576_s17] sm:$0xff]   ;;  %v511_v2 = vld [vmem:[%s576_s17 + $0x8] sm:$0xff]   ;;  %v512_v3 = vld [vmem:[%s576_s17 + $0x10] sm:$0xff]  }
   0xf   : > { %v449_v4 = vunpack.c.l.bf16 %v448_v1  ;;  %v450_v5 = vunpack.c.h.bf16 %v448_v1  ;;  %v453_v6 = vunpack.c.l.bf16 %v511_v2  ;;  %v454_v7 = vunpack.c.h.bf16 %v511_v2  ;;  %v513_v8 = vld [vmem:[%s576_s17 + $0x18] sm:$0xff]   ;;  %v514_v30 = vld [vmem:[%s576_s17 + $0x20] sm:$0xff]   ;;  %v515_v31 = vld [vmem:[%s576_s17 + $0x28] sm:$0xff]  }
  0x10   : > { %v457_v10 = vunpack.c.l.bf16 %v512_v3  ;;  %v458_v11 = vunpack.c.h.bf16 %v512_v3  ;;  %v461_v12 = vunpack.c.l.bf16 %v513_v8  ;;  %v462_v13 = vunpack.c.h.bf16 %v513_v8  ;;  %v516_v36 = vld [vmem:[%s576_s17 + $0x30] sm:$0xff]   ;;  %v517_v37 = vld [vmem:[%s576_s17 + $0x38] sm:$0xff]   ;;  %v518_v3 = vld [vmem:[%s576_s17 + $0x40] sm:$0xff]  }
  0x11   : > { %v242_v14 = vmul.f32 %v449_v4, %v581_v0  ;;  %v243_v15 = vmul.f32 %v450_v5, %v581_v0  ;;  %v244_v16 = vmul.f32 %v453_v6, %v581_v0  ;;  %v245_v17 = vmul.f32 %v454_v7, %v581_v0  ;;  %v519_v4 = vld [vmem:[%s576_s17 + $0x48] sm:$0xff]  }
  0x12   : > { %v246_v18 = vmul.f32 %v457_v10, %v581_v0  ;;  %v247_v19 = vmul.f32 %v458_v11, %v581_v0  ;;  %v248_v20 = vmul.f32 %v461_v12, %v581_v0  ;;  %v249_v21 = vmul.f32 %v462_v13, %v581_v0  ;;  %v520_v10 = vld [vmem:[%s576_s17 + $0x50] sm:$0xff]   ;;  %v521_v11 = vld [vmem:[%s576_s17 + $0x58] sm:$0xff]  }
  0x13   : > { %v281_v22 = vadd.f32 %v590_v9, %v242_v14  ;;  %v282_v23 = vadd.f32 %v590_v9, %v243_v15  ;;  %v283_v24 = vadd.f32 %v590_v9, %v244_v16  ;;  %v284_v25 = vadd.f32 %v590_v9, %v245_v17 }
  0x14   : > { %v285_v26 = vadd.f32 %v590_v9, %v246_v18  ;;  %v286_v27 = vadd.f32 %v590_v9, %v247_v19  ;;  %v287_v28 = vadd.f32 %v590_v9, %v248_v20  ;;  %v288_v29 = vadd.f32 %v590_v9, %v249_v21 }
  0x15   : > { %v313_v32 = vmax.f32 %v281_v22, 0.0  ;;  %v314_v33 = vmax.f32 %v282_v23, 0.0  ;;  %v315_v34 = vmax.f32 %v283_v24, 0.0  ;;  %v316_v35 = vmax.f32 %v284_v25, 0.0 }
  0x16   : > { %v317_v38 = vmax.f32 %v285_v26, 0.0  ;;  %v318_v39 = vmax.f32 %v286_v27, 0.0  ;;  %v319_v40 = vmax.f32 %v287_v28, 0.0  ;;  %v320_v41 = vmax.f32 %v288_v29, 0.0 }
  0x17   : > { %345 = vst [vmem:[%s608_s25] sm:$0xff] %v313_v32  ;;  %346 = vst [vmem:[%s608_s25 + $0x8] sm:$0xff] %v314_v33  ;;  %v465_v42 = vunpack.c.l.bf16 %v514_v30  ;;  %v466_v43 = vunpack.c.h.bf16 %v514_v30  ;;  %v469_v44 = vunpack.c.l.bf16 %v515_v31  ;;  %v470_v45 = vunpack.c.h.bf16 %v515_v31 }
  0x18   : > { %347 = vst [vmem:[%s608_s25 + $0x10] sm:$0xff] %v315_v34  ;;  %348 = vst [vmem:[%s608_s25 + $0x18] sm:$0xff] %v316_v35  ;;  %v473_v46 = vunpack.c.l.bf16 %v516_v36  ;;  %v474_v47 = vunpack.c.h.bf16 %v516_v36  ;;  %v477_v48 = vunpack.c.l.bf16 %v517_v37  ;;  %v478_v49 = vunpack.c.h.bf16 %v517_v37 }
  0x19   : > { %349 = vst [vmem:[%s608_s25 + $0x20] sm:$0xff] %v317_v38  ;;  %350 = vst [vmem:[%s608_s25 + $0x28] sm:$0xff] %v318_v39  ;;  %v250_v50 = vmul.f32 %v465_v42, %v581_v0  ;;  %v251_v51 = vmul.f32 %v466_v43, %v581_v0  ;;  %v252_v52 = vmul.f32 %v469_v44, %v581_v0  ;;  %v481_v16 = vunpack.c.l.bf16 %v518_v3 }
  0x1a   : > { %351 = vst [vmem:[%s608_s25 + $0x30] sm:$0xff] %v319_v40  ;;  %352 = vst [vmem:[%s608_s25 + $0x38] sm:$0xff] %v320_v41  ;;  %v253_v53 = vmul.f32 %v470_v45, %v581_v0  ;;  %v254_v54 = vmul.f32 %v473_v46, %v581_v0  ;;  %v255_v55 = vmul.f32 %v474_v47, %v581_v0  ;;  %v482_v17 = vunpack.c.h.bf16 %v518_v3  ;;  %v522_v40 = vld [vmem:[%s576_s17 + $0x60] sm:$0xff]   ;;  %v523_v41 = vld [vmem:[%s576_s17 + $0x68] sm:$0xff]  }
  0x1b   : > { %v256_v56 = vmul.f32 %v477_v48, %v581_v0  ;;  %v257_v57 = vmul.f32 %v478_v49, %v581_v0  ;;  %v289_v58 = vadd.f32 %v590_v9, %v250_v50  ;;  %v290_v59 = vadd.f32 %v590_v9, %v251_v51  ;;  %v524_v46 = vld [vmem:[%s576_s17 + $0x70] sm:$0xff]   ;;  %v525_v47 = vld [vmem:[%s576_s17 + $0x78] sm:$0xff]  }
  0x1c   : > { %v291_v60 = vadd.f32 %v590_v9, %v252_v52  ;;  %v292_v61 = vadd.f32 %v590_v9, %v253_v53  ;;  %v293_v62 = vadd.f32 %v590_v9, %v254_v54  ;;  %v294_v63 = vadd.f32 %v590_v9, %v255_v55 }
  0x1d   : > { %v295_v1 = vadd.f32 %v590_v9, %v256_v56  ;;  %v296_v2 = vadd.f32 %v590_v9, %v257_v57  ;;  %v321_v5 = vmax.f32 %v289_v58, 0.0  ;;  %v322_v6 = vmax.f32 %v290_v59, 0.0 }
  0x1e   : > { %v323_v7 = vmax.f32 %v291_v60, 0.0  ;;  %v324_v8 = vmax.f32 %v292_v61, 0.0  ;;  %v325_v12 = vmax.f32 %v293_v62, 0.0  ;;  %v326_v13 = vmax.f32 %v294_v63, 0.0 }
  0x1f   : > { %v327_v14 = vmax.f32 %v295_v1, 0.0  ;;  %v328_v15 = vmax.f32 %v296_v2, 0.0  ;;  %353 = vst [vmem:[%s608_s25 + $0x40] sm:$0xff] %v321_v5  ;;  %354 = vst [vmem:[%s608_s25 + $0x48] sm:$0xff] %v322_v6  ;;  %v485_v18 = vunpack.c.l.bf16 %v519_v4  ;;  %v486_v19 = vunpack.c.h.bf16 %v519_v4 }
  0x20   : > { %355 = vst [vmem:[%s608_s25 + $0x50] sm:$0xff] %v323_v7  ;;  %356 = vst [vmem:[%s608_s25 + $0x58] sm:$0xff] %v324_v8  ;;  %v489_v20 = vunpack.c.l.bf16 %v520_v10  ;;  %v490_v21 = vunpack.c.h.bf16 %v520_v10  ;;  %v493_v22 = vunpack.c.l.bf16 %v521_v11  ;;  %v494_v23 = vunpack.c.h.bf16 %v521_v11 }
  0x21   : > { %357 = vst [vmem:[%s608_s25 + $0x60] sm:$0xff] %v325_v12  ;;  %358 = vst [vmem:[%s608_s25 + $0x68] sm:$0xff] %v326_v13  ;;  %v258_v24 = vmul.f32 %v481_v16, %v581_v0  ;;  %v259_v25 = vmul.f32 %v482_v17, %v581_v0  ;;  %v260_v26 = vmul.f32 %v485_v18, %v581_v0  ;;  %v497_v52 = vunpack.c.l.bf16 %v522_v40 }
  0x22   : > { %359 = vst [vmem:[%s608_s25 + $0x70] sm:$0xff] %v327_v14  ;;  %360 = vst [vmem:[%s608_s25 + $0x78] sm:$0xff] %v328_v15  ;;  %v261_v27 = vmul.f32 %v486_v19, %v581_v0  ;;  %v262_v28 = vmul.f32 %v489_v20, %v581_v0  ;;  %v263_v29 = vmul.f32 %v490_v21, %v581_v0  ;;  %v498_v53 = vunpack.c.h.bf16 %v522_v40 }
  0x23   : > { %v264_v30 = vmul.f32 %v493_v22, %v581_v0  ;;  %v265_v31 = vmul.f32 %v494_v23, %v581_v0  ;;  %v297_v32 = vadd.f32 %v590_v9, %v258_v24  ;;  %v298_v33 = vadd.f32 %v590_v9, %v259_v25 }
  0x24   : > { %v299_v34 = vadd.f32 %v590_v9, %v260_v26  ;;  %v300_v35 = vadd.f32 %v590_v9, %v261_v27  ;;  %v301_v36 = vadd.f32 %v590_v9, %v262_v28  ;;  %v302_v37 = vadd.f32 %v590_v9, %v263_v29 }
  0x25   : > { %v303_v38 = vadd.f32 %v590_v9, %v264_v30  ;;  %v304_v39 = vadd.f32 %v590_v9, %v265_v31  ;;  %v329_v42 = vmax.f32 %v297_v32, 0.0  ;;  %v330_v43 = vmax.f32 %v298_v33, 0.0 }
  0x26   : > { %v331_v44 = vmax.f32 %v299_v34, 0.0  ;;  %v332_v45 = vmax.f32 %v300_v35, 0.0  ;;  %v333_v48 = vmax.f32 %v301_v36, 0.0  ;;  %v334_v49 = vmax.f32 %v302_v37, 0.0 }
  0x27   : > { %v335_v50 = vmax.f32 %v303_v38, 0.0  ;;  %v336_v51 = vmax.f32 %v304_v39, 0.0  ;;  %361 = vst [vmem:[%s608_s25 + $0x80] sm:$0xff] %v329_v42  ;;  %362 = vst [vmem:[%s608_s25 + $0x88] sm:$0xff] %v330_v43  ;;  %v501_v54 = vunpack.c.l.bf16 %v523_v41  ;;  %v502_v55 = vunpack.c.h.bf16 %v523_v41 }
  0x28   : > { %363 = vst [vmem:[%s608_s25 + $0x90] sm:$0xff] %v331_v44  ;;  %364 = vst [vmem:[%s608_s25 + $0x98] sm:$0xff] %v332_v45  ;;  %v505_v56 = vunpack.c.l.bf16 %v524_v46  ;;  %v506_v57 = vunpack.c.h.bf16 %v524_v46  ;;  %v509_v58 = vunpack.c.l.bf16 %v525_v47  ;;  %v510_v59 = vunpack.c.h.bf16 %v525_v47 }
  0x29   : > { %365 = vst [vmem:[%s608_s25 + $0xa0] sm:$0xff] %v333_v48  ;;  %366 = vst [vmem:[%s608_s25 + $0xa8] sm:$0xff] %v334_v49  ;;  %v266_v60 = vmul.f32 %v497_v52, %v581_v0  ;;  %v267_v61 = vmul.f32 %v498_v53, %v581_v0  ;;  %v268_v62 = vmul.f32 %v501_v54, %v581_v0 }
  0x2a   : > { %367 = vst [vmem:[%s608_s25 + $0xb0] sm:$0xff] %v335_v50  ;;  %368 = vst [vmem:[%s608_s25 + $0xb8] sm:$0xff] %v336_v51  ;;  %v269_v63 = vmul.f32 %v502_v55, %v581_v0  ;;  %v270_v1 = vmul.f32 %v505_v56, %v581_v0  ;;  %v271_v2 = vmul.f32 %v506_v57, %v581_v0 }
  0x2b   : > { %v272_v3 = vmul.f32 %v509_v58, %v581_v0  ;;  %v273_v4 = vmul.f32 %v510_v59, %v581_v0  ;;  %v305_v5 = vadd.f32 %v590_v9, %v266_v60  ;;  %v306_v6 = vadd.f32 %v590_v9, %v267_v61 }
  0x2c   : > { %v307_v7 = vadd.f32 %v590_v9, %v268_v62  ;;  %v308_v8 = vadd.f32 %v590_v9, %v269_v63  ;;  %v309_v10 = vadd.f32 %v590_v9, %v270_v1  ;;  %v310_v11 = vadd.f32 %v590_v9, %v271_v2 }
  0x2d   : > { %v311_v0 = vadd.f32 %v590_v9, %v272_v3  ;;  %v312_v12 = vadd.f32 %v590_v9, %v273_v4  ;;  %v337_v13 = vmax.f32 %v305_v5, 0.0  ;;  %v338_v14 = vmax.f32 %v306_v6, 0.0 }
  0x2e   : > { %v339_v15 = vmax.f32 %v307_v7, 0.0  ;;  %v340_v16 = vmax.f32 %v308_v8, 0.0  ;;  %v341_v17 = vmax.f32 %v309_v10, 0.0  ;;  %v342_v18 = vmax.f32 %v310_v11, 0.0 }
  0x2f   : > { %v343_v19 = vmax.f32 %v311_v0, 0.0  ;;  %v344_v20 = vmax.f32 %v312_v12, 0.0  ;;  %369 = vst [vmem:[%s608_s25 + $0xc0] sm:$0xff] %v337_v13  ;;  %370 = vst [vmem:[%s608_s25 + $0xc8] sm:$0xff] %v338_v14 }
  0x30   : > { %371 = vst [vmem:[%s608_s25 + $0xd0] sm:$0xff] %v339_v15  ;;  %372 = vst [vmem:[%s608_s25 + $0xd8] sm:$0xff] %v340_v16 }
  0x31   : > { %373 = vst [vmem:[%s608_s25 + $0xe0] sm:$0xff] %v341_v17  ;;  %374 = vst [vmem:[%s608_s25 + $0xe8] sm:$0xff] %v342_v18 }
  0x32   : > { %375 = vst [vmem:[%s608_s25 + $0xf0] sm:$0xff] %v343_v19  ;;  %376 = vst [vmem:[%s608_s25 + $0xf8] sm:$0xff] %v344_v20 }
  0x33 PF: > { %s13_s12 = sadd.s32 1, %s540_s12  }
  0x34   : > { %p10_p4 = scmp.ge.s32.totalorder %s13_s12, 4  }
  0x36   :  { %12 = sbr.rel (!%p10_p4) target bundleno = 1 (0x1), region = 62 }

// kernel: double_conv_forward.3
= control target key start
LH: loop header
LB: loop body
LE: loop exit
PB: predicated region body
PF: predicated region fallthrough
CT: control target
= control target key end

     0   :  { %s7409_s18 = smov 0   ;;  %s10178_s0 = inlined_call_operand.vmem [shape: f32[1,128], index: 0, kind: input, shape index: {}]   ;;  %s10179_s1 = inlined_call_operand.vmem [shape: f32[1,128], index: 1, kind: input, shape index: {}]   ;;  %s10180_s2 = inlined_call_operand.vmem [shape: bf16[2,256,128], index: 2, kind: input, shape index: {}]   ;;  %s10181_s3 = inlined_call_operand.vmem [shape: bf16[9,128,128], index: 3, kind: input, shape index: {}]   ;;  %s10182_s4 = inlined_call_operand.vmem [shape: bf16[2,256,128], index: 4, kind: output, shape index: {0}]   ;;  %s10183_s5 = inlined_call_operand.vmem [shape: f32[2,2,128], index: 5, kind: output, shape index: {1}]  }
   0x1 LB: > { %s5989_s0 = sadd.s32 4294967295, %s7376_s18   ;;  %p5993_p0 = scmp.ge.s32.totalorder %s7376_s18, 1  ;;  %s7376_s18 = sphi %s7409_s18, %s16_s18  }
   0x2   : > { %p190_p1 = scmp.lt.s32.totalorder %s7376_s18, 3 }
   0x4   : > { %p191_p2 = pnand %p5993_p0, %p190_p1 }
   0x6   : > { %194 = sbr.rel (%p191_p2) target bundleno = 655 (0x28f), region = 36 }
   0xb   : > { %v7227_v0 = vld [vmem:[%s10181_s3 + $0x78] sm:$0xff]   ;;  %v7228_v1 = vld [vmem:[%s10181_s3 + $0x70] sm:$0xff]   ;;  %v7378_v2 = vmov 0   ;;  %p222_p3 = scmp.lt.s32.totalorder %s5989_s0, 1  ;;  %v7229_v3 = vld [vmem:[%s10181_s3 + $0x68] sm:$0xff]   ;;  %vm276_vm0 = vcmask 1040384  }
   0xc   : > { %269 = vst [vmem:[#allocation2] sm:$0xf] %v7378_v2  ;;  %270 = vst [vmem:[#allocation2 + $0x4] sm:$0xf] %v7378_v2  ;;  %6770 = vmatprep.subr.bf16.mxu0 %v7227_v0  ;;  %7202 = vmatprep.subr.bf16.mxu1 %v7227_v0  ;;  %vm333_vm1 = vcmask 1043456   ;;  %v7230_v4 = vld [vmem:[%s10181_s3 + $0x60] sm:$0xff]  }
   0xd   : > { %271 = vst [vmem:[#allocation2 + $0x8] sm:$0xf] %v7378_v2  ;;  %273 = vst [vmem:[#allocation2 + $0xcc] sm:$0xf] %v7378_v2  ;;  %6771 = vmatpush3.bf16.msra.mxu0 %v7227_v0  ;;  %7210 = vmatpush3.bf16.msra.mxu1 %v7227_v0  ;;  %s10471_s0 = smov (!%p222_p3, %s5989_s0), 1  ;;  %v10222_v6 = vmov 0 }
   0xe   : > { %274 = vst [vmem:[#allocation2 + $0xd0] sm:$0xf] %v7378_v2  ;;  %275 = vst [vmem:[#allocation2 + $0xd4] sm:$0xf] %v7378_v2  ;;  %6772 = vmatprep.subr.bf16.mxu0 %v7228_v1  ;;  %7203 = vmatprep.subr.bf16.mxu1 %v7228_v1  ;;  %s6425_s26 = sshll.u32 %s10471_s0, 7  ;;  %v10225_v10 = vmov 0 }
   0xf   : > { %vm277_vm2 = vsmask.f32 256  ;;  %vm334_vm3 = vsmask.f32 7938  ;;  %s7437_s29 = scalar_lea.vmem %s10180_s2, %s6425_s26  ;;  %vm889_vm6 = vsmask.f32 3328  ;;  %s10074_s30 = scalar_lea.vmem %s10182_s4, %s6425_s26 }
  0x10   : > { %vm7440_vm4 = vmand %vm276_vm0, %vm277_vm2  ;;  %vm890_vm7 = vsmask.f32 7440  ;;  %v7231_v13 = vld [vmem:[%s10181_s3 + $0x58] sm:$0xff]   ;;  %v303_v19 = vld [vmem:[#allocation2 + $0x60] sm:$0x1]  ;;  %v10228_v39 = vmov 0 }
  0x11   : > { %6773 = vmatpush3.bf16.msra.mxu0 %v7228_v1  ;;  %7211 = vmatpush3.bf16.msra.mxu1 %v7228_v1  ;;  %v10223_v6 = vsel %vm7440_vm4, 4294967295, %v10222_v6  ;;  %vm7447_vm5 = vmand %vm333_vm1, %vm334_vm3  ;;  %v251_v15 = vld [vmem:[%s7437_s29 + $0x38] sm:$0xf]  ;;  %v252_v16 = vld [vmem:[%s7437_s29 + $0x3c] sm:$0xf]  ;;  %v304_v21 = vsel %vm7440_vm4, 0, %v303_v19 }
  0x12   : > { %6774 = vmatprep.subr.bf16.mxu0 %v7229_v3  ;;  %7204 = vmatprep.subr.bf16.mxu1 %v7229_v3  ;;  %10224 = vst [vmem:[#allocation3_spill] sm:$0xff] %v10223_v6  ;;  %v10226_v10 = vsel %vm7447_vm5, 4294967295, %v10225_v10  ;;  %v360_v20 = vld [vmem:[#allocation2 + $0x68] sm:$0xf]  ;;  %vm390_vm8 = vsmask.f32 4368  ;;  %vm7494_vm10 = vmor %vm889_vm6, %vm890_vm7 }
  0x13   : > { %v279_v5 = vld [vmem:[#allocation2] sm:$0x1]  ;;  %v826_v8 = vld [vmem:[#allocation2 + $0x4] sm:$0xf]  ;;  %10227 = vst [vmem:[#allocation4_spill] sm:$0xff] %v10226_v10  ;;  %v361_v22 = vsel %vm7447_vm5, 0, %v360_v20  ;;  %vm7476_vm9 = vmor %vm277_vm2, %vm390_vm8 }
  0x14   : > { %v336_v7 = vld [vmem:[#allocation2 + $0x8] sm:$0xf]  ;;  %v280_v9 = vsel %vm7440_vm4, 0, %v279_v5  ;;  %v902_v11 = vshll.u32 %v826_v8, 16  ;;  %v906_v12 = vshrl.u32 %v826_v8, 16  ;;  %v512_v23 = vshrl.u32 %v251_v15, 16 }
  0x15   : > { %6775 = vmatpush3.bf16.msra.mxu0 %v7229_v3  ;;  %7212 = vmatpush3.bf16.msra.mxu1 %v7229_v3  ;;  %281 = vst [vmem:[#allocation2] sm:$0x1] %v280_v9  ;;  %v337_v14 = vsel %vm7447_vm5, 0, %v336_v7  ;;  %v7232_v24 = vld [vmem:[%s10181_s3 + $0x50] sm:$0xff]   ;;  %305 = vst [vmem:[#allocation2 + $0x60] sm:$0x1] %v304_v21 }
  0x16   : > { %6776 = vmatprep.subr.bf16.mxu0 %v7230_v4  ;;  %7205 = vmatprep.subr.bf16.mxu1 %v7230_v4  ;;  %338 = vst [vmem:[#allocation2 + $0x8] sm:$0xf] %v337_v14  ;;  %v7458_v17 = vrot.slane %v902_v11, 5  ;;  %v908_v18 = vrot.slane %v906_v12, 4  ;;  %362 = vst [vmem:[#allocation2 + $0x68] sm:$0xf] %v361_v22 }
  0x17   : > { %v515_v26 = vshll.u32 %v251_v15, 16  ;;  %v520_v27 = vshrl.u32 %v252_v16, 16  ;;  %v523_v28 = vshll.u32 %v252_v16, 16  ;;  %v237_v29 = vld [vmem:[%s7437_s29] sm:$0xf]  ;;  %v514_v30 = vrot.slane %v512_v23, 7 }
  0x18   : > { %v909_v25 = vor.u32 %v908_v18, %v7458_v17  ;;  %v238_v31 = vld [vmem:[%s7437_s29 + $0x4] sm:$0xf]  ;;  %v282_v32 = vld [vmem:[#allocation2 + $0xc] sm:$0x1]  ;;  %v393_v33 = vshrl.u32 %v237_v29, 16  ;;  %v396_v38 = vshll.u32 %v237_v29, 16 }
  0x19   : > { %6777 = vmatpush3.bf16.msra.mxu0 %v7230_v4  ;;  %7213 = vmatpush3.bf16.msra.mxu1 %v7230_v4  ;;  %v522_v35 = vrot.slane %v520_v27, 7  ;;  %v283_v36 = vsel %vm7440_vm4, 0, %v282_v32  ;;  %v339_v37 = vld [vmem:[#allocation2 + $0x14] sm:$0xf]  ;;  %v10229_v39 = vsel %vm7476_vm9, 4294967295, %v10228_v39  ;;  %v517_v40 = vor.u32 %v515_v26, %v514_v30  ;;  %v7233_v53 = vld [vmem:[%s10181_s3 + $0x48] sm:$0xff]  }
  0x1a   : > { %6778 = vmatprep.subr.bf16.mxu0 %v7231_v13  ;;  %7206 = vmatprep.subr.bf16.mxu1 %v7231_v13  ;;  %v7470_v34 = vrot.slane %v909_v25, 4  ;;  %10230 = vst [vmem:[#allocation5_spill] sm:$0xff] %v10229_v39  ;;  %v518_v41 = vrot.slane %v514_v30, 4  ;;  %284 = vst [vmem:[#allocation2 + $0xc] sm:$0x1] %v283_v36  ;;  %v340_v42 = vsel %vm7447_vm5, 0, %v339_v37 }
  0x1b   : > { %v395_v43 = vrot.slane %v393_v33, 7  ;;  %v525_v45 = vor.u32 %v523_v28, %v522_v35  ;;  %v527_v46 = vrot.slane %v522_v35, 4  ;;  %341 = vst [vmem:[#allocation2 + $0x14] sm:$0xf] %v340_v42  ;;  %v401_v47 = vshrl.u32 %v238_v31, 16  ;;  %v7234_v8 = vld [vmem:[%s10181_s3 + $0x40] sm:$0xff]  }
  0x1c   : > { %v825_v44 = vld [vmem:[#allocation2] sm:$0xf]  ;;  %v404_v48 = vshll.u32 %v238_v31, 16  ;;  %v254_v58 = vld [vmem:[%s7437_s29 + $0x44] sm:$0xf]  ;;  %v7524_v29 = vld [vmem:[%s10181_s3 + $0x38] sm:$0xff]  }
  0x1d   : > { %6779 = vmatpush3.bf16.msra.mxu0 %v7231_v13  ;;  %7214 = vmatpush3.bf16.msra.mxu1 %v7231_v13  ;;  %v7482_v49 = vld [vmem:[#allocation2 + $0x8] sm:$0x1]  ;;  %v893_v50 = vshrl.u32 %v825_v44, 16  ;;  %v896_v51 = vshll.u32 %v825_v44, 16  ;;  %v253_v52 = vld [vmem:[%s7437_s29 + $0x40] sm:$0xf]  ;;  %v526_v55 = vsel %vm7476_vm9, %v518_v41, %v525_v45  ;;  %v398_v0 = vor.u32 %v396_v38, %v395_v43 }
  0x1e   : > { %6780 = vmatprep.subr.bf16.mxu0 %v7232_v24  ;;  %7207 = vmatprep.subr.bf16.mxu1 %v7232_v24  ;;  %v912_v54 = vshll.u32 %v7482_v49, 16  ;;  %v399_v56 = vrot.slane %v395_v43, 4  ;;  %v403_v57 = vrot.slane %v401_v47, 7  ;;  %v762_v62 = vld [vmem:[#allocation2 + $0x60] sm:$0xf]  ;;  %v529_v18 = vshrl.u32 %v253_v52, 16 }
  0x1f   : > { %v895_v60 = vrot.slane %v893_v50, 4  ;;  %v898_v61 = vrot.slane %v896_v51, 5  ;;  %765 = vst [vmem:[#allocation2 + $0x64] sm:$0xf] %v526_v55  ;;  %v766_v63 = vld [vmem:[#allocation2 + $0x68] sm:$0x1]  ;;  %v763_v2 = vsel %vm7447_vm5, %v517_v40, %v762_v62 }
  0x20   : > { %v914_v1 = vrot.slane %v912_v54, 5  ;;  %v767_v3 = vsel %vm7440_vm4, %v527_v46, %v766_v63  ;;  %v406_v4 = vor.u32 %v404_v48, %v403_v57  ;;  %v306_v5 = vld [vmem:[#allocation2 + $0x6c] sm:$0x1]  ;;  %v363_v7 = vld [vmem:[#allocation2 + $0x74] sm:$0xf]  ;;  %v408_v11 = vrot.slane %v403_v57, 4 }
  0x21   : > { %6781 = vmatpush3.bf16.msra.mxu0 %v7232_v24  ;;  %7215 = vmatpush3.bf16.msra.mxu1 %v7232_v24  ;;  %v899_v9 = vor.u32 %v898_v61, %v895_v60  ;;  %764 = vst [vmem:[#allocation2 + $0x60] sm:$0xf] %v763_v2  ;;  %768 = vst [vmem:[#allocation2 + $0x68] sm:$0x1] %v767_v3  ;;  %v307_v12 = vsel %vm7440_vm4, 0, %v306_v5  ;;  %v364_v13 = vsel %vm7447_vm5, 0, %v363_v7 }
  0x22   : > { %6782 = vmatprep.subr.bf16.mxu0 %v7233_v53  ;;  %7208 = vmatprep.subr.bf16.mxu1 %v7233_v53  ;;  %v915_v14 = vsel %vm7494_vm10, %v7470_v34, %v914_v1  ;;  %v407_v15 = vsel %vm7476_vm9, %v399_v56, %v406_v4  ;;  %v713_v16 = vld [vmem:[#allocation2 + $0xc] sm:$0xf]  ;;  %308 = vst [vmem:[#allocation2 + $0x6c] sm:$0x1] %v307_v12  ;;  %365 = vst [vmem:[#allocation2 + $0x74] sm:$0xf] %v364_v13 }
  0x23   : > { %v532_v19 = vshll.u32 %v253_v52, 16  ;;  %v900_v20 = vrot.slane %v899_v9, 4  ;;  %v714_v21 = vsel %vm7447_vm5, %v398_v0, %v713_v16  ;;  %716 = vst [vmem:[#allocation2 + $0x10] sm:$0xf] %v407_v15  ;;  %v717_v22 = vld [vmem:[#allocation2 + $0x14] sm:$0x1] }
  0x24   : > { %v537_v23 = vshrl.u32 %v254_v58, 16  ;;  %v540_v24 = vshll.u32 %v254_v58, 16  ;;  %715 = vst [vmem:[#allocation2 + $0xc] sm:$0xf] %v714_v21  ;;  %v718_v25 = vsel %vm7440_vm4, %v408_v11, %v717_v22  ;;  %v531_v26 = vrot.slane %v529_v18, 7  ;;  %v7529_v34 = vld [vmem:[%s10181_s3 + $0xb8] sm:$0xff]  }
  0x25   : > { %6783 = vmatpush3.bf16.msra.mxu0 %v7233_v53  ;;  %7216 = vmatpush3.bf16.msra.mxu1 %v7233_v53  ;;  %v905_v27 = vsel %vm7494_vm10, %v900_v20, %v7458_v17  ;;  %719 = vst [vmem:[#allocation2 + $0x14] sm:$0x1] %v718_v25  ;;  %v239_v63 = vld [vmem:[%s7437_s29 + $0x8] sm:$0xf]  ;;  %v240_v4 = vld [vmem:[%s7437_s29 + $0xc] sm:$0xf] }
  0x26   : > { %v539_v28 = vrot.slane %v537_v23, 7  ;;  %6784 = vmatprep.subr.bf16.mxu0 %v7234_v8  ;;  %7209 = vmatprep.subr.bf16.mxu1 %v7234_v8  ;;  %v6015_v30 = vcombine.low %v905_v27, %v915_v14  ;;  %v842_v31 = vld [vmem:[#allocation2 + $0x64] sm:$0xf]  ;;  %v534_v32 = vor.u32 %v532_v19, %v531_v26  ;;  %v535_v33 = vrot.slane %v531_v26, 4  ;;  %v285_v9 = vld [vmem:[#allocation2 + $0x18] sm:$0x1] }
  0x27   : > { %v1094_v35 = vshll.u32 %v842_v31, 16  ;;  %v1098_v17 = vshrl.u32 %v842_v31, 16  ;;  %v342_v15 = vld [vmem:[#allocation2 + $0x20] sm:$0xf]  ;;  %v286_v19 = vsel %vm7440_vm4, 0, %v285_v9  ;;  %v410_v22 = vshrl.u32 %v239_v63, 16 }
  0x28   : > { %v542_v36 = vor.u32 %v540_v24, %v539_v28  ;;  %6786 = vmatprep.mubr.bf16.mxu0 %v6015_v30  ;;  %v841_v37 = vld [vmem:[#allocation2 + $0x60] sm:$0xf]  ;;  %v881_v38 = vld [vmem:[#allocation2 + $0x68] sm:$0x1]  ;;  %v544_v48 = vrot.slane %v539_v28, 4  ;;  %v343_v20 = vsel %vm7447_vm5, 0, %v342_v15 }
  0x29   : > { %6785 = vmatpush3.bf16.msra.mxu0 %v7234_v8  ;;  %7217 = vmatpush3.bf16.msra.mxu1 %v7234_v8  ;;  %v1085_v40 = vshrl.u32 %v841_v37, 16  ;;  %v1088_v41 = vshll.u32 %v841_v37, 16  ;;  %v1096_v42 = vrot.slane %v1094_v35, 5  ;;  %v1100_v43 = vrot.slane %v1098_v17, 4  ;;  %v769_v44 = vld [vmem:[#allocation2 + $0x6c] sm:$0xf] }
  0x2a   : > { %v1104_v45 = vshll.u32 %v881_v38, 16  ;;  %v828_v46 = vld [vmem:[#allocation2 + $0x10] sm:$0xf]  ;;  %v543_v47 = vsel %vm7476_vm9, %v535_v33, %v542_v36  ;;  %v770_v50 = vsel %vm7447_vm5, %v534_v32, %v769_v44  ;;  %v773_v51 = vld [vmem:[#allocation2 + $0x74] sm:$0x1]  ;;  %6818 = vmatprep.subr.bf16.mxu1 %v7524_v29  ;;  %6866 = vmatprep.subr.bf16.mxu0 %v7529_v34  ;;  %v413_v23 = vshll.u32 %v239_v63, 16 }
  0x2b   : > { %v1087_v52 = vrot.slane %v1085_v40, 4  ;;  %v1090_v53 = vrot.slane %v1088_v41, 5  ;;  %v1101_v54 = vor.u32 %v1100_v43, %v1096_v42  ;;  %v827_v55 = vld [vmem:[#allocation2 + $0xc] sm:$0xf]  ;;  %v926_v56 = vshll.u32 %v828_v46, 16  ;;  %s5998_s26 = sshll.u32 %s10471_s0, 1 }
  0x2c   : > { %771 = vst [vmem:[#allocation2 + $0x6c] sm:$0xf] %v770_v50  ;;  %772 = vst [vmem:[#allocation2 + $0x70] sm:$0xf] %v543_v47  ;;  %v1106_v57 = vrot.slane %v1104_v45, 5  ;;  %v917_v60 = vshrl.u32 %v827_v55, 16  ;;  %v774_v14 = vsel %vm7440_vm4, %v544_v48, %v773_v51  ;;  %s235_s8 = scalar_lea.vmem %s10183_s5, %s5998_s26 }
  0x2d   : > { %v7537_v58 = vld [vmem:[#allocation2 + $0x14] sm:$0x1]  ;;  %v920_v61 = vshll.u32 %v827_v55, 16  ;;  %v930_v62 = vshrl.u32 %v828_v46, 16  ;;  %v1091_v0 = vor.u32 %v1090_v53, %v1087_v52  ;;  %v1102_v1 = vrot.slane %v1101_v54, 4 }
  0x2e   : > { %v928_v2 = vrot.slane %v926_v56, 5  ;;  %v936_v3 = vshll.u32 %v7537_v58, 16  ;;  %v919_v5 = vrot.slane %v917_v60, 4  ;;  %775 = vst [vmem:[#allocation2 + $0x74] sm:$0x1] %v774_v14  ;;  %v418_v24 = vshrl.u32 %v240_v4, 16 }
  0x2f   : > { %v922_v7 = vrot.slane %v920_v61, 5  ;;  %v932_v8 = vrot.slane %v930_v62, 4  ;;  %v1092_v11 = vrot.slane %v1091_v0, 4  ;;  %v1107_v12 = vsel %vm7494_vm10, %v1102_v1, %v1106_v57  ;;  %287 = vst [vmem:[#allocation2 + $0x18] sm:$0x1] %v286_v19  ;;  %v7238_v46 = vld [vmem:[%s10181_s3 + $0xb0] sm:$0xff]  }
  0x30   : > { %v938_v13 = vrot.slane %v936_v3, 5  ;;  %344 = vst [vmem:[#allocation2 + $0x20] sm:$0xf] %v343_v20  ;;  %v412_v37 = vrot.slane %v410_v22, 7  ;;  %v420_v38 = vrot.slane %v418_v24, 7  ;;  %v421_v52 = vshll.u32 %v240_v4, 16 }
  0x31   : > { %v923_v16 = vor.u32 %v922_v7, %v919_v5  ;;  %v933_v18 = vor.u32 %v932_v8, %v928_v2  ;;  %v1097_v21 = vsel %vm7494_vm10, %v1092_v11, %v1096_v42  ;;  %v309_v40 = vld [vmem:[#allocation2 + $0x78] sm:$0x1]  ;;  %v366_v41 = vld [vmem:[#allocation2 + $0x80] sm:$0xf]  ;;  %v255_v47 = vld [vmem:[%s7437_s29 + $0x48] sm:$0xf] }
  0x32   : > { %v6023_v25 = vcombine.low %v1097_v21, %v1107_v12  ;;  %v415_v50 = vor.u32 %v413_v23, %v412_v37  ;;  %v416_v51 = vrot.slane %v412_v37, 4  ;;  %v256_v53 = vld [vmem:[%s7437_s29 + $0x4c] sm:$0xf]  ;;  %v288_v54 = vld [vmem:[#allocation2 + $0x24] sm:$0x1]  ;;  %v425_v57 = vrot.slane %v420_v38, 4 }
  0x33   : > { %v924_v26 = vrot.slane %v923_v16, 4  ;;  %v934_v27 = vrot.slane %v933_v18, 4  ;;  %v843_v28 = vld [vmem:[#allocation2 + $0x6c] sm:$0xf]  ;;  %v844_v30 = vld [vmem:[#allocation2 + $0x70] sm:$0xf]  ;;  %v423_v1 = vor.u32 %v421_v52, %v420_v38 }
  0x34   : > { %v1109_v31 = vshrl.u32 %v843_v28, 16  ;;  %v1112_v32 = vshll.u32 %v843_v28, 16  ;;  %v1118_v33 = vshll.u32 %v844_v30, 16  ;;  %v1122_v35 = vshrl.u32 %v844_v30, 16  ;;  %6802 = vmatprep.mubr.bf16.mxu1 %v6023_v25  ;;  %v7568_v62 = vld [vmem:[%s10181_s3 + $0xa8] sm:$0xff]   ;;  %v7237_v21 = vld [vmem:[%s10181_s3 + $0x30] sm:$0xff]  }
  0x35   : > { %v929_v17 = vsel %vm7494_vm10, %v924_v26, %v928_v2  ;;  %v939_v36 = vsel %vm7494_vm10, %v934_v27, %v938_v13  ;;  %v882_v55 = vld [vmem:[#allocation2 + $0x74] sm:$0x1]  ;;  %v310_v60 = vsel %vm7440_vm4, 0, %v309_v40  ;;  %v367_v61 = vsel %vm7447_vm5, 0, %v366_v41  ;;  %v241_v5 = vld [vmem:[%s7437_s29 + $0x10] sm:$0xf] }
  0x36   : > { %v6016_v42 = vcombine.low %v929_v17, %v939_v36  ;;  %v1111_v43 = vrot.slane %v1109_v31, 4  ;;  %v1114_v44 = vrot.slane %v1112_v32, 5  ;;  %v1120_v45 = vrot.slane %v1118_v33, 5  ;;  %v720_v2 = vld [vmem:[#allocation2 + $0x18] sm:$0xf]  ;;  %v7242_v17 = vld [vmem:[%s10181_s3 + $0xa0] sm:$0xff]  }
  0x37   : > { %v1124_v48 = vrot.slane %v1122_v35, 4  ;;  %v1128_v0 = vshll.u32 %v882_v55, 16  ;;  %v724_v3 = vld [vmem:[#allocation2 + $0x20] sm:$0x1]  ;;  %311 = vst [vmem:[#allocation2 + $0x78] sm:$0x1] %v310_v60  ;;  %v721_v8 = vsel %vm7447_vm5, %v415_v50, %v720_v2  ;;  %v424_v16 = vsel %vm7476_vm9, %v416_v51, %v423_v1 }
  0x38   : > { %6787 = vmatmul.mubr.bf16.vlgmr.msra.gmra.mxu0 %v6016_v42  ;;  %v1115_v56 = vor.u32 %v1114_v44, %v1111_v43  ;;  %368 = vst [vmem:[#allocation2 + $0x80] sm:$0xf] %v367_v61  ;;  %v546_v4 = vshrl.u32 %v255_v47, 16  ;;  %v725_v9 = vsel %vm7440_vm4, %v425_v57, %v724_v3  ;;  %v549_v11 = vshll.u32 %v255_v47, 16  ;;  %v7577_v12 = vld [vmem:[%s7437_s29 + $0x14] sm:$0xf] }
  0x39   : > { %v1125_v63 = vor.u32 %v1124_v48, %v1120_v45  ;;  %6867 = vmatpush3.bf16.msra.mxu0 %v7529_v34  ;;  %v345_v34 = vld [vmem:[#allocation2 + $0x2c] sm:$0xf]  ;;  %v312_v13 = vld [vmem:[#allocation2 + $0x84] sm:$0x1]  ;;  %v1130_v15 = vrot.slane %v1128_v0, 5  ;;  %v554_v22 = vshrl.u32 %v256_v53, 16 }
  0x3a   : > { %v1116_v7 = vrot.slane %v1115_v56, 4  ;;  %6868 = vmatprep.subr.bf16.mxu0 %v7238_v46  ;;  %722 = vst [vmem:[#allocation2 + $0x18] sm:$0xf] %v721_v8  ;;  %726 = vst [vmem:[#allocation2 + $0x20] sm:$0x1] %v725_v9  ;;  %v548_v18 = vrot.slane %v546_v4, 7 }
  0x3b   : > { %v1126_v14 = vrot.slane %v1125_v63, 4  ;;  %v369_v19 = vld [vmem:[#allocation2 + $0x8c] sm:$0xf]  ;;  %723 = vst [vmem:[#allocation2 + $0x1c] sm:$0xf] %v424_v16  ;;  %v557_v23 = vshll.u32 %v256_v53, 16 }
  0x3c   : > { %v1121_v20 = vsel %vm7494_vm10, %v1116_v7, %v1120_v45  ;;  %v289_v24 = vsel %vm7440_vm4, 0, %v288_v54  ;;  %v7589_v25 = vld [vmem:[%s7437_s29 + $0x50] sm:$0xf]  ;;  %v551_v27 = vor.u32 %v549_v11, %v548_v18  ;;  %v552_v28 = vrot.slane %v548_v18, 4  ;;  %v7239_v51 = vld [vmem:[%s10181_s3 + $0x28] sm:$0xff]   ;;  %v7244_v60 = vld [vmem:[%s10181_s3 + $0x98] sm:$0xff]  }
  0x3d   : > { %v1131_v26 = vsel %vm7494_vm10, %v1126_v14, %v1130_v15  ;;  %6869 = vmatpush3.bf16.msra.mxu0 %v7238_v46  ;;  %290 = vst [vmem:[#allocation2 + $0x24] sm:$0x1] %v289_v24  ;;  %v346_v30 = vsel %vm7447_vm5, 0, %v345_v34  ;;  %v556_v32 = vrot.slane %v554_v22, 7  ;;  %v427_v33 = vshrl.u32 %v241_v5, 16  ;;  %v7241_v34 = vld [vmem:[%s10181_s3 + $0x20] sm:$0xff]  }
  0x3e   : > { %v6024_v31 = vcombine.low %v1121_v20, %v1131_v26  ;;  %347 = vst [vmem:[#allocation2 + $0x2c] sm:$0xf] %v346_v30  ;;  %v430_v35 = vshll.u32 %v241_v5, 16  ;;  %6870 = vmatprep.subr.bf16.mxu0 %v7568_v62  ;;  %v435_v36 = vshrl.u32 %v7577_v12, 16  ;;  %v438_v37 = vshll.u32 %v7577_v12, 16  ;;  %v7243_v26 = vld [vmem:[%s10181_s3 + $0x18] sm:$0xff]  }
  0x3f   : > { %v313_v38 = vsel %vm7440_vm4, 0, %v312_v13  ;;  %v370_v40 = vsel %vm7447_vm5, 0, %v369_v19  ;;  %v559_v41 = vor.u32 %v557_v23, %v556_v32  ;;  %v561_v42 = vrot.slane %v556_v32, 4  ;;  %v776_v43 = vld [vmem:[#allocation2 + $0x78] sm:$0xf]  ;;  %v7246_v13 = vld [vmem:[%s10181_s3 + $0x90] sm:$0xff]  }
  0x40   : > { %6803 = vmatmul.mubr.bf16.vlgmr.msra.gmra.mxu1 %v6024_v31  ;;  %v780_v44 = vld [vmem:[#allocation2 + $0x80] sm:$0x1]  ;;  %v429_v45 = vrot.slane %v427_v33, 7  ;;  %314 = vst [vmem:[#allocation2 + $0x84] sm:$0x1] %v313_v38  ;;  %v777_v46 = vsel %vm7447_vm5, %v551_v27, %v776_v43  ;;  %v437_v47 = vrot.slane %v435_v36, 7 }
  0x41   : > { %371 = vst [vmem:[#allocation2 + $0x8c] sm:$0xf] %v370_v40  ;;  %6819 = vmatpush3.bf16.msra.mxu1 %v7524_v29  ;;  %v563_v48 = vshrl.u32 %v7589_v25, 16  ;;  %v566_v50 = vshll.u32 %v7589_v25, 16  ;;  %6871 = vmatpush3.bf16.msra.mxu0 %v7568_v62  ;;  %v829_v52 = vld [vmem:[#allocation2 + $0x18] sm:$0xf]  ;;  %v560_v29 = vsel %vm7476_vm9, %v552_v28, %v559_v41  ;;  %v781_v54 = vsel %vm7440_vm4, %v561_v42, %v780_v44 }
  0x42   : > { %6820 = vmatprep.subr.bf16.mxu1 %v7237_v21  ;;  %v875_v53 = vld [vmem:[#allocation2 + $0x20] sm:$0x1]  ;;  %778 = vst [vmem:[#allocation2 + $0x78] sm:$0xf] %v777_v46  ;;  %v432_v55 = vor.u32 %v430_v35, %v429_v45  ;;  %v433_v56 = vrot.slane %v429_v45, 4  ;;  %6872 = vmatprep.subr.bf16.mxu0 %v7242_v17  ;;  %v941_v62 = vshrl.u32 %v829_v52, 16  ;;  %v440_v1 = vor.u32 %v438_v37, %v437_v47 }
  0x43   : > { %v7619_v57 = vld [vmem:[%s7437_s29 + $0x54] sm:$0xf]  ;;  %v830_v61 = vld [vmem:[#allocation2 + $0x1c] sm:$0xf]  ;;  %v944_v63 = vshll.u32 %v829_v52, 16  ;;  %v960_v0 = vshll.u32 %v875_v53, 16 }
  0x44   : > { %779 = vst [vmem:[#allocation2 + $0x7c] sm:$0xf] %v560_v29  ;;  %782 = vst [vmem:[#allocation2 + $0x80] sm:$0x1] %v781_v54  ;;  %v950_v2 = vshll.u32 %v830_v61, 16  ;;  %v954_v3 = vshrl.u32 %v830_v61, 16  ;;  %v441_v11 = vsel %vm7476_vm9, %v433_v56, %v440_v1 }
  0x45   : > { %v442_v4 = vrot.slane %v437_v47, 4  ;;  %v727_v5 = vld [vmem:[#allocation2 + $0x24] sm:$0xf]  ;;  %v7624_v7 = vrot.slane %v563_v48, 7  ;;  %6821 = vmatpush3.bf16.msra.mxu1 %v7237_v21  ;;  %v943_v8 = vrot.slane %v941_v62, 4  ;;  %v946_v9 = vrot.slane %v944_v63, 5  ;;  %6873 = vmatpush3.bf16.msra.mxu0 %v7242_v17 }
  0x46   : > { %v731_v12 = vld [vmem:[#allocation2 + $0x2c] sm:$0x1]  ;;  %v952_v14 = vrot.slane %v950_v2, 5  ;;  %v956_v15 = vrot.slane %v954_v3, 4  ;;  %v728_v16 = vsel %vm7447_vm5, %v432_v55, %v727_v5  ;;  %730 = vst [vmem:[#allocation2 + $0x28] sm:$0xf] %v441_v11  ;;  %6822 = vmatprep.subr.bf16.mxu1 %v7239_v51  ;;  %6874 = vmatprep.subr.bf16.mxu0 %v7244_v60 }
  0x47   : > { %v732_v18 = vsel %vm7440_vm4, %v442_v4, %v731_v12  ;;  %v947_v19 = vor.u32 %v946_v9, %v943_v8  ;;  %729 = vst [vmem:[#allocation2 + $0x24] sm:$0xf] %v728_v16  ;;  %v568_v20 = vor.u32 %v566_v50, %v7624_v7  ;;  %v571_v21 = vshrl.u32 %v7619_v57, 16  ;;  %v783_v22 = vld [vmem:[#allocation2 + $0x84] sm:$0xf]  ;;  %v7248_v33 = vld [vmem:[%s10181_s3 + $0x88] sm:$0xff]  }
  0x48   : > { %733 = vst [vmem:[#allocation2 + $0x2c] sm:$0x1] %v732_v18  ;;  %v957_v23 = vor.u32 %v956_v15, %v952_v14  ;;  %v962_v24 = vrot.slane %v960_v0, 5  ;;  %v574_v25 = vshll.u32 %v7619_v57, 16  ;;  %v569_v30 = vrot.slane %v7624_v7, 4  ;;  %v7245_v47 = vld [vmem:[%s10181_s3 + $0x10] sm:$0xff]  }
  0x49   : > { %v948_v27 = vrot.slane %v947_v19, 4  ;;  %v845_v28 = vld [vmem:[#allocation2 + $0x78] sm:$0xf]  ;;  %v573_v31 = vrot.slane %v571_v21, 7  ;;  %v784_v32 = vsel %vm7447_vm5, %v568_v20, %v783_v22  ;;  %6823 = vmatpush3.bf16.msra.mxu1 %v7239_v51  ;;  %6875 = vmatpush3.bf16.msra.mxu0 %v7244_v60  ;;  %v7250_v29 = vld [vmem:[%s10181_s3 + $0x80] sm:$0xff]   ;;  %v7247_v20 = vld [vmem:[%s10181_s3 + $0x8] sm:$0xff]  }
  0x4a   : > { %v958_v35 = vrot.slane %v957_v23, 4  ;;  %v1133_v37 = vshrl.u32 %v845_v28, 16  ;;  %785 = vst [vmem:[#allocation2 + $0x84] sm:$0xf] %v784_v32  ;;  %6824 = vmatprep.subr.bf16.mxu1 %v7241_v34  ;;  %6876 = vmatprep.subr.bf16.mxu0 %v7246_v13  ;;  %v1136_v40 = vshll.u32 %v845_v28, 16  ;;  %v7685_v32 = vld [vmem:[%s10181_s3] sm:$0xff]  }
  0x4b   : > { %v846_v17 = vld [vmem:[#allocation2 + $0x7c] sm:$0xf]  ;;  %v883_v36 = vld [vmem:[#allocation2 + $0x80] sm:$0x1]  ;;  %v953_v38 = vsel %vm7494_vm10, %v948_v27, %v952_v14  ;;  %v576_v46 = vor.u32 %v574_v25, %v573_v31  ;;  %v787_v1 = vld [vmem:[#allocation2 + $0x8c] sm:$0x1] }
  0x4c   : > { %v1142_v41 = vshll.u32 %v846_v17, 16  ;;  %v1146_v42 = vshrl.u32 %v846_v17, 16  ;;  %v963_v43 = vsel %vm7494_vm10, %v958_v35, %v962_v24  ;;  %v1135_v44 = vrot.slane %v1133_v37, 4  ;;  %v7663_v7 = vld [vmem:[%s7437_s29 + $0x18] sm:$0xf] }
  0x4d   : > { %v1152_v45 = vshll.u32 %v883_v36, 16  ;;  %v6017_v48 = vcombine.low %v953_v38, %v963_v43  ;;  %v1138_v50 = vrot.slane %v1136_v40, 5  ;;  %v832_v53 = vld [vmem:[#allocation2 + $0x28] sm:$0xf]  ;;  %6825 = vmatpush3.bf16.msra.mxu1 %v7241_v34  ;;  %6877 = vmatpush3.bf16.msra.mxu0 %v7246_v13  ;;  %v577_v60 = vsel %vm7476_vm9, %v569_v30, %v576_v46  ;;  %v291_v8 = vld [vmem:[#allocation2 + $0x30] sm:$0x1] }
  0x4e   : > { %v1144_v51 = vrot.slane %v1142_v41, 5  ;;  %v1148_v52 = vrot.slane %v1146_v42, 4  ;;  %v831_v55 = vld [vmem:[#allocation2 + $0x24] sm:$0xf]  ;;  %v974_v57 = vshll.u32 %v832_v53, 16  ;;  %6826 = vmatprep.subr.bf16.mxu1 %v7243_v26  ;;  %6878 = vmatprep.subr.bf16.mxu0 %v7248_v33  ;;  %v978_v3 = vshrl.u32 %v832_v53, 16 }
  0x4f   : > { %v1154_v54 = vrot.slane %v1152_v45, 5  ;;  %v876_v56 = vld [vmem:[#allocation2 + $0x2c] sm:$0x1]  ;;  %6790 = vmatprep.mubr.bf16.mxu0 %v6017_v48  ;;  %v1139_v61 = vor.u32 %v1138_v50, %v1135_v44  ;;  %v965_v63 = vshrl.u32 %v831_v55, 16  ;;  %v968_v0 = vshll.u32 %v831_v55, 16 }
  0x50   : > { %v1149_v62 = vor.u32 %v1148_v52, %v1144_v51  ;;  %786 = vst [vmem:[#allocation2 + $0x88] sm:$0xf] %v577_v60  ;;  %v976_v2 = vrot.slane %v974_v57, 5  ;;  %v984_v4 = vshll.u32 %v876_v56, 16  ;;  %v578_v5 = vrot.slane %v573_v31, 4 }
  0x51   : > { %v1140_v9 = vrot.slane %v1139_v61, 4  ;;  %v967_v12 = vrot.slane %v965_v63, 4  ;;  %v970_v34 = vrot.slane %v968_v0, 5  ;;  %v847_v13 = vld [vmem:[#allocation2 + $0x84] sm:$0xf]  ;;  %6827 = vmatpush3.bf16.msra.mxu1 %v7243_v26  ;;  %6879 = vmatpush3.bf16.msra.mxu0 %v7248_v33  ;;  %v980_v14 = vrot.slane %v978_v3, 4 }
  0x52   : > { %v1150_v11 = vrot.slane %v1149_v62, 4  ;;  %v986_v15 = vrot.slane %v984_v4, 5  ;;  %v788_v16 = vsel %vm7440_vm4, %v578_v5, %v787_v1  ;;  %v1157_v18 = vshrl.u32 %v847_v13, 16  ;;  %v348_v19 = vld [vmem:[#allocation2 + $0x38] sm:$0xf]  ;;  %6828 = vmatprep.subr.bf16.mxu1 %v7245_v47  ;;  %6880 = vmatprep.subr.bf16.mxu0 %v7250_v29 }
  0x53   : > { %v1145_v21 = vsel %vm7494_vm10, %v1140_v9, %v1144_v51  ;;  %v971_v23 = vor.u32 %v970_v34, %v967_v12  ;;  %789 = vst [vmem:[#allocation2 + $0x8c] sm:$0x1] %v788_v16  ;;  %v1160_v24 = vshll.u32 %v847_v13, 16  ;;  %v244_v25 = vld [vmem:[%s7437_s29 + $0x1c] sm:$0xf]  ;;  %v981_v28 = vor.u32 %v980_v14, %v976_v2 }
  0x54   : > { %v1155_v22 = vsel %vm7494_vm10, %v1150_v11, %v1154_v54  ;;  %v7678_v26 = vld [vmem:[%s10181_s3 + $0x138] sm:$0xff]   ;;  %v1159_v30 = vrot.slane %v1157_v18, 4  ;;  %v292_v31 = vsel %vm7440_vm4, 0, %v291_v8  ;;  %v349_v17 = vsel %vm7447_vm5, 0, %v348_v19  ;;  %v315_v37 = vld [vmem:[#allocation2 + $0x90] sm:$0x1] }
  0x55   : > { %v6025_v27 = vcombine.low %v1145_v21, %v1155_v22  ;;  %v972_v33 = vrot.slane %v971_v23, 4  ;;  %v1162_v35 = vrot.slane %v1160_v24, 5  ;;  %293 = vst [vmem:[#allocation2 + $0x30] sm:$0x1] %v292_v31  ;;  %v444_v36 = vshrl.u32 %v7663_v7, 16  ;;  %6829 = vmatpush3.bf16.msra.mxu1 %v7245_v47  ;;  %6881 = vmatpush3.bf16.msra.mxu0 %v7250_v29  ;;  %v7253_v62 = vld [vmem:[%s10181_s3 + $0xf8] sm:$0xff]  }
  0x56   : > { %v982_v38 = vrot.slane %v981_v28, 4  ;;  %350 = vst [vmem:[#allocation2 + $0x38] sm:$0xf] %v349_v17  ;;  %v447_v41 = vshll.u32 %v7663_v7, 16  ;;  %v452_v42 = vshrl.u32 %v244_v25, 16  ;;  %v455_v43 = vshll.u32 %v244_v25, 16  ;;  %6830 = vmatprep.subr.bf16.mxu1 %v7247_v20  ;;  %6962 = vmatprep.subr.bf16.mxu0 %v7678_v26 }
  0x57   : > { %6806 = vmatprep.mubr.bf16.mxu1 %v6025_v27  ;;  %v848_v40 = vld [vmem:[#allocation2 + $0x88] sm:$0xf]  ;;  %v977_v44 = vsel %vm7494_vm10, %v972_v33, %v976_v2  ;;  %v1163_v45 = vor.u32 %v1162_v35, %v1159_v30  ;;  %v259_v50 = vld [vmem:[%s7437_s29 + $0x58] sm:$0xf]  ;;  %v260_v51 = vld [vmem:[%s7437_s29 + $0x5c] sm:$0xf] }
  0x58   : > { %v1166_v46 = vshll.u32 %v848_v40, 16  ;;  %v1170_v48 = vshrl.u32 %v848_v40, 16  ;;  %v372_v52 = vld [vmem:[#allocation2 + $0x98] sm:$0xf]  ;;  %v987_v47 = vsel %vm7494_vm10, %v982_v38, %v986_v15  ;;  %v446_v53 = vrot.slane %v444_v36, 7 }
  0x59   : > { %v454_v29 = vrot.slane %v452_v42, 7  ;;  %v316_v54 = vsel %vm7440_vm4, 0, %v315_v37  ;;  %v6018_v55 = vcombine.low %v977_v44, %v987_v47  ;;  %v1164_v56 = vrot.slane %v1163_v45, 4  ;;  %v294_v61 = vld [vmem:[#allocation2 + $0x3c] sm:$0x1]  ;;  %6831 = vmatpush3.bf16.msra.mxu1 %v7247_v20 }
  0x5a   : > { %v1168_v57 = vrot.slane %v1166_v46, 5  ;;  %v1172_v60 = vrot.slane %v1170_v48, 4  ;;  %317 = vst [vmem:[#allocation2 + $0x90] sm:$0x1] %v316_v54  ;;  %v884_v63 = vld [vmem:[#allocation2 + $0x8c] sm:$0x1]  ;;  %v449_v0 = vor.u32 %v447_v41, %v446_v53  ;;  %6832 = vmatprep.subr.bf16.mxu1 %v7685_v32 }
  0x5b   : > { %v450_v1 = vrot.slane %v446_v53, 4  ;;  %v457_v2 = vor.u32 %v455_v43, %v454_v29  ;;  %v459_v3 = vrot.slane %v454_v29, 4  ;;  %v245_v4 = vld [vmem:[%s7437_s29 + $0x20] sm:$0xf]  ;;  %v351_v5 = vld [vmem:[#allocation2 + $0x44] sm:$0xf]  ;;  %6791 = vmatmul.mubr.bf16.gmra.mxu0 %v6018_v55 }
  0x5c   : > { %v1169_v7 = vsel %vm7494_vm10, %v1164_v56, %v1168_v57  ;;  %v1173_v8 = vor.u32 %v1172_v60, %v1168_v57  ;;  %v1176_v9 = vshll.u32 %v884_v63, 16  ;;  %v373_v11 = vsel %vm7447_vm5, 0, %v372_v52  ;;  %v734_v34 = vld [vmem:[#allocation2 + $0x30] sm:$0xf]  ;;  %v246_v16 = vld [vmem:[%s7437_s29 + $0x24] sm:$0xf] }
  0x5d   : > { %v458_v12 = vsel %vm7476_vm9, %v450_v1, %v457_v2  ;;  %374 = vst [vmem:[#allocation2 + $0x98] sm:$0xf] %v373_v11  ;;  %v580_v13 = vshrl.u32 %v259_v50, 16  ;;  %v583_v14 = vshll.u32 %v259_v50, 16  ;;  %v588_v15 = vshrl.u32 %v260_v51, 16  ;;  %6833 = vmatpush3.bf16.msra.mxu1 %v7685_v32 }
  0x5e   : > { %v1174_v18 = vrot.slane %v1173_v8, 4  ;;  %v1178_v19 = vrot.slane %v1176_v9, 5  ;;  %v735_v20 = vsel %vm7447_vm5, %v449_v0, %v734_v34  ;;  %737 = vst [vmem:[#allocation2 + $0x34] sm:$0xf] %v458_v12  ;;  %v738_v21 = vld [vmem:[#allocation2 + $0x38] sm:$0x1]  ;;  %6914 = vmatprep.subr.bf16.mxu1 %v7253_v62 }
  0x5f   : > { %v591_v22 = vshll.u32 %v260_v51, 16  ;;  %v318_v23 = vld [vmem:[#allocation2 + $0x9c] sm:$0x1]  ;;  %v375_v24 = vld [vmem:[#allocation2 + $0xa4] sm:$0xf]  ;;  %v739_v25 = vsel %vm7440_vm4, %v459_v3, %v738_v21  ;;  %v582_v27 = vrot.slane %v580_v13, 7 }
  0x60   : > { %736 = vst [vmem:[#allocation2 + $0x30] sm:$0xf] %v735_v20  ;;  %v590_v28 = vrot.slane %v588_v15, 7  ;;  %v295_v30 = vsel %vm7440_vm4, 0, %v294_v61  ;;  %v1179_v31 = vsel %vm7494_vm10, %v1174_v18, %v1178_v19  ;;  %740 = vst [vmem:[#allocation2 + $0x38] sm:$0x1] %v739_v25 }
  0x61   : > { %296 = vst [vmem:[#allocation2 + $0x3c] sm:$0x1] %v295_v30  ;;  %v352_v32 = vsel %vm7447_vm5, 0, %v351_v5  ;;  %v461_v33 = vshrl.u32 %v245_v4, 16  ;;  %v464_v35 = vshll.u32 %v245_v4, 16  ;;  %v6026_v17 = vcombine.low %v1169_v7, %v1179_v31 }
  0x62   : > { %v585_v36 = vor.u32 %v583_v14, %v582_v27  ;;  %v586_v37 = vrot.slane %v582_v27, 4  ;;  %v593_v38 = vor.u32 %v591_v22, %v590_v28  ;;  %v790_v40 = vld [vmem:[#allocation2 + $0x90] sm:$0xf]  ;;  %353 = vst [vmem:[#allocation2 + $0x44] sm:$0xf] %v352_v32  ;;  %v595_v42 = vrot.slane %v590_v28, 4 }
  0x63   : > { %v7724_v41 = vld [vmem:[%s7437_s29 + $0x60] sm:$0xf]  ;;  %v463_v43 = vrot.slane %v461_v33, 7  ;;  %v469_v44 = vshrl.u32 %v246_v16, 16  ;;  %v472_v45 = vshll.u32 %v246_v16, 16  ;;  %6807 = vmatmul.mubr.bf16.gmra.mxu1 %v6026_v17  ;;  %v319_v51 = vsel %vm7440_vm4, 0, %v318_v23 }
  0x64   : > { %v7727_v46 = vld [vmem:[%s7437_s29 + $0x64] sm:$0xf]  ;;  %v594_v48 = vsel %vm7476_vm9, %v586_v37, %v593_v38  ;;  %v791_v50 = vsel %vm7447_vm5, %v585_v36, %v790_v40  ;;  %v376_v52 = vsel %vm7447_vm5, 0, %v375_v24  ;;  %v1927_v47 = vrot.slane %v7482_v49, 5  ;;  %v794_v53 = vld [vmem:[#allocation2 + $0x98] sm:$0x1] }
  0x65   : > { %792 = vst [vmem:[#allocation2 + $0x90] sm:$0xf] %v791_v50  ;;  %793 = vst [vmem:[#allocation2 + $0x94] sm:$0xf] %v594_v48  ;;  %v466_v29 = vor.u32 %v464_v35, %v463_v43  ;;  %v467_v54 = vrot.slane %v463_v43, 4  ;;  %v471_v55 = vrot.slane %v469_v44, 7  ;;  %v795_v57 = vsel %vm7440_vm4, %v595_v42, %v794_v53 }
  0x66   : > { %320 = vst [vmem:[#allocation2 + $0x9c] sm:$0x1] %v319_v51  ;;  %377 = vst [vmem:[#allocation2 + $0xa4] sm:$0xf] %v376_v52  ;;  %v7738_v56 = vld [vmem:[#allocation2 + $0x34] sm:$0xf] }
  0x67   : > { %v597_v60 = vshrl.u32 %v7724_v41, 16  ;;  %v600_v61 = vshll.u32 %v7724_v41, 16  ;;  %v605_v62 = vshrl.u32 %v7727_v46, 16  ;;  %v7745_v63 = vld [vmem:[#allocation2 + $0x30] sm:$0xf]  ;;  %v998_v0 = vshll.u32 %v7738_v56, 16 }
  0x68   : > { %v1002_v1 = vshrl.u32 %v7738_v56, 16  ;;  %796 = vst [vmem:[#allocation2 + $0x98] sm:$0x1] %v795_v57  ;;  %v474_v2 = vor.u32 %v472_v45, %v471_v55  ;;  %v476_v3 = vrot.slane %v471_v55, 4  ;;  %v7749_v4 = vld [vmem:[#allocation2 + $0x38] sm:$0x1] }
  0x69   : > { %v989_v5 = vshrl.u32 %v7745_v63, 16  ;;  %v992_v7 = vshll.u32 %v7745_v63, 16  ;;  %v741_v8 = vld [vmem:[#allocation2 + $0x3c] sm:$0xf]  ;;  %v1000_v11 = vrot.slane %v998_v0, 5  ;;  %v1008_v34 = vshll.u32 %v7749_v4, 16 }
  0x6a   : > { %v1004_v12 = vrot.slane %v1002_v1, 4  ;;  %v475_v13 = vsel %vm7476_vm9, %v467_v54, %v474_v2  ;;  %v745_v14 = vld [vmem:[#allocation2 + $0x44] sm:$0x1]  ;;  %v742_v18 = vsel %vm7447_vm5, %v466_v29, %v741_v8  ;;  %v1934_v20 = vrot.slane %v7537_v58, 5  ;;  %v8053_v9 = vld [vmem:[#allocation2 + $0x78] sm:$0xe] }
  0x6b   : > { %v991_v15 = vrot.slane %v989_v5, 4  ;;  %v994_v16 = vrot.slane %v992_v7, 5  ;;  %744 = vst [vmem:[#allocation2 + $0x40] sm:$0xf] %v475_v13  ;;  %v746_v19 = vsel %vm7440_vm4, %v476_v3, %v745_v14  ;;  %v1010_v22 = vrot.slane %v1008_v34, 5 }
  0x6c   : > { %v1005_v21 = vor.u32 %v1004_v12, %v1000_v11  ;;  %743 = vst [vmem:[#allocation2 + $0x3c] sm:$0xf] %v742_v18  ;;  %747 = vst [vmem:[#allocation2 + $0x44] sm:$0x1] %v746_v19  ;;  %v599_v23 = vrot.slane %v597_v60, 7  ;;  %v607_v28 = vrot.slane %v605_v62, 7 }
  0x6d   : > { %v995_v24 = vor.u32 %v994_v16, %v991_v15  ;;  %v7763_v25 = vld [vmem:[#allocation2 + $0x90] sm:$0xf]  ;;  %v7765_v27 = vld [vmem:[#allocation2 + $0x94] sm:$0xf]  ;;  %v608_v30 = vshll.u32 %v7727_v46, 16  ;;  %vm1919_vm11 = vcmask 1042432  }
  0x6e   : > { %v1006_v31 = vrot.slane %v1005_v21, 4  ;;  %v1181_v32 = vshrl.u32 %v7763_v25, 16  ;;  %v1184_v33 = vshll.u32 %v7763_v25, 16  ;;  %v1190_v35 = vshll.u32 %v7765_v27, 16  ;;  %v797_v17 = vld [vmem:[#allocation2 + $0x9c] sm:$0xf] }
  0x6f   : > { %v996_v36 = vrot.slane %v995_v24, 4  ;;  %v7771_v37 = vld [vmem:[#allocation2 + $0x98] sm:$0x1]  ;;  %v1194_v38 = vshrl.u32 %v7765_v27, 16  ;;  %v602_v40 = vor.u32 %v600_v61, %v599_v23  ;;  %v603_v41 = vrot.slane %v599_v23, 4 }
  0x70   : > { %v1011_v42 = vsel %vm7494_vm10, %v1006_v31, %v1010_v22  ;;  %v1183_v43 = vrot.slane %v1181_v32, 4  ;;  %v1186_v44 = vrot.slane %v1184_v33, 5  ;;  %v1192_v45 = vrot.slane %v1190_v35, 5  ;;  %v801_v57 = vld [vmem:[#allocation2 + $0xa4] sm:$0x1] }
  0x71   : > { %v1001_v46 = vsel %vm7494_vm10, %v996_v36, %v1000_v11  ;;  %v1196_v48 = vrot.slane %v1194_v38, 4  ;;  %v1200_v50 = vshll.u32 %v7771_v37, 16  ;;  %v610_v51 = vor.u32 %v608_v30, %v607_v28  ;;  %v297_v60 = vld [vmem:[#allocation2 + $0x48] sm:$0x1]  ;;  %v354_v34 = vld [vmem:[#allocation2 + $0x50] sm:$0xf] }
  0x72   : > { %v6019_v52 = vcombine.low %v1001_v46, %v1011_v42  ;;  %v1187_v53 = vor.u32 %v1186_v44, %v1183_v43  ;;  %v7779_v29 = vld [vmem:[#allocation2 + $0x40] sm:$0xf]  ;;  %v612_v54 = vrot.slane %v607_v28, 4  ;;  %v798_v55 = vsel %vm7447_vm5, %v602_v40, %v797_v17  ;;  %v247_v5 = vld [vmem:[%s7437_s29 + $0x28] sm:$0xf] }
  0x73   : > { %v1197_v61 = vor.u32 %v1196_v48, %v1192_v45  ;;  %v1202_v62 = vrot.slane %v1200_v50, 5  ;;  %v7783_v0 = vld [vmem:[#allocation2 + $0x3c] sm:$0xf]  ;;  %v7785_v1 = vld [vmem:[#allocation2 + $0x44] sm:$0x1]  ;;  %v1022_v2 = vshll.u32 %v7779_v29, 16  ;;  %v611_v3 = vsel %vm7476_vm9, %v603_v41, %v610_v51 }
  0x74   : > { %799 = vst [vmem:[#allocation2 + $0x9c] sm:$0xf] %v798_v55  ;;  %6794 = vmatprep.mubr.bf16.mxu0 %v6019_v52  ;;  %v1188_v7 = vrot.slane %v1187_v53, 4  ;;  %v1013_v8 = vshrl.u32 %v7783_v0, 16  ;;  %v1016_v11 = vshll.u32 %v7783_v0, 16  ;;  %v1026_v12 = vshrl.u32 %v7779_v29, 16 }
  0x75   : > { %800 = vst [vmem:[#allocation2 + $0xa0] sm:$0xf] %v611_v3  ;;  %v1198_v13 = vrot.slane %v1197_v61, 4  ;;  %v1024_v14 = vrot.slane %v1022_v2, 5  ;;  %v1032_v15 = vshll.u32 %v7785_v1, 16  ;;  %v802_v16 = vsel %vm7440_vm4, %v612_v54, %v801_v57 }
  0x76   : > { %v248_v18 = vld [vmem:[%s7437_s29 + $0x2c] sm:$0xf]  ;;  %v1193_v19 = vsel %vm7494_vm10, %v1188_v7, %v1192_v45  ;;  %v1015_v21 = vrot.slane %v1013_v8, 4  ;;  %v1018_v22 = vrot.slane %v1016_v11, 5  ;;  %v1028_v23 = vrot.slane %v1026_v12, 4 }
  0x77   : > { %803 = vst [vmem:[#allocation2 + $0xa4] sm:$0x1] %v802_v16  ;;  %v321_v24 = vld [vmem:[#allocation2 + $0xa8] sm:$0x1]  ;;  %v1203_v28 = vsel %vm7494_vm10, %v1198_v13, %v1202_v62  ;;  %v1034_v30 = vrot.slane %v1032_v15, 5  ;;  %v298_v31 = vsel %vm7440_vm4, 0, %v297_v60 }
  0x78   : > { %v355_v32 = vsel %vm7447_vm5, 0, %v354_v34  ;;  %v378_v33 = vld [vmem:[#allocation2 + $0xb0] sm:$0xf]  ;;  %v6027_v35 = vcombine.low %v1193_v19, %v1203_v28  ;;  %v1019_v17 = vor.u32 %v1018_v22, %v1015_v21  ;;  %v1029_v36 = vor.u32 %v1028_v23, %v1024_v14  ;;  %299 = vst [vmem:[#allocation2 + $0x48] sm:$0x1] %v298_v31 }
  0x79   : > { %356 = vst [vmem:[#allocation2 + $0x50] sm:$0xf] %v355_v32  ;;  %v478_v38 = vshrl.u32 %v247_v5, 16  ;;  %v263_v40 = vld [vmem:[%s7437_s29 + $0x68] sm:$0xf]  ;;  %v481_v41 = vshll.u32 %v247_v5, 16 }
  0x7a   : > { %v486_v42 = vshrl.u32 %v248_v18, 16  ;;  %v489_v43 = vshll.u32 %v248_v18, 16  ;;  %v322_v44 = vsel %vm7440_vm4, 0, %v321_v24  ;;  %6810 = vmatprep.mubr.bf16.mxu1 %v6027_v35  ;;  %v1020_v45 = vrot.slane %v1019_v17, 4  ;;  %v264_v12 = vld [vmem:[%s7437_s29 + $0x6c] sm:$0xf] }
  0x7b   : > { %v1030_v46 = vrot.slane %v1029_v36, 4  ;;  %v7809_v48 = vld [vmem:[#allocation2 + $0x9c] sm:$0xf]  ;;  %v480_v50 = vrot.slane %v478_v38, 7  ;;  %323 = vst [vmem:[#allocation2 + $0xa8] sm:$0x1] %v322_v44 }
  0x7c   : > { %v379_v51 = vsel %vm7447_vm5, 0, %v378_v33  ;;  %v7813_v52 = vld [vmem:[#allocation2 + $0xa0] sm:$0xf]  ;;  %v1205_v53 = vshrl.u32 %v7809_v48, 16  ;;  %v1208_v54 = vshll.u32 %v7809_v48, 16  ;;  %v488_v55 = vrot.slane %v486_v42, 7 }
  0x7d   : > { %10233 = vst [vmem:[#allocation6_spill] sm:$0xff] %v7813_v52  ;;  %380 = vst [vmem:[#allocation2 + $0xb0] sm:$0xf] %v379_v51  ;;  %v614_v57 = vshrl.u32 %v263_v40, 16  ;;  %v1025_v60 = vsel %vm7494_vm10, %v1020_v45, %v1024_v14  ;;  %v1035_v61 = vsel %vm7494_vm10, %v1030_v46, %v1034_v30  ;;  %v1214_v62 = vshll.u32 %v7813_v52, 16 }
  0x7e   : > { %v1218_v2 = vshrl.u32 %v7813_v52, 16  ;;  %v6020_v3 = vcombine.low %v1025_v60, %v1035_v61  ;;  %v7823_v5 = vld [vmem:[#allocation2 + $0xa4] sm:$0x1]  ;;  %v1207_v7 = vrot.slane %v1205_v53, 4  ;;  %v1210_v8 = vrot.slane %v1208_v54, 5 }
  0x7f   : > { %v483_v11 = vor.u32 %v481_v41, %v480_v50  ;;  %v1216_v34 = vrot.slane %v1214_v62, 5  ;;  %v1224_v15 = vshll.u32 %v7823_v5, 16  ;;  %v484_v14 = vrot.slane %v480_v50, 4  ;;  %v249_v16 = vld [vmem:[%s7437_s29 + $0x30] sm:$0xf] }
  0x80   : > { %v1220_v13 = vrot.slane %v1218_v2, 4  ;;  %v300_v18 = vld [vmem:[#allocation2 + $0x54] sm:$0x1]  ;;  %v357_v19 = vld [vmem:[#allocation2 + $0x5c] sm:$0xf]  ;;  %6795 = vmatmul.mubr.bf16.gmra.mxu0 %v6020_v3  ;;  %v1211_v21 = vor.u32 %v1210_v8, %v1207_v7  ;;  %v491_v22 = vor.u32 %v489_v43, %v488_v55  ;;  %v493_v23 = vrot.slane %v488_v55, 4 }
  0x81   : > { %v748_v24 = vld [vmem:[#allocation2 + $0x48] sm:$0xf]  ;;  %v752_v28 = vld [vmem:[#allocation2 + $0x50] sm:$0x1]  ;;  %v616_v30 = vrot.slane %v614_v57, 7  ;;  %v1226_v32 = vrot.slane %v1224_v15, 5 }
  0x82   : > { %v1221_v31 = vor.u32 %v1220_v13, %v1216_v34  ;;  %v749_v33 = vsel %vm7447_vm5, %v483_v11, %v748_v24  ;;  %v617_v35 = vshll.u32 %v263_v40, 16  ;;  %v250_v17 = vld [vmem:[%s7437_s29 + $0x34] sm:$0xf]  ;;  %v1212_v36 = vrot.slane %v1211_v21, 4  ;;  %v804_v43 = vld [vmem:[#allocation2 + $0xa8] sm:$0xf] }
  0x83   : > { %v492_v38 = vsel %vm7476_vm9, %v484_v14, %v491_v22  ;;  %750 = vst [vmem:[#allocation2 + $0x48] sm:$0xf] %v749_v33  ;;  %v753_v41 = vsel %vm7440_vm4, %v493_v23, %v752_v28  ;;  %v620_v42 = vrot.slane %v616_v30, 4  ;;  %v324_v44 = vld [vmem:[#allocation2 + $0xb4] sm:$0x1]  ;;  %v622_v50 = vshrl.u32 %v264_v12, 16 }
  0x84   : > { %v1222_v45 = vrot.slane %v1221_v31, 4  ;;  %751 = vst [vmem:[#allocation2 + $0x4c] sm:$0xf] %v492_v38  ;;  %754 = vst [vmem:[#allocation2 + $0x50] sm:$0x1] %v753_v41  ;;  %v619_v46 = vor.u32 %v617_v35, %v616_v30  ;;  %v625_v51 = vshll.u32 %v264_v12, 16  ;;  %v1217_v54 = vsel %vm7494_vm10, %v1212_v36, %v1216_v34 }
  0x85   : > { %v7836_v40 = vld [vmem:[%s7437_s29 + $0x70] sm:$0xf]  ;;  %v381_v53 = vld [vmem:[#allocation2 + $0xbc] sm:$0xf]  ;;  %v301_v57 = vsel %vm7440_vm4, 0, %v300_v18  ;;  %v358_v60 = vsel %vm7447_vm5, 0, %v357_v19 }
  0x86   : > { %v808_v55 = vld [vmem:[#allocation2 + $0xb0] sm:$0x1]  ;;  %v495_v61 = vshrl.u32 %v249_v16, 16  ;;  %v7845_v62 = vld [vmem:[%s7437_s29 + $0x74] sm:$0xf]  ;;  %v1227_v2 = vsel %vm7494_vm10, %v1222_v45, %v1226_v32  ;;  %v624_v3 = vrot.slane %v622_v50, 7  ;;  %v805_v7 = vsel %vm7447_vm5, %v619_v46, %v804_v43 }
  0x87   : > { %302 = vst [vmem:[#allocation2 + $0x54] sm:$0x1] %v301_v57  ;;  %359 = vst [vmem:[#allocation2 + $0x5c] sm:$0xf] %v358_v60  ;;  %v498_v8 = vshll.u32 %v249_v16, 16  ;;  %v6028_v11 = vcombine.low %v1217_v54, %v1227_v2  ;;  %v503_v34 = vshrl.u32 %v250_v17, 16 }
  0x88   : > { %806 = vst [vmem:[#allocation2 + $0xa8] sm:$0xf] %v805_v7  ;;  %v497_v12 = vrot.slane %v495_v61, 7  ;;  %v506_v13 = vshll.u32 %v250_v17, 16  ;;  %v627_v15 = vor.u32 %v625_v51, %v624_v3  ;;  %v629_v14 = vrot.slane %v624_v3, 4 }
  0x89   : > { %v325_v18 = vsel %vm7440_vm4, 0, %v324_v44  ;;  %v382_v19 = vsel %vm7447_vm5, 0, %v381_v53  ;;  %6811 = vmatmul.mubr.bf16.gmra.mxu1 %v6028_v11  ;;  %v505_v23 = vrot.slane %v503_v34, 7  ;;  %v631_v16 = vshrl.u32 %v7836_v40, 16  ;;  %v8151_v6 = vld [vmem:[#allocation2 + $0x10] sm:$0xf] }
  0x8a   : > { %v500_v21 = vor.u32 %v498_v8, %v497_v12  ;;  %v501_v22 = vrot.slane %v497_v12, 4  ;;  %326 = vst [vmem:[#allocation2 + $0xb4] sm:$0x1] %v325_v18  ;;  %383 = vst [vmem:[#allocation2 + $0xbc] sm:$0xf] %v382_v19  ;;  %v628_v28 = vsel %vm7476_vm9, %v620_v42, %v627_v15  ;;  %v809_v30 = vsel %vm7440_vm4, %v629_v14, %v808_v55 }
  0x8b   : > { %v7856_v24 = vld [vmem:[#allocation2 + $0x48] sm:$0xf]  ;;  %v634_v31 = vshll.u32 %v7836_v40, 16  ;;  %v639_v32 = vshrl.u32 %v7845_v62, 16  ;;  %v7864_v33 = vld [vmem:[#allocation2 + $0x4c] sm:$0xf]  ;;  %v508_v38 = vor.u32 %v506_v13, %v505_v23 }
  0x8c   : > { %v7866_v35 = vld [vmem:[#allocation2 + $0x50] sm:$0x1]  ;;  %v1037_v17 = vshrl.u32 %v7856_v24, 16  ;;  %v1040_v36 = vshll.u32 %v7856_v24, 16  ;;  %807 = vst [vmem:[#allocation2 + $0xac] sm:$0xf] %v628_v28 }
  0x8d   : > { %810 = vst [vmem:[#allocation2 + $0xb0] sm:$0x1] %v809_v30  ;;  %v1046_v42 = vshll.u32 %v7864_v33, 16  ;;  %v1050_v43 = vshrl.u32 %v7864_v33, 16  ;;  %v1056_v44 = vshll.u32 %v7866_v35, 16  ;;  %v510_v45 = vrot.slane %v505_v23, 4 }
  0x8e   : > { %v1039_v46 = vrot.slane %v1037_v17, 4  ;;  %v1042_v50 = vrot.slane %v1040_v36, 5  ;;  %v509_v51 = vsel %vm7476_vm9, %v501_v22, %v508_v38  ;;  %v755_v40 = vld [vmem:[#allocation2 + $0x54] sm:$0xf]  ;;  %v759_v53 = vld [vmem:[#allocation2 + $0x5c] sm:$0x1] }
  0x8f   : > { %v1048_v54 = vrot.slane %v1046_v42, 5  ;;  %v1052_v55 = vrot.slane %v1050_v43, 4  ;;  %v1058_v57 = vrot.slane %v1056_v44, 5  ;;  %v7877_v60 = vld [vmem:[#allocation2 + $0xa8] sm:$0xf]  ;;  %v756_v61 = vsel %vm7447_vm5, %v500_v21, %v755_v40  ;;  %10243 = vst [vmem:[#allocation11_spill] sm:$0xff] %v8151_v6 }
  0x90   : > { %10234 = vst [vmem:[#allocation7_spill] sm:$0xff] %v7877_v60  ;;  %758 = vst [vmem:[#allocation2 + $0x58] sm:$0xf] %v509_v51  ;;  %v1043_v2 = vor.u32 %v1042_v50, %v1039_v46  ;;  %v1229_v3 = vshrl.u32 %v7877_v60, 16  ;;  %v1232_v7 = vshll.u32 %v7877_v60, 16  ;;  %v760_v8 = vsel %vm7440_vm4, %v510_v45, %v759_v53 }
  0x91   : > { %757 = vst [vmem:[#allocation2 + $0x54] sm:$0xf] %v756_v61  ;;  %v1053_v11 = vor.u32 %v1052_v55, %v1048_v54  ;;  %761 = vst [vmem:[#allocation2 + $0x5c] sm:$0x1] %v760_v8  ;;  %v633_v12 = vrot.slane %v631_v16, 7  ;;  %v641_v34 = vrot.slane %v639_v32, 7 }
  0x92   : > { %v642_v13 = vshll.u32 %v7845_v62, 16  ;;  %v1044_v15 = vrot.slane %v1043_v2, 4  ;;  %v1231_v14 = vrot.slane %v1229_v3, 4  ;;  %v1234_v18 = vrot.slane %v1232_v7, 5  ;;  %v811_v32 = vld [vmem:[#allocation2 + $0xb4] sm:$0xf] }
  0x93   : > { %vm1920_vm12 = vcmask 1046532   ;;  %v1054_v19 = vrot.slane %v1053_v11, 4  ;;  %v7886_v21 = vld [vmem:[#allocation2 + $0xac] sm:$0xf]  ;;  %v636_v23 = vor.u32 %v634_v31, %v633_v12  ;;  %v637_v28 = vrot.slane %v633_v12, 4 }
  0x94   : > { %10235 = vst [vmem:[#allocation8_spill] sm:$0xff] %v7886_v21  ;;  %v7888_v22 = vld [vmem:[#allocation2 + $0xb0] sm:$0x1]  ;;  %v644_v30 = vor.u32 %v642_v13, %v641_v34  ;;  %v1049_v17 = vsel %vm7494_vm10, %v1044_v15, %v1048_v54  ;;  %v1235_v36 = vor.u32 %v1234_v18, %v1231_v14  ;;  %v1238_v16 = vshll.u32 %v7886_v21, 16  ;;  %v815_v44 = vld [vmem:[#allocation2 + $0xbc] sm:$0x1]  ;;  %vm7920_vm13 = vmor %vm1919_vm11, %vm1920_vm12 }
  0x95   : > { %v1242_v62 = vshrl.u32 %v7886_v21, 16  ;;  %v1059_v38 = vsel %vm7494_vm10, %v1054_v19, %v1058_v57  ;;  %v1248_v42 = vshll.u32 %v7888_v22, 16  ;;  %v646_v31 = vrot.slane %v641_v34, 4  ;;  %v1871_v45 = vld [vmem:[#allocation2] sm:$0xe] }
  0x96   : > { %v645_v43 = vsel %vm7476_vm9, %v637_v28, %v644_v30  ;;  %v6021_v46 = vcombine.low %v1049_v17, %v1059_v38  ;;  %v1236_v50 = vrot.slane %v1235_v36, 4  ;;  %v1240_v51 = vrot.slane %v1238_v16, 5  ;;  %v1872_v54 = vld [vmem:[#allocation2 + $0xc] sm:$0xe]  ;;  %v7907_v7 = vld [vmem:[#allocation2 + $0x18] sm:$0xe] }
  0x97   : > { %v1244_v40 = vrot.slane %v1242_v62, 4  ;;  %v7899_v53 = vld [vmem:[#allocation2 + $0x58] sm:$0xf]  ;;  %814 = vst [vmem:[#allocation2 + $0xb8] sm:$0xf] %v645_v43  ;;  %v1250_v55 = vrot.slane %v1248_v42, 5  ;;  %v812_v3 = vsel %vm7447_vm5, %v636_v23, %v811_v32  ;;  %v816_v19 = vsel %vm7440_vm4, %v646_v31, %v815_v44 }
  0x98   : > { %v7901_v61 = vld [vmem:[#allocation2 + $0x54] sm:$0xf]  ;;  %v1070_v57 = vshll.u32 %v7899_v53, 16  ;;  %v1074_v2 = vshrl.u32 %v7899_v53, 16  ;;  %6798 = vmatprep.mubr.bf16.mxu0 %v6021_v46  ;;  %v1241_v8 = vsel %vm7494_vm10, %v1236_v50, %v1240_v51  ;;  %v7911_v12 = vld [vmem:[#allocation2 + $0x5c] sm:$0x1] }
  0x99   : > { %v1245_v11 = vor.u32 %v1244_v40, %v1240_v51  ;;  %v1061_v34 = vshrl.u32 %v7901_v61, 16  ;;  %v1064_v13 = vshll.u32 %v7901_v61, 16  ;;  %813 = vst [vmem:[#allocation2 + $0xb4] sm:$0xf] %v812_v3  ;;  %v1080_v18 = vshll.u32 %v7911_v12, 16 }
  0x9a   : > { %v1072_v15 = vrot.slane %v1070_v57, 5  ;;  %v1076_v14 = vrot.slane %v1074_v2, 4  ;;  %817 = vst [vmem:[#allocation2 + $0xbc] sm:$0x1] %v816_v19  ;;  %v6063_v17 = vrot.slane %v1871_v45, 9  ;;  %v6064_v42 = vrot.slane %v1872_v54, 9 }
  0x9b   : > { %v1246_v23 = vrot.slane %v1245_v11, 4  ;;  %v1063_v28 = vrot.slane %v1061_v34, 4  ;;  %v1066_v30 = vrot.slane %v1064_v13, 5  ;;  %v1082_v16 = vrot.slane %v1080_v18, 5  ;;  %v7924_v32 = vld [vmem:[#allocation2 + $0x4] sm:$0xf] }
  0x9c   : > { %v1077_v36 = vor.u32 %v1076_v14, %v1072_v15  ;;  %v1924_v38 = vrot.slane %v7924_v32, 5  ;;  %v7929_v44 = vld [vmem:[#allocation2 + $0x10] sm:$0xf]  ;;  %v6065_v46 = vrot.slane %v7907_v7, 9  ;;  %v7947_v13 = vld [vmem:[#allocation2 + $0x1c] sm:$0xf] }
  0x9d   : > { %v1251_v43 = vsel %vm7494_vm10, %v1246_v23, %v1250_v55  ;;  %v1067_v31 = vor.u32 %v1066_v30, %v1063_v28  ;;  %v1931_v45 = vrot.slane %v7929_v44, 5  ;;  %v1938_v14 = vrot.slane %v7947_v13, 5 }
  0x9e   : > { %v6029_v50 = vcombine.low %v1241_v8, %v1251_v43  ;;  %v1078_v51 = vrot.slane %v1077_v36, 4  ;;  %v7933_v40 = vld [vmem:[#allocation2 + $0xb8] sm:$0xf]  ;;  %v1926_v57 = vrot.slane %v1924_v38, 4  ;;  %v1925_v55 = vsel %vm7920_vm13, %v6063_v17, %v1924_v38  ;;  %v1875_v38 = vld [vmem:[#allocation2 + $0x30] sm:$0xe] }
  0x9f   : > { %10238 = vst [vmem:[#allocation9_spill] sm:$0xff] %v7933_v40  ;;  %v1068_v2 = vrot.slane %v1067_v31, 4  ;;  %v1262_v3 = vshll.u32 %v7933_v40, 16  ;;  %v1266_v54 = vshrl.u32 %v7933_v40, 16  ;;  %v1933_v8 = vrot.slane %v1931_v45, 4 }
  0xa0   : > { %6814 = vmatprep.mubr.bf16.mxu1 %v6029_v50  ;;  %v1083_v11 = vsel %vm7494_vm10, %v1078_v51, %v1082_v16  ;;  %v7941_v34 = vld [vmem:[#allocation2 + $0xb4] sm:$0xf]  ;;  %v1928_v7 = vsel %vm7920_vm13, %v1926_v57, %v1927_v47  ;;  %v1932_v47 = vsel %vm7920_vm13, %v6064_v42, %v1931_v45  ;;  %v1874_v16 = vld [vmem:[#allocation2 + $0x24] sm:$0xe]  ;;  %v1940_v57 = vrot.slane %v1938_v14, 4 }
  0xa1   : > { %10239 = vst [vmem:[#allocation10_spill] sm:$0xff] %v7941_v34  ;;  %v1073_v18 = vsel %vm7494_vm10, %v1068_v2, %v1072_v15  ;;  %v1253_v19 = vshrl.u32 %v7941_v34, 16  ;;  %v1256_v23 = vshll.u32 %v7941_v34, 16  ;;  %v1264_v28 = vrot.slane %v1262_v3, 5  ;;  %v7954_v17 = vld [vmem:[#allocation2 + $0xbc] sm:$0x1] }
  0xa2   : > { %v6022_v30 = vcombine.low %v1073_v18, %v1083_v11  ;;  %v1268_v49 = vrot.slane %v1266_v54, 4  ;;  %v6095_v36 = vcombine.low %v1925_v55, %v1928_v7  ;;  %v1272_v50 = vshll.u32 %v7954_v17, 16  ;;  %v7350_v2 = vld [vmem:[#allocation2 + $0x20] sm:$0x1]  ;;  %v7963_v42 = vld [vmem:[#allocation2 + $0x28] sm:$0xf] }
  0xa3   : > { %v1255_v43 = vrot.slane %v1253_v19, 4  ;;  %v1258_v31 = vrot.slane %v1256_v23, 5  ;;  %v1935_v15 = vsel %vm7920_vm13, %v1933_v8, %v1934_v20  ;;  %v1941_v3 = vrot.slane %v7350_v2, 5  ;;  %v1876_v23 = vld [vmem:[#allocation2 + $0x3c] sm:$0xe] }
  0xa4   : > { %6799 = vmatmul.mubr.bf16.gmra.mxu0 %v6022_v30  ;;  %v1269_v51 = vor.u32 %v1268_v49, %v1264_v28  ;;  %v1274_v55 = vrot.slane %v1272_v50, 5  ;;  %v1945_v45 = vrot.slane %v7963_v42, 5  ;;  %v6096_v7 = vcombine.low %v1932_v47, %v1935_v15  ;;  %v7352_v49 = vld [vmem:[#allocation2 + $0x2c] sm:$0x1]  ;;  %v7985_v2 = vld [vmem:[#allocation2 + $0x48] sm:$0xe] }
  0xa5   : > { %v1259_v54 = vor.u32 %v1258_v31, %v1255_v43  ;;  %6882 = vmatprep.mubr.bf16.mxu0 %v6095_v36  ;;  %v6067_v18 = vrot.slane %v1875_v38, 9  ;;  %v1939_v58 = vsel %vm7920_vm13, %v6065_v46, %v1938_v14  ;;  %v1942_v20 = vsel %vm7920_vm13, %v1940_v57, %v1941_v3  ;;  %v7353_v38 = vld [vmem:[#allocation2] sm:$0xf] }
  0xa6   : > { %v1270_v11 = vrot.slane %v1269_v51, 4  ;;  %v6066_v8 = vrot.slane %v1874_v16, 9  ;;  %v1948_v36 = vrot.slane %v7352_v49, 5  ;;  %v1952_v43 = vrot.slane %v7738_v56, 5  ;;  %v7258_v51 = vld [vmem:[%s10181_s3 + $0x130] sm:$0xff]  }
  0xa7   : > { %v1260_v19 = vrot.slane %v1259_v54, 4  ;;  %v1955_v31 = vrot.slane %v7749_v4, 5  ;;  %v6039_v46 = vcombine.low %v7353_v38, %v7924_v32  ;;  %v1947_v14 = vrot.slane %v1945_v45, 4  ;;  %v8018_v38 = vld [vmem:[#allocation2 + $0x6c] sm:$0xe] }
  0xa8   : > { %v1275_v30 = vsel %vm7494_vm10, %v1270_v11, %v1274_v55  ;;  %v1959_v50 = vrot.slane %v7779_v29, 5  ;;  %v6097_v15 = vcombine.low %v1939_v58, %v1942_v20  ;;  %v7983_v57 = vsel %vm7920_vm13, %v6067_v18, %v1952_v43  ;;  %v7355_v20 = vld [vmem:[#allocation2 + $0xc] sm:$0xf]  ;;  %v8057_v58 = vld [vmem:[#allocation2 + $0x88] sm:$0xf]  ;;  %v7266_v11 = vld [vmem:[%s10181_s3 + $0x120] sm:$0xff]  }
  0xa9   : > { %v1265_v47 = vsel %vm7494_vm10, %v1260_v19, %v1264_v28  ;;  %v1954_v4 = vrot.slane %v1952_v43, 4  ;;  %v1946_v32 = vsel %vm7920_vm13, %v6066_v8, %v1945_v45  ;;  %v6068_v3 = vrot.slane %v1876_v23, 9  ;;  %v1878_v45 = vld [vmem:[#allocation2 + $0x54] sm:$0xe]  ;;  %v8000_v19 = vld [vmem:[#allocation2 + $0x68] sm:$0x1] }
  0xaa   : > { %v6030_v16 = vcombine.low %v1265_v47, %v1275_v30  ;;  %v1966_v54 = vrot.slane %v7864_v33, 5  ;;  %v1949_v55 = vsel %vm7920_vm13, %v1947_v14, %v1948_v36  ;;  %v1962_v18 = vrot.slane %v7785_v1, 5  ;;  %v7356_v23 = vld [vmem:[#allocation2 + $0x18] sm:$0xf]  ;;  %v7262_v30 = vld [vmem:[%s10181_s3 + $0x128] sm:$0xff]  }
  0xab   : > { %v7991_v28 = vsel %vm7920_vm13, %v1954_v4, %v1955_v31  ;;  %v6040_v8 = vcombine.low %v7355_v20, %v7929_v44  ;;  %v1973_v49 = vrot.slane %v7899_v53, 5  ;;  %v1879_v1 = vld [vmem:[#allocation2 + $0x60] sm:$0xe]  ;;  %v6069_v36 = vrot.slane %v7985_v2, 9  ;;  %v8011_v31 = vld [vmem:[#allocation2 + $0x64] sm:$0xf] }
  0xac   : > { %6815 = vmatmul.mubr.bf16.gmra.mxu1 %v6030_v16  ;;  %6883 = vmatmul.mubr.bf16.vlgmr.msra.gmra.mxu0 %v6096_v7  ;;  %v1961_v7 = vrot.slane %v1959_v50, 4  ;;  %v1969_v43 = vrot.slane %v7866_v35, 5  ;;  %v8013_v47 = vld [vmem:[#allocation2 + $0x60] sm:$0xf]  ;;  %v1968_v14 = vrot.slane %v1966_v54, 4  ;;  %v6070_v16 = vrot.slane %v1878_v45, 9 }
  0xad   : > { %6834 = vmatprep.mubr.bf16.mxu1 %v6039_v46  ;;  %6963 = vmatpush3.bf16.msra.mxu0 %v7678_v26  ;;  %v6041_v26 = vcombine.low %v7356_v23, %v7947_v13  ;;  %v1980_v13 = vrot.slane %v8011_v31, 5  ;;  %v6098_v46 = vcombine.low %v1946_v32, %v1949_v55  ;;  %v8022_v4 = vld [vmem:[#allocation2 + $0x70] sm:$0xf]  ;;  %v8028_v2 = vsel %vm7920_vm13, %v6068_v3, %v1959_v50  ;;  %v8035_v55 = vld [vmem:[#allocation2 + $0x24] sm:$0xf] }
  0xae   : > { %6886 = vmatprep.mubr.bf16.mxu0 %v6097_v15  ;;  %6964 = vmatprep.subr.bf16.mxu0 %v7258_v51  ;;  %v8020_v15 = vld [vmem:[#allocation2 + $0x6c] sm:$0xf]  ;;  %v8032_v20 = vsel %vm7920_vm13, %v1961_v7, %v1962_v18  ;;  %v6071_v23 = vrot.slane %v1879_v1, 9  ;;  %v1987_v32 = vrot.slane %v8022_v4, 5  ;;  %v1975_v35 = vrot.slane %v1973_v49, 4 }
  0xaf   : > { %v1976_v50 = vrot.slane %v7911_v12, 5  ;;  %v8043_v3 = vld [vmem:[#allocation2 + $0x78] sm:$0xf]  ;;  %v8045_v7 = vld [vmem:[#allocation2 + $0x7c] sm:$0xf]  ;;  %v1982_v41 = vrot.slane %v1980_v13, 4  ;;  %v6100_v18 = vcombine.low %v8028_v2, %v8032_v20  ;;  %v8065_v1 = vsel %vm7920_vm13, %v6069_v36, %v1966_v54 }
  0xb0   : > { %v8055_v45 = vld [vmem:[#allocation2 + $0x84] sm:$0xf]  ;;  %v8069_v44 = vsel %vm7920_vm13, %v1968_v14, %v1969_v43  ;;  %v6072_v39 = vrot.slane %v8018_v38, 9  ;;  %v1884_v12 = vld [vmem:[#allocation2 + $0x9c] sm:$0xe]  ;;  %v8080_v54 = vsel %vm7920_vm13, %v6070_v16, %v1973_v49  ;;  %v8084_v36 = vsel %vm7920_vm13, %v6071_v23, %v1980_v13 }
  0xb1   : > { %6965 = vmatpush3.bf16.msra.mxu0 %v7258_v51  ;;  %v7257_v51 = vld [vmem:[%s10181_s3 + $0xf0] sm:$0xff]   ;;  %v1989_v43 = vrot.slane %v1987_v32, 4  ;;  %v1882_v2 = vld [vmem:[#allocation2 + $0x84] sm:$0xe]  ;;  %v10240_v38 = vcombine.low %v7983_v57, %v7991_v28  ;;  %v8094_v49 = vsel %vm7920_vm13, %v1975_v35, %v1976_v50  ;;  %v6073_v13 = vrot.slane %v8053_v9, 9 }
  0xb2   : > { %6966 = vmatprep.subr.bf16.mxu0 %v7262_v30  ;;  %v1994_v16 = vrot.slane %v8045_v7, 5  ;;  %v1883_v20 = vld [vmem:[#allocation2 + $0x90] sm:$0xe]  ;;  %v10241_v57 = vrot.slane %v8000_v19, 5  ;;  %v2001_v35 = vrot.slane %v8057_v58, 5  ;;  %v6076_v50 = vrot.slane %v1884_v12, 9 }
  0xb3   : > { %v7265_v9 = vld [vmem:[%s10181_s3 + $0xe0] sm:$0xff]   ;;  %v2008_v23 = vrot.slane %v7765_v27, 5  ;;  %v2018_v19 = vrot.slane %v7823_v5, 5  ;;  %v8119_v12 = vsel %vm7920_vm13, %v6072_v39, %v1987_v32  ;;  %v7270_v32 = vld [vmem:[%s10181_s3 + $0x118] sm:$0xff]  }
  0xb4   : > { %6835 = vmatmul.mubr.bf16.vlgmr.msra.gmra.mxu1 %v6040_v8  ;;  %6887 = vmatmul.mubr.bf16.gmra.mxu0 %v6098_v46  ;;  %v7366_v8 = vld [vmem:[%s10181_s3 + $0xf8] sm:$0xff]   ;;  %v7367_v46 = vld [vmem:[#allocation2 + $0x74] sm:$0x1]  ;;  %v8104_v28 = vsel %vm7920_vm13, %v1982_v41, %v10241_v57  ;;  %v6101_v41 = vcombine.low %v8065_v1, %v8069_v44  ;;  %v1996_v5 = vrot.slane %v1994_v16, 4  ;;  %v2003_v1 = vrot.slane %v2001_v35, 4 }
  0xb5   : > { %6915 = vmatpush3.bf16.msra.mxu1 %v7366_v8  ;;  %6838 = vmatprep.mubr.bf16.mxu1 %v6041_v26  ;;  %v1990_v14 = vrot.slane %v7367_v46, 5  ;;  %v7261_v26 = vld [vmem:[%s10181_s3 + $0xe8] sm:$0xff]   ;;  %v7368_v8 = vld [vmem:[#allocation2 + $0x80] sm:$0x1]  ;;  %v10252_v60 = vcombine.low %v8084_v36, %v8104_v28 }
  0xb6   : > { %6916 = vmatprep.subr.bf16.mxu1 %v7257_v51  ;;  %6890 = vmatprep.mubr.bf16.mxu0 %v10240_v38  ;;  %v1997_v46 = vrot.slane %v7368_v8, 5  ;;  %v6074_v38 = vrot.slane %v1882_v2, 9  ;;  %v2742_v8 = vld [vmem:[#allocation2 + $0xc] sm:$0xf] }
  0xb7   : > { %6967 = vmatpush3.bf16.msra.mxu0 %v7262_v30  ;;  %v2015_v30 = vrot.slane %v7813_v52, 5  ;;  %v8125_v10 = vsel %vm7920_vm13, %v1989_v43, %v1990_v14  ;;  %v7369_v2 = vld [vmem:[#allocation2 + $0x8c] sm:$0x1]  ;;  %v8139_v43 = vld [vmem:[%s10181_s3 + $0x110] sm:$0xff]   ;;  %v6075_v14 = vrot.slane %v1883_v20, 9  ;;  %v10244_v20 = vcombine.low %v7745_v63, %v7738_v56 }
  0xb8   : > { %6968 = vmatprep.subr.bf16.mxu0 %v7266_v11  ;;  %v2004_v57 = vrot.slane %v7369_v2, 5  ;;  %v8168_v56 = vsel %vm7920_vm13, %v6073_v13, %v1994_v16  ;;  %v8172_v63 = vsel %vm7920_vm13, %v1996_v5, %v1997_v46  ;;  %v8188_v16 = vld [vmem:[#allocation2 + $0xb4] sm:$0xe]  ;;  %v2800_v46 = vshll.u32 %v8151_v6, 16 }
  0xb9   : > { %6917 = vmatpush3.bf16.msra.mxu1 %v7257_v51  ;;  %v8129_v44 = vsel %vm7920_vm13, %v6076_v50, %v2015_v30  ;;  %v2017_v51 = vrot.slane %v2015_v30, 4  ;;  %v10242_v50 = vcombine.low %v8035_v55, %v7963_v42  ;;  %v2011_v30 = vrot.slane %v7771_v37, 5  ;;  %v8160_v55 = vld [vmem:[#allocation2 + $0xa8] sm:$0xe]  ;;  %v2748_v42 = vld [vmem:[#allocation2 + $0x24] sm:$0xf] }
  0xba   : > { %6918 = vmatprep.subr.bf16.mxu1 %v7261_v26  ;;  %v8182_v2 = vsel %vm7920_vm13, %v2003_v1, %v2004_v57  ;;  %v8186_v13 = vsel %vm7920_vm13, %v6075_v14, %v2008_v23  ;;  %v6077_v57 = vrot.slane %v8160_v55, 9  ;;  %v7278_v14 = vld [vmem:[%s10181_s3 + $0x108] sm:$0xff]   ;;  %v2025_v37 = vrot.slane %v7888_v22, 5 }
  0xbb   : > { %6969 = vmatpush3.bf16.msra.mxu0 %v7266_v11  ;;  %v2010_v11 = vrot.slane %v2008_v23, 4  ;;  %v8147_v39 = vsel %vm7920_vm13, %v2017_v51, %v2018_v19  ;;  %v2791_v19 = vshrl.u32 %v2742_v8, 16  ;;  %v7269_v51 = vld [vmem:[%s10181_s3 + $0xd8] sm:$0xff]   ;;  %v7273_v23 = vld [vmem:[%s10181_s3 + $0xd0] sm:$0xff]   ;;  %v10249_v55 = vcombine.low %v7783_v0, %v7779_v29  ;;  %v7277_v29 = vld [vmem:[%s10181_s3 + $0xc8] sm:$0xff]  }
  0xbc   : > { %6839 = vmatmul.mubr.bf16.gmra.mxu1 %v10242_v50  ;;  %6891 = vmatmul.mubr.bf16.gmra.mxu0 %v6100_v18  ;;  %v2022_v18 = vrot.slane %v7886_v21, 5  ;;  %v8178_v50 = vld [vmem:[#allocation2 + $0x14] sm:$0x1]  ;;  %v8221_v21 = vld [vmem:[#allocation2 + $0x28] sm:$0xf]  ;;  %v2032_v0 = vrot.slane %v7954_v17, 5 }
  0xbd   : > { %6842 = vmatprep.mubr.bf16.mxu1 %v10244_v20  ;;  %6919 = vmatpush3.bf16.msra.mxu1 %v7261_v26  ;;  %v8176_v26 = vsel %vm7920_vm13, %v6074_v38, %v2001_v35  ;;  %10245 = vst [vmem:[#allocation12_spill] sm:$0xff] %v8178_v50  ;;  %v2745_v20 = vld [vmem:[#allocation2 + $0x18] sm:$0xf]  ;;  %v2804_v35 = vshrl.u32 %v8151_v6, 16  ;;  %v8192_v38 = vld [vmem:[#allocation2 + $0x1c] sm:$0xf] }
  0xbe   : > { %6894 = vmatprep.mubr.bf16.mxu0 %v6101_v41  ;;  %6920 = vmatprep.subr.bf16.mxu1 %v7265_v9  ;;  %v2794_v41 = vshll.u32 %v2742_v8, 16  ;;  %10246 = vst [vmem:[#allocation13_spill] sm:$0xff] %v8192_v38  ;;  %v8196_v8 = vsel %vm7920_vm13, %v2010_v11, %v2011_v30  ;;  %v2793_v5 = vrot.slane %v2791_v19, 4  ;;  %v8207_v11 = vrot.slane %v2800_v46, 5  ;;  %v8219_v46 = vld [vmem:[#allocation2 + $0x20] sm:$0x1] }
  0xbf   : > { %6970 = vmatprep.subr.bf16.mxu0 %v7270_v32  ;;  %v2806_v30 = vrot.slane %v2804_v35, 4  ;;  %v2029_v19 = vrot.slane %v7933_v40, 5  ;;  %10247 = vst [vmem:[#allocation14_spill] sm:$0xff] %v8219_v46  ;;  %v2815_v35 = vshrl.u32 %v2745_v20, 16  ;;  %v2818_v34 = vshll.u32 %v2745_v20, 16  ;;  %10248 = vst [vmem:[#allocation15_spill] sm:$0xff] %v8221_v21 }
  0xc0   : > { %6971 = vmatpush3.bf16.msra.mxu0 %v7270_v32  ;;  %v2796_v1 = vrot.slane %v2794_v41, 5  ;;  %v2024_v32 = vrot.slane %v2022_v18, 4  ;;  %v2810_v41 = vshll.u32 %v8178_v50, 16  ;;  %v6078_v50 = vrot.slane %v8188_v16, 9  ;;  %v8246_v16 = vld [vmem:[#allocation2 + $0x2c] sm:$0x1] }
  0xc1   : > { %6921 = vmatpush3.bf16.msra.mxu1 %v7265_v9  ;;  %6972 = vmatprep.subr.bf16.mxu0 %v8139_v43  ;;  %v10250_v9 = vcombine.low %v8080_v54, %v8094_v49  ;;  %v2824_v40 = vshll.u32 %v8192_v38, 16  ;;  %v2828_v22 = vshrl.u32 %v8192_v38, 16  ;;  %v10251_v20 = vcombine.low %v7856_v24, %v7864_v33  ;;  %v7282_v54 = vld [vmem:[%s10181_s3 + $0x100] sm:$0xff]   ;;  %10253 = vst [vmem:[#allocation16_spill] sm:$0xff] %v8246_v16 }
  0xc2   : > { %6922 = vmatprep.subr.bf16.mxu1 %v7269_v51  ;;  %v2797_v6 = vor.u32 %v2796_v1, %v2793_v5  ;;  %v2807_v49 = vor.u32 %v2806_v30, %v8207_v11  ;;  %v2839_v24 = vshrl.u32 %v2748_v42, 16  ;;  %v2842_v33 = vshll.u32 %v2748_v42, 16  ;;  %v2751_v5 = vld [vmem:[#allocation2 + $0x30] sm:$0xf]  ;;  %v8259_v1 = vld [vmem:[#allocation2 + $0x34] sm:$0xf] }
  0xc3   : > { %v8255_v17 = vsel %vm7920_vm13, %v2024_v32, %v2025_v37  ;;  %v2031_v36 = vrot.slane %v2029_v19, 4  ;;  %v8257_v28 = vrot.slane %v2810_v41, 5  ;;  %10254 = vst [vmem:[#allocation17_spill] sm:$0xff] %v8259_v1  ;;  %v2817_v42 = vrot.slane %v2815_v35, 4 }
  0xc4   : > { %6843 = vmatmul.mubr.bf16.gmra.mxu1 %v10249_v55  ;;  %6895 = vmatmul.mubr.bf16.gmra.mxu0 %v10250_v9  ;;  %v2852_v30 = vshrl.u32 %v8221_v21, 16  ;;  %v2830_v37 = vrot.slane %v2828_v22, 4  ;;  %v2834_v32 = vshll.u32 %v8219_v46, 16  ;;  %v7281_v9 = vld [vmem:[%s10181_s3 + $0xc0] sm:$0xff]   ;;  %v8271_v55 = vrot.slane %v2807_v49, 4 }
  0xc5   : > { %6846 = vmatprep.mubr.bf16.mxu1 %v10251_v20  ;;  %6898 = vmatprep.mubr.bf16.mxu0 %v10252_v60  ;;  %v8251_v60 = vsel %vm7920_vm13, %v6077_v57, %v2022_v18  ;;  %v8263_v18 = vrot.slane %v2797_v6, 4  ;;  %v8265_v57 = vrot.slane %v2824_v40, 5  ;;  %v2841_v41 = vrot.slane %v2839_v24, 4  ;;  %v2754_v20 = vld [vmem:[#allocation2 + $0x3c] sm:$0xf] }
  0xc6   : > { %6923 = vmatpush3.bf16.msra.mxu1 %v7269_v51  ;;  %6973 = vmatpush3.bf16.msra.mxu0 %v8139_v43  ;;  %v2820_v51 = vrot.slane %v2818_v34, 5  ;;  %v2848_v43 = vshll.u32 %v8221_v21, 16  ;;  %v8276_v34 = vld [vmem:[%s10181_s3 + $0x1b8] sm:$0xff]   ;;  %v2844_v35 = vrot.slane %v2842_v33, 5  ;;  %v2863_v6 = vshrl.u32 %v2751_v5, 16 }
  0xc7   : > { %6924 = vmatprep.subr.bf16.mxu1 %v7273_v23  ;;  %6974 = vmatprep.subr.bf16.mxu0 %v7278_v14  ;;  %v2858_v40 = vshll.u32 %v8246_v16, 16  ;;  %v8279_v22 = vld [vmem:[#allocation2 + $0x38] sm:$0x1]  ;;  %v2866_v46 = vshll.u32 %v2751_v5, 16  ;;  %v2872_v38 = vshll.u32 %v8259_v1, 16  ;;  %v2876_v49 = vshrl.u32 %v8259_v1, 16 }
  0xc8   : > { %v8283_v21 = vld [vmem:[#allocation2 + $0x40] sm:$0xf]  ;;  %v8287_v24 = vsel %vm7920_vm13, %v6078_v50, %v2029_v19  ;;  %v2821_v33 = vor.u32 %v2820_v51, %v2817_v42  ;;  %v10255_v16 = vcombine.low %v7901_v61, %v7899_v53  ;;  %v10256_v5 = vcombine.low %v8119_v12, %v8125_v10  ;;  %v2757_v42 = vld [vmem:[#allocation2 + $0x48] sm:$0xf] }
  0xc9   : > { %v8299_v1 = vsel %vm7920_vm13, %v2031_v36, %v2032_v0  ;;  %v2831_v50 = vor.u32 %v2830_v37, %v8265_v57  ;;  %v2865_v19 = vrot.slane %v2863_v6, 4  ;;  %v2868_v52 = vrot.slane %v2866_v46, 5  ;;  %v8338_v37 = vld [vmem:[#allocation2 + $0x44] sm:$0x1] }
  0xca   : > { %6925 = vmatpush3.bf16.msra.mxu1 %v7273_v23  ;;  %6975 = vmatpush3.bf16.msra.mxu0 %v7278_v14  ;;  %v8289_v23 = vrot.slane %v2848_v43, 5  ;;  %v2854_v14 = vrot.slane %v2852_v30, 4  ;;  %v10257_v51 = vcombine.low %v8013_v47, %v8011_v31  ;;  %v10258_v53 = vcombine.low %v8168_v56, %v8172_v63  ;;  %v8323_v63 = vld [vmem:[%s10181_s3 + $0x178] sm:$0xff]  }
  0xcb   : > { %6926 = vmatprep.subr.bf16.mxu1 %v7277_v29  ;;  %6976 = vmatprep.subr.bf16.mxu0 %v7282_v54  ;;  %v8308_v61 = vrot.slane %v2834_v32, 5  ;;  %v8310_v10 = vrot.slane %v2872_v38, 5  ;;  %v2878_v12 = vrot.slane %v2876_v49, 4  ;;  %v2887_v0 = vshrl.u32 %v2754_v20, 16 }
  0xcc   : > { %6847 = vmatmul.mubr.bf16.gmra.mxu1 %v10255_v16  ;;  %6899 = vmatmul.mubr.bf16.gmra.mxu0 %v10256_v5  ;;  %v2803_v46 = vsel %vm7494_vm10, %v8263_v18, %v8207_v11  ;;  %v2890_v16 = vshll.u32 %v2754_v20, 16  ;;  %v2896_v31 = vshll.u32 %v8283_v21, 16  ;;  %v2900_v47 = vshrl.u32 %v8283_v21, 16 }
  0xcd   : > { %6850 = vmatprep.mubr.bf16.mxu1 %v10257_v51  ;;  %6902 = vmatprep.mubr.bf16.mxu0 %v10258_v53  ;;  %v8318_v56 = vrot.slane %v2821_v33, 4  ;;  %v2845_v38 = vor.u32 %v2844_v35, %v2841_v41  ;;  %v2882_v11 = vshll.u32 %v8279_v22, 16  ;;  %v2813_v36 = vsel %vm7494_vm10, %v8271_v55, %v8257_v28  ;;  %v8343_v33 = vld [vmem:[#allocation2 + $0x50] sm:$0x1] }
  0xce   : > { %6927 = vmatpush3.bf16.msra.mxu1 %v7277_v29  ;;  %6977 = vmatpush3.bf16.msra.mxu0 %v7282_v54  ;;  %v2855_v29 = vor.u32 %v2854_v14, %v8289_v23  ;;  %v8328_v54 = vld [vmem:[#allocation2 + $0x4c] sm:$0xf]  ;;  %v8334_v43 = vrot.slane %v2831_v50, 4  ;;  %v8336_v30 = vrot.slane %v2858_v40, 5  ;;  %v2869_v18 = vor.u32 %v2868_v52, %v2865_v19  ;;  %v2760_v50 = vld [vmem:[#allocation2 + $0x54] sm:$0xf] }
  0xcf   : > { %6928 = vmatprep.subr.bf16.mxu1 %v7281_v9  ;;  %7058 = vmatprep.subr.bf16.mxu0 %v8276_v34  ;;  %v2879_v32 = vor.u32 %v2878_v12, %v8310_v10  ;;  %v2889_v41 = vrot.slane %v2887_v0, 4  ;;  %v2892_v35 = vrot.slane %v2890_v16, 5  ;;  %v2911_v6 = vshrl.u32 %v2757_v42, 16  ;;  %v8367_v0 = vld [vmem:[#allocation2 + $0x58] sm:$0xf] }
  0xd0   : > { %v8341_v20 = vrot.slane %v2896_v31, 5  ;;  %v2902_v49 = vrot.slane %v2900_v47, 4  ;;  %v2914_v14 = vshll.u32 %v2757_v42, 16  ;;  %v2920_v28 = vshll.u32 %v8328_v54, 16  ;;  %v2763_v16 = vld [vmem:[#allocation2 + $0x60] sm:$0xf] }
  0xd1   : > { %v8347_v55 = vrot.slane %v2845_v38, 4  ;;  %v8349_v52 = vrot.slane %v2855_v29, 4  ;;  %v8351_v40 = vrot.slane %v2882_v11, 5  ;;  %v2924_v5 = vshrl.u32 %v8328_v54, 16 }
  0xd2   : > { %6929 = vmatpush3.bf16.msra.mxu1 %v7281_v9  ;;  %v10259_v9 = vcombine.low %v8020_v15, %v8022_v4  ;;  %v10260_v19 = vcombine.low %v8176_v26, %v8182_v2  ;;  %v6109_v42 = vcombine.low %v8251_v60, %v8255_v17  ;;  %v6110_v51 = vcombine.low %v8287_v24, %v8299_v1 }
  0xd3   : > { %7010 = vmatprep.subr.bf16.mxu1 %v8323_v63  ;;  %v8364_v53 = vrot.slane %v2869_v18, 4  ;;  %v2906_v12 = vshll.u32 %v8338_v37, 16  ;;  %v10261_v15 = vcombine.low %v8043_v3, %v8045_v7  ;;  %v10262_v4 = vcombine.low %v8186_v13, %v8196_v8 }
  0xd4   : > { %6851 = vmatmul.mubr.bf16.gmra.mxu1 %v10259_v9  ;;  %6903 = vmatmul.mubr.bf16.gmra.mxu0 %v10260_v19  ;;  %v8375_v2 = vcombine.low %v2803_v46, %v2813_v36  ;;  %v2893_v26 = vor.u32 %v2892_v35, %v2889_v41  ;;  %v2913_v60 = vrot.slane %v2911_v6, 4  ;;  %v2916_v17 = vrot.slane %v2914_v14, 5  ;;  %v8396_v36 = vld [vmem:[#allocation2 + $0x64] sm:$0xf]  ;;  %v2766_v14 = vld [vmem:[#allocation2 + $0x6c] sm:$0xf] }
  0xd5   : > { %6854 = vmatprep.mubr.bf16.mxu1 %v10261_v15  ;;  %6906 = vmatprep.mubr.bf16.mxu0 %v10262_v4  ;;  %v2827_v31 = vsel %vm7494_vm10, %v8318_v56, %v8265_v57  ;;  %v2880_v47 = vrot.slane %v2879_v32, 4  ;;  %v2903_v38 = vor.u32 %v2902_v49, %v8341_v20  ;;  %v8382_v3 = vrot.slane %v2920_v28, 5 }
  0xd6   : > { %v2837_v7 = vsel %vm7494_vm10, %v8334_v43, %v8308_v61  ;;  %v2851_v13 = vsel %vm7494_vm10, %v8347_v55, %v8289_v23  ;;  %v2926_v8 = vrot.slane %v2924_v5, 4  ;;  %v2930_v46 = vshll.u32 %v8343_v33, 16  ;;  %v8400_v61 = vld [vmem:[#allocation2 + $0x5c] sm:$0x1] }
  0xd7   : > { %v8393_v29 = vrot.slane %v2906_v12, 5  ;;  %v2935_v57 = vshrl.u32 %v2760_v50, 16  ;;  %v2938_v56 = vshll.u32 %v2760_v50, 16  ;;  %v2944_v11 = vshll.u32 %v8367_v0, 16  ;;  %v8430_v12 = vld [vmem:[#allocation2 + $0x68] sm:$0x1] }
  0xd8   : > { %v8398_v18 = vrot.slane %v2893_v26, 4  ;;  %v2917_v32 = vor.u32 %v2916_v17, %v2913_v60  ;;  %v2948_v43 = vshrl.u32 %v8367_v0, 16  ;;  %v2959_v41 = vshrl.u32 %v2763_v16, 16 }
  0xd9   : > { %v2861_v23 = vsel %vm7494_vm10, %v8349_v52, %v8336_v30  ;;  %v2875_v35 = vsel %vm7494_vm10, %v8364_v53, %v8310_v10  ;;  %v8411_v6 = vrot.slane %v2903_v38, 4  ;;  %v2962_v49 = vshll.u32 %v2763_v16, 16  ;;  %v8420_v30 = vld [vmem:[#allocation2 + $0x70] sm:$0xf] }
  0xda   : > { %v2885_v28 = vsel %vm7494_vm10, %v2880_v47, %v8351_v40  ;;  %v2927_v55 = vor.u32 %v2926_v8, %v8382_v3  ;;  %v8417_v5 = vrot.slane %v2930_v46, 5  ;;  %v2968_v50 = vshll.u32 %v8396_v36, 16 }
  0xdb   : > { %v10263_v52 = vcombine.low %v8055_v45, %v8057_v58  ;;  %v10264_v10 = vcombine.low %v8129_v44, %v8147_v39  ;;  %v2937_v9 = vrot.slane %v2935_v57, 4  ;;  %v2940_v19 = vrot.slane %v2938_v56, 5  ;;  %v2769_v44 = vld [vmem:[#allocation2 + $0x78] sm:$0xf] }
  0xdc   : > { %v8428_v53 = vrot.slane %v2944_v11, 5  ;;  %v2950_v40 = vrot.slane %v2948_v43, 4  ;;  %v10265_v15 = vcombine.low %v7763_v25, %v7765_v27  ;;  %v8435_v4 = vrot.slane %v2917_v32, 4  ;;  %v8452_v11 = vld [vmem:[#allocation2 + $0x7c] sm:$0xf] }
  0xdd   : > { %6855 = vmatmul.mubr.bf16.gmra.mxu1 %v10263_v52  ;;  %6907 = vmatmul.mubr.bf16.gmra.mxu0 %v10264_v10  ;;  %v2961_v58 = vrot.slane %v2959_v41, 4  ;;  %v2964_v45 = vrot.slane %v2962_v49, 5  ;;  %v2972_v26 = vshrl.u32 %v8396_v36, 16  ;;  %v2954_v39 = vshll.u32 %v8400_v61, 16  ;;  %10266 = vst [vmem:[#allocation18_spill] sm:$0xff] %v8452_v11 }
  0xde   : > { %6858 = vmatprep.mubr.bf16.mxu1 %v10265_v15  ;;  %6910 = vmatprep.mubr.bf16.mxu0 %v6109_v42  ;;  %v2983_v60 = vshrl.u32 %v2766_v14, 16  ;;  %v2986_v17 = vshll.u32 %v2766_v14, 16  ;;  %v2992_v16 = vshll.u32 %v8420_v30, 16  ;;  %v8440_v47 = vcombine.low %v2827_v31, %v2837_v7  ;;  %v8446_v42 = vld [vmem:[#allocation2 + $0x74] sm:$0x1] }
  0xdf   : > { %v8442_v38 = vcombine.low %v2851_v13, %v2861_v23  ;;  %v8444_v25 = vrot.slane %v2968_v50, 5  ;;  %v2974_v27 = vrot.slane %v2972_v26, 4  ;;  %v8448_v8 = vrot.slane %v2927_v55, 4  ;;  %v2772_v10 = vld [vmem:[#allocation2 + $0x84] sm:$0xf] }
  0xe0   : > { %v2941_v46 = vor.u32 %v2940_v19, %v2937_v9  ;;  %v2951_v57 = vor.u32 %v2950_v40, %v8428_v53  ;;  %v2996_v56 = vshrl.u32 %v8420_v30, 16  ;;  %v8454_v32 = vcombine.low %v2875_v35, %v2885_v28  ;;  %v10267_v35 = vld [vmem:[#allocation6_spill] sm:$0xff]  ;;  %v8473_v40 = vld [vmem:[#allocation2 + $0x80] sm:$0x1] }
  0xe1   : > { %v2965_v31 = vor.u32 %v2964_v45, %v2961_v58  ;;  %v2978_v7 = vshll.u32 %v8430_v12, 16  ;;  %v3007_v13 = vshrl.u32 %v2769_v44, 16  ;;  %v8457_v43 = vrot.slane %v2954_v39, 5  ;;  %10269 = vst [vmem:[#allocation6_spill] sm:$0xff] %v8473_v40  ;;  %v10270_v45 = vld [vmem:[#allocation7_spill] sm:$0xff]  ;;  %v10271_v26 = vld [vmem:[#allocation8_spill] sm:$0xff] }
  0xe2   : > { %v2985_v41 = vrot.slane %v2983_v60, 4  ;;  %v2988_v23 = vrot.slane %v2986_v17, 5  ;;  %v8459_v49 = vrot.slane %v2992_v16, 5  ;;  %v2975_v14 = vor.u32 %v2974_v27, %v8444_v25  ;;  %v8491_v16 = vld [vmem:[#allocation2 + $0x88] sm:$0xf] }
  0xe3   : > { %v2998_v55 = vrot.slane %v2996_v56, 4  ;;  %v3002_v50 = vshll.u32 %v8446_v42, 16  ;;  %v3010_v52 = vshll.u32 %v2769_v44, 16  ;;  %v10268_v28 = vcombine.low %v7809_v48, %v10267_v35  ;;  %10273 = vst [vmem:[#allocation7_spill] sm:$0xff] %v8491_v16 }
  0xe4   : > { %v8469_v9 = vrot.slane %v2941_v46, 4  ;;  %v8471_v19 = vrot.slane %v2951_v57, 4  ;;  %v3016_v15 = vshll.u32 %v8452_v11, 16  ;;  %v3020_v58 = vshrl.u32 %v8452_v11, 16  ;;  %v7283_v46 = vld [vmem:[#allocation2 + $0xc] sm:$0xff]   ;;  %v7295_v11 = vld [vmem:[#allocation2 + $0x54] sm:$0xff]  }
  0xe5   : > { %6859 = vmatmul.mubr.bf16.gmra.mxu1 %v10268_v28  ;;  %6911 = vmatmul.mubr.bf16.gmra.mxu0 %v6110_v51  ;;  %v10272_v44 = vcombine.low %v10270_v45, %v10271_v26  ;;  %v8481_v48 = vrot.slane %v2965_v31, 4  ;;  %v8483_v1 = vrot.slane %v2978_v7, 5  ;;  %v3009_v24 = vrot.slane %v3007_v13, 4  ;;  %v2775_v7 = vld [vmem:[#allocation2 + $0x90] sm:$0xf]  ;;  %v10277_v45 = vld [vmem:[#allocation9_spill] sm:$0xff] }
  0xe6   : > { %6978 = vmatprep.mubr.bf16.mxu0 %v8375_v2  ;;  %v3012_v51 = vrot.slane %v3010_v52, 5  ;;  %v2899_v39 = vsel %vm7494_vm10, %v8398_v18, %v8341_v20  ;;  %v2989_v60 = vor.u32 %v2988_v23, %v2985_v41  ;;  %v8489_v17 = vrot.slane %v3016_v15, 5  ;;  %v8507_v41 = vld [vmem:[#allocation2 + $0x8c] sm:$0x1] }
  0xe7   : > { %6862 = vmatprep.mubr.bf16.mxu1 %v10272_v44  ;;  %v3031_v27 = vshrl.u32 %v2772_v10, 16  ;;  %v8493_v57 = vrot.slane %v2975_v14, 4  ;;  %v2999_v2 = vor.u32 %v2998_v55, %v8459_v49  ;;  %v8496_v56 = vrot.slane %v3002_v50, 5  ;;  %10274 = vst [vmem:[#allocation8_spill] sm:$0xff] %v8507_v41  ;;  %v8509_v14 = vld [vmem:[#allocation2 + $0x94] sm:$0xf] }
  0xe8   : > { %v3022_v31 = vrot.slane %v3020_v58, 4  ;;  %v2909_v20 = vsel %vm7494_vm10, %v8411_v6, %v8393_v29  ;;  %v2923_v18 = vsel %vm7494_vm10, %v8435_v4, %v8382_v3  ;;  %v3026_v13 = vshll.u32 %v8473_v40, 16  ;;  %10275 = vst [vmem:[#allocation19_spill] sm:$0xff] %v8509_v14  ;;  %v7290_v3 = vld [vmem:[%s10181_s3 + $0x1b0] sm:$0xff]  }
  0xe9   : > { %v3034_v23 = vshll.u32 %v2772_v10, 16  ;;  %v2933_v55 = vsel %vm7494_vm10, %v8448_v8, %v8417_v5  ;;  %v3013_v50 = vor.u32 %v3012_v51, %v3009_v24  ;;  %v3040_v29 = vshll.u32 %v8491_v16, 16  ;;  %v10276_v58 = vld [vmem:[#allocation10_spill] sm:$0xff] }
  0xea   : > { %v3044_v6 = vshrl.u32 %v8491_v16, 16  ;;  %v3023_v4 = vor.u32 %v3022_v31, %v8489_v17  ;;  %v3033_v52 = vrot.slane %v3031_v27, 4  ;;  %v3055_v35 = vshrl.u32 %v2775_v7, 16  ;;  %v7292_v16 = vld [vmem:[#allocation2 + $0x48] sm:$0xff]  }
  0xeb   : > { %v3036_v10 = vrot.slane %v3034_v23, 5  ;;  %v8521_v28 = vrot.slane %v2989_v60, 4  ;;  %v8523_v15 = vrot.slane %v2999_v2, 4  ;;  %v3050_v5 = vshll.u32 %v8507_v41, 16  ;;  %v8540_v60 = vld [vmem:[#allocation2 + $0x98] sm:$0x1] }
  0xec   : > { %v3058_v8 = vshll.u32 %v2775_v7, 16  ;;  %v10278_v26 = vcombine.low %v10276_v58, %v10277_v45  ;;  %v2947_v44 = vsel %vm7494_vm10, %v8469_v9, %v8428_v53  ;;  %v2957_v24 = vsel %vm7494_vm10, %v8471_v19, %v8457_v43  ;;  %10279 = vst [vmem:[#allocation10_spill] sm:$0xff] %v8540_v60  ;;  %v2778_v9 = vld [vmem:[#allocation2 + $0x9c] sm:$0xf]  ;;  %v7294_v43 = vld [vmem:[%s10181_s3 + $0x1a8] sm:$0xff]  }
  0xed   : > { %6979 = vmatmul.mubr.bf16.vlgmr.msra.gmra.mxu0 %v8440_v47  ;;  %v8538_v51 = vrot.slane %v3026_v13, 5  ;;  %v3064_v27 = vshll.u32 %v8509_v14, 16  ;;  %v8544_v47 = vrot.slane %v3013_v50, 4  ;;  %v8546_v2 = vrot.slane %v3040_v29, 5  ;;  %v7284_v7 = vld [vmem:[#allocation2 + $0x18] sm:$0xff]   ;;  %v7287_v50 = vld [vmem:[#allocation2 + $0x24] sm:$0xff]  }
  0xee   : > { %6863 = vmatmul.mubr.bf16.gmra.mxu1 %v10278_v26  ;;  %7059 = vmatpush3.bf16.msra.mxu0 %v8276_v34  ;;  %v3046_v31 = vrot.slane %v3044_v6, 4  ;;  %v3068_v53 = vshrl.u32 %v8509_v14, 16  ;;  %v8553_v19 = vrot.slane %v3023_v4, 4  ;;  %v3057_v34 = vrot.slane %v3055_v35, 4  ;;  %v8555_v23 = vld [vmem:[#allocation2 + $0xa0] sm:$0xf] }
  0xef   : > { %6930 = vmatprep.mubr.bf16.mxu1 %v7283_v46  ;;  %6982 = vmatprep.mubr.bf16.mxu0 %v8442_v38  ;;  %v3037_v46 = vor.u32 %v3036_v10, %v3033_v52  ;;  %v3060_v13 = vrot.slane %v3058_v8, 5  ;;  %10280 = vst [vmem:[#allocation9_spill] sm:$0xff] %v8555_v23  ;;  %v8557_v29 = vrot.slane %v3050_v5, 5  ;;  %v8559_v6 = vrot.slane %v3064_v27, 5  ;;  %v8561_v45 = vld [vmem:[#allocation2 + $0xa4] sm:$0x1] }
  0xf0   : > { %7060 = vmatprep.subr.bf16.mxu0 %v7290_v3  ;;  %v3070_v58 = vrot.slane %v3068_v53, 4  ;;  %10281 = vst [vmem:[#allocation20_spill] sm:$0xff] %v8561_v45  ;;  %v3079_v38 = vshrl.u32 %v2778_v9, 16  ;;  %v6179_v26 = vcombine.low %v2899_v39, %v2909_v20  ;;  %v8563_v14 = vcombine.low %v2923_v18, %v2933_v55  ;;  %v2781_v8 = vld [vmem:[#allocation2 + $0xa8] sm:$0xf]  ;;  %v7289_v39 = vld [vmem:[%s10181_s3 + $0x170] sm:$0xff]  }
  0xf1   : > { %v3082_v41 = vshll.u32 %v2778_v9, 16  ;;  %v3088_v4 = vshll.u32 %v8555_v23, 16  ;;  %v8566_v52 = vcombine.low %v2947_v44, %v2957_v24  ;;  %v3047_v10 = vor.u32 %v3046_v31, %v8546_v2  ;;  %v8570_v27 = vld [vmem:[#allocation2 + $0xac] sm:$0xf]  ;;  %v7298_v20 = vld [vmem:[%s10181_s3 + $0x1a0] sm:$0xff]  }
  0xf2   : > { %7061 = vmatpush3.bf16.msra.mxu0 %v7290_v3  ;;  %v3074_v35 = vshll.u32 %v8540_v60, 16  ;;  %v3081_v5 = vrot.slane %v3079_v38, 4  ;;  %10282 = vst [vmem:[#allocation21_spill] sm:$0xff] %v8570_v27  ;;  %v8578_v18 = vrot.slane %v3037_v46, 4  ;;  %v3061_v55 = vor.u32 %v3060_v13, %v3057_v34  ;;  %v7293_v38 = vld [vmem:[%s10181_s3 + $0x168] sm:$0xff]  }
  0xf3   : > { %7062 = vmatprep.subr.bf16.mxu0 %v7294_v43  ;;  %v3084_v3 = vrot.slane %v3082_v41, 5  ;;  %v3092_v44 = vshrl.u32 %v8555_v23, 16  ;;  %v8581_v24 = vrot.slane %v3088_v4, 5  ;;  %v3098_v31 = vshll.u32 %v8561_v45, 16  ;;  %v8589_v41 = vld [vmem:[#allocation2 + $0xb0] sm:$0x1] }
  0xf4   : > { %v3103_v53 = vshrl.u32 %v2781_v8, 16  ;;  %v3106_v9 = vshll.u32 %v2781_v8, 16  ;;  %v3071_v46 = vor.u32 %v3070_v58, %v8559_v6  ;;  %10283 = vst [vmem:[#allocation22_spill] sm:$0xff] %v8589_v41  ;;  %v3112_v13 = vshll.u32 %v8570_v27, 16  ;;  %v7288_v45 = vld [vmem:[#allocation2 + $0x30] sm:$0xff]  }
  0xf5   : > { %6983 = vmatmul.mubr.bf16.gmra.mxu0 %v8454_v32  ;;  %v3085_v60 = vor.u32 %v3084_v3, %v3081_v5  ;;  %v3094_v34 = vrot.slane %v3092_v44, 4  ;;  %v8593_v4 = vrot.slane %v3047_v10, 4  ;;  %v3116_v32 = vshrl.u32 %v8570_v27, 16  ;;  %v7291_v5 = vld [vmem:[#allocation2 + $0x3c] sm:$0xff]   ;;  %v2784_v44 = vld [vmem:[#allocation2 + $0xb4] sm:$0xf] }
  0xf6   : > { %6931 = vmatmul.mubr.bf16.vlgmr.msra.gmra.mxu1 %v7284_v7  ;;  %v3105_v7 = vrot.slane %v3103_v53, 4  ;;  %v3108_v8 = vrot.slane %v3106_v9, 5  ;;  %6986 = vmatprep.mubr.bf16.mxu0 %v6179_v26  ;;  %v2971_v58 = vsel %vm7494_vm10, %v8481_v48, %v8444_v25  ;;  %v8606_v10 = vrot.slane %v3112_v13, 5  ;;  %v384_v23 = vld [vmem:[#allocation2 + $0xc8] sm:$0xf] }
  0xf7   : > { %7011 = vmatpush3.bf16.msra.mxu1 %v8323_v63  ;;  %6934 = vmatprep.mubr.bf16.mxu1 %v7287_v50  ;;  %v2981_v63 = vsel %vm7494_vm10, %v8493_v57, %v8483_v1  ;;  %v8604_v50 = vrot.slane %v3074_v35, 5  ;;  %v2995_v26 = vsel %vm7494_vm10, %v8521_v28, %v8459_v49  ;;  %v8612_v3 = vrot.slane %v3061_v55, 4  ;;  %v7297_v1 = vld [vmem:[%s10181_s3 + $0x160] sm:$0xff]   ;;  %v8624_v49 = vld [vmem:[#allocation2 + $0xb8] sm:$0xf] }
  0xf8   : > { %7012 = vmatprep.subr.bf16.mxu1 %v7289_v39  ;;  %7063 = vmatpush3.bf16.msra.mxu0 %v7294_v43  ;;  %v3095_v25 = vor.u32 %v3094_v34, %v8581_v24  ;;  %v3118_v48 = vrot.slane %v3116_v32, 4  ;;  %v8618_v57 = vrot.slane %v3071_v46, 4  ;;  %v8620_v43 = vrot.slane %v3085_v60, 4  ;;  %10284 = vst [vmem:[#allocation23_spill] sm:$0xff] %v8624_v49  ;;  %v8631_v34 = vld [vmem:[#allocation2 + $0xbc] sm:$0x1] }
  0xf9   : > { %7064 = vmatprep.subr.bf16.mxu0 %v7298_v20  ;;  %v8622_v35 = vrot.slane %v3098_v31, 5  ;;  %v3127_v28 = vshrl.u32 %v2784_v44, 16  ;;  %v3005_v55 = vsel %vm7494_vm10, %v8523_v15, %v8496_v56  ;;  %v3109_v53 = vor.u32 %v3108_v8, %v3105_v7  ;;  %10285 = vst [vmem:[#allocation24_spill] sm:$0xff] %v8631_v34  ;;  %v267_v60 = vld [vmem:[%s7437_s29 + $0x78] sm:$0xf]  ;;  %v8644_v7 = vld [vmem:[%s10181_s3 + $0x190] sm:$0xff]  }
  0xfa   : > { %v3122_v9 = vshll.u32 %v8589_v41, 16  ;;  %v3130_v46 = vshll.u32 %v2784_v44, 16  ;;  %v7302_v31 = vld [vmem:[%s10181_s3 + $0x198] sm:$0xff]   ;;  %v3119_v13 = vor.u32 %v3118_v48, %v8606_v10  ;;  %v3136_v32 = vshll.u32 %v8624_v49, 16  ;;  %v327_v41 = vld [vmem:[#allocation2 + $0xc0] sm:$0x1] }
  0xfb   : > { %7013 = vmatpush3.bf16.msra.mxu1 %v7289_v39  ;;  %v3129_v39 = vrot.slane %v3127_v28, 4  ;;  %v3140_v27 = vshrl.u32 %v8624_v49, 16  ;;  %v268_v56 = vld [vmem:[%s7437_s29 + $0x7c] sm:$0xf]  ;;  %v6182_v15 = vcombine.low %v2971_v58, %v2981_v63  ;;  %v8646_v8 = vrot.slane %v3095_v25, 4 }
  0xfc   : > { %7014 = vmatprep.subr.bf16.mxu1 %v7293_v38  ;;  %7065 = vmatpush3.bf16.msra.mxu0 %v7298_v20  ;;  %v3132_v44 = vrot.slane %v3130_v46, 5  ;;  %v8652_v48 = vld [vmem:[%s10181_s3 + $0x158] sm:$0xff]   ;;  %v8654_v58 = vrot.slane %v3136_v32, 5  ;;  %v3146_v63 = vshll.u32 %v8631_v34, 16  ;;  %v328_v25 = vsel %vm7440_vm4, 0, %v327_v41 }
  0xfd   : > { %6987 = vmatmul.mubr.bf16.gmra.mxu0 %v8563_v14  ;;  %v3142_v20 = vrot.slane %v3140_v27, 4  ;;  %v6183_v46 = vcombine.low %v2995_v26, %v3005_v55  ;;  %329 = vst [vmem:[#allocation2 + $0xc0] sm:$0x1] %v328_v25  ;;  %v651_v14 = vshll.u32 %v267_v60, 16  ;;  %v8660_v40 = vrot.slane %v3109_v53, 4  ;;  %7066 = vmatprep.subr.bf16.mxu0 %v7302_v31  ;;  %v10289_v25 = vld [vmem:[#allocation12_spill] sm:$0xff] }
  0xfe   : > { %6935 = vmatmul.mubr.bf16.gmra.mxu1 %v7288_v45  ;;  %v3133_v49 = vor.u32 %v3132_v44, %v3129_v39  ;;  %v648_v45 = vshrl.u32 %v267_v60, 16  ;;  %6990 = vmatprep.mubr.bf16.mxu0 %v8566_v52  ;;  %v8662_v32 = vrot.slane %v3119_v13, 4  ;;  %v8664_v27 = vrot.slane %v3122_v9, 5  ;;  %v8677_v60 = vld [vmem:[#allocation2 + $0xc] sm:$0xe]  ;;  %v10288_v13 = vld [vmem:[#allocation11_spill] sm:$0xff] }
  0xff   : > { %6938 = vmatprep.mubr.bf16.mxu1 %v7291_v5  ;;  %7015 = vmatpush3.bf16.msra.mxu1 %v7293_v38  ;;  %v656_v34 = vshrl.u32 %v268_v56, 16  ;;  %v3143_v38 = vor.u32 %v3142_v20, %v8654_v58  ;;  %v659_v5 = vshll.u32 %v268_v56, 16  ;;  %v385_v55 = vsel %vm7447_vm5, 0, %v384_v23  ;;  %v7305_v23 = vld [vmem:[%s10181_s3 + $0x150] sm:$0xff]   ;;  %v8700_v44 = vld [vmem:[#allocation2 + $0x18] sm:$0xe] }
 0x100   : > { %7016 = vmatprep.subr.bf16.mxu1 %v7297_v1  ;;  %v650_v41 = vrot.slane %v648_v45, 7  ;;  %v3019_v52 = vsel %vm7494_vm10, %v8544_v47, %v8489_v17  ;;  %v3029_v53 = vsel %vm7494_vm10, %v8553_v19, %v8538_v51  ;;  %7067 = vmatpush3.bf16.msra.mxu0 %v7302_v31  ;;  %386 = vst [vmem:[#allocation2 + $0xc8] sm:$0xf] %v385_v55  ;;  %v3562_v39 = vrot.slane %v10288_v13, 5  ;;  %v7310_v17 = vld [vmem:[%s10181_s3 + $0x188] sm:$0xff]  }
 0x101   : > { %v658_v9 = vrot.slane %v656_v34, 7  ;;  %7068 = vmatprep.subr.bf16.mxu0 %v8644_v7  ;;  %v8687_v47 = vrot.slane %v3133_v49, 4  ;;  %v8689_v51 = vrot.slane %v3146_v63, 5  ;;  %v3053_v31 = vsel %vm7494_vm10, %v8593_v4, %v8557_v29  ;;  %v10291_v4 = vld [vmem:[#allocation15_spill] sm:$0xff]  ;;  %v7309_v55 = vld [vmem:[%s10181_s3 + $0x148] sm:$0xff]  }
 0x102   : > { %v653_v19 = vor.u32 %v651_v14, %v650_v41  ;;  %v654_v34 = vrot.slane %v650_v41, 4  ;;  %v8702_v49 = vrot.slane %v3143_v38, 4  ;;  %v6199_v63 = vrot.slane %v8677_v60, 9  ;;  %v4381_v28 = vld [vmem:[#allocation2 + $0x18] sm:$0xf] }
 0x103   : > { %7017 = vmatpush3.bf16.msra.mxu1 %v7297_v1  ;;  %v3043_v1 = vsel %vm7494_vm10, %v8578_v18, %v8546_v2  ;;  %v661_v56 = vor.u32 %v659_v5, %v658_v9  ;;  %v663_v20 = vrot.slane %v658_v9, 4  ;;  %v3565_v45 = vrot.slane %v10289_v25, 5 }
 0x104   : > { %7018 = vmatprep.subr.bf16.mxu1 %v8652_v48  ;;  %v6184_v14 = vcombine.low %v3019_v52, %v3029_v53  ;;  %v818_v18 = vld [vmem:[#allocation2 + $0xc0] sm:$0xf]  ;;  %v8710_v29 = vrot.slane %v3562_v39, 4  ;;  %v3576_v5 = vrot.slane %v10291_v4, 5  ;;  %v6185_v38 = vcombine.low %v3043_v1, %v3053_v31  ;;  %v10292_v53 = vld [vmem:[#allocation13_spill] sm:$0xff]  ;;  %7069 = vmatpush3.bf16.msra.mxu0 %v8644_v7 }
 0x105   : > { %6991 = vmatmul.mubr.bf16.gmra.mxu0 %v6182_v15  ;;  %v662_v2 = vsel %vm7476_vm9, %v654_v34, %v661_v56  ;;  %v7314_v15 = vld [vmem:[%s10181_s3 + $0x180] sm:$0xff]   ;;  %v10217_v9 = vrot.slane %v10292_v53, 5  ;;  %v3091_v7 = vsel %vm7494_vm10, %v8620_v43, %v8581_v24  ;;  %7070 = vmatprep.subr.bf16.mxu0 %v7310_v17 }
 0x106   : > { %6939 = vmatmul.mubr.bf16.gmra.mxu1 %v7292_v16  ;;  %6994 = vmatprep.mubr.bf16.mxu0 %v6183_v46  ;;  %v819_v16 = vsel %vm7447_vm5, %v653_v19, %v818_v18  ;;  %821 = vst [vmem:[#allocation2 + $0xc4] sm:$0xf] %v662_v2  ;;  %v3498_v34 = vld [vmem:[#allocation2 + $0x24] sm:$0xe]  ;;  %v10293_v46 = vld [vmem:[#allocation14_spill] sm:$0xff]  ;;  %v3578_v19 = vrot.slane %v3576_v5, 4  ;;  %v3067_v18 = vsel %vm7494_vm10, %v8612_v3, %v8559_v6 }
 0x107   : > { %6942 = vmatprep.mubr.bf16.mxu1 %v7295_v11  ;;  %v7296_v11 = vld [vmem:[#allocation2 + $0x60] sm:$0xff]   ;;  %7019 = vmatpush3.bf16.msra.mxu1 %v8652_v48  ;;  %820 = vst [vmem:[#allocation2 + $0xc0] sm:$0xf] %v819_v16  ;;  %v6201_v31 = vrot.slane %v3498_v34, 9  ;;  %v7299_v2 = vld [vmem:[#allocation2 + $0x6c] sm:$0xff]   ;;  %v3077_v48 = vsel %vm7494_vm10, %v8618_v57, %v8604_v50  ;;  %v3101_v34 = vsel %vm7494_vm10, %v8646_v8, %v8622_v35 }
 0x108   : > { %v10294_v56 = vld [vmem:[#allocation16_spill] sm:$0xff]  ;;  %7020 = vmatprep.subr.bf16.mxu1 %v7305_v23  ;;  %v822_v4 = vld [vmem:[#allocation2 + $0xc8] sm:$0x1]  ;;  %v3499_v16 = vld [vmem:[#allocation2 + $0x30] sm:$0xe]  ;;  %7071 = vmatpush3.bf16.msra.mxu0 %v7310_v17  ;;  %v3566_v13 = vsel %vm7920_vm13, %v8710_v29, %v3565_v45 }
 0x109   : > { %v3579_v41 = vrot.slane %v10294_v56, 5  ;;  %v823_v6 = vsel %vm7440_vm4, %v663_v20, %v822_v4  ;;  %v8747_v50 = vsel %vm7920_vm13, %v6201_v31, %v3576_v5  ;;  %v7313_v24 = vld [vmem:[%s10181_s3 + $0x140] sm:$0xff]   ;;  %v6202_v43 = vrot.slane %v3499_v16, 9  ;;  %v10295_v35 = vld [vmem:[#allocation17_spill] sm:$0xff]  ;;  %v3500_v5 = vld [vmem:[#allocation2 + $0x3c] sm:$0xe]  ;;  %7072 = vmatprep.subr.bf16.mxu0 %v7314_v15 }
 0x10a   : > { %824 = vst [vmem:[#allocation2 + $0xc8] sm:$0x1] %v823_v6  ;;  %v3583_v8 = vrot.slane %v10295_v35, 5  ;;  %v3586_v20 = vrot.slane %v8279_v22, 5  ;;  %v6186_v56 = vcombine.low %v3067_v18, %v3077_v48  ;;  %v8763_v31 = vld [vmem:[%s10181_s3 + $0x238] sm:$0xff]   ;;  %v6203_v4 = vrot.slane %v3500_v5, 9 }
 0x10b   : > { %v8751_v3 = vsel %vm7920_vm13, %v3578_v19, %v3579_v41  ;;  %7021 = vmatpush3.bf16.msra.mxu1 %v7305_v23  ;;  %v3590_v16 = vrot.slane %v8283_v21, 5  ;;  %v6187_v22 = vcombine.low %v3091_v7, %v3101_v34  ;;  %v3115_v23 = vsel %vm7494_vm10, %v8660_v40, %v8606_v10  ;;  %v7300_v34 = vld [vmem:[#allocation2 + $0x78] sm:$0xff]   ;;  %v10307_v29 = vld [vmem:[#allocation24_spill] sm:$0xff] }
 0x10c   : > { %7022 = vmatprep.subr.bf16.mxu1 %v7309_v55  ;;  %v8767_v19 = vsel %vm7920_vm13, %v6202_v43, %v3583_v8  ;;  %v3585_v41 = vrot.slane %v3583_v8, 4  ;;  %v8778_v18 = vrot.slane %v10217_v9, 4  ;;  %v3597_v48 = vrot.slane %v8328_v54, 5  ;;  %7073 = vmatpush3.bf16.msra.mxu0 %v7314_v15  ;;  %v7303_v8 = vld [vmem:[#allocation2 + $0x84] sm:$0xff]  }
 0x10d   : > { %6995 = vmatmul.mubr.bf16.gmra.mxu0 %v6184_v14  ;;  %v8774_v17 = vld [vmem:[#allocation2 + $0xc4] sm:$0xf]  ;;  %v3593_v7 = vrot.slane %v8338_v37, 5  ;;  %7154 = vmatprep.subr.bf16.mxu0 %v8763_v31  ;;  %v3592_v37 = vrot.slane %v3590_v16, 4 }
 0x10e   : > { %6943 = vmatmul.mubr.bf16.gmra.mxu1 %v7296_v11  ;;  %6998 = vmatprep.mubr.bf16.mxu0 %v6185_v38  ;;  %v2787_v6 = vld [vmem:[#allocation2 + $0xc0] sm:$0xf]  ;;  %v3160_v21 = vshll.u32 %v8774_v17, 16  ;;  %v8784_v14 = vsel %vm7920_vm13, %v3585_v41, %v3586_v20  ;;  %v8788_v11 = vsel %vm7920_vm13, %v6203_v4, %v3590_v16  ;;  %v3164_v54 = vshrl.u32 %v8774_v17, 16  ;;  %v8795_v38 = vld [vmem:[%s10181_s3 + $0x1f8] sm:$0xff]  }
 0x10f   : > { %6946 = vmatprep.mubr.bf16.mxu1 %v7299_v2  ;;  %7023 = vmatpush3.bf16.msra.mxu1 %v7309_v55  ;;  %v3151_v43 = vshrl.u32 %v2787_v6, 16  ;;  %v3154_v35 = vshll.u32 %v2787_v6, 16  ;;  %v3501_v55 = vld [vmem:[#allocation2 + $0x48] sm:$0xe]  ;;  %v3599_v5 = vrot.slane %v3597_v48, 4  ;;  %v3600_v41 = vrot.slane %v8343_v33, 5 }
 0x110   : > { %v8799_v20 = vrot.slane %v3160_v21, 5  ;;  %7024 = vmatprep.subr.bf16.mxu1 %v7313_v24  ;;  %v3166_v57 = vrot.slane %v3164_v54, 4  ;;  %v6204_v1 = vrot.slane %v3501_v55, 9  ;;  %v8808_v21 = vsel %vm7920_vm13, %v3592_v37, %v3593_v7  ;;  %v7329_v40 = vld [vmem:[%s10181_s3 + $0x1e0] sm:$0xff]  }
 0x111   : > { %v8803_v15 = vld [vmem:[#allocation2 + $0xc8] sm:$0x1]  ;;  %v3153_v4 = vrot.slane %v3151_v43, 4  ;;  %v3156_v6 = vrot.slane %v3154_v35, 5  ;;  %v8812_v2 = vsel %vm7920_vm13, %v3599_v5, %v3600_v41  ;;  %v3604_v16 = vrot.slane %v8367_v0, 5 }
 0x112   : > { %v3170_v52 = vshll.u32 %v8803_v15, 16  ;;  %v3167_v33 = vor.u32 %v3166_v57, %v8799_v20  ;;  %v6235_v43 = vcombine.low %v8788_v11, %v8808_v21  ;;  %v8820_v35 = vsel %vm7920_vm13, %v6204_v1, %v3597_v48 }
 0x113   : > { %v3157_v9 = vor.u32 %v3156_v6, %v3153_v4  ;;  %7025 = vmatpush3.bf16.msra.mxu1 %v7313_v24  ;;  %v3125_v7 = vsel %vm7494_vm10, %v8662_v32, %v8664_v27  ;;  %v3502_v24 = vld [vmem:[#allocation2 + $0x54] sm:$0xe]  ;;  %v3606_v57 = vrot.slane %v3604_v16, 4  ;;  %v3607_v48 = vrot.slane %v8400_v61, 5 }
 0x114   : > { %v8826_v54 = vrot.slane %v3170_v52, 5  ;;  %7106 = vmatprep.subr.bf16.mxu1 %v8795_v38  ;;  %v3168_v55 = vrot.slane %v3167_v33, 4  ;;  %v6205_v1 = vrot.slane %v3502_v24, 9  ;;  %v3139_v32 = vsel %vm7494_vm10, %v8687_v47, %v8654_v58  ;;  %v3503_v52 = vld [vmem:[#allocation2 + $0x60] sm:$0xe]  ;;  %v10296_v33 = vld [vmem:[#allocation18_spill] sm:$0xff] }
 0x115   : > { %6999 = vmatmul.mubr.bf16.gmra.mxu0 %v6186_v56  ;;  %v3158_v37 = vrot.slane %v3157_v9, 4  ;;  %v3149_v27 = vsel %vm7494_vm10, %v8702_v49, %v8689_v51  ;;  %v3611_v56 = vrot.slane %v8396_v36, 5  ;;  %v3614_v9 = vrot.slane %v8430_v12, 5  ;;  %v7307_v58 = vld [vmem:[#allocation2 + $0x9c] sm:$0xff]   ;;  %v3504_v49 = vld [vmem:[#allocation2 + $0x6c] sm:$0xe] }
 0x116   : > { %6947 = vmatmul.mubr.bf16.gmra.mxu1 %v7300_v34  ;;  %7002 = vmatprep.mubr.bf16.mxu0 %v6187_v22  ;;  %v7304_v34 = vld [vmem:[#allocation2 + $0x90] sm:$0xff]   ;;  %v8844_v61 = vsel %vm7920_vm13, %v6205_v1, %v3604_v16  ;;  %v8848_v22 = vsel %vm7920_vm13, %v3606_v57, %v3607_v48  ;;  %v6188_v36 = vcombine.low %v3115_v23, %v3125_v7  ;;  %v3618_v5 = vrot.slane %v8420_v30, 5  ;;  %v3505_v23 = vld [vmem:[#allocation2 + $0x78] sm:$0xe] }
 0x117   : > { %6950 = vmatprep.mubr.bf16.mxu1 %v7303_v8  ;;  %v6206_v8 = vrot.slane %v3503_v52, 9  ;;  %v3613_v51 = vrot.slane %v3611_v56, 4  ;;  %v6189_v12 = vcombine.low %v3139_v32, %v3149_v27  ;;  %v3621_v41 = vrot.slane %v8446_v42, 5  ;;  %v10297_v7 = vld [vmem:[#allocation6_spill] sm:$0xff] }
 0x118   : > { %v6207_v16 = vrot.slane %v3504_v49, 9  ;;  %v3625_v24 = vrot.slane %v10296_v33, 5  ;;  %v3620_v10 = vrot.slane %v3618_v5, 4  ;;  %v3628_v30 = vrot.slane %v10297_v7, 5  ;;  %v7315_v49 = vld [vmem:[#allocation2 + $0x18] sm:$0xff]  }
 0x119   : > { %v8861_v4 = vsel %vm7920_vm13, %v6206_v8, %v3611_v56  ;;  %v8865_v6 = vsel %vm7920_vm13, %v3613_v51, %v3614_v9  ;;  %v6208_v57 = vrot.slane %v3505_v23, 9  ;;  %v3163_v48 = vsel %vm7494_vm10, %v3158_v37, %v8799_v20  ;;  %v3506_v37 = vld [vmem:[#allocation2 + $0x84] sm:$0xe]  ;;  %v10298_v9 = vld [vmem:[#allocation7_spill] sm:$0xff] }
 0x11a   : > { %v8873_v42 = vsel %vm7920_vm13, %v6207_v16, %v3618_v5  ;;  %v3627_v1 = vrot.slane %v3625_v24, 4  ;;  %v3173_v32 = vsel %vm7494_vm10, %v3168_v55, %v8826_v54  ;;  %v8883_v27 = vsel %vm7920_vm13, %v3620_v10, %v3621_v41  ;;  %v7308_v55 = vld [vmem:[#allocation2 + $0xa8] sm:$0xff]   ;;  %v10299_v8 = vld [vmem:[#allocation8_spill] sm:$0xff]  ;;  %v10300_v16 = vld [vmem:[#allocation19_spill] sm:$0xff] }
 0x11b   : > { %v8889_v56 = vsel %vm7920_vm13, %v6208_v57, %v3625_v24  ;;  %v3632_v54 = vrot.slane %v10298_v9, 5  ;;  %v3635_v51 = vrot.slane %v10299_v8, 5  ;;  %v3639_v33 = vrot.slane %v10300_v16, 5  ;;  %v10301_v24 = vld [vmem:[#allocation10_spill] sm:$0xff]  ;;  %v10304_v16 = vld [vmem:[#allocation21_spill] sm:$0xff] }
 0x11c   : > { %v8893_v20 = vsel %vm7920_vm13, %v3627_v1, %v3628_v30  ;;  %v3642_v10 = vrot.slane %v10301_v24, 5  ;;  %v6190_v23 = vcombine.low %v3163_v48, %v3173_v32  ;;  %v10303_v48 = vld [vmem:[#allocation20_spill] sm:$0xff]  ;;  %v3509_v24 = vld [vmem:[#allocation2 + $0xa8] sm:$0xe]  ;;  %v10305_v8 = vld [vmem:[#allocation22_spill] sm:$0xff] }
 0x11d   : > { %7003 = vmatmul.mubr.bf16.gmra.mxu0 %v6188_v36  ;;  %v3507_v36 = vld [vmem:[#allocation2 + $0x90] sm:$0xe]  ;;  %v3634_v5 = vrot.slane %v3632_v54, 4  ;;  %v3641_v1 = vrot.slane %v3639_v33, 4  ;;  %v3649_v32 = vrot.slane %v10303_v48, 5 }
 0x11e   : > { %6951 = vmatmul.mubr.bf16.gmra.mxu1 %v7304_v34  ;;  %7006 = vmatprep.mubr.bf16.mxu0 %v6189_v12  ;;  %v7311_v12 = vld [vmem:[#allocation2 + $0xb4] sm:$0xff]   ;;  %v6210_v41 = vrot.slane %v3507_v36, 9  ;;  %v3508_v36 = vld [vmem:[#allocation2 + $0x9c] sm:$0xe]  ;;  %v3656_v34 = vrot.slane %v10305_v8, 5 }
 0x11f   : > { %6954 = vmatprep.mubr.bf16.mxu1 %v7307_v58  ;;  %v6209_v58 = vrot.slane %v3506_v37, 9  ;;  %v8907_v30 = vsel %vm7920_vm13, %v3634_v5, %v3635_v51  ;;  %v10302_v37 = vld [vmem:[#allocation9_spill] sm:$0xff]  ;;  %v6211_v51 = vrot.slane %v3508_v36, 9  ;;  %v10306_v8 = vld [vmem:[#allocation23_spill] sm:$0xff]  ;;  %v3663_v36 = vrot.slane %v10307_v29, 5  ;;  %v7319_v48 = vld [vmem:[#allocation2 + $0x30] sm:$0xff]  }
 0x120   : > { %v8911_v57 = vsel %vm7920_vm13, %v6210_v41, %v3639_v33  ;;  %v3646_v9 = vrot.slane %v10302_v37, 5  ;;  %v6212_v33 = vrot.slane %v3509_v24, 9  ;;  %v3660_v45 = vrot.slane %v10306_v8, 5  ;;  %v9031_v41 = vld [vmem:[#allocation2 + $0x34] sm:$0xf] }
 0x121   : > { %v8903_v7 = vsel %vm7920_vm13, %v6209_v58, %v3632_v54  ;;  %v3653_v54 = vrot.slane %v10304_v16, 5  ;;  %v8920_v58 = vsel %vm7920_vm13, %v3641_v1, %v3642_v10  ;;  %v3563_v10 = vsel %vm7920_vm13, %v6199_v63, %v3562_v39  ;;  %v7312_v1 = vld [vmem:[#allocation2 + $0xc0] sm:$0xff]  }
 0x122   : > { %v3648_v5 = vrot.slane %v3646_v9, 4  ;;  %v3511_v16 = vld [vmem:[#allocation2 + $0xc0] sm:$0xe]  ;;  %v3662_v24 = vrot.slane %v3660_v45, 4 }
 0x123   : > { %v3655_v37 = vrot.slane %v3653_v54, 4  ;;  %v8948_v39 = vsel %vm7920_vm13, %v6212_v33, %v3653_v54  ;;  %v3667_v54 = vrot.slane %v8774_v17, 5  ;;  %v6214_v33 = vrot.slane %v3511_v16, 9  ;;  %v8997_v16 = vld [vmem:[#allocation2 + $0x1c] sm:$0xf] }
 0x124   : > { %v8971_v29 = vsel %vm7920_vm13, %v3662_v24, %v3663_v36  ;;  %v10312_v36 = vrot.slane %v10293_v46, 5  ;;  %v4384_v24 = vld [vmem:[#allocation2 + $0x24] sm:$0xf] }
 0x125   : > { %7007 = vmatmul.mubr.bf16.gmra.mxu0 %v6190_v23  ;;  %v8937_v23 = vsel %vm7920_vm13, %v3648_v5, %v3649_v32  ;;  %v8952_v63 = vsel %vm7920_vm13, %v3655_v37, %v3656_v34  ;;  %v7322_v32 = vld [vmem:[%s10181_s3 + $0x230] sm:$0xff]   ;;  %v3670_v34 = vrot.slane %v8803_v15, 5  ;;  %v330_v37 = vld [vmem:[#allocation2 + $0xcc] sm:$0x1]  ;;  %v8975_v17 = vsel %vm7920_vm13, %v6214_v33, %v3667_v54  ;;  %v9007_v33 = vld [vmem:[#allocation2 + $0x28] sm:$0xf] }
 0x126   : > { %6955 = vmatmul.mubr.bf16.gmra.mxu1 %v7308_v55  ;;  %7074 = vmatprep.mubr.bf16.mxu0 %v7315_v49  ;;  %v8933_v55 = vsel %vm7920_vm13, %v6211_v51, %v3646_v9  ;;  %v3510_v49 = vld [vmem:[#allocation2 + $0xb4] sm:$0xe]  ;;  %v6231_v51 = vcombine.low %v3563_v10, %v3566_v13  ;;  %v331_v8 = vsel %vm7440_vm4, 0, %v330_v37  ;;  %10308 = vst [vmem:[#allocation3_spill] sm:$0xff] %v8975_v17  ;;  %v10310_v13 = vrot.slane %v10292_v53, 5  ;;  %v7330_v37 = vld [vmem:[%s10181_s3 + $0x220] sm:$0xff]  }
 0x127   : > { %6958 = vmatprep.mubr.bf16.mxu1 %v7311_v12  ;;  %v7316_v12 = vld [vmem:[#allocation2 + $0x24] sm:$0xff]   ;;  %v6213_v9 = vrot.slane %v3510_v49, 9  ;;  %v3669_v49 = vrot.slane %v3667_v54, 4  ;;  %332 = vst [vmem:[#allocation2 + $0xcc] sm:$0x1] %v331_v8  ;;  %v4430_v53 = vshrl.u32 %v4381_v28, 16  ;;  %v10314_v15 = vcombine.low %v8747_v50, %v8751_v3 }
 0x128   : > { %v4433_v54 = vshll.u32 %v4381_v28, 16  ;;  %v7324_v50 = vld [vmem:[#allocation2 + $0x54] sm:$0xff]  }
 0x129   : > { %v8965_v5 = vsel %vm7920_vm13, %v6213_v9, %v3660_v45  ;;  %v8981_v10 = vsel %vm7920_vm13, %v3669_v49, %v3670_v34  ;;  %v10311_v9 = vrot.slane %v8700_v44, 9  ;;  %v7326_v44 = vld [vmem:[%s10181_s3 + $0x228] sm:$0xff]   ;;  %v7320_v34 = vld [vmem:[#allocation2 + $0x3c] sm:$0xff]   ;;  %v4432_v8 = vrot.slane %v4430_v53, 4 }
 0x12a   : > { %10309 = vst [vmem:[#allocation11_spill] sm:$0xff] %v8981_v10  ;;  %v4383_v49 = vld [vmem:[#allocation2 + $0x20] sm:$0x1]  ;;  %v4435_v28 = vrot.slane %v4433_v54, 5  ;;  %v4463_v53 = vshll.u32 %v9007_v33, 16  ;;  %v7325_v54 = vld [vmem:[%s10181_s3 + $0x1e8] sm:$0xff]  }
 0x12b   : > { %v3570_v45 = vsel %vm7920_vm13, %v10311_v9, %v10310_v13  ;;  %v5201_v13 = vrot.slane %v8997_v16, 5  ;;  %v9013_v9 = vpop.f32.mrf.mxu0 }
 0x12c   : > { %10313 = vst [vmem:[#allocation12_spill] sm:$0xff] %v9013_v9  ;;  %v9033_v52 = vrot.slane %v4463_v53, 5  ;;  %v4487_v53 = vshll.u32 %v9031_v41, 16 }
 0x12d   : > { %7075 = vmatmul.mubr.bf16.vlgmr.msra.gmra.mxu0 %v7316_v12  ;;  %v3573_v12 = vsel %vm7920_vm13, %v8778_v18, %v10312_v36  ;;  %v4443_v18 = vshrl.u32 %v8997_v16, 16  ;;  %v5135_v36 = vld [vmem:[#allocation2 + $0x18] sm:$0xe]  ;;  %v9028_v3 = vpop.f32.mrf.mxu0  ;;  %v5203_v25 = vrot.slane %v5201_v13, 4 }
 0x12e   : > { %6959 = vmatmul.mubr.bf16.gmra.mxu1 %v7312_v1  ;;  %7155 = vmatpush3.bf16.msra.mxu0 %v8763_v31  ;;  %v6232_v46 = vcombine.low %v3570_v45, %v3573_v12  ;;  %v7321_v31 = vld [vmem:[%s10181_s3 + $0x1f0] sm:$0xff]   ;;  %v4454_v12 = vshrl.u32 %v4384_v24, 16  ;;  %v4457_v1 = vshll.u32 %v4384_v24, 16  ;;  %v9026_v24 = vld [vmem:[#allocation2 + $0x2c] sm:$0x1]  ;;  %10315 = vst [vmem:[#allocation5_spill] sm:$0xff] %v9028_v3 }
 0x12f   : > { %7026 = vmatprep.mubr.bf16.mxu1 %v6231_v51  ;;  %7078 = vmatprep.mubr.bf16.mxu0 %v7319_v48  ;;  %v4439_v51 = vshll.u32 %v8997_v16, 16  ;;  %v7323_v48 = vld [vmem:[#allocation2 + $0x48] sm:$0xff]   ;;  %v4467_v16 = vshrl.u32 %v9007_v33, 16  ;;  %v5211_v21 = vrot.slane %v9026_v24, 5 }
 0x130   : > { %7156 = vmatprep.subr.bf16.mxu0 %v7322_v32  ;;  %v4459_v60 = vrot.slane %v4457_v1, 5  ;;  %v7334_v1 = vld [vmem:[%s10181_s3 + $0x218] sm:$0xff]  }
 0x131   : > { %v9015_v45 = vrot.slane %v4439_v51, 5  ;;  %v4436_v51 = vor.u32 %v4435_v28, %v4432_v8  ;;  %v5136_v8 = vld [vmem:[#allocation2 + $0x24] sm:$0xe] }
 0x132   : > { %7157 = vmatpush3.bf16.msra.mxu0 %v7322_v32  ;;  %v4445_v32 = vrot.slane %v4443_v18, 4  ;;  %v6335_v18 = vrot.slane %v5135_v36, 9  ;;  %v7327_v36 = vld [vmem:[#allocation2 + $0x60] sm:$0xff]  }
 0x133   : > { %7158 = vmatprep.subr.bf16.mxu0 %v7326_v44 }
 0x135   : > { %7079 = vmatmul.mubr.bf16.gmra.mxu0 %v7320_v34  ;;  %v4387_v34 = vld [vmem:[#allocation2 + $0x30] sm:$0xf] }
 0x136   : > { %7027 = vmatmul.mubr.bf16.vlgmr.msra.gmra.mxu1 %v6232_v46  ;;  %7082 = vmatprep.mubr.bf16.mxu0 %v7323_v48  ;;  %v4449_v46 = vshll.u32 %v4383_v49, 16  ;;  %v4456_v48 = vrot.slane %v4454_v12, 4  ;;  %v4478_v28 = vshrl.u32 %v4387_v34, 16  ;;  %v9048_v12 = vsel %vm7920_vm13, %v6335_v18, %v5201_v13 }
 0x137   : > { %7107 = vmatpush3.bf16.msra.mxu1 %v8795_v38  ;;  %7030 = vmatprep.mubr.bf16.mxu1 %v10314_v15  ;;  %v5204_v38 = vrot.slane %v4383_v49, 5  ;;  %v4446_v15 = vor.u32 %v4445_v32, %v9015_v45  ;;  %v4481_v49 = vshll.u32 %v4387_v34, 16  ;;  %v4473_v32 = vshll.u32 %v9026_v24, 16  ;;  %v9057_v34 = vpop.f32.mrf.mxu0 }
 0x138   : > { %7108 = vmatprep.subr.bf16.mxu1 %v7321_v31  ;;  %7159 = vmatpush3.bf16.msra.mxu0 %v7326_v44  ;;  %v4469_v44 = vrot.slane %v4467_v16, 4  ;;  %v9038_v47 = vrot.slane %v4449_v46, 5  ;;  %v4491_v16 = vshrl.u32 %v9031_v41, 16  ;;  %v10316_v46 = vcombine.low %v8767_v19, %v8784_v14  ;;  %10318 = vst [vmem:[#allocation13_spill] sm:$0xff] %v9057_v34  ;;  %v7338_v19 = vld [vmem:[%s10181_s3 + $0x210] sm:$0xff]  }
 0x139   : > { %7160 = vmatprep.subr.bf16.mxu0 %v7330_v37  ;;  %v9059_v0 = vrot.slane %v4446_v15, 4  ;;  %v4460_v13 = vor.u32 %v4459_v60, %v4456_v48  ;;  %v6336_v18 = vrot.slane %v5136_v8, 9  ;;  %v4480_v15 = vrot.slane %v4478_v28, 4  ;;  %v7333_v60 = vld [vmem:[%s10181_s3 + $0x1d8] sm:$0xff]   ;;  %v9089_v8 = vld [vmem:[#allocation2 + $0x40] sm:$0xf]  ;;  %v9093_v24 = vpop.f32.mrf.mxu0 }
 0x13a   : > { %v4470_v14 = vor.u32 %v4469_v44, %v9033_v52  ;;  %v9076_v11 = vrot.slane %v4473_v32, 5  ;;  %v4493_v48 = vrot.slane %v4491_v16, 4  ;;  %v4390_v44 = vld [vmem:[#allocation2 + $0x3c] sm:$0xf]  ;;  %10321 = vst [vmem:[#allocation17_spill] sm:$0xff] %v9093_v24  ;;  %v5215_v16 = vrot.slane %v9031_v41, 5 }
 0x13b   : > { %7109 = vmatpush3.bf16.msra.mxu1 %v7321_v31  ;;  %v9044_v31 = vrot.slane %v4436_v51, 4  ;;  %v9063_v51 = vsel %vm7920_vm13, %v5203_v25, %v5204_v38  ;;  %v7328_v25 = vld [vmem:[#allocation2 + $0x6c] sm:$0xff]   ;;  %v9087_v38 = vrot.slane %v4487_v53, 5  ;;  %v9123_v3 = vpop.f32.mrf.mxu0 }
 0x13c   : > { %7110 = vmatprep.subr.bf16.mxu1 %v7325_v54  ;;  %7161 = vmatpush3.bf16.msra.mxu0 %v7330_v37  ;;  %v9055_v37 = vpop.f32.mrf.mxu1  ;;  %10319 = vst [vmem:[#allocation14_spill] sm:$0xff] %v9063_v51  ;;  %v5137_v53 = vld [vmem:[#allocation2 + $0x30] sm:$0xe]  ;;  %v9107_v24 = vld [vmem:[#allocation2 + $0x4c] sm:$0xf]  ;;  %10324 = vst [vmem:[#allocation6_spill] sm:$0xff] %v9123_v3 }
 0x13d   : > { %7083 = vmatmul.mubr.bf16.gmra.mxu0 %v7324_v50  ;;  %10317 = vst [vmem:[#allocation15_spill] sm:$0xff] %v9055_v37  ;;  %v5208_v50 = vrot.slane %v9007_v33, 5  ;;  %7162 = vmatprep.subr.bf16.mxu0 %v7334_v1  ;;  %v7331_v33 = vld [vmem:[#allocation2 + $0x78] sm:$0xff]   ;;  %v7342_v41 = vld [vmem:[%s10181_s3 + $0x208] sm:$0xff]   ;;  %v5217_v9 = vrot.slane %v5215_v16, 4  ;;  %v4535_v17 = vshll.u32 %v9107_v24, 16 }
 0x13e   : > { %7031 = vmatmul.mubr.bf16.gmra.mxu1 %v10316_v46  ;;  %v4483_v46 = vrot.slane %v4481_v49, 5  ;;  %7086 = vmatprep.mubr.bf16.mxu0 %v7327_v36  ;;  %v9091_v28 = vpop.f32.mrf.mxu1  ;;  %v4452_v49 = vsel %vm7494_vm10, %v9059_v0, %v9038_v47  ;;  %v9099_v36 = vrot.slane %v4460_v13, 4  ;;  %v4502_v0 = vshrl.u32 %v4390_v44, 16 }
 0x13f   : > { %7034 = vmatprep.mubr.bf16.mxu1 %v6235_v43  ;;  %7111 = vmatpush3.bf16.msra.mxu1 %v7325_v54  ;;  %v9079_v43 = vld [vmem:[#allocation2 + $0x38] sm:$0x1]  ;;  %10320 = vst [vmem:[#allocation16_spill] sm:$0xff] %v9091_v28  ;;  %v9103_v32 = vsel %vm7920_vm13, %v6336_v18, %v5208_v50  ;;  %v4393_v54 = vld [vmem:[#allocation2 + $0x48] sm:$0xf]  ;;  %v5210_v28 = vrot.slane %v5208_v50, 4 }
 0x140   : > { %7112 = vmatprep.subr.bf16.mxu1 %v7329_v40  ;;  %7163 = vmatpush3.bf16.msra.mxu0 %v7334_v1  ;;  %v4471_v1 = vrot.slane %v4470_v14, 4  ;;  %v4484_v37 = vor.u32 %v4483_v46, %v4480_v15  ;;  %v4497_v26 = vshll.u32 %v9079_v43, 16  ;;  %v4505_v47 = vshll.u32 %v4390_v44, 16  ;;  %v9121_v34 = vpop.f32.mrf.mxu1 }
 0x141   : > { %7164 = vmatprep.subr.bf16.mxu0 %v7338_v19  ;;  %v4511_v13 = vshll.u32 %v9089_v8, 16  ;;  %v4515_v18 = vshrl.u32 %v9089_v8, 16  ;;  %v4494_v14 = vor.u32 %v4493_v48, %v9087_v38  ;;  %v6337_v50 = vrot.slane %v5137_v53, 9  ;;  %10323 = vst [vmem:[#allocation18_spill] sm:$0xff] %v9121_v34 }
 0x142   : > { %v4526_v15 = vshrl.u32 %v4393_v54, 16  ;;  %v4529_v46 = vshll.u32 %v4393_v54, 16  ;;  %v10322_v44 = vcombine.low %v8820_v35, %v8812_v2  ;;  %v5218_v10 = vrot.slane %v9079_v43, 5 }
 0x143   : > { %7113 = vmatpush3.bf16.msra.mxu1 %v7329_v40  ;;  %v7337_v40 = vld [vmem:[%s10181_s3 + $0x1d0] sm:$0xff]   ;;  %v4539_v51 = vshrl.u32 %v9107_v24, 16  ;;  %v10325_v48 = vcombine.low %v8844_v61, %v8848_v22  ;;  %v4466_v2 = vsel %vm7494_vm10, %v9099_v36, %v9033_v52  ;;  %v4476_v35 = vsel %vm7494_vm10, %v4471_v1, %v9076_v11  ;;  %v9144_v61 = vld [vmem:[#allocation2 + $0x44] sm:$0x1]  ;;  %v7341_v52 = vld [vmem:[%s10181_s3 + $0x1c8] sm:$0xff]   ;;  %v9158_v36 = vpop.f32.mrf.mxu1  ;;  %v9160_v1 = vpop.f32.mrf.mxu0 }
 0x144   : > { %7114 = vmatprep.subr.bf16.mxu1 %v7333_v60  ;;  %v9142_v43 = vrot.slane %v4484_v37, 4  ;;  %7165 = vmatpush3.bf16.msra.mxu0 %v7338_v19  ;;  %v4504_v22 = vrot.slane %v4502_v0, 4  ;;  %v9146_v54 = vrot.slane %v4511_v13, 5  ;;  %v4517_v53 = vrot.slane %v4515_v18, 4  ;;  %v7346_v37 = vld [vmem:[%s10181_s3 + $0x200] sm:$0xff]   ;;  %10326 = vst [vmem:[#allocation7_spill] sm:$0xff] %v9158_v36 }
 0x145   : > { %7087 = vmatmul.mubr.bf16.gmra.mxu0 %v7328_v25  ;;  %v9140_v25 = vsel %vm7920_vm13, %v5210_v28, %v5211_v21  ;;  %7166 = vmatprep.subr.bf16.mxu0 %v7342_v41  ;;  %v9154_v11 = vrot.slane %v4494_v14, 4  ;;  %v9156_v19 = vrot.slane %v4497_v26, 5  ;;  %v4531_v21 = vrot.slane %v4529_v46, 5  ;;  %v7332_v28 = vld [vmem:[#allocation2 + $0x84] sm:$0xff]   ;;  %10327 = vst [vmem:[#allocation8_spill] sm:$0xff] %v9160_v1  ;;  %v7335_v26 = vld [vmem:[#allocation2 + $0x90] sm:$0xff]  }
 0x146   : > { %7035 = vmatmul.mubr.bf16.gmra.mxu1 %v10322_v44  ;;  %7090 = vmatprep.mubr.bf16.mxu0 %v7331_v33  ;;  %v4507_v33 = vrot.slane %v4505_v47, 5  ;;  %v9164_v0 = vsel %vm7920_vm13, %v6337_v50, %v5215_v16  ;;  %v9168_v47 = vsel %vm7920_vm13, %v5217_v9, %v5218_v10  ;;  %v9170_v13 = vrot.slane %v4535_v17, 5  ;;  %v9184_v10 = vld [vmem:[#allocation2 + $0x50] sm:$0x1]  ;;  %v4396_v17 = vld [vmem:[#allocation2 + $0x54] sm:$0xf] }
 0x147   : > { %7038 = vmatprep.mubr.bf16.mxu1 %v10325_v48  ;;  %7115 = vmatpush3.bf16.msra.mxu1 %v7333_v60  ;;  %v4528_v60 = vrot.slane %v4526_v15, 4  ;;  %v4541_v18 = vrot.slane %v4539_v51, 4  ;;  %v10328_v14 = vsel %vm7494_vm10, %v9044_v31, %v9015_v45  ;;  %v9179_v46 = vcombine.low %v4466_v2, %v4476_v35  ;;  %v5138_v51 = vld [vmem:[#allocation2 + $0x3c] sm:$0xe]  ;;  %v9192_v44 = vld [vmem:[#allocation2 + $0x58] sm:$0xf] }
 0x148   : > { %7116 = vmatprep.subr.bf16.mxu1 %v7337_v40  ;;  %v9177_v15 = vcombine.low %v10328_v14, %v4452_v49  ;;  %v4521_v50 = vshll.u32 %v9144_v61, 16  ;;  %7167 = vmatpush3.bf16.msra.mxu0 %v7342_v41  ;;  %v4508_v45 = vor.u32 %v4507_v33, %v4504_v22  ;;  %v4518_v31 = vor.u32 %v4517_v53, %v9146_v54  ;;  %v7345_v48 = vld [vmem:[%s10181_s3 + $0x1c0] sm:$0xff]   ;;  %v9207_v22 = vpop.f32.mrf.mxu1  ;;  %v9209_v33 = vpop.f32.mrf.mxu0  ;;  %v5139_v16 = vld [vmem:[#allocation2 + $0x48] sm:$0xe] }
 0x149   : > { %v5222_v49 = vrot.slane %v9089_v8, 5  ;;  %7168 = vmatprep.subr.bf16.mxu0 %v7346_v37  ;;  %v4532_v2 = vor.u32 %v4531_v21, %v4528_v60  ;;  %v5229_v35 = vrot.slane %v9107_v24, 5  ;;  %v10329_v8 = vcombine.low %v8861_v4, %v8865_v6  ;;  %10330 = vst [vmem:[#allocation19_spill] sm:$0xff] %v9207_v22  ;;  %10331 = vst [vmem:[#allocation10_spill] sm:$0xff] %v9209_v33  ;;  %v4399_v22 = vld [vmem:[#allocation2 + $0x60] sm:$0xf] }
 0x14a   : > { %v4542_v53 = vor.u32 %v4541_v18, %v9170_v13  ;;  %v4545_v14 = vshll.u32 %v9184_v10, 16  ;;  %v4550_v9 = vshrl.u32 %v4396_v17, 16  ;;  %v10332_v60 = vcombine.low %v8873_v42, %v8883_v27  ;;  %v7339_v36 = vld [vmem:[#allocation2 + $0xa8] sm:$0xff]   ;;  %v9226_v1 = vld [vmem:[#allocation2 + $0x64] sm:$0xf] }
 0x14b   : > { %7117 = vmatpush3.bf16.msra.mxu1 %v7337_v40  ;;  %v4553_v40 = vshll.u32 %v4396_v17, 16  ;;  %v4523_v24 = vrot.slane %v4521_v50, 5  ;;  %v6338_v4 = vrot.slane %v5138_v51, 9  ;;  %v4559_v6 = vshll.u32 %v9192_v44, 16  ;;  %v7336_v17 = vld [vmem:[#allocation2 + $0x9c] sm:$0xff]   ;;  %v9220_v51 = vpop.f32.mrf.mxu1 }
 0x14c   : > { %7118 = vmatprep.subr.bf16.mxu1 %v7341_v52  ;;  %v4563_v21 = vshrl.u32 %v9192_v44, 16  ;;  %7169 = vmatpush3.bf16.msra.mxu0 %v7346_v37  ;;  %v4519_v18 = vrot.slane %v4518_v31, 4  ;;  %v5225_v41 = vrot.slane %v9144_v61, 5  ;;  %v4533_v42 = vrot.slane %v4532_v2, 4  ;;  %10333 = vst [vmem:[#allocation9_spill] sm:$0xff] %v9220_v51 }
 0x14d   : > { %7091 = vmatmul.mubr.bf16.gmra.mxu0 %v7332_v28  ;;  %v4509_v28 = vrot.slane %v4508_v45, 4  ;;  %v6339_v27 = vrot.slane %v5139_v16, 9  ;;  %v5232_v50 = vrot.slane %v9184_v10, 5  ;;  %v4547_v37 = vrot.slane %v4545_v14, 5  ;;  %v4398_v45 = vld [vmem:[#allocation2 + $0x5c] sm:$0x1] }
 0x14e   : > { %7039 = vmatmul.mubr.bf16.gmra.mxu1 %v10329_v8  ;;  %7094 = vmatprep.mubr.bf16.mxu0 %v7335_v26  ;;  %v5224_v8 = vrot.slane %v5222_v49, 4  ;;  %v5231_v26 = vrot.slane %v5229_v35, 4  ;;  %v4552_v31 = vrot.slane %v4550_v9, 4  ;;  %v4555_v34 = vrot.slane %v4553_v40, 5 }
 0x14f   : > { %7042 = vmatprep.mubr.bf16.mxu1 %v10332_v60  ;;  %7119 = vmatpush3.bf16.msra.mxu1 %v7341_v52  ;;  %v9222_v60 = vpop.f32.mrf.mxu0  ;;  %v4543_v52 = vrot.slane %v4542_v53, 4  ;;  %v9224_v33 = vrot.slane %v4559_v6, 5  ;;  %v4565_v61 = vrot.slane %v4563_v21, 4  ;;  %v4574_v3 = vshrl.u32 %v4399_v22, 16 }
 0x150   : > { %7120 = vmatprep.subr.bf16.mxu1 %v7345_v48  ;;  %v4577_v2 = vshll.u32 %v4399_v22, 16  ;;  %v4514_v16 = vsel %vm7494_vm10, %v4509_v28, %v9146_v54  ;;  %v9233_v10 = vsel %vm7920_vm13, %v6338_v4, %v5222_v49  ;;  %v9237_v9 = vsel %vm7920_vm13, %v5224_v8, %v5225_v41  ;;  %v5140_v22 = vld [vmem:[#allocation2 + $0x54] sm:$0xe] }
 0x151   : > { %v5236_v40 = vrot.slane %v9192_v44, 5  ;;  %v4524_v53 = vsel %vm7494_vm10, %v4519_v18, %v4523_v24  ;;  %v9247_v54 = vsel %vm7920_vm13, %v6339_v27, %v5229_v35  ;;  %v9251_v49 = vsel %vm7920_vm13, %v5231_v26, %v5232_v50  ;;  %v9256_v44 = vpop.f32.mrf.mxu1  ;;  %v9258_v14 = vpop.f32.mrf.mxu0  ;;  %v4402_v18 = vld [vmem:[#allocation2 + $0x6c] sm:$0xf]  ;;  %v9290_v50 = vld [vmem:[#allocation2 + $0x70] sm:$0xf] }
 0x152   : > { %v10334_v41 = vcombine.low %v8889_v56, %v8893_v20  ;;  %10335 = vst [vmem:[#allocation20_spill] sm:$0xff] %v9256_v44  ;;  %v4569_v24 = vshll.u32 %v4398_v45, 16  ;;  %v4583_v35 = vshll.u32 %v9226_v1, 16  ;;  %v4587_v4 = vshrl.u32 %v9226_v1, 16 }
 0x153   : > { %7121 = vmatpush3.bf16.msra.mxu1 %v7345_v48  ;;  %v4538_v48 = vsel %vm7494_vm10, %v4533_v42, %v9170_v13  ;;  %v4548_v13 = vsel %vm7494_vm10, %v4543_v52, %v4547_v37  ;;  %v10336_v6 = vcombine.low %v8903_v7, %v8907_v30  ;;  %v4556_v56 = vor.u32 %v4555_v34, %v4552_v31 }
 0x154   : > { %v4566_v20 = vor.u32 %v4565_v61, %v9224_v33  ;;  %v4576_v21 = vrot.slane %v4574_v3, 4  ;;  %v4579_v28 = vrot.slane %v4577_v2, 5  ;;  %v10337_v8 = vsel %vm7494_vm10, %v9154_v11, %v9156_v19  ;;  %v9288_v19 = vld [vmem:[#allocation2 + $0x68] sm:$0x1]  ;;  %v4405_v61 = vld [vmem:[#allocation2 + $0x78] sm:$0xf] }
 0x155   : > { %7095 = vmatmul.mubr.bf16.gmra.mxu0 %v7336_v17  ;;  %v10338_v17 = vsel %vm7494_vm10, %v9142_v43, %v9087_v38  ;;  %v6340_v7 = vrot.slane %v5140_v22, 9  ;;  %v5238_v30 = vrot.slane %v5236_v40, 4  ;;  %v5239_v34 = vrot.slane %v4398_v45, 5  ;;  %v9292_v38 = vpop.f32.mrf.mxu1  ;;  %v9294_v43 = vpop.f32.mrf.mxu0  ;;  %v7343_v2 = vld [vmem:[#allocation2 + $0xc0] sm:$0xff]  }
 0x156   : > { %7043 = vmatmul.mubr.bf16.gmra.mxu1 %v10334_v41  ;;  %7098 = vmatprep.mubr.bf16.mxu0 %v7339_v36  ;;  %v9278_v42 = vcombine.low %v10338_v17, %v10337_v8  ;;  %v7340_v36 = vld [vmem:[#allocation2 + $0xb4] sm:$0xff]   ;;  %v9280_v27 = vcombine.low %v4514_v16, %v4524_v53  ;;  %v9284_v26 = vcombine.low %v4538_v48, %v4548_v13  ;;  %v9296_v52 = vrot.slane %v4583_v35, 5  ;;  %v5141_v41 = vld [vmem:[#allocation2 + $0x60] sm:$0xe] }
 0x157   : > { %7046 = vmatprep.mubr.bf16.mxu1 %v10336_v6  ;;  %10339 = vst [vmem:[#allocation21_spill] sm:$0xff] %v9292_v38  ;;  %10340 = vst [vmem:[#allocation22_spill] sm:$0xff] %v9294_v43  ;;  %v4589_v37 = vrot.slane %v4587_v4, 4  ;;  %v4598_v45 = vshrl.u32 %v4402_v18, 16  ;;  %v4601_v31 = vshll.u32 %v4402_v18, 16  ;;  %v9298_v16 = vrot.slane %v4556_v56, 4  ;;  %v9321_v18 = vpop.f32.mrf.mxu1  ;;  %v9323_v8 = vpop.f32.mrf.mxu0 }
 0x158   : > { %v9300_v53 = vrot.slane %v4566_v20, 4  ;;  %v9302_v48 = vrot.slane %v4569_v24, 5  ;;  %v4580_v22 = vor.u32 %v4579_v28, %v4576_v21  ;;  %v9306_v13 = vsel %vm7920_vm13, %v6340_v7, %v5236_v40  ;;  %v9316_v24 = vld [vmem:[#allocation2 + $0x7c] sm:$0xf]  ;;  %10342 = vst [vmem:[#allocation23_spill] sm:$0xff] %v9321_v18  ;;  %10343 = vst [vmem:[#allocation24_spill] sm:$0xff] %v9323_v8 }
 0x159   : > { %v9310_v35 = vsel %vm7920_vm13, %v5238_v30, %v5239_v34  ;;  %v4593_v4 = vshll.u32 %v9288_v19, 16  ;;  %v5243_v6 = vrot.slane %v9226_v1, 5  ;;  %v4607_v56 = vshll.u32 %v9290_v50, 16  ;;  %v4410_v8 = vld [vmem:[#allocation2 + $0x8c] sm:$0x1] }
 0x15a   : > { %v4611_v20 = vshrl.u32 %v9290_v50, 16  ;;  %v4622_v21 = vshrl.u32 %v4405_v61, 16  ;;  %v4625_v28 = vshll.u32 %v4405_v61, 16  ;;  %v10341_v40 = vcombine.low %v8911_v57, %v8920_v58  ;;  %v7344_v57 = vld [vmem:[#allocation2 + $0xcc] sm:$0xff]  }
 0x15b   : > { %v4590_v17 = vor.u32 %v4589_v37, %v9296_v52  ;;  %v6341_v1 = vrot.slane %v5141_v41, 9  ;;  %v4600_v7 = vrot.slane %v4598_v45, 4  ;;  %v4603_v30 = vrot.slane %v4601_v31, 5  ;;  %v4408_v45 = vld [vmem:[#allocation2 + $0x84] sm:$0xf] }
 0x15c   : > { %v10344_v34 = vcombine.low %v8933_v55, %v8937_v23  ;;  %v9339_v37 = vrot.slane %v4580_v22, 4  ;;  %v5245_v31 = vrot.slane %v5243_v6, 4  ;;  %v5246_v55 = vrot.slane %v9288_v19, 5  ;;  %v9346_v41 = vld [vmem:[#allocation2 + $0x74] sm:$0x1]  ;;  %v9352_v22 = vpop.f32.mrf.mxu0 }
 0x15d   : > { %7099 = vmatmul.mubr.bf16.gmra.mxu0 %v7340_v36  ;;  %v4631_v23 = vshll.u32 %v9316_v24, 16  ;;  %v4635_v61 = vshrl.u32 %v9316_v24, 16  ;;  %v4624_v11 = vrot.slane %v4622_v21, 4  ;;  %v4627_v3 = vrot.slane %v4625_v28, 5  ;;  %v9350_v36 = vpop.f32.mrf.mxu1  ;;  %10346 = vst [vmem:[#allocation26_spill] sm:$0xff] %v9352_v22 }
 0x15e   : > { %7047 = vmatmul.mubr.bf16.gmra.mxu1 %v10341_v40  ;;  %7102 = vmatprep.mubr.bf16.mxu0 %v7343_v2  ;;  %v9344_v2 = vld [vmem:[#allocation2 + $0x88] sm:$0xf]  ;;  %v9348_v40 = vrot.slane %v4607_v56, 5  ;;  %10345 = vst [vmem:[#allocation25_spill] sm:$0xff] %v9350_v36  ;;  %v9354_v58 = vrot.slane %v4590_v17, 4  ;;  %v9356_v19 = vrot.slane %v4593_v4, 5  ;;  %v9360_v18 = vsel %vm7920_vm13, %v6341_v1, %v5243_v6 }
 0x15f   : > { %7050 = vmatprep.mubr.bf16.mxu1 %v10344_v34  ;;  %v4613_v34 = vrot.slane %v4611_v20, 4  ;;  %v4604_v38 = vor.u32 %v4603_v30, %v4600_v7  ;;  %v5142_v20 = vld [vmem:[#allocation2 + $0x6c] sm:$0xe]  ;;  %v4646_v21 = vshrl.u32 %v4408_v45, 16  ;;  %v4649_v28 = vshll.u32 %v4408_v45, 16  ;;  %v9380_v22 = vpop.f32.mrf.mxu1 }
 0x160   : > { %v4655_v36 = vshll.u32 %v9344_v2, 16  ;;  %v4617_v17 = vshll.u32 %v9346_v41, 16  ;;  %v9368_v44 = vrot.slane %v4631_v23, 5  ;;  %v4637_v4 = vrot.slane %v4635_v61, 4  ;;  %v4407_v30 = vld [vmem:[#allocation2 + $0x80] sm:$0x1] }
 0x161   : > { %v4659_v51 = vshrl.u32 %v9344_v2, 16  ;;  %v9373_v6 = vsel %vm7920_vm13, %v5245_v31, %v5246_v55  ;;  %v4614_v1 = vor.u32 %v4613_v34, %v9348_v40  ;;  %v5250_v7 = vrot.slane %v9290_v50, 5  ;;  %10348 = vst [vmem:[#allocation27_spill] sm:$0xff] %v9380_v22  ;;  %v5143_v50 = vld [vmem:[#allocation2 + $0x78] sm:$0xe] }
 0x162   : > { %v4628_v56 = vor.u32 %v4627_v3, %v4624_v11  ;;  %v10347_v45 = vcombine.low %v8948_v39, %v8952_v63  ;;  %v9388_v55 = vrot.slane %v4604_v38, 4  ;;  %v6342_v61 = vrot.slane %v5142_v20, 9  ;;  %v10351_v63 = vld [vmem:[#allocation14_spill] sm:$0xff] }
 0x163   : > { %v5257_v3 = vrot.slane %v9316_v24, 5  ;;  %v10350_v39 = vcombine.low %v8965_v5, %v8971_v29  ;;  %v10352_v11 = vcombine.low %v9048_v12, %v10351_v63  ;;  %v4651_v34 = vrot.slane %v4649_v28, 5  ;;  %v4411_v12 = vld [vmem:[#allocation2 + $0x90] sm:$0xf]  ;;  %v9403_v63 = vpop.f32.mrf.mxu1 }
 0x164   : > { %v9382_v23 = vpop.f32.mrf.mxu0  ;;  %v4661_v22 = vrot.slane %v4659_v51, 4  ;;  %v4619_v38 = vrot.slane %v4617_v17, 5  ;;  %v5253_v20 = vrot.slane %v9346_v41, 5  ;;  %v4638_v24 = vor.u32 %v4637_v4, %v9368_v44  ;;  %10354 = vst [vmem:[#allocation29_spill] sm:$0xff] %v9403_v63 }
 0x165   : > { %10349 = vst [vmem:[#allocation28_spill] sm:$0xff] %v9382_v23  ;;  %7103 = vmatmul.mubr.bf16.gmra.mxu0 %v7344_v57  ;;  %v4648_v57 = vrot.slane %v4646_v21, 4  ;;  %v4641_v23 = vshll.u32 %v4407_v30, 16  ;;  %v4615_v5 = vrot.slane %v4614_v1, 4  ;;  %v5252_v29 = vrot.slane %v5250_v7, 4 }
 0x166   : > { %7051 = vmatmul.mubr.bf16.gmra.mxu1 %v10347_v45  ;;  %7170 = vmatprep.mubr.bf16.mxu0 %v10352_v11  ;;  %v9397_v45 = vrot.slane %v4655_v36, 5  ;;  %v9399_v31 = vpop.f32.mrf.mxu0  ;;  %v6343_v43 = vrot.slane %v5143_v50, 9  ;;  %v9409_v51 = vsel %vm7920_vm13, %v6342_v61, %v5250_v7  ;;  %v5259_v36 = vrot.slane %v5257_v3, 4  ;;  %v5144_v50 = vld [vmem:[#allocation2 + $0x84] sm:$0xe] }
 0x167   : > { %7054 = vmatprep.mubr.bf16.mxu1 %v10350_v39  ;;  %10353 = vst [vmem:[#allocation14_spill] sm:$0xff] %v9399_v31  ;;  %v4629_v39 = vrot.slane %v4628_v56, 4  ;;  %v5260_v28 = vrot.slane %v4407_v30, 5  ;;  %v5264_v41 = vrot.slane %v9344_v2, 5  ;;  %v4610_v17 = vsel %vm7494_vm10, %v9388_v55, %v9348_v40  ;;  %v9419_v7 = vld [vmem:[#allocation2 + $0x94] sm:$0xf] }
 0x168   : > { %v9405_v21 = vpop.f32.mrf.mxu0  ;;  %v4652_v56 = vor.u32 %v4651_v34, %v4648_v57  ;;  %v4662_v4 = vor.u32 %v4661_v22, %v9397_v45  ;;  %v4665_v1 = vshll.u32 %v4410_v8, 16  ;;  %v4639_v63 = vrot.slane %v4638_v24, 4  ;;  %v10356_v55 = vld [vmem:[#allocation3_spill] sm:$0xff] }
 0x169   : > { %10355 = vst [vmem:[#allocation30_spill] sm:$0xff] %v9405_v21  ;;  %v4643_v21 = vrot.slane %v4641_v23, 5  ;;  %v4670_v61 = vshrl.u32 %v4411_v12, 16  ;;  %v4673_v30 = vshll.u32 %v4411_v12, 16  ;;  %v4620_v2 = vsel %vm7494_vm10, %v4615_v5, %v4619_v38  ;;  %v10357_v57 = vld [vmem:[#allocation11_spill] sm:$0xff] }
 0x16a   : > { %v9417_v11 = vpop.f32.mrf.mxu0  ;;  %v9425_v31 = vsel %vm7920_vm13, %v5252_v29, %v5253_v20  ;;  %v4634_v40 = vsel %vm7494_vm10, %v4629_v39, %v9368_v44  ;;  %v9432_v22 = vsel %vm7920_vm13, %v6343_v43, %v5257_v3  ;;  %v10358_v34 = vcombine.low %v10356_v55, %v10357_v57 }
 0x16b   : > { %v10359_v38 = vcombine.low %v9103_v32, %v9140_v25  ;;  %v9446_v20 = vsel %vm7920_vm13, %v5259_v36, %v5260_v28  ;;  %v6344_v44 = vrot.slane %v5144_v50, 9  ;;  %v5266_v5 = vrot.slane %v5264_v41, 4 }
 0x16c   : > { %v9434_v23 = vpop.f32.mrf.mxu1  ;;  %v9439_v24 = vpop.f32.mrf.mxu0  ;;  %v5267_v43 = vrot.slane %v4410_v8, 5  ;;  %v10360_v3 = vcombine.low %v9164_v0, %v9168_v47  ;;  %v4653_v29 = vrot.slane %v4652_v56, 4  ;;  %v4663_v39 = vrot.slane %v4662_v4, 4 }
 0x16d   : > { %7171 = vmatmul.mubr.bf16.vlgmr.msra.gmra.mxu0 %v10359_v38  ;;  %v4667_v12 = vrot.slane %v4665_v1, 5  ;;  %v4679_v55 = vshll.u32 %v9419_v7, 16  ;;  %v4644_v36 = vsel %vm7494_vm10, %v4639_v63, %v4643_v21  ;;  %v4672_v28 = vrot.slane %v4670_v61, 4  ;;  %v9506_v61 = vld [vmem:[#allocation2 + $0xa0] sm:$0xf] }
 0x16e   : > { %7055 = vmatmul.mubr.bf16.gmra.mxu1 %v10358_v34  ;;  %7174 = vmatprep.mubr.bf16.mxu0 %v10360_v3  ;;  %v9453_v32 = vpop.f32.mrf.mxu1  ;;  %v9455_v25 = vpop.f32.mrf.mxu0  ;;  %v4675_v8 = vrot.slane %v4673_v30, 5  ;;  %v10361_v0 = vsel %vm7494_vm10, %v9300_v53, %v9302_v48  ;;  %v10362_v47 = vsel %vm7494_vm10, %v9298_v16, %v9224_v33  ;;  %v10363_v63 = vsel %vm7494_vm10, %v9354_v58, %v9356_v19  ;;  %v4414_v16 = vld [vmem:[#allocation2 + $0x9c] sm:$0xf]  ;;  %v9504_v19 = vld [vmem:[#allocation2 + $0x98] sm:$0x1] }
 0x16f   : > { %7122 = vmatprep.mubr.bf16.mxu1 %v9177_v15  ;;  %v4683_v15 = vshrl.u32 %v9419_v7, 16  ;;  %v9470_v56 = vcombine.low %v10362_v47, %v10361_v0  ;;  %v10364_v21 = vsel %vm7494_vm10, %v9339_v37, %v9296_v52  ;;  %v9492_v50 = vcombine.low %v4610_v17, %v4620_v2  ;;  %v4417_v34 = vld [vmem:[#allocation2 + $0xa8] sm:$0xf] }
 0x170   : > { %v9482_v4 = vcombine.low %v10364_v21, %v10363_v63  ;;  %v9488_v48 = vpop.f32.mrf.mxu1  ;;  %v9490_v1 = vpop.f32.mrf.mxu0  ;;  %v9498_v52 = vsel %vm7920_vm13, %v6344_v44, %v5264_v41  ;;  %v9502_v37 = vsel %vm7920_vm13, %v5266_v5, %v5267_v43  ;;  %v9508_v30 = vcombine.low %v4634_v40, %v4644_v36  ;;  %v5145_v41 = vld [vmem:[#allocation2 + $0x90] sm:$0xe]  ;;  %v9521_v36 = vld [vmem:[#allocation2 + $0xac] sm:$0xf]  ;;  %v10368_v21 = vld [vmem:[#allocation12_spill] sm:$0xff] }
 0x171   : > { %10365 = vst [vmem:[#allocation3_spill] sm:$0xff] %v9488_v48  ;;  %v4658_v17 = vsel %vm7494_vm10, %v4653_v29, %v9397_v45  ;;  %v4668_v2 = vsel %vm7494_vm10, %v4663_v39, %v4667_v12  ;;  %v9515_v57 = vrot.slane %v4679_v55, 5  ;;  %v4676_v5 = vor.u32 %v4675_v8, %v4672_v28 }
 0x172   : > { %v9517_v38 = vpop.f32.mrf.mxu1  ;;  %v9519_v44 = vpop.f32.mrf.mxu0  ;;  %v4685_v43 = vrot.slane %v4683_v15, 4  ;;  %v4694_v3 = vshrl.u32 %v4414_v16, 16  ;;  %v4697_v40 = vshll.u32 %v4414_v16, 16  ;;  %v4689_v29 = vshll.u32 %v9504_v19, 16 }
 0x173   : > { %10366 = vst [vmem:[#allocation11_spill] sm:$0xff] %v9517_v38  ;;  %v4703_v39 = vshll.u32 %v9506_v61, 16  ;;  %v4707_v12 = vshrl.u32 %v9506_v61, 16  ;;  %v10367_v28 = vcombine.low %v9233_v10, %v9237_v9  ;;  %v9534_v8 = vcombine.low %v4658_v17, %v4668_v2 }
 0x174   : > { %v6836_v55 = vpop.f32.mrf.mxu1  ;;  %v9529_v0 = vpop.f32.mrf.mxu0  ;;  %v5271_v15 = vrot.slane %v9419_v7, 5  ;;  %v4718_v47 = vshrl.u32 %v4417_v34, 16  ;;  %v4721_v63 = vshll.u32 %v4417_v34, 16  ;;  %v10369_v45 = vcombine.low %v9247_v54, %v9251_v49 }
 0x175   : > { %7175 = vmatmul.mubr.bf16.gmra.mxu0 %v10367_v28  ;;  %v1753_v16 = vadd.f32 %v6836_v55, %v10368_v21  ;;  %v4727_v58 = vshll.u32 %v9521_v36, 16  ;;  %v4731_v10 = vshrl.u32 %v9521_v36, 16  ;;  %v9546_v2 = vrot.slane %v4676_v5, 4  ;;  %v10370_v28 = vld [vmem:[#allocation5_spill] sm:$0xff]  ;;  %v4416_v5 = vld [vmem:[#allocation2 + $0xa4] sm:$0x1] }
 0x176   : > { %7123 = vmatmul.mubr.bf16.vlgmr.msra.gmra.mxu1 %v9179_v46  ;;  %7178 = vmatprep.mubr.bf16.mxu0 %v10369_v45  ;;  %v6345_v46 = vrot.slane %v5145_v41, 9  ;;  %v1744_v9 = vpop.f32.mrf.mxu1  ;;  %v9544_v17 = vpop.f32.mrf.mxu0  ;;  %v4686_v7 = vor.u32 %v4685_v43, %v9515_v57  ;;  %v4696_v34 = vrot.slane %v4694_v3, 4  ;;  %v4699_v55 = vrot.slane %v4697_v40, 5  ;;  %v10372_v3 = vld [vmem:[#allocation13_spill] sm:$0xff] }
 0x177   : > { %7126 = vmatprep.mubr.bf16.mxu1 %v9278_v42  ;;  %v9550_v42 = vadd.f32 %v9439_v24, %v1753_v16  ;;  %v1745_v54 = vadd.f32 %v1744_v9, %v10370_v28  ;;  %v9553_v49 = vrot.slane %v4703_v39, 5  ;;  %v4709_v41 = vrot.slane %v4707_v12, 4 }
 0x178   : > { %v6837_v45 = vpop.f32.mrf.mxu1  ;;  %v9555_v21 = vpop.f32.mrf.mxu0  ;;  %v5273_v33 = vrot.slane %v5271_v15, 4  ;;  %v5274_v53 = vrot.slane %v9504_v19, 5  ;;  %v4720_v38 = vrot.slane %v4718_v47, 4  ;;  %v4723_v48 = vrot.slane %v4721_v63, 5  ;;  %v9573_v63 = vld [vmem:[#allocation2 + $0xb0] sm:$0x1] }
 0x179   : > { %v9559_v43 = vadd.f32 %v9455_v25, %v1745_v54  ;;  %v1756_v24 = vadd.f32 %v6837_v45, %v10372_v3  ;;  %v9562_v40 = vrot.slane %v4727_v58, 5  ;;  %v4733_v16 = vrot.slane %v4731_v10, 4  ;;  %v10373_v58 = vld [vmem:[#allocation17_spill] sm:$0xff]  ;;  %v5146_v3 = vld [vmem:[#allocation2 + $0x9c] sm:$0xe] }
 0x17a   : > { %v1747_v39 = vpop.f32.mrf.mxu1  ;;  %v9564_v9 = vpop.f32.mrf.mxu0  ;;  %v9566_v12 = vrot.slane %v4689_v29, 5  ;;  %v9570_v28 = vsel %vm7920_vm13, %v6345_v46, %v5271_v15  ;;  %v4700_v19 = vor.u32 %v4699_v55, %v4696_v34  ;;  %v5278_v47 = vrot.slane %v9506_v61, 5 }
 0x17b   : > { %10371 = vst [vmem:[#allocation12_spill] sm:$0xff] %v9559_v43  ;;  %v9576_v25 = vadd.f32 %v9490_v1, %v1756_v24  ;;  %v1748_v54 = vadd.f32 %v1747_v39, %v10373_v58  ;;  %v4710_v10 = vor.u32 %v4709_v41, %v9553_v49  ;;  %v4713_v45 = vshll.u32 %v4416_v5, 16  ;;  %v10377_v24 = vld [vmem:[#allocation8_spill] sm:$0xff] }
 0x17c   : > { %v6840_v29 = vpop.f32.mrf.mxu1  ;;  %v9581_v43 = vpop.f32.mrf.mxu0  ;;  %v10374_v15 = vcombine.low %v9306_v13, %v9310_v35  ;;  %v4682_v1 = vsel %vm7494_vm10, %v9546_v2, %v9515_v57  ;;  %v4687_v61 = vrot.slane %v4686_v7, 4  ;;  %v9592_v46 = vsel %vm7920_vm13, %v5273_v33, %v5274_v53 }
 0x17d   : > { %v4724_v34 = vor.u32 %v4723_v48, %v4720_v38  ;;  %v9595_v55 = vadd.f32 %v9519_v44, %v1748_v54  ;;  %v10376_v13 = vcombine.low %v9360_v18, %v9373_v6  ;;  %v4734_v35 = vor.u32 %v4733_v16, %v9562_v40  ;;  %v5147_v18 = vld [vmem:[#allocation2 + $0xa8] sm:$0xe] }
 0x17e   : > { %7127 = vmatmul.mubr.bf16.gmra.mxu1 %v9280_v27  ;;  %7179 = vmatmul.mubr.bf16.gmra.mxu0 %v10374_v15  ;;  %v10375_v27 = vld [vmem:[#allocation6_spill] sm:$0xff]  ;;  %v4737_v57 = vshll.u32 %v9573_v63, 16  ;;  %v1760_v2 = vpop.f32.mrf.mxu1  ;;  %v9604_v7 = vpop.f32.mrf.mxu0  ;;  %v4701_v53 = vrot.slane %v4700_v19, 4  ;;  %v6346_v33 = vrot.slane %v5146_v3, 9  ;;  %v5280_v48 = vrot.slane %v5278_v47, 4 }
 0x17f   : > { %v1769_v41 = vadd.f32 %v6840_v29, %v10375_v27  ;;  %7130 = vmatprep.mubr.bf16.mxu1 %v9284_v26  ;;  %7182 = vmatprep.mubr.bf16.mxu0 %v10376_v13  ;;  %v5281_v38 = vrot.slane %v4416_v5, 5  ;;  %v1761_v26 = vadd.f32 %v1760_v2, %v10377_v24  ;;  %v4711_v39 = vrot.slane %v4710_v10, 4  ;;  %v10378_v29 = vld [vmem:[#allocation10_spill] sm:$0xff] }
 0x180   : > { %v4715_v58 = vrot.slane %v4713_v45, 5  ;;  %v6841_v6 = vpop.f32.mrf.mxu1  ;;  %v9610_v54 = vpop.f32.mrf.mxu0  ;;  %v4692_v16 = vsel %vm7494_vm10, %v4687_v61, %v9566_v12  ;;  %v6377_v19 = vcombine.low %v9570_v28, %v9592_v46  ;;  %v4725_v3 = vrot.slane %v4724_v34, 4  ;;  %v4420_v27 = vld [vmem:[#allocation2 + $0xb4] sm:$0xf]  ;;  %v4425_v28 = vld [vmem:[#allocation2 + $0xc8] sm:$0x1] }
 0x181   : > { %v9607_v44 = vadd.f32 %v9529_v0, %v1769_v41  ;;  %v5285_v5 = vrot.slane %v9521_v36, 5  ;;  %v9619_v0 = vadd.f32 %v9544_v17, %v1761_v26  ;;  %v1772_v10 = vadd.f32 %v6841_v6, %v10378_v29  ;;  %v4423_v6 = vld [vmem:[#allocation2 + $0xc0] sm:$0xf] }
 0x182   : > { %v4735_v45 = vrot.slane %v4734_v35, 4  ;;  %v4739_v15 = vrot.slane %v4737_v57, 5  ;;  %v1763_v41 = vpop.f32.mrf.mxu1  ;;  %v9622_v13 = vpop.f32.mrf.mxu0  ;;  %v4706_v12 = vsel %vm7494_vm10, %v4701_v53, %v9553_v49  ;;  %v9629_v61 = vsel %vm7920_vm13, %v6346_v33, %v5278_v47 }
 0x183   : > { %v9633_v36 = vsel %vm7920_vm13, %v5280_v48, %v5281_v38  ;;  %v6347_v17 = vrot.slane %v5147_v18, 9  ;;  %v9636_v34 = vadd.f32 %v9555_v21, %v1772_v10  ;;  %v1764_v35 = vadd.f32 %v1763_v41, %v9222_v60  ;;  %v9651_v60 = vld [vmem:[#allocation2 + $0xb8] sm:$0xf] }
 0x184   : > { %v4716_v57 = vsel %vm7494_vm10, %v4711_v39, %v4715_v58  ;;  %v5288_v2 = vrot.slane %v9573_v63, 5  ;;  %v6844_v49 = vpop.f32.mrf.mxu1  ;;  %v9643_v47 = vpop.f32.mrf.mxu0  ;;  %v10379_v53 = vcombine.low %v9409_v51, %v9425_v31  ;;  %v4730_v21 = vsel %vm7494_vm10, %v4725_v3, %v9562_v40 }
 0x185   : > { %v5287_v33 = vrot.slane %v5285_v5, 4  ;;  %v4742_v48 = vshrl.u32 %v4420_v27, 16  ;;  %v4745_v38 = vshll.u32 %v4420_v27, 16  ;;  %v9654_v63 = vadd.f32 %v9564_v9, %v1764_v35  ;;  %v10382_v27 = vld [vmem:[#allocation24_spill] sm:$0xff] }
 0x186   : > { %7131 = vmatmul.mubr.bf16.gmra.mxu1 %v9470_v56  ;;  %7183 = vmatmul.mubr.bf16.gmra.mxu0 %v10379_v53  ;;  %v1785_v56 = vadd.f32 %v6844_v49, %v9258_v14  ;;  %v10380_v31 = vcombine.low %v9432_v22, %v9446_v20  ;;  %v4740_v51 = vsel %vm7494_vm10, %v4735_v45, %v4739_v15  ;;  %v1776_v40 = vpop.f32.mrf.mxu1  ;;  %v9663_v24 = vpop.f32.mrf.mxu0  ;;  %v10381_v20 = vld [vmem:[#allocation22_spill] sm:$0xff]  ;;  %v4751_v18 = vshll.u32 %v9651_v60, 16 }
 0x187   : > { %7134 = vmatprep.mubr.bf16.mxu1 %v9482_v4  ;;  %v9665_v26 = vcombine.low %v4682_v1, %v4692_v16  ;;  %v9667_v39 = vcombine.low %v4706_v12, %v4716_v57  ;;  %v6378_v9 = vcombine.low %v9629_v61, %v9633_v36  ;;  %v9673_v14 = vsel %vm7920_vm13, %v6347_v17, %v5285_v5  ;;  %v387_v4 = vld [vmem:[#allocation2 + $0xd4] sm:$0xf]  ;;  %v9681_v16 = vld [vmem:[#allocation2 + $0xc4] sm:$0xf]  ;;  %v4422_v12 = vld [vmem:[#allocation2 + $0xbc] sm:$0x1] }
 0x188   : > { %7186 = vmatprep.mubr.bf16.mxu0 %v10380_v31  ;;  %v9676_v22 = vadd.f32 %v9581_v43, %v1785_v56  ;;  %v1777_v58 = vadd.f32 %v1776_v40, %v10381_v20  ;;  %v4755_v1 = vshrl.u32 %v9651_v60, 16  ;;  %v6845_v3 = vpop.f32.mrf.mxu1  ;;  %v9683_v29 = vpop.f32.mrf.mxu0  ;;  %v9685_v10 = vcombine.low %v4730_v21, %v4740_v51  ;;  %v5148_v17 = vld [vmem:[#allocation2 + $0xb4] sm:$0xe] }
 0x189   : > { %v9689_v5 = vsel %vm7920_vm13, %v5287_v33, %v5288_v2  ;;  %v4744_v43 = vrot.slane %v4742_v48, 4  ;;  %v4747_v45 = vrot.slane %v4745_v38, 5  ;;  %v1788_v41 = vadd.f32 %v6845_v3, %v10382_v27  ;;  %v10384_v38 = vld [vmem:[#allocation26_spill] sm:$0xff]  ;;  %v5149_v27 = vld [vmem:[#allocation2 + $0xc0] sm:$0xe] }
 0x18a   : > { %v9692_v15 = vadd.f32 %v9604_v7, %v1777_v58  ;;  %v5292_v35 = vrot.slane %v9651_v60, 5  ;;  %v388_v49 = vsel %vm7447_vm5, 0, %v387_v4  ;;  %v1779_v53 = vpop.f32.mrf.mxu1  ;;  %v9698_v21 = vpop.f32.mrf.mxu0  ;;  %v4766_v56 = vshrl.u32 %v4423_v6, 16 }
 0x18b   : > { %v4769_v2 = vshll.u32 %v4423_v6, 16  ;;  %v4775_v33 = vshll.u32 %v9681_v16, 16  ;;  %v4779_v48 = vshrl.u32 %v9681_v16, 16  ;;  %389 = vst [vmem:[#allocation2 + $0xd4] sm:$0xf] %v388_v49  ;;  %v9703_v7 = vadd.f32 %v9610_v54, %v1788_v41  ;;  %v10387_v49 = vld [vmem:[#allocation14_spill] sm:$0xff] }
 0x18c   : > { %v1780_v31 = vadd.f32 %v1779_v53, %v10384_v38  ;;  %v9706_v51 = vrot.slane %v4751_v18, 5  ;;  %v4757_v60 = vrot.slane %v4755_v1, 4  ;;  %v6848_v40 = vpop.f32.mrf.mxu1  ;;  %v9709_v4 = vpop.f32.mrf.mxu0  ;;  %v10385_v20 = vcombine.low %v9498_v52, %v9502_v37  ;;  %v10386_v18 = vld [vmem:[#allocation28_spill] sm:$0xff] }
 0x18d   : > { %v4748_v58 = vor.u32 %v4747_v45, %v4744_v43  ;;  %v4761_v6 = vshll.u32 %v4422_v12, 16  ;;  %v6348_v3 = vrot.slane %v5148_v17, 9  ;;  %v5299_v54 = vrot.slane %v9681_v16, 5 }
 0x18e   : > { %7135 = vmatmul.mubr.bf16.gmra.mxu1 %v9492_v50  ;;  %7187 = vmatmul.mubr.bf16.gmra.mxu0 %v10385_v20  ;;  %v9716_v41 = vadd.f32 %v9622_v13, %v1780_v31  ;;  %v1801_v1 = vadd.f32 %v6848_v40, %v10386_v18  ;;  %v5294_v50 = vrot.slane %v5292_v35, 4  ;;  %v5295_v52 = vrot.slane %v4422_v12, 5  ;;  %v1792_v37 = vpop.f32.mrf.mxu1  ;;  %v9723_v43 = vpop.f32.mrf.mxu0 }
 0x18f   : > { %7138 = vmatprep.mubr.bf16.mxu1 %v9508_v30  ;;  %7190 = vmatprep.mubr.bf16.mxu0 %v6377_v19  ;;  %v4768_v45 = vrot.slane %v4766_v56, 4  ;;  %v4771_v17 = vrot.slane %v4769_v2, 5  ;;  %v9725_v57 = vrot.slane %v4775_v33, 5  ;;  %v4781_v16 = vrot.slane %v4779_v48, 4  ;;  %v4426_v33 = vld [vmem:[#allocation2 + $0xcc] sm:$0xf] }
 0x190   : > { %v9728_v13 = vadd.f32 %v9643_v47, %v1801_v1  ;;  %v1793_v53 = vadd.f32 %v1792_v37, %v10387_v49  ;;  %v6379_v30 = vcombine.low %v9673_v14, %v9689_v5  ;;  %v6349_v46 = vrot.slane %v5149_v27, 9  ;;  %v6849_v19 = vpop.f32.mrf.mxu1  ;;  %v6901_v12 = vpop.f32.mrf.mxu0  ;;  %v10388_v47 = vld [vmem:[#allocation30_spill] sm:$0xff] }
 0x191   : > { %v4758_v38 = vor.u32 %v4757_v60, %v9706_v51  ;;  %v9734_v31 = vrot.slane %v4761_v6, 5  ;;  %v5301_v56 = vrot.slane %v5299_v54, 4  ;;  %v5302_v2 = vrot.slane %v4425_v28, 5  ;;  %v9744_v5 = vld [vmem:[#allocation2 + $0xd0] sm:$0xf] }
 0x192   : > { %v9737_v48 = vadd.f32 %v9663_v24, %v1793_v53  ;;  %v1804_v40 = vadd.f32 %v6849_v19, %v10388_v47  ;;  %v9740_v20 = vrot.slane %v4748_v58, 4  ;;  %v5293_v14 = vsel %vm7920_vm13, %v6348_v3, %v5292_v35  ;;  %v1795_v27 = vpop.f32.mrf.mxu1  ;;  %v2264_v18 = vpop.f32.mrf.mxu0 }
 0x193   : > { %v5296_v60 = vsel %vm7920_vm13, %v5294_v50, %v5295_v52  ;;  %v4772_v6 = vor.u32 %v4771_v17, %v4768_v45  ;;  %v4782_v1 = vor.u32 %v4781_v16, %v9725_v57  ;;  %v4785_v37 = vshll.u32 %v4425_v28, 16  ;;  %v5150_v16 = vld [vmem:[#allocation2 + $0xcc] sm:$0xe] }
 0x194   : > { %v9750_v24 = vadd.f32 %v9683_v29, %v1804_v40  ;;  %v1796_v58 = vadd.f32 %v1795_v27, %v9417_v11  ;;  %v5300_v49 = vsel %vm7920_vm13, %v6349_v46, %v5299_v54  ;;  %v4790_v35 = vshrl.u32 %v4426_v33, 16  ;;  %v6852_v3 = vpop.f32.mrf.mxu1  ;;  %v6904_v53 = vpop.f32.mrf.mxu0  ;;  %v10389_v54 = vld [vmem:[#allocation15_spill] sm:$0xff] }
 0x195   : > { %v5303_v50 = vsel %vm7920_vm13, %v5301_v56, %v5302_v2  ;;  %v4793_v52 = vshll.u32 %v4426_v33, 16  ;;  %v4799_v29 = vshll.u32 %v9744_v5, 16  ;;  %v4803_v11 = vshrl.u32 %v9744_v5, 16 }
 0x196   : > { %7139 = vmatmul.mubr.bf16.gmra.mxu1 %v9534_v8  ;;  %7191 = vmatmul.mubr.bf16.gmra.mxu0 %v6378_v9  ;;  %v9764_v45 = vadd.f32 %v9698_v21, %v1796_v58  ;;  %v1817_v17 = vadd.f32 %v6852_v3, %v10389_v54  ;;  %v4759_v8 = vrot.slane %v4758_v38, 4  ;;  %v5306_v61 = vrot.slane %v9744_v5, 5  ;;  %v1808_v36 = vpop.f32.mrf.mxu1  ;;  %v2277_v9 = vpop.f32.mrf.mxu0  ;;  %v10390_v21 = vld [vmem:[#allocation16_spill] sm:$0xff] }
 0x197   : > { %7142 = vmatprep.mubr.bf16.mxu1 %v9665_v26  ;;  %7194 = vmatprep.mubr.bf16.mxu0 %v6379_v30  ;;  %v6380_v28 = vcombine.low %v5293_v14, %v5296_v60  ;;  %v4773_v46 = vrot.slane %v4772_v6, 4  ;;  %v4783_v19 = vrot.slane %v4782_v1, 4  ;;  %v4787_v56 = vrot.slane %v4785_v37, 5  ;;  %v4428_v30 = vld [vmem:[#allocation2 + $0xd4] sm:$0x1] }
 0x198   : > { %v9770_v2 = vadd.f32 %v9709_v4, %v1817_v17  ;;  %v1809_v33 = vadd.f32 %v1808_v36, %v10390_v21  ;;  %v6381_v47 = vcombine.low %v5300_v49, %v5303_v50  ;;  %v4792_v40 = vrot.slane %v4790_v35, 4  ;;  %v6853_v27 = vpop.f32.mrf.mxu1  ;;  %v6905_v26 = vpop.f32.mrf.mxu0  ;;  %v10391_v14 = vld [vmem:[#allocation18_spill] sm:$0xff] }
 0x199   : > { %v4795_v38 = vrot.slane %v4793_v52, 5  ;;  %v4801_v58 = vrot.slane %v4799_v29, 5  ;;  %v4805_v3 = vrot.slane %v4803_v11, 4  ;;  %v6350_v5 = vrot.slane %v5150_v16, 9  ;;  %v10392_v52 = vld [vmem:[#allocation7_spill] sm:$0xff] }
 0x19a   : > { %v9774_v54 = vadd.f32 %v9723_v43, %v1809_v33  ;;  %v1820_v60 = vadd.f32 %v6853_v27, %v10391_v14  ;;  %v5308_v6 = vrot.slane %v5306_v61, 4  ;;  %v5309_v1 = vrot.slane %v4428_v30, 5  ;;  %v1811_v4 = vpop.f32.mrf.mxu1  ;;  %v2280_v37 = vpop.f32.mrf.mxu0 }
 0x19b   : > { %v4754_v49 = vsel %vm7494_vm10, %v9740_v20, %v9706_v51  ;;  %v4764_v35 = vsel %vm7494_vm10, %v4759_v8, %v9734_v31  ;;  %v1812_v43 = vadd.f32 %v1811_v4, %v10392_v52  ;;  %v4778_v29 = vsel %vm7494_vm10, %v4773_v46, %v9725_v57  ;;  %v10393_v8 = vld [vmem:[#allocation19_spill] sm:$0xff] }
 0x19c   : > { %v9784_v50 = vadd.f32 %v6901_v12, %v1820_v60  ;;  %v4788_v11 = vsel %vm7494_vm10, %v4783_v19, %v4787_v56  ;;  %v4796_v51 = vor.u32 %v4795_v38, %v4792_v40  ;;  %v4806_v20 = vor.u32 %v4805_v3, %v4801_v58 }
 0x19d   : > { %v6856_v17 = vpop.f32.mrf.mxu1  ;;  %v6908_v16 = vpop.f32.mrf.mxu0  ;;  %v5307_v12 = vsel %vm7920_vm13, %v6350_v5, %v5306_v61  ;;  %v9795_v31 = vadd.f32 %v2264_v18, %v1812_v43  ;;  %v4809_v57 = vshll.u32 %v4428_v30, 16  ;;  %v5310_v46 = vsel %vm7920_vm13, %v5308_v6, %v5309_v1 }
 0x19e   : > { %7143 = vmatmul.mubr.bf16.gmra.mxu1 %v9667_v39  ;;  %7195 = vmatmul.mubr.bf16.gmra.mxu0 %v6380_v28  ;;  %v1833_v36 = vadd.f32 %v6856_v17, %v10393_v8  ;;  %v10394_v28 = vld [vmem:[#allocation9_spill] sm:$0xff]  ;;  %v6324_v40 = vcombine.low %v4754_v49, %v4764_v35  ;;  %v6325_v18 = vcombine.low %v4778_v29, %v4788_v11  ;;  %v4797_v27 = vrot.slane %v4796_v51, 4  ;;  %v10397_v35 = vld [vmem:[#allocation23_spill] sm:$0xff] }
 0x19f   : > { %7146 = vmatprep.mubr.bf16.mxu1 %v9685_v10  ;;  %7198 = vmatprep.mubr.bf16.mxu0 %v6381_v47  ;;  %v1824_v19 = vpop.f32.mrf.mxu1  ;;  %v2293_v39 = vpop.f32.mrf.mxu0  ;;  %v6382_v38 = vcombine.low %v5307_v12, %v5310_v46  ;;  %v10395_v10 = vld [vmem:[#allocation20_spill] sm:$0xff]  ;;  %v4807_v30 = vrot.slane %v4806_v20, 4  ;;  %v4811_v5 = vrot.slane %v4809_v57, 5  ;;  %v10398_v17 = vld [vmem:[#allocation25_spill] sm:$0xff] }
 0x1a0   : > { %v9801_v56 = vadd.f32 %v6904_v53, %v1833_v36  ;;  %v1825_v21 = vadd.f32 %v1824_v19, %v10394_v28  ;;  %v10396_v53 = vld [vmem:[#allocation21_spill] sm:$0xff]  ;;  %v10399_v36 = vld [vmem:[#allocation27_spill] sm:$0xff] }
 0x1a1   : > { %v6857_v33 = vpop.f32.mrf.mxu1  ;;  %v6909_v61 = vpop.f32.mrf.mxu0  ;;  %v4812_v43 = vsel %vm7494_vm10, %v4807_v30, %v4811_v5 }
 0x1a2   : > { %v9804_v3 = vadd.f32 %v2277_v9, %v1825_v21  ;;  %v1836_v47 = vadd.f32 %v6857_v33, %v10395_v10  ;;  %v4802_v9 = vsel %vm7494_vm10, %v4797_v27, %v4801_v58  ;;  %v10400_v58 = vld [vmem:[#allocation29_spill] sm:$0xff] }
 0x1a3   : > { %v1827_v62 = vpop.f32.mrf.mxu1  ;;  %v2296_v14 = vpop.f32.mrf.mxu0  ;;  %v6326_v12 = vcombine.low %v4802_v9, %v4812_v43 }
 0x1a4   : > { %v9807_v60 = vadd.f32 %v6905_v26, %v1836_v47  ;;  %v1828_v6 = vadd.f32 %v1827_v62, %v10396_v53 }
 0x1a5   : > { %v6860_v1 = vpop.f32.mrf.mxu1  ;;  %v6912_v4 = vpop.f32.mrf.mxu0 }
 0x1a6   : > { %7147 = vmatmul.mubr.bf16.gmra.mxu1 %v6324_v40  ;;  %7199 = vmatmul.mubr.bf16.gmra.mxu0 %v6382_v38  ;;  %v9810_v49 = vadd.f32 %v2280_v37, %v1828_v6  ;;  %v1849_v52 = vadd.f32 %v6860_v1, %v10397_v35 }
 0x1a7   : > { %7150 = vmatprep.mubr.bf16.mxu1 %v6325_v18  ;;  %v1840_v29 = vpop.f32.mrf.mxu1  ;;  %v2309_v26 = vpop.f32.mrf.mxu0 }
 0x1a8   : > { %v9817_v11 = vadd.f32 %v6908_v16, %v1849_v52  ;;  %v1841_v51 = vadd.f32 %v1840_v29, %v10398_v17  ;;  %v10403_v29 = vld [vmem:[#allocation12_spill] sm:$0xff] }
 0x1a9   : > { %v6861_v20 = vpop.f32.mrf.mxu1  ;;  %v6913_v8 = vpop.f32.mrf.mxu0 }
 0x1aa   : > { %v9820_v37 = vadd.f32 %v2293_v39, %v1841_v51  ;;  %v1852_v57 = vadd.f32 %v6861_v20, %v10399_v36 }
 0x1ab   : > { %v1843_v46 = vpop.f32.mrf.mxu1  ;;  %v2312_v19 = vpop.f32.mrf.mxu0 }
 0x1ac   : > { %v9823_v28 = vadd.f32 %v6909_v61, %v1852_v57  ;;  %v1844_v59 = vadd.f32 %v1843_v46, %v10400_v58  ;;  %v10401_v61 = vld [vmem:[#allocation3_spill] sm:$0xff] }
 0x1ad   : > { %v6980_v33 = vpop.f32.mrf.mxu0 }
 0x1ae   : > { %v6864_v21 = vpop.f32.mrf.mxu1  ;;  %7151 = vmatmul.mubr.bf16.gmra.mxu1 %v6326_v12  ;;  %v9826_v16 = vadd.f32 %v2296_v14, %v1844_v59  ;;  %v10402_v14 = vld [vmem:[#allocation11_spill] sm:$0xff] }
 0x1af   : > { %v1865_v40 = vadd.f32 %v6864_v21, %v9434_v23  ;;  %v3337_v27 = vpop.f32.mrf.mxu0 }
 0x1b0   : > { %v1856_v18 = vpop.f32.mrf.mxu1 }
 0x1b1   : > { %v9829_v38 = vadd.f32 %v6912_v4, %v1865_v40  ;;  %v1857_v39 = vadd.f32 %v1856_v18, %v9453_v32  ;;  %v6981_v47 = vpop.f32.mrf.mxu0 }
 0x1b2   : > { %v6865_v10 = vpop.f32.mrf.mxu1 }
 0x1b3   : > { %v9832_v30 = vadd.f32 %v2309_v26, %v1857_v39  ;;  %v1868_v5 = vadd.f32 %v6865_v10, %v10401_v61  ;;  %v3340_v53 = vpop.f32.mrf.mxu0 }
 0x1b4   : > { %v1859_v62 = vpop.f32.mrf.mxu1 }
 0x1b5   : > { %v9835_v6 = vadd.f32 %v6913_v8, %v1868_v5  ;;  %v1860_v1 = vadd.f32 %v1859_v62, %v10402_v14  ;;  %v6984_v23 = vpop.f32.mrf.mxu0 }
 0x1b6   : > { %v6932_v35 = vpop.f32.mrf.mxu1 }
 0x1b7   : > { %v9838_v52 = vadd.f32 %v2312_v19, %v1860_v1  ;;  %v2712_v4 = vadd.f32 %v6932_v35, %v9550_v42  ;;  %v3353_v32 = vpop.f32.mrf.mxu0 }
 0x1b8   : > { %v2583_v9 = vpop.f32.mrf.mxu1 }
 0x1b9   : > { %v9841_v43 = vadd.f32 %v6980_v33, %v2712_v4  ;;  %v2710_v26 = vadd.f32 %v2583_v9, %v10403_v29  ;;  %v6985_v51 = vpop.f32.mrf.mxu0 }
 0x1ba   : > { %v6933_v17 = vpop.f32.mrf.mxu1 }
 0x1bb   : > { %v9844_v20 = vadd.f32 %v3337_v27, %v2710_v26  ;;  %v2713_v12 = vadd.f32 %v6933_v17, %v9576_v25  ;;  %v3356_v36 = vpop.f32.mrf.mxu0 }
 0x1bc   : > { %v2586_v8 = vpop.f32.mrf.mxu1 }
 0x1bd   : > { %v9847_v57 = vadd.f32 %v6981_v47, %v2713_v12  ;;  %v2711_v46 = vadd.f32 %v2586_v8, %v9595_v55  ;;  %v6988_v42 = vpop.f32.mrf.mxu0 }
 0x1be   : > { %v6936_v19 = vpop.f32.mrf.mxu1 }
 0x1bf   : > { %v9850_v58 = vadd.f32 %v3340_v53, %v2711_v46  ;;  %v2716_v59 = vadd.f32 %v6936_v19, %v9607_v44  ;;  %v3369_v33 = vpop.f32.mrf.mxu0 }
 0x1c0   : > { %v2599_v21 = vpop.f32.mrf.mxu1 }
 0x1c1   : > { %v9853_v40 = vadd.f32 %v6984_v23, %v2716_v59  ;;  %v2714_v18 = vadd.f32 %v2599_v21, %v9619_v0  ;;  %v6989_v25 = vpop.f32.mrf.mxu0 }
 0x1c2   : > { %v6937_v27 = vpop.f32.mrf.mxu1 }
 0x1c3   : > { %v9856_v39 = vadd.f32 %v3353_v32, %v2714_v18  ;;  %v2717_v10 = vadd.f32 %v6937_v27, %v9636_v34  ;;  %v3372_v55 = vpop.f32.mrf.mxu0 }
 0x1c4   : > { %v2602_v47 = vpop.f32.mrf.mxu1 }
 0x1c5   : > { %v9859_v61 = vadd.f32 %v6985_v51, %v2717_v10  ;;  %v2715_v5 = vadd.f32 %v2602_v47, %v9654_v63  ;;  %v6992_v44 = vpop.f32.mrf.mxu0 }
 0x1c6   : > { %v6940_v62 = vpop.f32.mrf.mxu1 }
 0x1c7   : > { %v9862_v53 = vadd.f32 %v3356_v36, %v2715_v5  ;;  %v2720_v14 = vadd.f32 %v6940_v62, %v9676_v22  ;;  %v3385_v0 = vpop.f32.mrf.mxu0 }
 0x1c8   : > { %v2615_v1 = vpop.f32.mrf.mxu1 }
 0x1c9   : > { %v9865_v35 = vadd.f32 %v6988_v42, %v2720_v14  ;;  %v2718_v23 = vadd.f32 %v2615_v1, %v9692_v15  ;;  %v6993_v34 = vpop.f32.mrf.mxu0 }
 0x1ca   : > { %v6941_v4 = vpop.f32.mrf.mxu1 }
 0x1cb   : > { %v9868_v9 = vadd.f32 %v3369_v33, %v2718_v23  ;;  %v2721_v32 = vadd.f32 %v6941_v4, %v9703_v7  ;;  %v3388_v63 = vpop.f32.mrf.mxu0 }
 0x1cc   : > { %v2618_v29 = vpop.f32.mrf.mxu1 }
 0x1cd   : > { %v9871_v26 = vadd.f32 %v6989_v25, %v2721_v32  ;;  %v2719_v17 = vadd.f32 %v2618_v29, %v9716_v41  ;;  %v6996_v22 = vpop.f32.mrf.mxu0 }
 0x1ce   : > { %v6944_v51 = vpop.f32.mrf.mxu1 }
 0x1cf   : > { %v9874_v12 = vadd.f32 %v3372_v55, %v2719_v17  ;;  %v2724_v8 = vadd.f32 %v6944_v51, %v9728_v13  ;;  %v3401_v15 = vpop.f32.mrf.mxu0 }
 0x1d0   : > { %v2631_v36 = vpop.f32.mrf.mxu1 }
 0x1d1   : > { %v9877_v46 = vadd.f32 %v6992_v44, %v2724_v8  ;;  %v2722_v19 = vadd.f32 %v2631_v36, %v9737_v48  ;;  %v6997_v7 = vpop.f32.mrf.mxu0 }
 0x1d2   : > { %v6945_v42 = vpop.f32.mrf.mxu1 }
 0x1d3   : > { %v9880_v59 = vadd.f32 %v3385_v0, %v2722_v19  ;;  %v2725_v21 = vadd.f32 %v6945_v42, %v9750_v24  ;;  %v3404_v41 = vpop.f32.mrf.mxu0 }
 0x1d4   : > { %v2634_v33 = vpop.f32.mrf.mxu1 }
 0x1d5   : > { %v9883_v18 = vadd.f32 %v6993_v34, %v2725_v21  ;;  %v2723_v27 = vadd.f32 %v2634_v33, %v9764_v45  ;;  %v7000_v13 = vpop.f32.mrf.mxu0 }
 0x1d6   : > { %v6948_v25 = vpop.f32.mrf.mxu1 }
 0x1d7   : > { %v9886_v10 = vadd.f32 %v3388_v63, %v2723_v27  ;;  %v2728_v47 = vadd.f32 %v6948_v25, %v9770_v2  ;;  %v3417_v48 = vpop.f32.mrf.mxu0 }
 0x1d8   : > { %v2647_v55 = vpop.f32.mrf.mxu1 }
 0x1d9   : > { %v9889_v5 = vadd.f32 %v6996_v22, %v2728_v47  ;;  %v2726_v62 = vadd.f32 %v2647_v55, %v9774_v54  ;;  %v7001_v24 = vpop.f32.mrf.mxu0 }
 0x1da   : > { %v6949_v44 = vpop.f32.mrf.mxu1 }
 0x1db   : > { %v9892_v14 = vadd.f32 %v3401_v15, %v2726_v62  ;;  %v2729_v1 = vadd.f32 %v6949_v44, %v9784_v50  ;;  %v3420_v45 = vpop.f32.mrf.mxu0 }
 0x1dc   : > { %v2650_v0 = vpop.f32.mrf.mxu1 }
 0x1dd   : > { %v9895_v23 = vadd.f32 %v6997_v7, %v2729_v1  ;;  %v2727_v4 = vadd.f32 %v2650_v0, %v9795_v31  ;;  %v7004_v2 = vpop.f32.mrf.mxu0 }
 0x1de   : > { %v6952_v34 = vpop.f32.mrf.mxu1 }
 0x1df   : > { %v9898_v32 = vadd.f32 %v3404_v41, %v2727_v4  ;;  %v2732_v29 = vadd.f32 %v6952_v34, %v9801_v56  ;;  %v3433_v54 = vpop.f32.mrf.mxu0 }
 0x1e0   : > { %v2663_v63 = vpop.f32.mrf.mxu1 }
 0x1e1   : > { %v9901_v17 = vadd.f32 %v7000_v13, %v2732_v29  ;;  %v2730_v51 = vadd.f32 %v2663_v63, %v9804_v3  ;;  %v7005_v50 = vpop.f32.mrf.mxu0 }
 0x1e2   : > { %v6953_v22 = vpop.f32.mrf.mxu1 }
 0x1e3   : > { %v9904_v8 = vadd.f32 %v3417_v48, %v2730_v51  ;;  %v2733_v36 = vadd.f32 %v6953_v22, %v9807_v60  ;;  %v3436_v31 = vpop.f32.mrf.mxu0 }
 0x1e4   : > { %v2666_v15 = vpop.f32.mrf.mxu1 }
 0x1e5   : > { %10404 = vst [vmem:[#allocation5_spill] sm:$0xff] %v9904_v8  ;;  %v9907_v19 = vadd.f32 %v7001_v24, %v2733_v36  ;;  %v2731_v42 = vadd.f32 %v2666_v15, %v9810_v49  ;;  %v7008_v56 = vpop.f32.mrf.mxu0 }
 0x1e6   : > { %v6956_v7 = vpop.f32.mrf.mxu1 }
 0x1e7   : > { %10405 = vst [vmem:[#allocation13_spill] sm:$0xff] %v9907_v19  ;;  %v9910_v21 = vadd.f32 %v3420_v45, %v2731_v42  ;;  %v2736_v33 = vadd.f32 %v6956_v7, %v9817_v11  ;;  %v3449_v3 = vpop.f32.mrf.mxu0 }
 0x1e8   : > { %v2679_v41 = vpop.f32.mrf.mxu1 }
 0x1e9   : > { %10406 = vst [vmem:[#allocation17_spill] sm:$0xff] %v9910_v21  ;;  %v9913_v27 = vadd.f32 %v7004_v2, %v2736_v33  ;;  %v2734_v25 = vadd.f32 %v2679_v41, %v9820_v37  ;;  %v7009_v60 = vpop.f32.mrf.mxu0 }
 0x1ea   : > { %v6957_v13 = vpop.f32.mrf.mxu1 }
 0x1eb   : > { %v9916_v47 = vadd.f32 %v3433_v54, %v2734_v25  ;;  %v2737_v55 = vadd.f32 %v6957_v13, %v9823_v28  ;;  %v3452_v49 = vpop.f32.mrf.mxu0 }
 0x1ec   : > { %v2682_v48 = vpop.f32.mrf.mxu1 }
 0x1ed   : > { %10407 = vst [vmem:[#allocation6_spill] sm:$0xff] %v9916_v47  ;;  %v9919_v62 = vadd.f32 %v7005_v50, %v2737_v55  ;;  %v2735_v44 = vadd.f32 %v2682_v48, %v9826_v16  ;;  %v7076_v11 = vpop.f32.mrf.mxu0 }
 0x1ee   : > { %v6960_v24 = vpop.f32.mrf.mxu1 }
 0x1ef   : > { %10408 = vst [vmem:[#allocation8_spill] sm:$0xff] %v9919_v62  ;;  %v9922_v1 = vadd.f32 %v3436_v31, %v2735_v44  ;;  %v2740_v0 = vadd.f32 %v6960_v24, %v9829_v38  ;;  %v4222_v37 = vpop.f32.mrf.mxu0 }
 0x1f0   : > { %v2695_v45 = vpop.f32.mrf.mxu1 }
 0x1f1   : > { %10409 = vst [vmem:[#allocation10_spill] sm:$0xff] %v9922_v1  ;;  %v9925_v4 = vadd.f32 %v7008_v56, %v2740_v0  ;;  %v2738_v34 = vadd.f32 %v2695_v45, %v9832_v30  ;;  %v9928_v28 = vpop.f32.mrf.mxu0 }
 0x1f2   : > { %v6961_v2 = vpop.f32.mrf.mxu1 }
 0x1f3   : > { %v9930_v29 = vadd.f32 %v3449_v3, %v2738_v34  ;;  %v2741_v63 = vadd.f32 %v6961_v2, %v9835_v6  ;;  %v9933_v54 = vpop.f32.mrf.mxu0 }
 0x1f4   : > { %v2698_v16 = vpop.f32.mrf.mxu1 }
 0x1f5   : > { %10410 = vst [vmem:[#allocation22_spill] sm:$0xff] %v9930_v29  ;;  %v9935_v51 = vadd.f32 %v7009_v60, %v2741_v63  ;;  %v2739_v38 = vadd.f32 %v2698_v16, %v9838_v52  ;;  %v7080_v50 = vpop.f32.mrf.mxu0 }
 0x1f6   : > { %v7028_v22 = vpop.f32.mrf.mxu1 }
 0x1f7   : > { %10411 = vst [vmem:[#allocation24_spill] sm:$0xff] %v9935_v51  ;;  %v9938_v36 = vadd.f32 %v3452_v49, %v2739_v38  ;;  %v3964_v30 = vadd.f32 %v7028_v22, %v9841_v43  ;;  %v9941_v31 = vpop.f32.mrf.mxu0 }
 0x1f8   : > { %v3835_v15 = vpop.f32.mrf.mxu1 }
 0x1f9   : > { %10412 = vst [vmem:[#allocation4_spill] sm:$0xff] %v9938_v36  ;;  %v9943_v42 = vadd.f32 %v7076_v11, %v3964_v30  ;;  %v3962_v6 = vadd.f32 %v3835_v15, %v9844_v20  ;;  %v9948_v56 = vpop.f32.mrf.mxu0 }
 0x1fa   : > { %v9946_v7 = vpop.f32.mrf.mxu1 }
 0x1fb   : > { %v9950_v33 = vadd.f32 %v4222_v37, %v3962_v6  ;;  %v9954_v41 = vpop.f32.mrf.mxu0 }
 0x1fc   : > { %v9952_v52 = vpop.f32.mrf.mxu1 }
 0x1fd   : > { %v7084_v25 = vpop.f32.mrf.mxu0 }
 0x1fe   : > { %v7032_v3 = vpop.f32.mrf.mxu1 }
 0x1ff   : > { %v3968_v43 = vadd.f32 %v7032_v3, %v9853_v40  ;;  %v9959_v60 = vpop.f32.mrf.mxu0 }
 0x200   : > { %v9957_v13 = vpop.f32.mrf.mxu1 }
 0x201   : > { %v9961_v55 = vadd.f32 %v7080_v50, %v3968_v43  ;;  %v9965_v48 = vpop.f32.mrf.mxu0 }
 0x202   : > { %v9963_v20 = vpop.f32.mrf.mxu1 }
 0x203   : > { %v9969_v44 = vpop.f32.mrf.mxu0 }
 0x204   : > { %v9967_v49 = vpop.f32.mrf.mxu1 }
 0x205   : > { %v7088_v11 = vpop.f32.mrf.mxu0 }
 0x206   : > { %v7036_v24 = vpop.f32.mrf.mxu1 }
 0x207   : > { %v3972_v0 = vadd.f32 %v7036_v24, %v9865_v35  ;;  %v9974_v40 = vpop.f32.mrf.mxu0 }
 0x208   : > { %v9972_v45 = vpop.f32.mrf.mxu1 }
 0x209   : > { %v9976_v37 = vadd.f32 %v7084_v25, %v3972_v0  ;;  %v9980_v2 = vpop.f32.mrf.mxu0 }
 0x20a   : > { %v9978_v34 = vpop.f32.mrf.mxu1 }
 0x20b   : > { %v9984_v16 = vpop.f32.mrf.mxu0 }
 0x20c   : > { %v9982_v63 = vpop.f32.mrf.mxu1 }
 0x20d   : > { %v7092_v22 = vpop.f32.mrf.mxu0 }
 0x20e   : > { %v7040_v38 = vpop.f32.mrf.mxu1 }
 0x20f   : > { %v3976_v50 = vadd.f32 %v7040_v38, %v9877_v46  ;;  %v9989_v35 = vpop.f32.mrf.mxu0 }
 0x210   : > { %v9987_v30 = vpop.f32.mrf.mxu1 }
 0x211   : > { %v9991_v15 = vadd.f32 %v7088_v11, %v3976_v50  ;;  %v9995_v3 = vpop.f32.mrf.mxu0 }
 0x212   : > { %v9993_v6 = vpop.f32.mrf.mxu1  ;;  %10413 = vst [vmem:[#allocation26_spill] sm:$0xff] %v9995_v3 }
 0x213   : > { %v9999_v43 = vpop.f32.mrf.mxu0 }
 0x214   : > { %v9997_v25 = vpop.f32.mrf.mxu1  ;;  %10414 = vst [vmem:[#allocation28_spill] sm:$0xff] %v9999_v43 }
 0x215   : > { %v7096_v0 = vpop.f32.mrf.mxu0 }
 0x216   : > { %v7044_v24 = vpop.f32.mrf.mxu1 }
 0x217   : > { %v3980_v36 = vadd.f32 %v7044_v24, %v9889_v5  ;;  %v10004_v46 = vpop.f32.mrf.mxu0 }
 0x218   : > { %v10002_v51 = vpop.f32.mrf.mxu1  ;;  %10415 = vst [vmem:[#allocation14_spill] sm:$0xff] %v10004_v46 }
 0x219   : > { %v10006_v38 = vadd.f32 %v7092_v22, %v3980_v36  ;;  %v10010_v50 = vpop.f32.mrf.mxu0 }
 0x21a   : > { %v10008_v11 = vpop.f32.mrf.mxu1  ;;  %10417 = vst [vmem:[#allocation15_spill] sm:$0xff] %v10010_v50 }
 0x21b   : > { %10416 = vst [vmem:[#allocation30_spill] sm:$0xff] %v10006_v38  ;;  %v10014_v1 = vpop.f32.mrf.mxu0 }
 0x21c   : > { %v10012_v29 = vpop.f32.mrf.mxu1  ;;  %10418 = vst [vmem:[#allocation16_spill] sm:$0xff] %v10014_v1 }
 0x21d   : > { %v7100_v47 = vpop.f32.mrf.mxu0 }
 0x21e   : > { %v7048_v62 = vpop.f32.mrf.mxu1 }
 0x21f   : > { %v3984_v21 = vadd.f32 %v7048_v62, %v9901_v17  ;;  %v10019_v5 = vpop.f32.mrf.mxu0 }
 0x220   : > { %v10017_v19 = vpop.f32.mrf.mxu1  ;;  %10420 = vst [vmem:[#allocation7_spill] sm:$0xff] %v10019_v5 }
 0x221   : > { %10419 = vst [vmem:[#allocation18_spill] sm:$0xff] %v10017_v19  ;;  %v10021_v24 = vadd.f32 %v7096_v0, %v3984_v21  ;;  %v10025_v22 = vpop.f32.mrf.mxu0 }
 0x222   : > { %v10023_v36 = vpop.f32.mrf.mxu1  ;;  %10423 = vst [vmem:[#allocation20_spill] sm:$0xff] %v10025_v22 }
 0x223   : > { %10421 = vst [vmem:[#allocation19_spill] sm:$0xff] %v10021_v24  ;;  %10422 = vst [vmem:[#allocation9_spill] sm:$0xff] %v10023_v36  ;;  %v10029_v50 = vpop.f32.mrf.mxu0 }
 0x224   : > { %v10027_v46 = vpop.f32.mrf.mxu1  ;;  %10425 = vst [vmem:[#allocation23_spill] sm:$0xff] %v10029_v50 }
 0x225   : > { %10424 = vst [vmem:[#allocation21_spill] sm:$0xff] %v10027_v46  ;;  %v7104_v1 = vpop.f32.mrf.mxu0 }
 0x226   : > { %v7052_v8 = vpop.f32.mrf.mxu1 }
 0x227   : > { %v3988_v43 = vadd.f32 %v7052_v8, %v9913_v27  ;;  %v10034_v17 = vpop.f32.mrf.mxu0 }
 0x228   : > { %v10032_v38 = vpop.f32.mrf.mxu1  ;;  %10427 = vst [vmem:[#allocation27_spill] sm:$0xff] %v10034_v17 }
 0x229   : > { %10426 = vst [vmem:[#allocation25_spill] sm:$0xff] %v10032_v38  ;;  %v10036_v62 = vadd.f32 %v7100_v47, %v3988_v43  ;;  %v10040_v0 = vpop.f32.mrf.mxu0 }
 0x22a   : > { %v10038_v21 = vpop.f32.mrf.mxu1  ;;  %10430 = vst [vmem:[#allocation11_spill] sm:$0xff] %v10040_v0  ;;  %v3965_v0 = vadd.f32 %v9946_v7, %v9847_v57  ;;  %v3966_v57 = vadd.f32 %v9957_v13, %v9856_v39 }
 0x22b   : > { %10428 = vst [vmem:[#allocation29_spill] sm:$0xff] %v10036_v62  ;;  %10429 = vst [vmem:[#allocation3_spill] sm:$0xff] %v10038_v21  ;;  %v10044_v22 = vpop.f32.mrf.mxu0  ;;  %v3963_v21 = vadd.f32 %v9952_v52, %v9850_v58  ;;  %v3969_v58 = vadd.f32 %v9963_v20, %v9859_v61 }
 0x22c   : > { %v10042_v5 = vpop.f32.mrf.mxu1  ;;  %10432 = vst [vmem:[#allocation31_spill] sm:$0xff] %v10044_v22  ;;  %v4353_v13 = vadd.f32 %v9941_v31, %v3966_v57 }
 0x22d   : > { %10431 = vst [vmem:[#allocation12_spill] sm:$0xff] %v10042_v5  ;;  %v7172_v50 = vpop.f32.mrf.mxu0  ;;  %v4356_v20 = vadd.f32 %v9948_v56, %v3969_v58 }
 0x22e   : > { %v7056_v24 = vpop.f32.mrf.mxu1 }
 0x22f   : > { %v3992_v46 = vadd.f32 %v7056_v24, %v9925_v4  ;;  %v5474_v8 = vpop.f32.mrf.mxu0 }
 0x230   : > { %v10047_v36 = vpop.f32.mrf.mxu1 }
 0x231   : > { %10433 = vst [vmem:[#allocation32_spill] sm:$0xff] %v10047_v36  ;;  %v10049_v27 = vadd.f32 %v7104_v1, %v3992_v46  ;;  %v7173_v47 = vpop.f32.mrf.mxu0  ;;  %v4352_v36 = vadd.f32 %v9928_v28, %v3965_v0 }
 0x232   : > { %v10051_v17 = vpop.f32.mrf.mxu1 }
 0x233   : > { %10434 = vst [vmem:[#allocation33_spill] sm:$0xff] %v10049_v27  ;;  %10435 = vst [vmem:[#allocation34_spill] sm:$0xff] %v10051_v17  ;;  %v5477_v62 = vpop.f32.mrf.mxu0  ;;  %v4350_v17 = vadd.f32 %v9933_v54, %v3963_v21 }
 0x234   : > { %v10053_v43 = vpop.f32.mrf.mxu1 }
 0x235   : > { %10436 = vst [vmem:[#allocation35_spill] sm:$0xff] %v10053_v43  ;;  %v7176_v22 = vpop.f32.mrf.mxu0 }
 0x236   : > { %v7124_v5 = vpop.f32.mrf.mxu1 }
 0x237   : > { %v5490_v24 = vpop.f32.mrf.mxu0  ;;  %v5105_v1 = vadd.f32 %v7124_v5, %v9943_v42  ;;  %v3967_v42 = vadd.f32 %v9967_v49, %v9862_v53 }
 0x238   : > { %v4976_v4 = vpop.f32.mrf.mxu1 }
 0x239   : > { %v5103_v46 = vadd.f32 %v4976_v4, %v9950_v33  ;;  %v7177_v43 = vpop.f32.mrf.mxu0  ;;  %v5603_v19 = vadd.f32 %v7172_v50, %v5105_v1  ;;  %v4354_v21 = vadd.f32 %v9954_v41, %v3967_v42  ;;  %v3973_v4 = vadd.f32 %v9978_v34, %v9871_v26 }
 0x23a   : > { %v7125_v27 = vpop.f32.mrf.mxu1 }
 0x23b   : > { %v5106_v38 = vadd.f32 %v7125_v27, %v4352_v36  ;;  %v5493_v52 = vpop.f32.mrf.mxu0  ;;  %v5601_v28 = vadd.f32 %v5474_v8, %v5103_v46  ;;  %v3970_v8 = vadd.f32 %v9972_v45, %v9868_v9  ;;  %v5833_v27 = vmul.f32 %v5603_v19, %v5603_v19 }
 0x23c   : > { %v4979_v7 = vpop.f32.mrf.mxu1 }
 0x23d   : > { %v5604_v0 = vadd.f32 %v7173_v47, %v5106_v38  ;;  %v5104_v3 = vadd.f32 %v4979_v7, %v4350_v17  ;;  %v5831_v50 = vmul.f32 %v5601_v28, %v5601_v28  ;;  %v4357_v42 = vadd.f32 %v9959_v60, %v3970_v8 }
 0x23e   : > { %v7128_v39 = vpop.f32.mrf.mxu1  ;;  %v10076_v54 = vpop.f32.mrf.mxu0 }
 0x23f   : > { %v6467_v61 = vpack.c.bf16 %v5604_v0, %v5603_v19  ;;  %v5602_v33 = vadd.f32 %v5477_v62, %v5104_v3  ;;  %v5109_v38 = vadd.f32 %v7128_v39, %v9961_v55  ;;  %v5834_v1 = vmul.f32 %v5604_v0, %v5604_v0 }
 0x240   : > { %v4992_v53 = vpop.f32.mrf.mxu1  ;;  %v5506_v49 = vpop.f32.mrf.mxu0 }
 0x241   : > { %6539 = vst [vmem:[%s10074_s30 + $0x8] sm:$0xff] %v6467_v61   ;;  %v6462_v5 = vpack.c.bf16 %v5602_v33, %v5601_v28  ;;  %v5793_v36 = vadd.f32 %v5602_v33, %v5601_v28  ;;  %v5832_v17 = vmul.f32 %v5602_v33, %v5602_v33  ;;  %v5107_v3 = vadd.f32 %v4992_v53, %v4353_v13 }
 0x242   : > { %v7129_v62 = vpop.f32.mrf.mxu1  ;;  %v7181_v31 = vpop.f32.mrf.mxu0  ;;  %v5607_v46 = vadd.f32 %v7176_v22, %v5109_v38 }
 0x243   : > { %6463 = vst [vmem:[%s10074_s30] sm:$0xff] %v6462_v5   ;;  %v5794_v56 = vadd.f32 %v5793_v36, %v5603_v19  ;;  %v5863_v47 = vadd.f32 %v5832_v17, %v5831_v50  ;;  %v5110_v55 = vadd.f32 %v7129_v62, %v4356_v20  ;;  %v5605_v57 = vadd.f32 %v5490_v24, %v5107_v3 }
 0x244   : > { %v4995_v58 = vpop.f32.mrf.mxu1  ;;  %v5509_v7 = vpop.f32.mrf.mxu0  ;;  %v3971_v19 = vadd.f32 %v9982_v63, %v9874_v12  ;;  %v3977_v17 = vadd.f32 %v9993_v6, %v9883_v18  ;;  %v3975_v6 = vadd.f32 %v9997_v25, %v9886_v10 }
 0x245   : > { %v5864_v41 = vadd.f32 %v5863_v47, %v5833_v27  ;;  %v5795_v28 = vadd.f32 %v5794_v56, %v5604_v0  ;;  %v5608_v9 = vadd.f32 %v7177_v43, %v5110_v55  ;;  %v5108_v45 = vadd.f32 %v4995_v58, %v4354_v21 }
 0x246   : > { %v7132_v39 = vpop.f32.mrf.mxu1  ;;  %v10091_v61 = vpop.f32.mrf.mxu0  ;;  %v5835_v26 = vmul.f32 %v5605_v57, %v5605_v57  ;;  %v4360_v0 = vadd.f32 %v9965_v48, %v3973_v4  ;;  %v4358_v36 = vadd.f32 %v9969_v44, %v3971_v19  ;;  %v5837_v48 = vmul.f32 %v5607_v46, %v5607_v46 }
 0x247   : > { %v5796_v33 = vadd.f32 %v5795_v28, %v5605_v57  ;;  %v5865_v34 = vadd.f32 %v5864_v41, %v5834_v1  ;;  %v6477_v22 = vpack.c.bf16 %v5608_v9, %v5607_v46  ;;  %v5606_v24 = vadd.f32 %v5493_v52, %v5108_v45 }
 0x248   : > { %v5008_v13 = vpop.f32.mrf.mxu1  ;;  %v5522_v20 = vpop.f32.mrf.mxu0  ;;  %v5113_v60 = vadd.f32 %v7132_v39, %v9976_v37  ;;  %v3974_v52 = vadd.f32 %v9987_v30, %v9880_v59  ;;  %v5838_v44 = vmul.f32 %v5608_v9, %v5608_v9  ;;  %v4362_v25 = vadd.f32 %v9984_v16, %v3975_v6 }
 0x249   : > { %v5866_v43 = vadd.f32 %v5865_v34, %v5835_v26  ;;  %6541 = vst [vmem:[%s10074_s30 + $0x18] sm:$0xff] %v6477_v22   ;;  %v5111_v38 = vadd.f32 %v5008_v13, %v4357_v42  ;;  %v6472_v53 = vpack.c.bf16 %v5606_v24, %v5605_v57  ;;  %v5797_v12 = vadd.f32 %v5796_v33, %v5606_v24 }
 0x24a   : > { %v5836_v63 = vmul.f32 %v5606_v24, %v5606_v24  ;;  %v7133_v50 = vpop.f32.mrf.mxu1  ;;  %v7185_v5 = vpop.f32.mrf.mxu0  ;;  %v5611_v56 = vadd.f32 %v10076_v54, %v5113_v60  ;;  %v4361_v18 = vadd.f32 %v9974_v40, %v3974_v52  ;;  %v4364_v57 = vadd.f32 %v9980_v2, %v3977_v17 }
 0x24b   : > { %v5114_v21 = vadd.f32 %v7133_v50, %v4360_v0  ;;  %6540 = vst [vmem:[%s10074_s30 + $0x10] sm:$0xff] %v6472_v53   ;;  %v5798_v8 = vadd.f32 %v5797_v12, %v5607_v46  ;;  %v5609_v37 = vadd.f32 %v5506_v49, %v5111_v38  ;;  %v3978_v2 = vadd.f32 %v10002_v51, %v9892_v14  ;;  %v10437_v50 = vld [vmem:[#allocation26_spill] sm:$0xff] }
 0x24c   : > { %v5867_v3 = vadd.f32 %v5866_v43, %v5836_v63  ;;  %v5011_v62 = vpop.f32.mrf.mxu1  ;;  %v5525_v27 = vpop.f32.mrf.mxu0  ;;  %v5841_v34 = vmul.f32 %v5611_v56, %v5611_v56 }
 0x24d   : > { %v5612_v47 = vadd.f32 %v7181_v31, %v5114_v21  ;;  %v5112_v55 = vadd.f32 %v5011_v62, %v4358_v36  ;;  %v5799_v1 = vadd.f32 %v5798_v8, %v5608_v9  ;;  %v5839_v54 = vmul.f32 %v5609_v37, %v5609_v37 }
 0x24e   : > { %v5868_v4 = vadd.f32 %v5867_v3, %v5837_v48  ;;  %v7136_v59 = vpop.f32.mrf.mxu1  ;;  %v10103_v30 = vpop.f32.mrf.mxu0  ;;  %v10438_v3 = vld [vmem:[#allocation30_spill] sm:$0xff] }
 0x24f   : > { %v6487_v46 = vpack.c.bf16 %v5612_v47, %v5611_v56  ;;  %v5610_v49 = vadd.f32 %v5509_v7, %v5112_v55  ;;  %v5800_v58 = vadd.f32 %v5799_v1, %v5609_v37  ;;  %v5117_v42 = vadd.f32 %v7136_v59, %v9991_v15  ;;  %v10440_v55 = vld [vmem:[#allocation5_spill] sm:$0xff] }
 0x250   : > { %v5869_v31 = vadd.f32 %v5868_v4, %v5838_v44  ;;  %v5024_v41 = vpop.f32.mrf.mxu1  ;;  %v5538_v28 = vpop.f32.mrf.mxu0  ;;  %v3981_v7 = vadd.f32 %v10008_v11, %v9895_v23  ;;  %v5842_v16 = vmul.f32 %v5612_v47, %v5612_v47  ;;  %v4365_v23 = vadd.f32 %v9989_v35, %v3978_v2  ;;  %v10441_v44 = vld [vmem:[#allocation18_spill] sm:$0xff]  ;;  %v10442_v1 = vld [vmem:[#allocation13_spill] sm:$0xff] }
 0x251   : > { %6543 = vst [vmem:[%s10074_s30 + $0x28] sm:$0xff] %v6487_v46   ;;  %v6482_v9 = vpack.c.bf16 %v5610_v49, %v5609_v37  ;;  %v5840_v45 = vmul.f32 %v5610_v49, %v5610_v49  ;;  %v5115_v19 = vadd.f32 %v5024_v41, %v4361_v18  ;;  %v5801_v39 = vadd.f32 %v5800_v58, %v5610_v49  ;;  %v10443_v59 = vld [vmem:[#allocation9_spill] sm:$0xff] }
 0x252   : > { %v5870_v40 = vadd.f32 %v5869_v31, %v5839_v54  ;;  %v7137_v33 = vpop.f32.mrf.mxu1  ;;  %v7189_v10 = vpop.f32.mrf.mxu0  ;;  %v5615_v43 = vadd.f32 %v10091_v61, %v5117_v42  ;;  %v3979_v11 = vadd.f32 %v10012_v29, %v9898_v32  ;;  %v4368_v36 = vadd.f32 %v10437_v50, %v3981_v7  ;;  %v10439_v29 = vld [vmem:[#allocation28_spill] sm:$0xff]  ;;  %v10445_v7 = vld [vmem:[#allocation17_spill] sm:$0xff] }
 0x253   : > { %6542 = vst [vmem:[%s10074_s30 + $0x20] sm:$0xff] %v6482_v9   ;;  %v5118_v26 = vadd.f32 %v7137_v33, %v4364_v57  ;;  %v5802_v22 = vadd.f32 %v5801_v39, %v5611_v56  ;;  %v5613_v13 = vadd.f32 %v5522_v20, %v5115_v19  ;;  %v3982_v4 = vadd.f32 %v10441_v44, %v10440_v55  ;;  %v10449_v50 = vld [vmem:[#allocation16_spill] sm:$0xff] }
 0x254   : > { %v5871_v24 = vadd.f32 %v5870_v40, %v5840_v45  ;;  %v5027_v15 = vpop.f32.mrf.mxu1  ;;  %v5541_v0 = vpop.f32.mrf.mxu0  ;;  %v3985_v18 = vadd.f32 %v10443_v59, %v10442_v1  ;;  %v5845_v46 = vmul.f32 %v5615_v43, %v5615_v43 }
 0x255   : > { %v5616_v60 = vadd.f32 %v7185_v5, %v5118_v26  ;;  %v5116_v38 = vadd.f32 %v5027_v15, %v4362_v25  ;;  %v5803_v12 = vadd.f32 %v5802_v22, %v5612_v47  ;;  %v5843_v61 = vmul.f32 %v5613_v13, %v5613_v13  ;;  %v10444_v25 = vld [vmem:[#allocation14_spill] sm:$0xff]  ;;  %v10446_v26 = vld [vmem:[#allocation21_spill] sm:$0xff] }
 0x256   : > { %v5872_v53 = vadd.f32 %v5871_v24, %v5841_v34  ;;  %v7140_v14 = vpop.f32.mrf.mxu1  ;;  %v10118_v51 = vpop.f32.mrf.mxu0  ;;  %v4369_v2 = vadd.f32 %v10444_v25, %v3982_v4  ;;  %v3983_v34 = vadd.f32 %v10446_v26, %v10445_v7  ;;  %v10447_v24 = vld [vmem:[#allocation15_spill] sm:$0xff] }
 0x257   : > { %v6497_v63 = vpack.c.bf16 %v5616_v60, %v5615_v43  ;;  %v5614_v20 = vadd.f32 %v5525_v27, %v5116_v38  ;;  %v5804_v52 = vadd.f32 %v5803_v12, %v5613_v13  ;;  %v5121_v37 = vadd.f32 %v7140_v14, %v10438_v3 }
 0x258   : > { %v5873_v5 = vadd.f32 %v5872_v53, %v5842_v16  ;;  %v5040_v17 = vpop.f32.mrf.mxu1  ;;  %v5554_v21 = vpop.f32.mrf.mxu0  ;;  %v4366_v27 = vadd.f32 %v10439_v29, %v3979_v11  ;;  %v5846_v42 = vmul.f32 %v5616_v60, %v5616_v60  ;;  %v10448_v53 = vld [vmem:[#allocation19_spill] sm:$0xff] }
 0x259   : > { %6545 = vst [vmem:[%s10074_s30 + $0x38] sm:$0xff] %v6497_v63   ;;  %v6492_v48 = vpack.c.bf16 %v5614_v20, %v5613_v13  ;;  %v5844_v8 = vmul.f32 %v5614_v20, %v5614_v20  ;;  %v5119_v62 = vadd.f32 %v5040_v17, %v4365_v23  ;;  %v5805_v56 = vadd.f32 %v5804_v52, %v5614_v20  ;;  %v10451_v52 = vld [vmem:[#allocation25_spill] sm:$0xff]  ;;  %v10453_v17 = vld [vmem:[#allocation3_spill] sm:$0xff] }
 0x25a   : > { %v5874_v35 = vadd.f32 %v5873_v5, %v5843_v61  ;;  %v7141_v47 = vpop.f32.mrf.mxu1  ;;  %v7193_v32 = vpop.f32.mrf.mxu0  ;;  %v5619_v41 = vadd.f32 %v10103_v30, %v5121_v37  ;;  %v4372_v13 = vadd.f32 %v10447_v24, %v3985_v18  ;;  %v10452_v5 = vld [vmem:[#allocation8_spill] sm:$0xff]  ;;  %v10454_v18 = vld [vmem:[#allocation7_spill] sm:$0xff] }
 0x25b   : > { %6544 = vst [vmem:[%s10074_s30 + $0x30] sm:$0xff] %v6492_v48   ;;  %v5122_v6 = vadd.f32 %v7141_v47, %v4368_v36  ;;  %v5806_v49 = vadd.f32 %v5805_v56, %v5615_v43  ;;  %v5617_v58 = vadd.f32 %v5538_v28, %v5119_v62  ;;  %v10450_v36 = vld [vmem:[#allocation6_spill] sm:$0xff]  ;;  %v3989_v48 = vadd.f32 %v10453_v17, %v10452_v5  ;;  %v10461_v24 = vld [vmem:[#allocation32_spill] sm:$0xff]  ;;  %v10464_v5 = vld [vmem:[#allocation27_spill] sm:$0xff] }
 0x25c   : > { %v5875_v57 = vadd.f32 %v5874_v35, %v5844_v8  ;;  %v5043_v54 = vpop.f32.mrf.mxu1  ;;  %v5557_v31 = vpop.f32.mrf.mxu0  ;;  %v3986_v61 = vadd.f32 %v10451_v52, %v10450_v36  ;;  %v5849_v3 = vmul.f32 %v5619_v41, %v5619_v41 }
 0x25d   : > { %v5620_v9 = vadd.f32 %v7189_v10, %v5122_v6  ;;  %v5120_v45 = vadd.f32 %v5043_v54, %v4366_v27  ;;  %v5807_v40 = vadd.f32 %v5806_v49, %v5616_v60  ;;  %v5847_v30 = vmul.f32 %v5617_v58, %v5617_v58  ;;  %v10456_v49 = vld [vmem:[#allocation12_spill] sm:$0xff] }
 0x25e   : > { %v5876_v19 = vadd.f32 %v5875_v57, %v5845_v46  ;;  %v7144_v39 = vpop.f32.mrf.mxu1  ;;  %v10133_v33 = vpop.f32.mrf.mxu0  ;;  %v4373_v6 = vadd.f32 %v10454_v18, %v3986_v61  ;;  %v10455_v46 = vld [vmem:[#allocation10_spill] sm:$0xff] }
 0x25f   : > { %v6507_v22 = vpack.c.bf16 %v5620_v9, %v5619_v41  ;;  %v5618_v28 = vadd.f32 %v5541_v0, %v5120_v45  ;;  %v5808_v15 = vadd.f32 %v5807_v40, %v5617_v58  ;;  %v5125_v12 = vadd.f32 %v7144_v39, %v10448_v53 }
 0x260   : > { %v5877_v10 = vadd.f32 %v5876_v19, %v5846_v42  ;;  %v5056_v43 = vpop.f32.mrf.mxu1  ;;  %v5570_v38 = vpop.f32.mrf.mxu0  ;;  %v4370_v0 = vadd.f32 %v10449_v50, %v3983_v34  ;;  %v5850_v55 = vmul.f32 %v5620_v9, %v5620_v9  ;;  %v3987_v57 = vadd.f32 %v10456_v49, %v10455_v46  ;;  %v10469_v49 = vld [vmem:[#allocation31_spill] sm:$0xff] }
 0x261   : > { %6547 = vst [vmem:[%s10074_s30 + $0x48] sm:$0xff] %v6507_v22   ;;  %v6502_v60 = vpack.c.bf16 %v5618_v28, %v5617_v58  ;;  %v5848_v16 = vmul.f32 %v5618_v28, %v5618_v28  ;;  %v5123_v14 = vadd.f32 %v5056_v43, %v4369_v2  ;;  %v5809_v11 = vadd.f32 %v5808_v15, %v5618_v28  ;;  %v10459_v22 = vld [vmem:[#allocation23_spill] sm:$0xff]  ;;  %v10462_v15 = vld [vmem:[#allocation24_spill] sm:$0xff] }
 0x262   : > { %v5878_v23 = vadd.f32 %v5877_v10, %v5847_v30  ;;  %v7145_v63 = vpop.f32.mrf.mxu1  ;;  %v7197_v20 = vpop.f32.mrf.mxu0  ;;  %v5623_v47 = vadd.f32 %v10118_v51, %v5125_v12  ;;  %v4374_v28 = vadd.f32 %v10459_v22, %v3987_v57  ;;  %v10463_v30 = vld [vmem:[#allocation34_spill] sm:$0xff] }
 0x263   : > { %6546 = vst [vmem:[%s10074_s30 + $0x40] sm:$0xff] %v6502_v60   ;;  %v5126_v8 = vadd.f32 %v7145_v63, %v4372_v13  ;;  %v5810_v37 = vadd.f32 %v5809_v11, %v5619_v41  ;;  %v5621_v35 = vadd.f32 %v5554_v21, %v5123_v14  ;;  %v10457_v41 = vld [vmem:[#allocation20_spill] sm:$0xff]  ;;  %v3993_v10 = vadd.f32 %v10463_v30, %v10462_v15 }
 0x264   : > { %v5879_v62 = vadd.f32 %v5878_v23, %v5848_v16  ;;  %v5059_v56 = vpop.f32.mrf.mxu1  ;;  %v5573_v59 = vpop.f32.mrf.mxu0  ;;  %v4376_v21 = vadd.f32 %v10457_v41, %v3989_v48  ;;  %v5853_v60 = vmul.f32 %v5623_v47, %v5623_v47  ;;  %v10465_v48 = vld [vmem:[#allocation4_spill] sm:$0xff] }
 0x265   : > { %v5624_v29 = vadd.f32 %v7193_v32, %v5126_v8  ;;  %v5124_v27 = vadd.f32 %v5059_v56, %v4370_v0  ;;  %v5811_v4 = vadd.f32 %v5810_v37, %v5620_v9  ;;  %v5851_v51 = vmul.f32 %v5621_v35, %v5621_v35  ;;  %v10458_v9 = vld [vmem:[#allocation29_spill] sm:$0xff]  ;;  %v10466_v8 = vld [vmem:[#allocation35_spill] sm:$0xff] }
 0x266   : > { %v5880_v44 = vadd.f32 %v5879_v62, %v5849_v3  ;;  %v7148_v1 = vpop.f32.mrf.mxu1  ;;  %v7200_v34 = vpop.f32.mrf.mxu0  ;;  %v3991_v3 = vadd.f32 %v10466_v8, %v10465_v48 }
 0x267   : > { %v6517_v58 = vpack.c.bf16 %v5624_v29, %v5623_v47  ;;  %v5622_v54 = vadd.f32 %v5557_v31, %v5124_v27  ;;  %v5812_v45 = vadd.f32 %v5811_v4, %v5621_v35  ;;  %v5129_v39 = vadd.f32 %v7148_v1, %v10458_v9  ;;  %v10460_v31 = vld [vmem:[#allocation22_spill] sm:$0xff] }
 0x268   : > { %v5881_v32 = vadd.f32 %v5880_v44, %v5850_v55  ;;  %v5072_v42 = vpop.f32.mrf.mxu1  ;;  %v3990_v13 = vadd.f32 %v10461_v24, %v10460_v31  ;;  %v5854_v50 = vmul.f32 %v5624_v29, %v5624_v29  ;;  %v5586_v61 = vpop.f32.mrf.mxu0  ;;  %v4378_v57 = vadd.f32 %v10469_v49, %v3991_v3 }
 0x269   : > { %6549 = vst [vmem:[%s10074_s30 + $0x58] sm:$0xff] %v6517_v58   ;;  %v6512_v19 = vpack.c.bf16 %v5622_v54, %v5621_v35  ;;  %v5852_v40 = vmul.f32 %v5622_v54, %v5622_v54  ;;  %v5127_v25 = vadd.f32 %v5072_v42, %v4373_v6  ;;  %v5813_v7 = vadd.f32 %v5812_v45, %v5622_v54  ;;  %v10467_v35 = vld [vmem:[#allocation11_spill] sm:$0xff] }
 0x26a   : > { %v5882_v2 = vadd.f32 %v5881_v32, %v5851_v51  ;;  %v7149_v26 = vpop.f32.mrf.mxu1  ;;  %v5627_v23 = vadd.f32 %v10133_v33, %v5129_v39  ;;  %v4377_v17 = vadd.f32 %v10464_v5, %v3990_v13  ;;  %v7201_v46 = vpop.f32.mrf.mxu0 }
 0x26b   : > { %6548 = vst [vmem:[%s10074_s30 + $0x50] sm:$0xff] %v6512_v19   ;;  %v5130_v43 = vadd.f32 %v7149_v26, %v4376_v21  ;;  %v5814_v16 = vadd.f32 %v5813_v7, %v5623_v47  ;;  %v5625_v12 = vadd.f32 %v5570_v38, %v5127_v25  ;;  %v4380_v38 = vadd.f32 %v10467_v35, %v3993_v10 }
 0x26c   : > { %v5883_v53 = vadd.f32 %v5882_v2, %v5852_v40  ;;  %v5075_v14 = vpop.f32.mrf.mxu1  ;;  %v5857_v58 = vmul.f32 %v5627_v23, %v5627_v23  ;;  %v5589_v39 = vpop.f32.mrf.mxu0 }
 0x26d   : > { %v5628_v11 = vadd.f32 %v7197_v20, %v5130_v43  ;;  %v5128_v63 = vadd.f32 %v5075_v14, %v4374_v28  ;;  %v5815_v36 = vadd.f32 %v5814_v16, %v5624_v29  ;;  %v5855_v33 = vmul.f32 %v5625_v12, %v5625_v12  ;;  %v10468_v29 = vld [vmem:[#allocation33_spill] sm:$0xff] }
 0x26e   : > { %v5884_v0 = vadd.f32 %v5883_v53, %v5853_v60  ;;  %v7152_v52 = vpop.f32.mrf.mxu1 }
 0x26f   : > { %v6527_v37 = vpack.c.bf16 %v5628_v11, %v5627_v23  ;;  %v5626_v62 = vadd.f32 %v5573_v59, %v5128_v63  ;;  %v5816_v56 = vadd.f32 %v5815_v36, %v5625_v12  ;;  %v5133_v44 = vadd.f32 %v7152_v52, %v10468_v29 }
 0x270   : > { %v5885_v20 = vadd.f32 %v5884_v0, %v5854_v50  ;;  %v5088_v47 = vpop.f32.mrf.mxu1  ;;  %v5858_v19 = vmul.f32 %v5628_v11, %v5628_v11 }
 0x271   : > { %6551 = vst [vmem:[%s10074_s30 + $0x68] sm:$0xff] %v6527_v37   ;;  %v6522_v27 = vpack.c.bf16 %v5626_v62, %v5625_v12  ;;  %v5856_v55 = vmul.f32 %v5626_v62, %v5626_v62  ;;  %v5131_v4 = vadd.f32 %v5088_v47, %v4377_v17  ;;  %v5817_v18 = vadd.f32 %v5816_v56, %v5626_v62 }
 0x272   : > { %v5886_v1 = vadd.f32 %v5885_v20, %v5855_v33  ;;  %v7153_v6 = vpop.f32.mrf.mxu1  ;;  %v5631_v51 = vadd.f32 %v7200_v34, %v5133_v44 }
 0x273   : > { %6550 = vst [vmem:[%s10074_s30 + $0x60] sm:$0xff] %v6522_v27   ;;  %v5134_v59 = vadd.f32 %v7153_v6, %v4380_v38  ;;  %v5818_v54 = vadd.f32 %v5817_v18, %v5627_v23  ;;  %v5629_v21 = vadd.f32 %v5586_v61, %v5131_v4 }
 0x274   : > { %v5887_v41 = vadd.f32 %v5886_v1, %v5856_v55  ;;  %v5091_v45 = vpop.f32.mrf.mxu1  ;;  %v5861_v34 = vmul.f32 %v5631_v51, %v5631_v51 }
 0x275   : > { %v5632_v32 = vadd.f32 %v7201_v46, %v5134_v59  ;;  %v5132_v42 = vadd.f32 %v5091_v45, %v4378_v57  ;;  %v5819_v9 = vadd.f32 %v5818_v54, %v5628_v11  ;;  %v5859_v26 = vmul.f32 %v5629_v21, %v5629_v21 }
 0x276   : > { %v5888_v40 = vadd.f32 %v5887_v41, %v5857_v58 }
 0x277   : > { %v6537_v25 = vpack.c.bf16 %v5632_v32, %v5631_v51  ;;  %v5630_v2 = vadd.f32 %v5589_v39, %v5132_v42  ;;  %v5820_v7 = vadd.f32 %v5819_v9, %v5629_v21  ;;  %v5862_v10 = vmul.f32 %v5632_v32, %v5632_v32 }
 0x278   : > { %v5889_v22 = vadd.f32 %v5888_v40, %v5858_v19 }
 0x279   : > { %6553 = vst [vmem:[%s10074_s30 + $0x78] sm:$0xff] %v6537_v25   ;;  %v6532_v28 = vpack.c.bf16 %v5630_v2, %v5629_v21  ;;  %v5860_v31 = vmul.f32 %v5630_v2, %v5630_v2  ;;  %v5821_v13 = vadd.f32 %v5820_v7, %v5630_v2 }
 0x27a   : > { %v5890_v24 = vadd.f32 %v5889_v22, %v5859_v26 }
 0x27b   : > { %6552 = vst [vmem:[%s10074_s30 + $0x70] sm:$0xff] %v6532_v28   ;;  %v5822_v15 = vadd.f32 %v5821_v13, %v5631_v51 }
 0x27c   : > { %v5891_v30 = vadd.f32 %v5890_v24, %v5860_v31 }
 0x27d   : > { %v5823_v43 = vadd.f32 %v5822_v15, %v5632_v32 }
 0x27e   : > { %v5892_v60 = vadd.f32 %v5891_v30, %v5861_v34 }
 0x27f   : > { %v5824_v16 = vrot.slane %v5823_v43, 4 }
 0x280   : > { %v5893_v53 = vadd.f32 %v5892_v60, %v5862_v10 }
 0x281   : > { %v5825_v12 = vadd.f32 %v5824_v16, %v5823_v43 }
 0x282   : > { %v5894_v14 = vrot.slane %v5893_v53, 4 }
 0x283   : > { %v5826_v23 = vrot.slane %v5825_v12, 2 }
 0x284   : > { %v5895_v11 = vadd.f32 %v5894_v14, %v5893_v53 }
 0x285   : > { %v5827_v63 = vadd.f32 %v5826_v23, %v5825_v12 }
 0x286   : > { %v5896_v50 = vrot.slane %v5895_v11, 2 }
 0x287   : > { %v5828_v0 = vrot.slane %v5827_v63, 1 }
 0x288   : > { %v5897_v36 = vadd.f32 %v5896_v50, %v5895_v11 }
 0x289   : > { %v5829_v52 = vadd.f32 %v5828_v0, %v5827_v63 }
 0x28a   : > { %v5898_v61 = vrot.slane %v5897_v36, 1 }
 0x28b   : > { %5901 = vst [vmem:[%s235_s8] sm:$0x1] %v5829_v52 }
 0x28c   : > { %v5899_v5 = vadd.f32 %v5898_v61, %v5897_v36 }
 0x28e   : > { %5902 = vst [vmem:[%s235_s8 + $0x1] sm:$0x1] %v5899_v5 }
 0x28f PF: > { %s16_s18 = sadd.s32 1, %s7376_s18  }
 0x290   : > { %p13_p4 = scmp.ge.s32.totalorder %s16_s18, 4  }
 0x292   :  { %15 = sbr.rel (!%p13_p4) target bundleno = 1 (0x1), region = 89 }

// kernel: double_conv_forward.4
= control target key start
LH: loop header
LB: loop body
LE: loop exit
PB: predicated region body
PF: predicated region fallthrough
CT: control target
= control target key end

     0   :  { %s7798_s18 = smov 0   ;;  %s10611_s0 = inlined_call_operand.vmem [shape: f32[1,128], index: 0, kind: input, shape index: {}]   ;;  %s10612_s1 = inlined_call_operand.vmem [shape: f32[1,128], index: 1, kind: input, shape index: {}]   ;;  %s10613_s2 = inlined_call_operand.vmem [shape: bf16[2,256,128], index: 2, kind: input, shape index: {}]   ;;  %s10614_s3 = inlined_call_operand.vmem [shape: bf16[9,128,128], index: 3, kind: input, shape index: {}]   ;;  %s10615_s4 = inlined_call_operand.vmem [shape: bf16[2,256,128], index: 4, kind: output, shape index: {0}]   ;;  %s10616_s5 = inlined_call_operand.vmem [shape: f32[2,2,128], index: 5, kind: output, shape index: {1}]  }
   0x1 LB: > { %s6227_s19 = sadd.s32 4294967295, %s7765_s18   ;;  %p6231_p0 = scmp.ge.s32.totalorder %s7765_s18, 1  ;;  %s7765_s18 = sphi %s7798_s18, %s16_s18  }
   0x2   : > { %p190_p1 = scmp.lt.s32.totalorder %s7765_s18, 3 }
   0x4   : > { %p191_p2 = pnand %p6231_p0, %p190_p1 }
   0x6   : > { %194 = sbr.rel (%p191_p2) target bundleno = 680 (0x2a8), region = 36 }
   0xb   : > { %v7610_v0 = vld [vmem:[%s10614_s3 + $0x78] sm:$0xff]   ;;  %v7611_v1 = vld [vmem:[%s10614_s3 + $0x70] sm:$0xff]   ;;  %v7767_v2 = vmov 0   ;;  %p222_p3 = scmp.lt.s32.totalorder %s6227_s19, 1  ;;  %v7612_v3 = vld [vmem:[%s10614_s3 + $0x68] sm:$0xff]   ;;  %vm434_vm0 = vcmask 1040384  }
   0xc   : > { %427 = vst [vmem:[#allocation2] sm:$0xf] %v7767_v2  ;;  %428 = vst [vmem:[#allocation2 + $0x4] sm:$0xf] %v7767_v2  ;;  %7153 = vmatprep.subr.bf16.mxu0 %v7610_v0  ;;  %7585 = vmatprep.subr.bf16.mxu1 %v7610_v0  ;;  %vm491_vm1 = vcmask 1043456   ;;  %v7613_v4 = vld [vmem:[%s10614_s3 + $0x60] sm:$0xff]  }
   0xd   : > { %429 = vst [vmem:[#allocation2 + $0x8] sm:$0xf] %v7767_v2  ;;  %431 = vst [vmem:[#allocation2 + $0xcc] sm:$0xf] %v7767_v2  ;;  %7154 = vmatpush3.bf16.msra.mxu0 %v7610_v0  ;;  %7593 = vmatpush3.bf16.msra.mxu1 %v7610_v0  ;;  %s10878_s19 = smov (!%p222_p3, %s6227_s19), 1  ;;  %v10637_v10 = vmov 0 }
   0xe   : > { %432 = vst [vmem:[#allocation2 + $0xd0] sm:$0xf] %v7767_v2  ;;  %433 = vst [vmem:[#allocation2 + $0xd4] sm:$0xf] %v7767_v2  ;;  %7155 = vmatprep.subr.bf16.mxu0 %v7611_v1  ;;  %7586 = vmatprep.subr.bf16.mxu1 %v7611_v1  ;;  %s6697_s28 = sshll.u32 %s10878_s19, 7  ;;  %v7614_v14 = vld [vmem:[%s10614_s3 + $0x58] sm:$0xff]  }
   0xf   : > { %vm435_vm2 = vsmask.f32 256  ;;  %vm492_vm3 = vsmask.f32 7938  ;;  %s7826_s6 = scalar_lea.vmem %s10613_s2, %s6697_s28  ;;  %vm1127_vm6 = vsmask.f32 3328  ;;  %s10472_s11 = scalar_lea.vmem %s10615_s4, %s6697_s28 }
  0x10   : > { %vm7829_vm4 = vmand %vm434_vm0, %vm435_vm2  ;;  %v6764_v13 = vld [vmem:[%s7826_s6] sm:$0xff]   ;;  %v440_v22 = vld [vmem:[#allocation2 + $0xc] sm:$0x1]  ;;  %vm1128_vm7 = vsmask.f32 7440  ;;  %vm2157_vm11 = vcmask 1042432  }
  0x11   : > { %7156 = vmatpush3.bf16.msra.mxu0 %v7611_v1  ;;  %7594 = vmatpush3.bf16.msra.mxu1 %v7611_v1  ;;  %vm7836_vm5 = vmand %vm491_vm1, %vm492_vm3  ;;  %v6765_v16 = vunpack.c.l.bf16 %v6764_v13  ;;  %v6766_v17 = vunpack.c.h.bf16 %v6764_v13  ;;  %v7849_v18 = vld [vmem:[%s10611_s0] ss:$0 sm:$0xff]  ;;  %v497_v23 = vld [vmem:[#allocation2 + $0x14] sm:$0xf]  ;;  %v441_v26 = vsel %vm7829_vm4, 0, %v440_v22  ;;  %vm2158_vm12 = vcmask 1046532  }
  0x12   : > { %7157 = vmatprep.subr.bf16.mxu0 %v7612_v3  ;;  %7587 = vmatprep.subr.bf16.mxu1 %v7612_v3  ;;  %v10638_v10 = vsel %vm7836_vm5, 4294967295, %v10637_v10  ;;  %v7854_v19 = vld [vmem:[%s10612_s1] ss:$0 sm:$0xff]  ;;  %v498_v27 = vsel %vm7836_vm5, 0, %v497_v23  ;;  %v6913_v28 = vld [vmem:[%s7826_s6 + $0x38] sm:$0xff]   ;;  %v7615_v30 = vld [vmem:[%s10614_s3 + $0x50] sm:$0xff]  }
  0x13   : > { %v437_v5 = vld [vmem:[#allocation2] sm:$0x1]  ;;  %v1064_v8 = vld [vmem:[#allocation2 + $0x4] sm:$0xf]  ;;  %10639 = vst [vmem:[#allocation3_spill] sm:$0xff] %v10638_v10  ;;  %v308_v24 = vmul.f32 %v6765_v16, %v7849_v18  ;;  %v309_v25 = vmul.f32 %v6766_v17, %v7849_v18  ;;  %v6793_v32 = vunpack.c.l.bf16 %v6913_v28  ;;  %v6794_v33 = vunpack.c.h.bf16 %v6913_v28  ;;  %v7616_v59 = vld [vmem:[%s10614_s3 + $0x48] sm:$0xff]  }
  0x14   : > { %v494_v7 = vld [vmem:[#allocation2 + $0x8] sm:$0xf]  ;;  %v438_v9 = vsel %vm7829_vm4, 0, %v437_v5  ;;  %v1140_v11 = vshll.u32 %v1064_v8, 16  ;;  %v1144_v12 = vshrl.u32 %v1064_v8, 16  ;;  %v7880_v42 = vld [vmem:[%s7826_s6 + $0x40] sm:$0xff]   ;;  %vm7899_vm9 = vmor %vm1127_vm6, %vm1128_vm7 }
  0x15   : > { %7158 = vmatpush3.bf16.msra.mxu0 %v7612_v3  ;;  %7595 = vmatpush3.bf16.msra.mxu1 %v7612_v3  ;;  %439 = vst [vmem:[#allocation2] sm:$0x1] %v438_v9  ;;  %v495_v15 = vsel %vm7836_vm5, 0, %v494_v7  ;;  %v461_v29 = vld [vmem:[#allocation2 + $0x60] sm:$0x1]  ;;  %v347_v35 = vadd.f32 %v7854_v19, %v308_v24  ;;  %v348_v36 = vadd.f32 %v7854_v19, %v309_v25  ;;  %v6797_v45 = vunpack.c.l.bf16 %v7880_v42  ;;  %vm8353_vm13 = vmor %vm2157_vm11, %vm2158_vm12  ;;  %s6236_s28 = sshll.u32 %s10878_s19, 1 }
  0x16   : > { %7159 = vmatprep.subr.bf16.mxu0 %v7613_v4  ;;  %7588 = vmatprep.subr.bf16.mxu1 %v7613_v4  ;;  %496 = vst [vmem:[#allocation2 + $0x8] sm:$0xf] %v495_v15  ;;  %v7856_v20 = vrot.slane %v1140_v11, 5  ;;  %v1146_v21 = vrot.slane %v1144_v12, 4  ;;  %442 = vst [vmem:[#allocation2 + $0xc] sm:$0x1] %v441_v26  ;;  %v322_v40 = vmul.f32 %v6793_v32, %v7849_v18  ;;  %v6798_v46 = vunpack.c.h.bf16 %v7880_v42  ;;  %s235_s14 = scalar_lea.vmem %s10616_s5, %s6236_s28 }
  0x17   : > { %499 = vst [vmem:[#allocation2 + $0x14] sm:$0xf] %v498_v27  ;;  %v518_v34 = vld [vmem:[#allocation2 + $0x68] sm:$0xf]  ;;  %v462_v37 = vsel %vm7829_vm4, 0, %v461_v29  ;;  %v323_v41 = vmul.f32 %v6794_v33, %v7849_v18  ;;  %v379_v43 = vmax.f32 %v347_v35, 0.0  ;;  %v324_v16 = vmul.f32 %v6797_v45, %v7849_v18 }
  0x18   : > { %v1147_v31 = vor.u32 %v1146_v21, %v7856_v20  ;;  %v519_v38 = vsel %vm7836_vm5, 0, %v518_v34  ;;  %vm628_vm8 = vsmask.f32 4368  ;;  %463 = vst [vmem:[#allocation2 + $0x60] sm:$0x1] %v462_v37  ;;  %v380_v44 = vmax.f32 %v348_v36, 0.0 }
  0x19   : > { %7160 = vmatpush3.bf16.msra.mxu0 %v7613_v4  ;;  %7596 = vmatpush3.bf16.msra.mxu1 %v7613_v4  ;;  %520 = vst [vmem:[#allocation2 + $0x68] sm:$0xf] %v519_v38  ;;  %v464_v47 = vld [vmem:[#allocation2 + $0x6c] sm:$0x1]  ;;  %v521_v48 = vld [vmem:[#allocation2 + $0x74] sm:$0xf]  ;;  %v361_v50 = vadd.f32 %v7854_v19, %v322_v40  ;;  %v362_v51 = vadd.f32 %v7854_v19, %v323_v41  ;;  %vm7912_vm10 = vmor %vm435_vm2, %vm628_vm8 }
  0x1a   : > { %7161 = vmatprep.subr.bf16.mxu0 %v7614_v14  ;;  %7589 = vmatprep.subr.bf16.mxu1 %v7614_v14  ;;  %v7875_v39 = vrot.slane %v1147_v31, 4  ;;  %v465_v52 = vsel %vm7829_vm4, 0, %v464_v47  ;;  %v522_v53 = vsel %vm7836_vm5, 0, %v521_v48  ;;  %v6699_v57 = vpack.c.bf16 %v379_v43, %v379_v43  ;;  %v7617_v17 = vld [vmem:[%s10614_s3 + $0x40] sm:$0xff]   ;;  %v7924_v37 = vld [vmem:[%s10614_s3 + $0x38] sm:$0xff]  }
  0x1b   : > { %v6700_v58 = vpack.c.bf16 %v380_v44, %v380_v44  ;;  %466 = vst [vmem:[#allocation2 + $0x6c] sm:$0x1] %v465_v52  ;;  %523 = vst [vmem:[#allocation2 + $0x74] sm:$0xf] %v522_v53  ;;  %v393_v62 = vmax.f32 %v361_v50, 0.0  ;;  %v394_v63 = vmax.f32 %v362_v51, 0.0  ;;  %v325_v38 = vmul.f32 %v6798_v46, %v7849_v18 }
  0x1c   : > { %v1063_v49 = vld [vmem:[#allocation2] sm:$0xf]  ;;  %v631_v3 = vshrl.u32 %v6699_v57, 16  ;;  %v634_v4 = vshll.u32 %v6699_v57, 16  ;;  %v10642_v26 = vmov 0  ;;  %v7937_v42 = vld [vmem:[%s10614_s3 + $0xb8] sm:$0xff]   ;;  %v363_v50 = vadd.f32 %v7854_v19, %v324_v16 }
  0x1d   : > { %7162 = vmatpush3.bf16.msra.mxu0 %v7614_v14  ;;  %7597 = vmatpush3.bf16.msra.mxu1 %v7614_v14  ;;  %v7890_v54 = vld [vmem:[#allocation2 + $0x8] sm:$0x1]  ;;  %v1131_v55 = vshrl.u32 %v1063_v49, 16  ;;  %v1134_v56 = vshll.u32 %v1063_v49, 16  ;;  %v639_v7 = vshrl.u32 %v6700_v58, 16  ;;  %v642_v8 = vshll.u32 %v6700_v58, 16 }
  0x1e   : > { %7163 = vmatprep.subr.bf16.mxu0 %v7615_v30  ;;  %7590 = vmatprep.subr.bf16.mxu1 %v7615_v30  ;;  %v1150_v60 = vshll.u32 %v7890_v54, 16  ;;  %v2165_v61 = vrot.slane %v7890_v54, 5  ;;  %v6713_v9 = vpack.c.bf16 %v393_v62, %v393_v62  ;;  %v633_v12 = vrot.slane %v631_v3, 7  ;;  %v951_v13 = vld [vmem:[#allocation2 + $0xc] sm:$0xf]  ;;  %v6908_v58 = vld [vmem:[%s7826_s6 + $0x10] sm:$0xff]  }
  0x1f   : > { %v1133_v1 = vrot.slane %v1131_v55, 4  ;;  %v1136_v2 = vrot.slane %v1134_v56, 5  ;;  %v955_v14 = vld [vmem:[#allocation2 + $0x14] sm:$0x1]  ;;  %v6714_v15 = vpack.c.bf16 %v394_v63, %v394_v63  ;;  %v641_v22 = vrot.slane %v639_v7, 7 }
  0x20   : > { %v1152_v5 = vrot.slane %v1150_v60, 5  ;;  %v750_v23 = vshrl.u32 %v6713_v9, 16  ;;  %v753_v24 = vshll.u32 %v6713_v9, 16  ;;  %v10643_v26 = vsel %vm7912_vm10, 4294967295, %v10642_v26  ;;  %v443_v40 = vld [vmem:[#allocation2 + $0x18] sm:$0x1] }
  0x21   : > { %7164 = vmatpush3.bf16.msra.mxu0 %v7615_v30  ;;  %7598 = vmatpush3.bf16.msra.mxu1 %v7615_v30  ;;  %v1137_v11 = vor.u32 %v1136_v2, %v1133_v1  ;;  %10644 = vst [vmem:[#allocation4_spill] sm:$0xff] %v10643_v26  ;;  %v636_v27 = vor.u32 %v634_v4, %v633_v12  ;;  %v637_v28 = vrot.slane %v633_v12, 4  ;;  %v758_v29 = vshrl.u32 %v6714_v15, 16  ;;  %v1000_v45 = vld [vmem:[#allocation2 + $0x60] sm:$0xf] }
  0x22   : > { %7165 = vmatprep.subr.bf16.mxu0 %v7616_v59  ;;  %7591 = vmatprep.subr.bf16.mxu1 %v7616_v59  ;;  %v1153_v21 = vsel %vm7899_vm9, %v7875_v39, %v1152_v5  ;;  %v644_v30 = vor.u32 %v642_v8, %v641_v22  ;;  %v646_v31 = vrot.slane %v641_v22, 4  ;;  %v752_v32 = vrot.slane %v750_v23, 7  ;;  %v6907_v39 = vld [vmem:[%s7826_s6 + $0x8] sm:$0xff]   ;;  %v500_v51 = vld [vmem:[#allocation2 + $0x20] sm:$0xf] }
  0x23   : > { %v1138_v25 = vrot.slane %v1137_v11, 4  ;;  %v761_v33 = vshll.u32 %v6714_v15, 16  ;;  %v952_v35 = vsel %vm7836_vm5, %v636_v27, %v951_v13  ;;  %v760_v36 = vrot.slane %v758_v29, 7  ;;  %v1004_v47 = vld [vmem:[#allocation2 + $0x68] sm:$0x1] }
  0x24   : > { %953 = vst [vmem:[#allocation2 + $0xc] sm:$0xf] %v952_v35  ;;  %v956_v43 = vsel %vm7829_vm4, %v646_v31, %v955_v14  ;;  %v756_v44 = vrot.slane %v752_v32, 4  ;;  %v755_v46 = vor.u32 %v753_v24, %v752_v32  ;;  %v446_v52 = vld [vmem:[#allocation2 + $0x24] sm:$0x1]  ;;  %v364_v53 = vadd.f32 %v7854_v19, %v325_v38  ;;  %v7961_v14 = vld [vmem:[%s7826_s6 + $0x48] sm:$0xff]  }
  0x25   : > { %7166 = vmatpush3.bf16.msra.mxu0 %v7616_v59  ;;  %7599 = vmatpush3.bf16.msra.mxu1 %v7616_v59  ;;  %v1143_v34 = vsel %vm7899_vm9, %v1138_v25, %v7856_v20  ;;  %v645_v20 = vsel %vm7912_vm10, %v637_v28, %v644_v30  ;;  %957 = vst [vmem:[#allocation2 + $0x14] sm:$0x1] %v956_v43  ;;  %v765_v49 = vrot.slane %v760_v36, 4  ;;  %v6769_v55 = vunpack.c.l.bf16 %v6907_v39  ;;  %v503_v59 = vld [vmem:[#allocation2 + $0x2c] sm:$0xf] }
  0x26   : > { %7167 = vmatprep.subr.bf16.mxu0 %v7617_v17  ;;  %7592 = vmatprep.subr.bf16.mxu1 %v7617_v17  ;;  %v6287_v41 = vcombine.low %v1143_v34, %v1153_v21  ;;  %954 = vst [vmem:[#allocation2 + $0x10] sm:$0xf] %v645_v20  ;;  %v763_v48 = vor.u32 %v761_v33, %v760_v36  ;;  %v6770_v56 = vunpack.c.h.bf16 %v6907_v39  ;;  %v444_v57 = vsel %vm7829_vm4, 0, %v443_v40 }
  0x27   : > { %v1001_v62 = vsel %vm7836_vm5, %v755_v46, %v1000_v45  ;;  %v1005_v63 = vsel %vm7829_vm4, %v765_v49, %v1004_v47  ;;  %v395_v1 = vmax.f32 %v363_v50, 0.0  ;;  %445 = vst [vmem:[#allocation2 + $0x18] sm:$0x1] %v444_v57  ;;  %v396_v2 = vmax.f32 %v364_v53, 0.0 }
  0x28   : > { %7169 = vmatprep.mubr.bf16.mxu0 %v6287_v41  ;;  %v764_v60 = vsel %vm7912_vm10, %v756_v44, %v763_v48  ;;  %1002 = vst [vmem:[#allocation2 + $0x60] sm:$0xf] %v1001_v62  ;;  %1006 = vst [vmem:[#allocation2 + $0x68] sm:$0x1] %v1005_v63  ;;  %v310_v3 = vmul.f32 %v6769_v55, %v7849_v18  ;;  %v311_v4 = vmul.f32 %v6770_v56, %v7849_v18 }
  0x29   : > { %7168 = vmatpush3.bf16.msra.mxu0 %v7617_v17  ;;  %7600 = vmatpush3.bf16.msra.mxu1 %v7617_v17  ;;  %1003 = vst [vmem:[#allocation2 + $0x64] sm:$0xf] %v764_v60  ;;  %v501_v5 = vsel %vm7836_vm5, 0, %v500_v51  ;;  %v6715_v7 = vpack.c.bf16 %v395_v1, %v395_v1  ;;  %v6773_v8 = vunpack.c.l.bf16 %v6908_v58  ;;  %v6774_v9 = vunpack.c.h.bf16 %v6908_v58 }
  0x2a   : > { %7201 = vmatprep.subr.bf16.mxu1 %v7924_v37  ;;  %7249 = vmatprep.subr.bf16.mxu0 %v7937_v42  ;;  %502 = vst [vmem:[#allocation2 + $0x20] sm:$0xf] %v501_v5  ;;  %v447_v11 = vsel %vm7829_vm4, 0, %v446_v52  ;;  %v6716_v12 = vpack.c.bf16 %v396_v2, %v396_v2  ;;  %v504_v13 = vsel %vm7836_vm5, 0, %v503_v59  ;;  %v349_v21 = vadd.f32 %v7854_v19, %v310_v3  ;;  %v1007_v59 = vld [vmem:[#allocation2 + $0x6c] sm:$0xf] }
  0x2b   : > { %448 = vst [vmem:[#allocation2 + $0x24] sm:$0x1] %v447_v11  ;;  %v1065_v15 = vld [vmem:[#allocation2 + $0xc] sm:$0xf]  ;;  %v767_v16 = vshrl.u32 %v6715_v7, 16  ;;  %v770_v17 = vshll.u32 %v6715_v7, 16  ;;  %v7965_v22 = vadd.f32 %v7854_v19, %v311_v4  ;;  %v312_v28 = vmul.f32 %v6773_v8, %v7849_v18 }
  0x2c   : > { %505 = vst [vmem:[#allocation2 + $0x2c] sm:$0xf] %v504_v13  ;;  %v1112_v24 = vld [vmem:[#allocation2 + $0x14] sm:$0x1]  ;;  %v1155_v25 = vshrl.u32 %v1065_v15, 16  ;;  %v1158_v27 = vshll.u32 %v1065_v15, 16  ;;  %v313_v29 = vmul.f32 %v6774_v9, %v7849_v18  ;;  %v6801_v33 = vunpack.c.l.bf16 %v7961_v14 }
  0x2d   : > { %v1066_v23 = vld [vmem:[#allocation2 + $0x10] sm:$0xf]  ;;  %v1174_v32 = vshll.u32 %v1112_v24, 16  ;;  %v769_v36 = vrot.slane %v767_v16, 7  ;;  %v6802_v38 = vunpack.c.h.bf16 %v7961_v14  ;;  %v775_v43 = vshrl.u32 %v6716_v12, 16 }
  0x2e   : > { %v1164_v30 = vshll.u32 %v1066_v23, 16  ;;  %v1168_v31 = vshrl.u32 %v1066_v23, 16  ;;  %v1157_v34 = vrot.slane %v1155_v25, 4  ;;  %v1160_v35 = vrot.slane %v1158_v27, 5  ;;  %v1011_v11 = vld [vmem:[#allocation2 + $0x74] sm:$0x1] }
  0x2f   : > { %v1176_v41 = vrot.slane %v1174_v32, 5  ;;  %v1079_v20 = vld [vmem:[#allocation2 + $0x60] sm:$0xf]  ;;  %v1119_v47 = vld [vmem:[#allocation2 + $0x68] sm:$0x1]  ;;  %v772_v49 = vor.u32 %v770_v17, %v769_v36  ;;  %v778_v58 = vshll.u32 %v6716_v12, 16 }
  0x30   : > { %v1166_v39 = vrot.slane %v1164_v30, 5  ;;  %v1170_v40 = vrot.slane %v1168_v31, 4  ;;  %v1161_v44 = vor.u32 %v1160_v35, %v1157_v34  ;;  %v1080_v45 = vld [vmem:[#allocation2 + $0x64] sm:$0xf]  ;;  %v1323_v46 = vshrl.u32 %v1079_v20, 16  ;;  %v7621_v23 = vld [vmem:[%s10614_s3 + $0xb0] sm:$0xff]  }
  0x31   : > { %v1326_v48 = vshll.u32 %v1079_v20, 16  ;;  %v1332_v51 = vshll.u32 %v1080_v45, 16  ;;  %v1336_v52 = vshrl.u32 %v1080_v45, 16  ;;  %v1342_v53 = vshll.u32 %v1119_v47, 16  ;;  %v467_v35 = vld [vmem:[#allocation2 + $0x78] sm:$0x1] }
  0x32   : > { %v1171_v50 = vor.u32 %v1170_v40, %v1166_v39  ;;  %v1162_v55 = vrot.slane %v1161_v44, 4  ;;  %v1325_v56 = vrot.slane %v1323_v46, 4  ;;  %v773_v4 = vrot.slane %v769_v36, 4  ;;  %v958_v46 = vld [vmem:[#allocation2 + $0x18] sm:$0xf]  ;;  %v8010_v14 = vld [vmem:[%s7826_s6 + $0x50] sm:$0xff]  }
  0x33   : > { %v1328_v57 = vrot.slane %v1326_v48, 5  ;;  %v1334_v62 = vrot.slane %v1332_v51, 5  ;;  %v1338_v63 = vrot.slane %v1336_v52, 4  ;;  %v1344_v1 = vrot.slane %v1342_v53, 5 }
  0x34   : > { %v1172_v60 = vrot.slane %v1171_v50, 4  ;;  %v1167_v2 = vsel %vm7899_vm9, %v1162_v55, %v1166_v39  ;;  %v777_v5 = vrot.slane %v775_v43, 7  ;;  %v1008_v9 = vsel %vm7836_vm5, %v772_v49, %v1007_v59 }
  0x35   : > { %v1329_v3 = vor.u32 %v1328_v57, %v1325_v56  ;;  %v1339_v8 = vor.u32 %v1338_v63, %v1334_v62  ;;  %v381_v12 = vmax.f32 %v349_v21, 0.0  ;;  %1009 = vst [vmem:[#allocation2 + $0x6c] sm:$0xf] %v1008_v9  ;;  %v382_v25 = vmax.f32 %v7965_v22, 0.0 }
  0x36   : > { %v1177_v7 = vsel %vm7899_vm9, %v1172_v60, %v1176_v41  ;;  %v780_v16 = vor.u32 %v778_v58, %v777_v5  ;;  %v782_v17 = vrot.slane %v777_v5, 4  ;;  %v351_v30 = vadd.f32 %v7854_v19, %v312_v28  ;;  %v7625_v60 = vld [vmem:[%s10614_s3 + $0xa0] sm:$0xff]  }
  0x37   : > { %v6288_v13 = vcombine.low %v1167_v2, %v1177_v7  ;;  %v1330_v15 = vrot.slane %v1329_v3, 4  ;;  %v1340_v24 = vrot.slane %v1339_v8, 4  ;;  %v6701_v27 = vpack.c.bf16 %v381_v12, %v381_v12  ;;  %v962_v2 = vld [vmem:[#allocation2 + $0x20] sm:$0x1] }
  0x38   : > { %v781_v21 = vsel %vm7912_vm10, %v773_v4, %v780_v16  ;;  %v1012_v32 = vsel %vm7829_vm4, %v782_v17, %v1011_v11  ;;  %v352_v34 = vadd.f32 %v7854_v19, %v313_v29  ;;  %v6702_v22 = vpack.c.bf16 %v382_v25, %v382_v25  ;;  %v7623_v29 = vld [vmem:[%s10614_s3 + $0xa8] sm:$0xff]   ;;  %v965_v17 = vld [vmem:[#allocation2 + $0x24] sm:$0xf]  ;;  %v7627_v25 = vld [vmem:[%s10614_s3 + $0x98] sm:$0xff]  }
  0x39   : > { %7170 = vmatmul.mubr.bf16.vlgmr.msra.gmra.mxu0 %v6288_v13  ;;  %v1335_v31 = vsel %vm7899_vm9, %v1330_v15, %v1334_v62  ;;  %v1345_v36 = vsel %vm7899_vm9, %v1340_v24, %v1344_v1  ;;  %1010 = vst [vmem:[#allocation2 + $0x70] sm:$0xf] %v781_v21  ;;  %1013 = vst [vmem:[#allocation2 + $0x74] sm:$0x1] %v1012_v32  ;;  %v648_v28 = vshrl.u32 %v6701_v27, 16  ;;  %v651_v39 = vshll.u32 %v6701_v27, 16 }
  0x3a   : > { %7250 = vmatpush3.bf16.msra.mxu0 %v7937_v42  ;;  %v6295_v40 = vcombine.low %v1335_v31, %v1345_v36  ;;  %v383_v41 = vmax.f32 %v351_v30, 0.0  ;;  %v384_v20 = vmax.f32 %v352_v34, 0.0  ;;  %v326_v43 = vmul.f32 %v6801_v33, %v7849_v18  ;;  %v524_v24 = vld [vmem:[#allocation2 + $0x80] sm:$0xf] }
  0x3b   : > { %7251 = vmatprep.subr.bf16.mxu0 %v7621_v23  ;;  %v650_v44 = vrot.slane %v648_v28, 7  ;;  %v656_v45 = vshrl.u32 %v6702_v22, 16  ;;  %v659_v47 = vshll.u32 %v6702_v22, 16  ;;  %v327_v42 = vmul.f32 %v6802_v38, %v7849_v18 }
  0x3c   : > { %7185 = vmatprep.mubr.bf16.mxu1 %v6295_v40  ;;  %v6703_v48 = vpack.c.bf16 %v383_v41, %v383_v41  ;;  %v6704_v49 = vpack.c.bf16 %v384_v20, %v384_v20  ;;  %v8002_v50 = vadd.f32 %v7854_v19, %v326_v43  ;;  %v468_v33 = vsel %vm7829_vm4, 0, %v467_v35  ;;  %v1081_v51 = vld [vmem:[#allocation2 + $0x6c] sm:$0xf] }
  0x3d   : > { %v653_v52 = vor.u32 %v651_v39, %v650_v44  ;;  %v654_v53 = vrot.slane %v650_v44, 4  ;;  %v658_v55 = vrot.slane %v656_v45, 7  ;;  %v8007_v56 = vadd.f32 %v7854_v19, %v327_v42  ;;  %469 = vst [vmem:[#allocation2 + $0x78] sm:$0x1] %v468_v33 }
  0x3e   : > { %7252 = vmatpush3.bf16.msra.mxu0 %v7621_v23  ;;  %v1347_v38 = vshrl.u32 %v1081_v51, 16  ;;  %v1350_v57 = vshll.u32 %v1081_v51, 16  ;;  %v665_v58 = vshrl.u32 %v6703_v48, 16  ;;  %v668_v59 = vshll.u32 %v6703_v48, 16  ;;  %v969_v23 = vld [vmem:[#allocation2 + $0x2c] sm:$0x1] }
  0x3f   : > { %7253 = vmatprep.subr.bf16.mxu0 %v7623_v29  ;;  %v661_v62 = vor.u32 %v659_v47, %v658_v55  ;;  %v663_v63 = vrot.slane %v658_v55, 4  ;;  %v959_v1 = vsel %vm7836_vm5, %v653_v52, %v958_v46  ;;  %v673_v3 = vshrl.u32 %v6704_v49, 16  ;;  %v7629_v46 = vld [vmem:[%s10614_s3 + $0x90] sm:$0xff]  }
  0x40   : > { %v1082_v4 = vld [vmem:[#allocation2 + $0x70] sm:$0xf]  ;;  %v1120_v5 = vld [vmem:[#allocation2 + $0x74] sm:$0x1]  ;;  %v1349_v7 = vrot.slane %v1347_v38, 4  ;;  %v1352_v8 = vrot.slane %v1350_v57, 5  ;;  %v6805_v9 = vunpack.c.l.bf16 %v8010_v14  ;;  %v6806_v11 = vunpack.c.h.bf16 %v8010_v14 }
  0x41   : > { %960 = vst [vmem:[#allocation2 + $0x18] sm:$0xf] %v959_v1  ;;  %v1356_v12 = vshll.u32 %v1082_v4, 16  ;;  %v1360_v13 = vshrl.u32 %v1082_v4, 16  ;;  %v1366_v15 = vshll.u32 %v1120_v5, 16  ;;  %v662_v16 = vsel %vm7912_vm10, %v654_v53, %v661_v62  ;;  %v7620_v38 = vld [vmem:[%s10614_s3 + $0x30] sm:$0xff]  }
  0x42   : > { %7254 = vmatpush3.bf16.msra.mxu0 %v7623_v29  ;;  %v1353_v27 = vor.u32 %v1352_v8, %v1349_v7  ;;  %961 = vst [vmem:[#allocation2 + $0x1c] sm:$0xf] %v662_v16  ;;  %v963_v30 = vsel %vm7829_vm4, %v663_v63, %v962_v2  ;;  %v667_v31 = vrot.slane %v665_v58, 7  ;;  %v675_v21 = vrot.slane %v673_v3, 7  ;;  %v7631_v4 = vld [vmem:[%s10614_s3 + $0x88] sm:$0xff]  }
  0x43   : > { %7255 = vmatprep.subr.bf16.mxu0 %v7625_v60  ;;  %v1358_v32 = vrot.slane %v1356_v12, 5  ;;  %v1362_v34 = vrot.slane %v1360_v13, 4  ;;  %v1368_v35 = vrot.slane %v1366_v15, 5  ;;  %964 = vst [vmem:[#allocation2 + $0x20] sm:$0x1] %v963_v30  ;;  %v676_v36 = vshll.u32 %v6704_v49, 16 }
  0x44   : > { %v1354_v22 = vrot.slane %v1353_v27, 4  ;;  %v670_v28 = vor.u32 %v668_v59, %v667_v31  ;;  %v671_v39 = vrot.slane %v667_v31, 4  ;;  %v680_v40 = vrot.slane %v675_v21, 4  ;;  %v8054_v15 = vld [vmem:[%s10614_s3 + $0x28] sm:$0xff]   ;;  %v1014_v27 = vld [vmem:[#allocation2 + $0x78] sm:$0xf] }
  0x45   : > { %v1363_v41 = vor.u32 %v1362_v34, %v1358_v32  ;;  %v678_v20 = vor.u32 %v676_v36, %v675_v21  ;;  %v397_v43 = vmax.f32 %v8002_v50, 0.0  ;;  %v398_v29 = vmax.f32 %v8007_v56, 0.0  ;;  %v7633_v30 = vld [vmem:[%s10614_s3 + $0x80] sm:$0xff]  }
  0x46   : > { %7256 = vmatpush3.bf16.msra.mxu0 %v7625_v60  ;;  %v1359_v44 = vsel %vm7899_vm9, %v1354_v22, %v1358_v32  ;;  %v966_v45 = vsel %vm7836_vm5, %v670_v28, %v965_v17  ;;  %v970_v47 = vsel %vm7829_vm4, %v680_v40, %v969_v23  ;;  %v525_v42 = vsel %vm7836_vm5, 0, %v524_v24 }
  0x47   : > { %7257 = vmatprep.subr.bf16.mxu0 %v7627_v25  ;;  %v1364_v48 = vrot.slane %v1363_v41, 4  ;;  %v679_v50 = vsel %vm7912_vm10, %v671_v39, %v678_v20  ;;  %967 = vst [vmem:[#allocation2 + $0x24] sm:$0xf] %v966_v45  ;;  %971 = vst [vmem:[#allocation2 + $0x2c] sm:$0x1] %v970_v47  ;;  %v6717_v33 = vpack.c.bf16 %v397_v43, %v397_v43 }
  0x48   : > { %v1067_v49 = vld [vmem:[#allocation2 + $0x18] sm:$0xf]  ;;  %526 = vst [vmem:[#allocation2 + $0x80] sm:$0xf] %v525_v42  ;;  %v6718_v51 = vpack.c.bf16 %v398_v29, %v398_v29  ;;  %968 = vst [vmem:[#allocation2 + $0x28] sm:$0xf] %v679_v50  ;;  %v328_v55 = vmul.f32 %v6805_v9, %v7849_v18  ;;  %v329_v56 = vmul.f32 %v6806_v11, %v7849_v18 }
  0x49   : > { %v1179_v52 = vshrl.u32 %v1067_v49, 16  ;;  %v1182_v53 = vshll.u32 %v1067_v49, 16  ;;  %v1369_v14 = vsel %vm7899_vm9, %v1364_v48, %v1368_v35  ;;  %v1068_v57 = vld [vmem:[#allocation2 + $0x1c] sm:$0xf]  ;;  %v784_v58 = vshrl.u32 %v6717_v33, 16  ;;  %v7624_v42 = vld [vmem:[%s10614_s3 + $0x20] sm:$0xff]  }
  0x4a   : > { %v787_v59 = vshll.u32 %v6717_v33, 16  ;;  %v792_v60 = vshrl.u32 %v6718_v51, 16  ;;  %7258 = vmatpush3.bf16.msra.mxu0 %v7627_v25  ;;  %v6296_v62 = vcombine.low %v1359_v44, %v1369_v14  ;;  %v1113_v63 = vld [vmem:[#allocation2 + $0x20] sm:$0x1]  ;;  %v1188_v3 = vshll.u32 %v1068_v57, 16 }
  0x4b   : > { %v1181_v1 = vrot.slane %v1179_v52, 4  ;;  %v1184_v2 = vrot.slane %v1182_v53, 5  ;;  %7259 = vmatprep.subr.bf16.mxu0 %v7629_v46  ;;  %v1192_v5 = vshrl.u32 %v1068_v57, 16  ;;  %v1198_v7 = vshll.u32 %v1113_v63, 16  ;;  %v470_v41 = vld [vmem:[#allocation2 + $0x84] sm:$0x1] }
  0x4c   : > { %v786_v8 = vrot.slane %v784_v58, 7  ;;  %v794_v9 = vrot.slane %v792_v60, 7  ;;  %7186 = vmatmul.mubr.bf16.vlgmr.msra.gmra.mxu1 %v6296_v62  ;;  %v1190_v12 = vrot.slane %v1188_v3, 5  ;;  %v795_v13 = vshll.u32 %v6718_v51, 16  ;;  %v527_v20 = vld [vmem:[#allocation2 + $0x8c] sm:$0xf] }
  0x4d   : > { %v1185_v11 = vor.u32 %v1184_v2, %v1181_v1  ;;  %v367_v16 = vadd.f32 %v7854_v19, %v328_v55  ;;  %7202 = vmatpush3.bf16.msra.mxu1 %v7924_v37  ;;  %v1194_v17 = vrot.slane %v1192_v5, 4  ;;  %v1200_v23 = vrot.slane %v1198_v7, 5  ;;  %v449_v33 = vld [vmem:[#allocation2 + $0x30] sm:$0x1]  ;;  %v506_v14 = vld [vmem:[#allocation2 + $0x38] sm:$0xf] }
  0x4e   : > { %v789_v24 = vor.u32 %v787_v59, %v786_v8  ;;  %v790_v25 = vrot.slane %v786_v8, 4  ;;  %7260 = vmatpush3.bf16.msra.mxu0 %v7629_v46  ;;  %7203 = vmatprep.subr.bf16.mxu1 %v7620_v38  ;;  %v1069_v21 = vld [vmem:[#allocation2 + $0x24] sm:$0xf]  ;;  %v1114_v32 = vld [vmem:[#allocation2 + $0x2c] sm:$0x1]  ;;  %v797_v34 = vor.u32 %v795_v13, %v794_v9  ;;  %v799_v35 = vrot.slane %v794_v9, 4 }
  0x4f   : > { %v1186_v31 = vrot.slane %v1185_v11, 4  ;;  %v368_v36 = vadd.f32 %v7854_v19, %v329_v56  ;;  %7261 = vmatprep.subr.bf16.mxu0 %v7631_v4  ;;  %v1195_v37 = vor.u32 %v1194_v17, %v1190_v12  ;;  %v1070_v22 = vld [vmem:[#allocation2 + $0x28] sm:$0xf]  ;;  %v1203_v28 = vshrl.u32 %v1069_v21, 16  ;;  %v1018_v47 = vld [vmem:[#allocation2 + $0x80] sm:$0x1] }
  0x50   : > { %v1206_v39 = vshll.u32 %v1069_v21, 16  ;;  %v1222_v40 = vshll.u32 %v1114_v32, 16  ;;  %v1212_v29 = vshll.u32 %v1070_v22, 16  ;;  %v1216_v44 = vshrl.u32 %v1070_v22, 16  ;;  %v6909_v56 = vld [vmem:[%s7826_s6 + $0x18] sm:$0xff]  }
  0x51   : > { %v1191_v43 = vsel %vm7899_vm9, %v1186_v31, %v1190_v12  ;;  %v798_v45 = vsel %vm7912_vm10, %v790_v25, %v797_v34  ;;  %7204 = vmatpush3.bf16.msra.mxu1 %v7620_v38  ;;  %v1196_v46 = vrot.slane %v1195_v37, 4  ;;  %v1205_v48 = vrot.slane %v1203_v28, 4  ;;  %v7637_v38 = vld [vmem:[%s10614_s3 + $0x138] sm:$0xff]   ;;  %v8664_v10 = vld [vmem:[#allocation2 + $0x28] sm:$0xf] }
  0x52   : > { %v1208_v49 = vrot.slane %v1206_v39, 5  ;;  %v1224_v50 = vrot.slane %v1222_v40, 5  ;;  %1017 = vst [vmem:[#allocation2 + $0x7c] sm:$0xf] %v798_v45  ;;  %7262 = vmatpush3.bf16.msra.mxu0 %v7631_v4  ;;  %v1214_v51 = vrot.slane %v1212_v29, 5  ;;  %v1218_v52 = vrot.slane %v1216_v44, 4  ;;  %7205 = vmatprep.subr.bf16.mxu1 %v8054_v15 }
  0x53   : > { %v1015_v53 = vsel %vm7836_vm5, %v789_v24, %v1014_v27  ;;  %v1019_v55 = vsel %vm7829_vm4, %v799_v35, %v1018_v47  ;;  %7263 = vmatprep.subr.bf16.mxu0 %v7633_v30  ;;  %v1201_v57 = vsel %vm7899_vm9, %v1196_v46, %v1200_v23  ;;  %v399_v59 = vmax.f32 %v367_v16, 0.0  ;;  %v7626_v13 = vld [vmem:[%s10614_s3 + $0x18] sm:$0xff]   ;;  %v8095_v24 = vld [vmem:[%s7826_s6 + $0x20] sm:$0xff]  }
  0x54   : > { %v1209_v58 = vor.u32 %v1208_v49, %v1205_v48  ;;  %1016 = vst [vmem:[#allocation2 + $0x78] sm:$0xf] %v1015_v53  ;;  %1020 = vst [vmem:[#allocation2 + $0x80] sm:$0x1] %v1019_v55  ;;  %v400_v60 = vmax.f32 %v368_v36, 0.0  ;;  %v6289_v62 = vcombine.low %v1191_v43, %v1201_v57  ;;  %v1219_v63 = vor.u32 %v1218_v52, %v1214_v51  ;;  %v8112_v57 = vld [vmem:[%s7826_s6 + $0x58] sm:$0xff]  }
  0x55   : > { %v471_v1 = vsel %vm7829_vm4, 0, %v470_v41  ;;  %v528_v2 = vsel %vm7836_vm5, 0, %v527_v20  ;;  %v6719_v4 = vpack.c.bf16 %v399_v59, %v399_v59  ;;  %7206 = vmatpush3.bf16.msra.mxu1 %v8054_v15  ;;  %v6777_v7 = vunpack.c.l.bf16 %v6909_v56  ;;  %v7628_v20 = vld [vmem:[%s10614_s3 + $0x10] sm:$0xff]   ;;  %v452_v45 = vld [vmem:[#allocation2 + $0x3c] sm:$0x1] }
  0x56   : > { %v1210_v3 = vrot.slane %v1209_v58, 4  ;;  %472 = vst [vmem:[#allocation2 + $0x84] sm:$0x1] %v471_v1  ;;  %529 = vst [vmem:[#allocation2 + $0x8c] sm:$0xf] %v528_v2  ;;  %v6720_v5 = vpack.c.bf16 %v400_v60, %v400_v60  ;;  %7264 = vmatpush3.bf16.msra.mxu0 %v7633_v30  ;;  %7173 = vmatprep.mubr.bf16.mxu0 %v6289_v62  ;;  %v1220_v8 = vrot.slane %v1219_v63, 4  ;;  %v6778_v9 = vunpack.c.h.bf16 %v6909_v56 }
  0x57   : > { %7207 = vmatprep.subr.bf16.mxu1 %v7624_v42  ;;  %v450_v11 = vsel %vm7829_vm4, 0, %v449_v33  ;;  %v507_v12 = vsel %vm7836_vm5, 0, %v506_v14  ;;  %v801_v16 = vshrl.u32 %v6719_v4, 16  ;;  %v804_v17 = vshll.u32 %v6719_v4, 16  ;;  %7345 = vmatprep.subr.bf16.mxu0 %v7637_v38  ;;  %v509_v38 = vld [vmem:[#allocation2 + $0x44] sm:$0xf] }
  0x58   : > { %v1215_v15 = vsel %vm7899_vm9, %v1210_v3, %v1214_v51  ;;  %v809_v23 = vshrl.u32 %v6720_v5, 16  ;;  %451 = vst [vmem:[#allocation2 + $0x30] sm:$0x1] %v450_v11  ;;  %508 = vst [vmem:[#allocation2 + $0x38] sm:$0xf] %v507_v12  ;;  %v1225_v25 = vsel %vm7899_vm9, %v1220_v8, %v1224_v50  ;;  %v812_v30 = vshll.u32 %v6720_v5, 16 }
  0x59   : > { %v1084_v27 = vld [vmem:[#allocation2 + $0x7c] sm:$0xf]  ;;  %v314_v31 = vmul.f32 %v6777_v7, %v7849_v18  ;;  %v315_v21 = vmul.f32 %v6778_v9, %v7849_v18  ;;  %v6290_v32 = vcombine.low %v1215_v15, %v1225_v25  ;;  %v803_v36 = vrot.slane %v801_v16, 7  ;;  %7208 = vmatpush3.bf16.msra.mxu1 %v7624_v42  ;;  %v7630_v58 = vld [vmem:[%s10614_s3 + $0x8] sm:$0xff]   ;;  %v8123_v3 = vld [vmem:[%s10611_s0] ss:$0 sm:$0xff] }
  0x5a   : > { %v1380_v34 = vshll.u32 %v1084_v27, 16  ;;  %v1384_v35 = vshrl.u32 %v1084_v27, 16  ;;  %v811_v28 = vrot.slane %v809_v23, 7  ;;  %v6781_v41 = vunpack.c.l.bf16 %v8095_v24  ;;  %7209 = vmatprep.subr.bf16.mxu1 %v7626_v13  ;;  %v473_v7 = vld [vmem:[#allocation2 + $0x90] sm:$0x1]  ;;  %v7632_v8 = vld [vmem:[%s10614_s3] sm:$0xff]  }
  0x5b   : > { %v1083_v37 = vld [vmem:[#allocation2 + $0x78] sm:$0xf]  ;;  %v1121_v22 = vld [vmem:[#allocation2 + $0x80] sm:$0x1]  ;;  %v353_v39 = vadd.f32 %v7854_v19, %v314_v31  ;;  %v354_v40 = vadd.f32 %v7854_v19, %v315_v21  ;;  %7174 = vmatmul.mubr.bf16.gmra.mxu0 %v6290_v32  ;;  %v806_v42 = vor.u32 %v804_v17, %v803_v36  ;;  %v807_v46 = vrot.slane %v803_v36, 4 }
  0x5c   : > { %v1371_v18 = vshrl.u32 %v1083_v37, 16  ;;  %v1374_v43 = vshll.u32 %v1083_v37, 16  ;;  %v1382_v29 = vrot.slane %v1380_v34, 5  ;;  %v1386_v44 = vrot.slane %v1384_v35, 4  ;;  %v8139_v23 = vld [vmem:[%s10612_s1] ss:$0 sm:$0xff] }
  0x5d   : > { %v1390_v47 = vshll.u32 %v1121_v22, 16  ;;  %v814_v48 = vor.u32 %v812_v30, %v811_v28  ;;  %v1021_v49 = vld [vmem:[#allocation2 + $0x84] sm:$0xf]  ;;  %v1025_v19 = vld [vmem:[#allocation2 + $0x8c] sm:$0x1]  ;;  %v816_v52 = vrot.slane %v811_v28, 4  ;;  %7210 = vmatpush3.bf16.msra.mxu1 %v7626_v13  ;;  %v6782_v2 = vunpack.c.h.bf16 %v8095_v24 }
  0x5e   : > { %v1373_v50 = vrot.slane %v1371_v18, 4  ;;  %v1376_v33 = vrot.slane %v1374_v43, 5  ;;  %v1387_v51 = vor.u32 %v1386_v44, %v1382_v29  ;;  %v1022_v56 = vsel %vm7836_vm5, %v806_v42, %v1021_v49  ;;  %7211 = vmatprep.subr.bf16.mxu1 %v7628_v20  ;;  %v7635_v37 = vld [vmem:[%s10614_s3 + $0xf8] sm:$0xff]  }
  0x5f   : > { %v1392_v53 = vrot.slane %v1390_v47, 5  ;;  %v815_v55 = vsel %vm7912_vm10, %v807_v46, %v814_v48  ;;  %v385_v14 = vmax.f32 %v353_v39, 0.0  ;;  %1023 = vst [vmem:[#allocation2 + $0x84] sm:$0xf] %v1022_v56  ;;  %v1026_v62 = vsel %vm7829_vm4, %v816_v52, %v1025_v19  ;;  %v972_v34 = vld [vmem:[#allocation2 + $0x30] sm:$0xf] }
  0x60   : > { %v1377_v59 = vor.u32 %v1376_v33, %v1373_v50  ;;  %v1388_v60 = vrot.slane %v1387_v51, 4  ;;  %1024 = vst [vmem:[#allocation2 + $0x88] sm:$0xf] %v815_v55  ;;  %v386_v63 = vmax.f32 %v354_v40, 0.0  ;;  %1027 = vst [vmem:[#allocation2 + $0x8c] sm:$0x1] %v1026_v62  ;;  %v316_v4 = vmul.f32 %v8123_v3, %v6781_v41 }
  0x61   : > { %v6705_v1 = vpack.c.bf16 %v385_v14, %v385_v14  ;;  %v453_v5 = vsel %vm7829_vm4, 0, %v452_v45  ;;  %v510_v13 = vsel %vm7836_vm5, 0, %v509_v38  ;;  %7212 = vmatpush3.bf16.msra.mxu1 %v7628_v20  ;;  %v317_v17 = vmul.f32 %v8123_v3, %v6782_v2  ;;  %v976_v28 = vld [vmem:[#allocation2 + $0x38] sm:$0x1]  ;;  %v6918_v2 = vld [vmem:[%s7826_s6 + $0x60] sm:$0xff]  }
  0x62   : > { %v1378_v9 = vrot.slane %v1377_v59, 4  ;;  %v1393_v11 = vsel %vm7899_vm9, %v1388_v60, %v1392_v53  ;;  %v6706_v12 = vpack.c.bf16 %v386_v63, %v386_v63  ;;  %454 = vst [vmem:[#allocation2 + $0x3c] sm:$0x1] %v453_v5  ;;  %v355_v24 = vadd.f32 %v8139_v23, %v316_v4  ;;  %511 = vst [vmem:[#allocation2 + $0x44] sm:$0xf] %v510_v13 }
  0x63   : > { %v682_v15 = vshrl.u32 %v6705_v1, 16  ;;  %v685_v16 = vshll.u32 %v6705_v1, 16  ;;  %7213 = vmatprep.subr.bf16.mxu1 %v7630_v58  ;;  %v6809_v31 = vunpack.c.l.bf16 %v8112_v57  ;;  %v356_v35 = vadd.f32 %v8139_v23, %v317_v17  ;;  %v530_v14 = vld [vmem:[#allocation2 + $0x98] sm:$0xf] }
  0x64   : > { %v1383_v25 = vsel %vm7899_vm9, %v1378_v9, %v1382_v29  ;;  %v690_v27 = vshrl.u32 %v6706_v12, 16  ;;  %v693_v30 = vshll.u32 %v6706_v12, 16  ;;  %v387_v36 = vmax.f32 %v355_v24, 0.0 }
  0x65   : > { %v6297_v21 = vcombine.low %v1383_v25, %v1393_v11  ;;  %v684_v32 = vrot.slane %v682_v15, 7  ;;  %v6810_v39 = vunpack.c.h.bf16 %v8112_v57  ;;  %v330_v40 = vmul.f32 %v8123_v3, %v6809_v31  ;;  %7214 = vmatpush3.bf16.msra.mxu1 %v7630_v58 }
  0x66   : > { %v692_v22 = vrot.slane %v690_v27, 7  ;;  %v474_v41 = vsel %vm7829_vm4, 0, %v473_v7  ;;  %v1085_v20 = vld [vmem:[#allocation2 + $0x84] sm:$0xf]  ;;  %v388_v44 = vmax.f32 %v356_v35, 0.0  ;;  %v6707_v45 = vpack.c.bf16 %v387_v36, %v387_v36  ;;  %7215 = vmatprep.subr.bf16.mxu1 %v7632_v8 }
  0x67   : > { %7189 = vmatprep.mubr.bf16.mxu1 %v6297_v21  ;;  %v1086_v18 = vld [vmem:[#allocation2 + $0x88] sm:$0xf]  ;;  %v687_v43 = vor.u32 %v685_v16, %v684_v32  ;;  %v688_v29 = vrot.slane %v684_v32, 4  ;;  %475 = vst [vmem:[#allocation2 + $0x90] sm:$0x1] %v474_v41  ;;  %v1395_v42 = vshrl.u32 %v1085_v20, 16  ;;  %v369_v9 = vadd.f32 %v8139_v23, %v330_v40 }
  0x68   : > { %v1122_v47 = vld [vmem:[#allocation2 + $0x8c] sm:$0x1]  ;;  %v1398_v46 = vshll.u32 %v1085_v20, 16  ;;  %v1404_v48 = vshll.u32 %v1086_v18, 16  ;;  %v1408_v49 = vshrl.u32 %v1086_v18, 16  ;;  %v695_v50 = vor.u32 %v693_v30, %v692_v22 }
  0x69   : > { %v1414_v19 = vshll.u32 %v1122_v47, 16  ;;  %v697_v33 = vrot.slane %v692_v22, 4  ;;  %v973_v51 = vsel %vm7836_vm5, %v687_v43, %v972_v34  ;;  %v1397_v52 = vrot.slane %v1395_v42, 4  ;;  %7216 = vmatpush3.bf16.msra.mxu1 %v7632_v8  ;;  %v979_v7 = vld [vmem:[#allocation2 + $0x3c] sm:$0xf] }
  0x6a   : > { %v1400_v53 = vrot.slane %v1398_v46, 5  ;;  %v1406_v55 = vrot.slane %v1404_v48, 5  ;;  %v1410_v56 = vrot.slane %v1408_v49, 4  ;;  %974 = vst [vmem:[#allocation2 + $0x30] sm:$0xf] %v973_v51  ;;  %v696_v57 = vsel %vm7912_vm10, %v688_v29, %v695_v50  ;;  %7297 = vmatprep.subr.bf16.mxu1 %v7635_v37 }
  0x6b   : > { %v1416_v38 = vrot.slane %v1414_v19, 5  ;;  %v977_v58 = vsel %vm7829_vm4, %v697_v33, %v976_v28  ;;  %v6708_v59 = vpack.c.bf16 %v388_v44, %v388_v44  ;;  %975 = vst [vmem:[#allocation2 + $0x34] sm:$0xf] %v696_v57  ;;  %v699_v63 = vshrl.u32 %v6707_v45, 16  ;;  %v983_v15 = vld [vmem:[#allocation2 + $0x44] sm:$0x1] }
  0x6c   : > { %v1401_v60 = vor.u32 %v1400_v53, %v1397_v52  ;;  %v1411_v62 = vor.u32 %v1410_v56, %v1406_v55  ;;  %978 = vst [vmem:[#allocation2 + $0x38] sm:$0x1] %v977_v58  ;;  %v702_v1 = vshll.u32 %v6707_v45, 16  ;;  %v331_v8 = vmul.f32 %v8123_v3, %v6810_v39  ;;  %v476_v51 = vld [vmem:[#allocation2 + $0x9c] sm:$0x1] }
  0x6d   : > { %v707_v4 = vshrl.u32 %v6708_v59, 16  ;;  %v710_v5 = vshll.u32 %v6708_v59, 16  ;;  %v701_v13 = vrot.slane %v699_v63, 7  ;;  %v531_v16 = vsel %vm7836_vm5, 0, %v530_v14 }
  0x6e   : > { %v1402_v11 = vrot.slane %v1401_v60, 4  ;;  %v1412_v12 = vrot.slane %v1411_v62, 4  ;;  %v370_v24 = vadd.f32 %v8139_v23, %v331_v8  ;;  %v401_v25 = vmax.f32 %v369_v9, 0.0  ;;  %532 = vst [vmem:[#allocation2 + $0x98] sm:$0xf] %v531_v16 }
  0x6f   : > { %v709_v17 = vrot.slane %v707_v4, 7  ;;  %v6813_v27 = vunpack.c.l.bf16 %v6918_v2  ;;  %v704_v21 = vor.u32 %v702_v1, %v701_v13  ;;  %v705_v32 = vrot.slane %v701_v13, 4  ;;  %v1028_v14 = vld [vmem:[#allocation2 + $0x90] sm:$0xf]  ;;  %v533_v16 = vld [vmem:[#allocation2 + $0xa4] sm:$0xf] }
  0x70   : > { %v1407_v30 = vsel %vm7899_vm9, %v1402_v11, %v1406_v55  ;;  %v1417_v31 = vsel %vm7899_vm9, %v1412_v12, %v1416_v38  ;;  %v402_v22 = vmax.f32 %v370_v24, 0.0  ;;  %v6721_v41 = vpack.c.bf16 %v401_v25, %v401_v25 }
  0x71   : > { %v6298_v34 = vcombine.low %v1407_v30, %v1417_v31  ;;  %v8169_v35 = vld [vmem:[#allocation2 + $0x30] sm:$0xf]  ;;  %v712_v36 = vor.u32 %v710_v5, %v709_v17  ;;  %v714_v37 = vrot.slane %v709_v17, 4  ;;  %v980_v40 = vsel %vm7836_vm5, %v704_v21, %v979_v7 }
  0x72   : > { %v1227_v28 = vshrl.u32 %v8169_v35, 16  ;;  %v1230_v39 = vshll.u32 %v8169_v35, 16  ;;  %v8175_v20 = vld [vmem:[#allocation2 + $0x34] sm:$0xf]  ;;  %981 = vst [vmem:[#allocation2 + $0x3c] sm:$0xf] %v980_v40  ;;  %v6722_v44 = vpack.c.bf16 %v402_v22, %v402_v22  ;;  %v6814_v45 = vunpack.c.h.bf16 %v6918_v2 }
  0x73   : > { %7190 = vmatmul.mubr.bf16.gmra.mxu1 %v6298_v34  ;;  %v8177_v18 = vld [vmem:[#allocation2 + $0x38] sm:$0x1]  ;;  %v713_v43 = vsel %vm7912_vm10, %v705_v32, %v712_v36  ;;  %v984_v29 = vsel %vm7829_vm4, %v714_v37, %v983_v15  ;;  %v1236_v46 = vshll.u32 %v8175_v20, 16  ;;  %v1240_v48 = vshrl.u32 %v8175_v20, 16  ;;  %v6911_v37 = vld [vmem:[%s7826_s6 + $0x28] sm:$0xff]  }
  0x74   : > { %v1229_v47 = vrot.slane %v1227_v28, 4  ;;  %v1232_v42 = vrot.slane %v1230_v39, 5  ;;  %982 = vst [vmem:[#allocation2 + $0x40] sm:$0xf] %v713_v43  ;;  %985 = vst [vmem:[#allocation2 + $0x44] sm:$0x1] %v984_v29  ;;  %v332_v59 = vmul.f32 %v8123_v3, %v6813_v27  ;;  %v333_v63 = vmul.f32 %v8123_v3, %v6814_v45 }
  0x75   : > { %v1246_v49 = vshll.u32 %v8177_v18, 16  ;;  %v818_v19 = vshrl.u32 %v6721_v41, 16  ;;  %v821_v50 = vshll.u32 %v6721_v41, 16  ;;  %v826_v33 = vshrl.u32 %v6722_v44, 16  ;;  %v1032_v12 = vld [vmem:[#allocation2 + $0x98] sm:$0x1] }
  0x76   : > { %v1233_v52 = vor.u32 %v1232_v42, %v1229_v47  ;;  %v1238_v53 = vrot.slane %v1236_v46, 5  ;;  %v1242_v55 = vrot.slane %v1240_v48, 4  ;;  %v829_v56 = vshll.u32 %v6722_v44, 16  ;;  %v455_v41 = vld [vmem:[#allocation2 + $0x48] sm:$0x1] }
  0x77   : > { %v1248_v38 = vrot.slane %v1246_v49, 5  ;;  %v820_v57 = vrot.slane %v818_v19, 7  ;;  %v828_v58 = vrot.slane %v826_v33, 7  ;;  %v477_v1 = vsel %vm7829_vm4, 0, %v476_v51  ;;  %v512_v47 = vld [vmem:[#allocation2 + $0x50] sm:$0xf] }
  0x78   : > { %v1234_v60 = vrot.slane %v1233_v52, 4  ;;  %v1243_v62 = vor.u32 %v1242_v55, %v1238_v53  ;;  %478 = vst [vmem:[#allocation2 + $0x9c] sm:$0x1] %v477_v1  ;;  %v371_v13 = vadd.f32 %v8139_v23, %v332_v59  ;;  %v372_v15 = vadd.f32 %v8139_v23, %v333_v63 }
  0x79   : > { %v823_v2 = vor.u32 %v821_v50, %v820_v57  ;;  %v824_v4 = vrot.slane %v820_v57, 4  ;;  %v831_v5 = vor.u32 %v829_v56, %v828_v58  ;;  %v833_v7 = vrot.slane %v828_v58, 4  ;;  %v8192_v11 = vld [vmem:[#allocation2 + $0x3c] sm:$0xf] }
  0x7a   : > { %v1239_v8 = vsel %vm7899_vm9, %v1234_v60, %v1238_v53  ;;  %v1244_v9 = vrot.slane %v1243_v62, 4  ;;  %v1251_v25 = vshrl.u32 %v8192_v11, 16  ;;  %v1254_v27 = vshll.u32 %v8192_v11, 16 }
  0x7b   : > { %v8196_v17 = vld [vmem:[#allocation2 + $0x40] sm:$0xf]  ;;  %v8198_v24 = vld [vmem:[#allocation2 + $0x44] sm:$0x1]  ;;  %v832_v30 = vsel %vm7912_vm10, %v824_v4, %v831_v5  ;;  %v1029_v31 = vsel %vm7836_vm5, %v823_v2, %v1028_v14  ;;  %v1033_v40 = vsel %vm7829_vm4, %v833_v7, %v1032_v12  ;;  %v403_v45 = vmax.f32 %v371_v13, 0.0 }
  0x7c   : > { %v1249_v21 = vsel %vm7899_vm9, %v1244_v9, %v1248_v38  ;;  %v1260_v32 = vshll.u32 %v8196_v17, 16  ;;  %v1264_v34 = vshrl.u32 %v8196_v17, 16  ;;  %v1270_v36 = vshll.u32 %v8198_v24, 16  ;;  %1030 = vst [vmem:[#allocation2 + $0x90] sm:$0xf] %v1029_v31 }
  0x7d   : > { %1031 = vst [vmem:[#allocation2 + $0x94] sm:$0xf] %v832_v30  ;;  %v6291_v22 = vcombine.low %v1239_v8, %v1249_v21  ;;  %v1253_v28 = vrot.slane %v1251_v25, 4  ;;  %v1256_v39 = vrot.slane %v1254_v27, 5  ;;  %1034 = vst [vmem:[#allocation2 + $0x98] sm:$0x1] %v1033_v40  ;;  %v6785_v49 = vunpack.c.l.bf16 %v6911_v37 }
  0x7e   : > { %v1262_v43 = vrot.slane %v1260_v32, 5  ;;  %v1266_v29 = vrot.slane %v1264_v34, 4  ;;  %v1272_v44 = vrot.slane %v1270_v36, 5  ;;  %v404_v46 = vmax.f32 %v372_v15, 0.0 }
  0x7f   : > { %7177 = vmatprep.mubr.bf16.mxu0 %v6291_v22  ;;  %v1257_v42 = vor.u32 %v1256_v39, %v1253_v28  ;;  %v534_v48 = vsel %vm7836_vm5, 0, %v533_v16  ;;  %v6723_v50 = vpack.c.bf16 %v403_v45, %v403_v45  ;;  %v6786_v33 = vunpack.c.h.bf16 %v6911_v37  ;;  %v1035_v21 = vld [vmem:[#allocation2 + $0x9c] sm:$0xf]  ;;  %v6912_v28 = vld [vmem:[%s7826_s6 + $0x30] sm:$0xff]  }
  0x80   : > { %v1267_v19 = vor.u32 %v1266_v29, %v1262_v43  ;;  %535 = vst [vmem:[#allocation2 + $0xa4] sm:$0xf] %v534_v48  ;;  %v456_v51 = vsel %vm7829_vm4, 0, %v455_v41  ;;  %v6724_v53 = vpack.c.bf16 %v404_v46, %v404_v46  ;;  %v318_v55 = vmul.f32 %v8123_v3, %v6785_v49  ;;  %v458_v29 = vld [vmem:[#allocation2 + $0x54] sm:$0x1] }
  0x81   : > { %v1258_v52 = vrot.slane %v1257_v42, 4  ;;  %457 = vst [vmem:[#allocation2 + $0x48] sm:$0x1] %v456_v51  ;;  %v513_v56 = vsel %vm7836_vm5, 0, %v512_v47  ;;  %v835_v38 = vshrl.u32 %v6723_v50, 16  ;;  %v838_v57 = vshll.u32 %v6723_v50, 16 }
  0x82   : > { %v1268_v14 = vrot.slane %v1267_v19, 4  ;;  %v319_v58 = vmul.f32 %v8123_v3, %v6786_v33  ;;  %514 = vst [vmem:[#allocation2 + $0x50] sm:$0xf] %v513_v56  ;;  %v843_v63 = vshrl.u32 %v6724_v53, 16  ;;  %v846_v1 = vshll.u32 %v6724_v53, 16 }
  0x83   : > { %v1263_v59 = vsel %vm7899_vm9, %v1258_v52, %v1262_v43  ;;  %v8224_v60 = vld [vmem:[#allocation2 + $0x90] sm:$0xf]  ;;  %v357_v2 = vadd.f32 %v8139_v23, %v318_v55  ;;  %v837_v15 = vrot.slane %v835_v38, 7  ;;  %v515_v46 = vld [vmem:[#allocation2 + $0x5c] sm:$0xf]  ;;  %v6789_v50 = vunpack.c.l.bf16 %v6912_v28 }
  0x84   : > { %v8226_v62 = vld [vmem:[#allocation2 + $0x94] sm:$0xf]  ;;  %v1273_v4 = vsel %vm7899_vm9, %v1268_v14, %v1272_v44  ;;  %v1419_v5 = vshrl.u32 %v8224_v60, 16  ;;  %v1422_v7 = vshll.u32 %v8224_v60, 16  ;;  %v8234_v12 = vld [vmem:[#allocation2 + $0x98] sm:$0x1]  ;;  %v358_v43 = vadd.f32 %v8139_v23, %v319_v58 }
  0x85   : > { %v1428_v8 = vshll.u32 %v8226_v62, 16  ;;  %v6292_v9 = vcombine.low %v1263_v59, %v1273_v4  ;;  %v1432_v13 = vshrl.u32 %v8226_v62, 16  ;;  %v845_v16 = vrot.slane %v843_v63, 7  ;;  %v536_v4 = vld [vmem:[#allocation2 + $0xb0] sm:$0xf] }
  0x86   : > { %v1421_v25 = vrot.slane %v1419_v5, 4  ;;  %v1424_v27 = vrot.slane %v1422_v7, 5  ;;  %v1438_v31 = vshll.u32 %v8234_v12, 16  ;;  %v840_v34 = vor.u32 %v838_v57, %v837_v15  ;;  %v6919_v57 = vld [vmem:[%s7826_s6 + $0x68] sm:$0xff]  }
  0x87   : > { %v1430_v30 = vrot.slane %v1428_v8, 5  ;;  %7178 = vmatmul.mubr.bf16.gmra.mxu0 %v6292_v9  ;;  %v1434_v32 = vrot.slane %v1432_v13, 4  ;;  %v841_v36 = vrot.slane %v837_v15, 4  ;;  %v848_v37 = vor.u32 %v846_v1, %v845_v16  ;;  %v1039_v22 = vld [vmem:[#allocation2 + $0xa4] sm:$0x1] }
  0x88   : > { %v1425_v39 = vor.u32 %v1424_v27, %v1421_v25  ;;  %v1440_v40 = vrot.slane %v1438_v31, 5  ;;  %v850_v41 = vrot.slane %v845_v16, 4  ;;  %v1036_v47 = vsel %vm7836_vm5, %v840_v34, %v1035_v21  ;;  %v986_v15 = vld [vmem:[#allocation2 + $0x48] sm:$0xf] }
  0x89   : > { %v1435_v44 = vor.u32 %v1434_v32, %v1430_v30  ;;  %v849_v45 = vsel %vm7912_vm10, %v841_v36, %v848_v37  ;;  %v389_v42 = vmax.f32 %v357_v2, 0.0  ;;  %1037 = vst [vmem:[#allocation2 + $0x9c] sm:$0xf] %v1036_v47  ;;  %v390_v19 = vmax.f32 %v358_v43, 0.0  ;;  %v479_v2 = vld [vmem:[#allocation2 + $0xa8] sm:$0x1] }
  0x8a   : > { %v1426_v48 = vrot.slane %v1425_v39, 4  ;;  %1038 = vst [vmem:[#allocation2 + $0xa0] sm:$0xf] %v849_v45  ;;  %v1040_v49 = vsel %vm7829_vm4, %v850_v41, %v1039_v22  ;;  %v6790_v52 = vunpack.c.h.bf16 %v6912_v28  ;;  %v459_v53 = vsel %vm7829_vm4, 0, %v458_v29  ;;  %v990_v31 = vld [vmem:[#allocation2 + $0x50] sm:$0x1] }
  0x8b   : > { %v1436_v33 = vrot.slane %v1435_v44, 4  ;;  %1041 = vst [vmem:[#allocation2 + $0xa4] sm:$0x1] %v1040_v49  ;;  %v6709_v51 = vpack.c.bf16 %v389_v42, %v389_v42  ;;  %v6710_v56 = vpack.c.bf16 %v390_v19, %v390_v19  ;;  %v320_v14 = vmul.f32 %v8123_v3, %v6789_v50  ;;  %460 = vst [vmem:[#allocation2 + $0x54] sm:$0x1] %v459_v53 }
  0x8c   : > { %v1431_v55 = vsel %vm7899_vm9, %v1426_v48, %v1430_v30  ;;  %v516_v38 = vsel %vm7836_vm5, 0, %v515_v46  ;;  %v321_v1 = vmul.f32 %v8123_v3, %v6790_v52  ;;  %v6817_v25 = vunpack.c.l.bf16 %v6919_v57 }
  0x8d   : > { %v1441_v58 = vsel %vm7899_vm9, %v1436_v33, %v1440_v40  ;;  %v716_v59 = vshrl.u32 %v6709_v51, 16  ;;  %v719_v63 = vshll.u32 %v6709_v51, 16  ;;  %517 = vst [vmem:[#allocation2 + $0x5c] sm:$0xf] %v516_v38  ;;  %v724_v7 = vshrl.u32 %v6710_v56, 16  ;;  %v6920_v51 = vld [vmem:[%s7826_s6 + $0x70] sm:$0xff]  }
  0x8e   : > { %v6299_v5 = vcombine.low %v1431_v55, %v1441_v58  ;;  %v727_v8 = vshll.u32 %v6710_v56, 16  ;;  %v359_v9 = vadd.f32 %v8139_v23, %v320_v14  ;;  %v360_v16 = vadd.f32 %v8139_v23, %v321_v1 }
  0x8f   : > { %v718_v13 = vrot.slane %v716_v59, 7  ;;  %v6818_v27 = vunpack.c.h.bf16 %v6919_v57  ;;  %v726_v30 = vrot.slane %v724_v7, 7  ;;  %v480_v32 = vsel %vm7829_vm4, 0, %v479_v2 }
  0x90   : > { %7193 = vmatprep.mubr.bf16.mxu1 %v6299_v5  ;;  %v391_v21 = vmax.f32 %v359_v9, 0.0  ;;  %v537_v34 = vsel %vm7836_vm5, 0, %v536_v4  ;;  %v8263_v36 = vld [vmem:[#allocation2 + $0x9c] sm:$0xf]  ;;  %v392_v39 = vmax.f32 %v360_v16, 0.0  ;;  %v334_v40 = vmul.f32 %v8123_v3, %v6817_v25 }
  0x91   : > { %v8265_v37 = vld [vmem:[#allocation2 + $0xa0] sm:$0xf]  ;;  %v721_v22 = vor.u32 %v719_v63, %v718_v13  ;;  %v722_v28 = vrot.slane %v718_v13, 4  ;;  %481 = vst [vmem:[#allocation2 + $0xa8] sm:$0x1] %v480_v32  ;;  %v1443_v43 = vshrl.u32 %v8263_v36, 16  ;;  %v729_v42 = vor.u32 %v727_v8, %v726_v30 }
  0x92   : > { %538 = vst [vmem:[#allocation2 + $0xb0] sm:$0xf] %v537_v34  ;;  %v8268_v41 = vld [vmem:[#allocation2 + $0xa4] sm:$0x1]  ;;  %v1446_v29 = vshll.u32 %v8263_v36, 16  ;;  %v1452_v44 = vshll.u32 %v8265_v37, 16  ;;  %v6711_v56 = vpack.c.bf16 %v391_v21, %v391_v21  ;;  %v6712_v57 = vpack.c.bf16 %v392_v39, %v392_v39 }
  0x93   : > { %v1456_v45 = vshrl.u32 %v8265_v37, 16  ;;  %v1462_v47 = vshll.u32 %v8268_v41, 16  ;;  %v731_v46 = vrot.slane %v726_v30, 4  ;;  %v987_v48 = vsel %vm7836_vm5, %v721_v22, %v986_v15 }
  0x94   : > { %v1445_v49 = vrot.slane %v1443_v43, 4  ;;  %v1448_v19 = vrot.slane %v1446_v29, 5  ;;  %v1454_v50 = vrot.slane %v1452_v44, 5  ;;  %988 = vst [vmem:[#allocation2 + $0x48] sm:$0xf] %v987_v48  ;;  %v730_v53 = vsel %vm7912_vm10, %v722_v28, %v729_v42 }
  0x95   : > { %v1458_v33 = vrot.slane %v1456_v45, 4  ;;  %v1464_v52 = vrot.slane %v1462_v47, 5  ;;  %v991_v55 = vsel %vm7829_vm4, %v731_v46, %v990_v31  ;;  %989 = vst [vmem:[#allocation2 + $0x4c] sm:$0xf] %v730_v53  ;;  %v335_v58 = vmul.f32 %v8123_v3, %v6818_v27  ;;  %v993_v31 = vld [vmem:[#allocation2 + $0x54] sm:$0xf] }
  0x96   : > { %v1449_v14 = vor.u32 %v1448_v19, %v1445_v49  ;;  %992 = vst [vmem:[#allocation2 + $0x50] sm:$0x1] %v991_v55  ;;  %v733_v59 = vshrl.u32 %v6711_v56, 16  ;;  %v736_v63 = vshll.u32 %v6711_v56, 16  ;;  %v373_v1 = vadd.f32 %v8139_v23, %v334_v40  ;;  %v997_v45 = vld [vmem:[#allocation2 + $0x5c] sm:$0x1] }
  0x97   : > { %v1459_v38 = vor.u32 %v1458_v33, %v1454_v50  ;;  %v6821_v2 = vunpack.c.l.bf16 %v6920_v51  ;;  %v741_v7 = vshrl.u32 %v6712_v57, 16  ;;  %v744_v8 = vshll.u32 %v6712_v57, 16  ;;  %v482_v53 = vld [vmem:[#allocation2 + $0xb4] sm:$0x1] }
  0x98   : > { %v1450_v4 = vrot.slane %v1449_v14, 4  ;;  %v735_v9 = vrot.slane %v733_v59, 7  ;;  %v374_v13 = vadd.f32 %v8139_v23, %v335_v58  ;;  %v405_v15 = vmax.f32 %v373_v1, 0.0 }
  0x99   : > { %v1460_v5 = vrot.slane %v1459_v38, 4  ;;  %v6822_v16 = vunpack.c.h.bf16 %v6920_v51  ;;  %v743_v30 = vrot.slane %v741_v7, 7  ;;  %v336_v21 = vmul.f32 %v8123_v3, %v6821_v2  ;;  %v1042_v7 = vld [vmem:[#allocation2 + $0xa8] sm:$0xf] }
  0x9a   : > { %v1455_v25 = vsel %vm7899_vm9, %v1450_v4, %v1454_v50  ;;  %v738_v22 = vor.u32 %v736_v63, %v735_v9  ;;  %v739_v28 = vrot.slane %v735_v9, 4  ;;  %v406_v39 = vmax.f32 %v374_v13, 0.0  ;;  %v539_v63 = vld [vmem:[#allocation2 + $0xbc] sm:$0xf]  ;;  %v1046_v13 = vld [vmem:[#allocation2 + $0xb0] sm:$0x1] }
  0x9b   : > { %v1465_v27 = vsel %vm7899_vm9, %v1460_v5, %v1464_v52  ;;  %v8290_v34 = vld [vmem:[#allocation2 + $0x48] sm:$0xf]  ;;  %v746_v29 = vor.u32 %v744_v8, %v743_v30  ;;  %v748_v44 = vrot.slane %v743_v30, 4  ;;  %v6725_v48 = vpack.c.bf16 %v405_v15, %v405_v15 }
  0x9c   : > { %v6300_v32 = vcombine.low %v1455_v25, %v1465_v27  ;;  %v1275_v40 = vshrl.u32 %v8290_v34, 16  ;;  %v1278_v43 = vshll.u32 %v8290_v34, 16  ;;  %v8294_v47 = vld [vmem:[#allocation2 + $0x4c] sm:$0xf]  ;;  %v994_v46 = vsel %vm7836_vm5, %v738_v22, %v993_v31 }
  0x9d   : > { %v8296_v42 = vld [vmem:[#allocation2 + $0x50] sm:$0x1]  ;;  %v6726_v49 = vpack.c.bf16 %v406_v39, %v406_v39  ;;  %v337_v19 = vmul.f32 %v8123_v3, %v6822_v16  ;;  %v1284_v51 = vshll.u32 %v8294_v47, 16  ;;  %v1288_v52 = vshrl.u32 %v8294_v47, 16  ;;  %995 = vst [vmem:[#allocation2 + $0x54] sm:$0xf] %v994_v46 }
  0x9e   : > { %7194 = vmatmul.mubr.bf16.gmra.mxu1 %v6300_v32  ;;  %v1277_v50 = vrot.slane %v1275_v40, 4  ;;  %v1280_v33 = vrot.slane %v1278_v43, 5  ;;  %v1294_v55 = vshll.u32 %v8296_v42, 16  ;;  %v747_v56 = vsel %vm7912_vm10, %v739_v28, %v746_v29 }
  0x9f   : > { %v998_v14 = vsel %vm7829_vm4, %v748_v44, %v997_v45  ;;  %v852_v38 = vshrl.u32 %v6725_v48, 16  ;;  %v1286_v58 = vrot.slane %v1284_v51, 5  ;;  %v1290_v3 = vrot.slane %v1288_v52, 4  ;;  %996 = vst [vmem:[#allocation2 + $0x58] sm:$0xf] %v747_v56 }
  0xa0   : > { %v1281_v57 = vor.u32 %v1280_v33, %v1277_v50  ;;  %999 = vst [vmem:[#allocation2 + $0x5c] sm:$0x1] %v998_v14  ;;  %v855_v59 = vshll.u32 %v6725_v48, 16  ;;  %v1296_v1 = vrot.slane %v1294_v55, 5  ;;  %v860_v4 = vshrl.u32 %v6726_v49, 16 }
  0xa1   : > { %v854_v2 = vrot.slane %v852_v38, 7  ;;  %v863_v5 = vshll.u32 %v6726_v49, 16  ;;  %v1291_v9 = vor.u32 %v1290_v3, %v1286_v58  ;;  %v375_v15 = vadd.f32 %v8139_v23, %v336_v21  ;;  %v2109_v38 = vld [vmem:[#allocation2] sm:$0xe] }
  0xa2   : > { %v1282_v8 = vrot.slane %v1281_v57, 4  ;;  %v376_v16 = vadd.f32 %v8139_v23, %v337_v19  ;;  %v862_v30 = vrot.slane %v860_v4, 7  ;;  %v483_v31 = vsel %vm7829_vm4, 0, %v482_v53 }
  0xa3   : > { %v857_v25 = vor.u32 %v855_v59, %v854_v2  ;;  %v858_v27 = vrot.slane %v854_v2, 4  ;;  %v1292_v22 = vrot.slane %v1291_v9, 4  ;;  %v407_v28 = vmax.f32 %v375_v15, 0.0  ;;  %484 = vst [vmem:[#allocation2 + $0xb4] sm:$0x1] %v483_v31 }
  0xa4   : > { %v1287_v32 = vsel %vm7899_vm9, %v1282_v8, %v1286_v58  ;;  %v408_v39 = vmax.f32 %v376_v16, 0.0  ;;  %v8314_v40 = vld [vmem:[#allocation2 + $0x54] sm:$0xf]  ;;  %v865_v43 = vor.u32 %v863_v5, %v862_v30  ;;  %v867_v29 = vrot.slane %v862_v30, 4 }
  0xa5   : > { %v1043_v23 = vsel %vm7836_vm5, %v857_v25, %v1042_v7  ;;  %v540_v21 = vsel %vm7836_vm5, 0, %v539_v63  ;;  %v1297_v44 = vsel %vm7899_vm9, %v1292_v22, %v1296_v1  ;;  %v1299_v45 = vshrl.u32 %v8314_v40, 16 }
  0xa6   : > { %v1302_v46 = vshll.u32 %v8314_v40, 16  ;;  %1044 = vst [vmem:[#allocation2 + $0xa8] sm:$0xf] %v1043_v23  ;;  %541 = vst [vmem:[#allocation2 + $0xbc] sm:$0xf] %v540_v21  ;;  %v6727_v48 = vpack.c.bf16 %v407_v28, %v407_v28  ;;  %v6293_v49 = vcombine.low %v1287_v32, %v1297_v44  ;;  %v866_v33 = vsel %vm7912_vm10, %v858_v27, %v865_v43 }
  0xa7   : > { %v8324_v19 = vld [vmem:[#allocation2 + $0x58] sm:$0xf]  ;;  %v8326_v50 = vld [vmem:[#allocation2 + $0x5c] sm:$0x1]  ;;  %v1047_v51 = vsel %vm7829_vm4, %v867_v29, %v1046_v13  ;;  %v6728_v52 = vpack.c.bf16 %v408_v39, %v408_v39  ;;  %v1301_v53 = vrot.slane %v1299_v45, 4  ;;  %v6335_v16 = vrot.slane %v2109_v38, 9 }
  0xa8   : > { %v1304_v55 = vrot.slane %v1302_v46, 5  ;;  %v1308_v56 = vshll.u32 %v8324_v19, 16  ;;  %v1312_v14 = vshrl.u32 %v8324_v19, 16  ;;  %1045 = vst [vmem:[#allocation2 + $0xac] sm:$0xf] %v866_v33  ;;  %7181 = vmatprep.mubr.bf16.mxu0 %v6293_v49  ;;  %v1318_v57 = vshll.u32 %v8326_v50, 16 }
  0xa9   : > { %1048 = vst [vmem:[#allocation2 + $0xb0] sm:$0x1] %v1047_v51  ;;  %v869_v58 = vshrl.u32 %v6727_v48, 16  ;;  %v872_v3 = vshll.u32 %v6727_v48, 16  ;;  %v877_v59 = vshrl.u32 %v6728_v52, 16  ;;  %v880_v4 = vshll.u32 %v6728_v52, 16 }
  0xaa   : > { %v1305_v63 = vor.u32 %v1304_v55, %v1301_v53  ;;  %v1310_v1 = vrot.slane %v1308_v56, 5  ;;  %v1314_v2 = vrot.slane %v1312_v14, 4  ;;  %v1320_v5 = vrot.slane %v1318_v57, 5  ;;  %v1049_v9 = vld [vmem:[#allocation2 + $0xb4] sm:$0xf] }
  0xab   : > { %v871_v7 = vrot.slane %v869_v58, 7  ;;  %v879_v8 = vrot.slane %v877_v59, 7  ;;  %v8357_v49 = vld [vmem:[#allocation2 + $0x4] sm:$0xf]  ;;  %v2110_v56 = vld [vmem:[#allocation2 + $0xc] sm:$0xe] }
  0xac   : > { %v1306_v13 = vrot.slane %v1305_v63, 4  ;;  %v1315_v15 = vor.u32 %v1314_v2, %v1310_v1  ;;  %v2162_v33 = vrot.slane %v8357_v49, 5  ;;  %v2111_v58 = vld [vmem:[#allocation2 + $0x18] sm:$0xe]  ;;  %v7733_v2 = vld [vmem:[#allocation2 + $0x14] sm:$0x1] }
  0xad   : > { %v8335_v25 = vld [vmem:[#allocation2 + $0xa8] sm:$0xf]  ;;  %v874_v27 = vor.u32 %v872_v3, %v871_v7  ;;  %v875_v30 = vrot.slane %v871_v7, 4  ;;  %v882_v31 = vor.u32 %v880_v4, %v879_v8  ;;  %v884_v32 = vrot.slane %v879_v8, 4  ;;  %v1053_v22 = vld [vmem:[#allocation2 + $0xbc] sm:$0x1] }
  0xae   : > { %v1311_v28 = vsel %vm7899_vm9, %v1306_v13, %v1310_v1  ;;  %v1316_v39 = vrot.slane %v1315_v15, 4  ;;  %v1467_v43 = vshrl.u32 %v8335_v25, 16  ;;  %v1470_v29 = vshll.u32 %v8335_v25, 16  ;;  %v8367_v8 = vld [vmem:[#allocation2 + $0x10] sm:$0xf] }
  0xaf   : > { %v8341_v23 = vld [vmem:[#allocation2 + $0xac] sm:$0xf]  ;;  %v883_v44 = vsel %vm7912_vm10, %v875_v30, %v882_v31  ;;  %v1050_v45 = vsel %vm7836_vm5, %v874_v27, %v1049_v9  ;;  %v1054_v46 = vsel %vm7829_vm4, %v884_v32, %v1053_v22  ;;  %v2163_v63 = vsel %vm8353_vm13, %v6335_v16, %v2162_v33  ;;  %v8370_v13 = vld [vmem:[#allocation2 + $0x68] sm:$0x1]  ;;  %v2112_v31 = vld [vmem:[#allocation2 + $0x24] sm:$0xe] }
  0xb0   : > { %v8343_v21 = vld [vmem:[#allocation2 + $0xb0] sm:$0x1]  ;;  %v1321_v51 = vsel %vm7899_vm9, %v1316_v39, %v1320_v5  ;;  %v1469_v52 = vrot.slane %v1467_v43, 4  ;;  %v1472_v53 = vrot.slane %v1470_v29, 5  ;;  %v1476_v55 = vshll.u32 %v8341_v23, 16 }
  0xb1   : > { %1051 = vst [vmem:[#allocation2 + $0xb4] sm:$0xf] %v1050_v45  ;;  %1052 = vst [vmem:[#allocation2 + $0xb8] sm:$0xf] %v883_v44  ;;  %v6294_v14 = vcombine.low %v1311_v28, %v1321_v51  ;;  %v1480_v38 = vshrl.u32 %v8341_v23, 16  ;;  %v1486_v57 = vshll.u32 %v8343_v21, 16 }
  0xb2   : > { %1055 = vst [vmem:[#allocation2 + $0xbc] sm:$0x1] %v1054_v46  ;;  %v1473_v3 = vor.u32 %v1472_v53, %v1469_v52  ;;  %v1478_v59 = vrot.slane %v1476_v55, 5  ;;  %v2164_v1 = vrot.slane %v2162_v33, 4  ;;  %v2172_v4 = vrot.slane %v7733_v2, 5 }
  0xb3   : > { %7182 = vmatmul.mubr.bf16.gmra.mxu0 %v6294_v14  ;;  %v1482_v5 = vrot.slane %v1480_v38, 4  ;;  %v6336_v7 = vrot.slane %v2110_v56, 9  ;;  %v2169_v9 = vrot.slane %v8367_v8, 5  ;;  %v2221_v15 = vrot.slane %v8370_v13, 5  ;;  %v8377_v43 = vld [vmem:[#allocation2] sm:$0xf] }
  0xb4   : > { %v1474_v27 = vrot.slane %v1473_v3, 4  ;;  %v1488_v30 = vrot.slane %v1486_v57, 5  ;;  %v2166_v16 = vsel %vm8353_vm13, %v2164_v1, %v2165_v61  ;;  %v6337_v39 = vrot.slane %v2111_v58, 9  ;;  %v8383_v45 = vld [vmem:[#allocation2 + $0x1c] sm:$0xf] }
  0xb5   : > { %v1483_v32 = vor.u32 %v1482_v5, %v1478_v59  ;;  %v6367_v22 = vcombine.low %v2163_v63, %v2166_v16  ;;  %v2171_v28 = vrot.slane %v2169_v9, 4  ;;  %v6311_v29 = vcombine.low %v8377_v43, %v8357_v49  ;;  %v7738_v46 = vld [vmem:[#allocation2 + $0x20] sm:$0x1]  ;;  %v2113_v5 = vld [vmem:[#allocation2 + $0x30] sm:$0xe]  ;;  %v7653_v43 = vld [vmem:[%s10614_s3 + $0x118] sm:$0xff]  }
  0xb6   : > { %v2170_v44 = vsel %vm8353_vm13, %v6336_v7, %v2169_v9  ;;  %v2176_v54 = vrot.slane %v8383_v45, 5  ;;  %v2179_v33 = vrot.slane %v7738_v46, 5  ;;  %v1479_v61 = vsel %vm7899_vm9, %v1474_v27, %v1478_v59  ;;  %v7741_v46 = vld [vmem:[#allocation2 + $0x2c] sm:$0x1] }
  0xb7   : > { %v1484_v51 = vrot.slane %v1483_v32, 4  ;;  %7265 = vmatprep.mubr.bf16.mxu0 %v6367_v22  ;;  %v2173_v55 = vsel %vm8353_vm13, %v2171_v28, %v2172_v4  ;;  %v6338_v56 = vrot.slane %v2112_v31, 9  ;;  %v7641_v4 = vld [vmem:[%s10614_s3 + $0x130] sm:$0xff]  }
  0xb8   : > { %v8388_v52 = vld [vmem:[#allocation2 + $0xb4] sm:$0xf]  ;;  %v8390_v53 = vld [vmem:[#allocation2 + $0xb8] sm:$0xf]  ;;  %v6368_v1 = vcombine.low %v2170_v44, %v2173_v55  ;;  %v2177_v2 = vsel %vm8353_vm13, %v6337_v39, %v2176_v54  ;;  %v2178_v22 = vrot.slane %v2176_v54, 4  ;;  %v2190_v55 = vrot.slane %v8175_v20, 5 }
  0xb9   : > { %v8394_v14 = vld [vmem:[#allocation2 + $0xbc] sm:$0x1]  ;;  %v1491_v38 = vshrl.u32 %v8388_v52, 16  ;;  %v1494_v57 = vshll.u32 %v8388_v52, 16  ;;  %v1500_v58 = vshll.u32 %v8390_v53, 16  ;;  %v1504_v3 = vshrl.u32 %v8390_v53, 16 }
  0xba   : > { %v1489_v59 = vsel %vm7899_vm9, %v1484_v51, %v1488_v30  ;;  %v1510_v63 = vshll.u32 %v8394_v14, 16  ;;  %v8408_v30 = vld [vmem:[#allocation2 + $0x28] sm:$0xf]  ;;  %v7740_v39 = vld [vmem:[%s10614_s3 + $0x138] sm:$0xff]   ;;  %v6339_v51 = vrot.slane %v2113_v5, 9  ;;  %v2180_v54 = vsel %vm8353_vm13, %v2178_v22, %v2179_v33 }
  0xbb   : > { %v6301_v7 = vcombine.low %v1479_v61, %v1489_v59  ;;  %v1493_v9 = vrot.slane %v1491_v38, 4  ;;  %v1496_v27 = vrot.slane %v1494_v57, 5  ;;  %v1502_v16 = vrot.slane %v1500_v58, 5  ;;  %7266 = vmatmul.mubr.bf16.vlgmr.msra.gmra.mxu0 %v6368_v1  ;;  %v7645_v59 = vld [vmem:[%s10614_s3 + $0x128] sm:$0xff]  }
  0xbc   : > { %v1506_v31 = vrot.slane %v1504_v3, 4  ;;  %v1512_v32 = vrot.slane %v1510_v63, 5  ;;  %v2183_v28 = vrot.slane %v8408_v30, 5  ;;  %7346 = vmatpush3.bf16.msra.mxu0 %v7740_v39  ;;  %v2186_v61 = vrot.slane %v7741_v46, 5  ;;  %v2114_v3 = vld [vmem:[#allocation2 + $0x3c] sm:$0xe] }
  0xbd   : > { %7197 = vmatprep.mubr.bf16.mxu1 %v6301_v7  ;;  %v1497_v44 = vor.u32 %v1496_v27, %v1493_v9  ;;  %7347 = vmatprep.subr.bf16.mxu0 %v7641_v4  ;;  %v8422_v1 = vld [vmem:[#allocation2 + $0xc] sm:$0xf]  ;;  %v6369_v7 = vcombine.low %v2177_v2, %v2180_v54  ;;  %v2192_v9 = vrot.slane %v2190_v55, 4  ;;  %v2115_v22 = vld [vmem:[#allocation2 + $0x48] sm:$0xe]  ;;  %v6340_v46 = vrot.slane %v2114_v3, 9 }
  0xbe   : > { %v1507_v38 = vor.u32 %v1506_v31, %v1502_v16  ;;  %v2184_v57 = vsel %vm8353_vm13, %v6338_v56, %v2183_v28  ;;  %v2185_v58 = vrot.slane %v2183_v28, 4  ;;  %v6312_v5 = vcombine.low %v8422_v1, %v8367_v8  ;;  %v2116_v28 = vld [vmem:[#allocation2 + $0x54] sm:$0xe]  ;;  %v8443_v54 = vld [vmem:[#allocation2 + $0x24] sm:$0xf] }
  0xbf   : > { %v1498_v63 = vrot.slane %v1497_v44, 4  ;;  %v2191_v56 = vsel %vm8353_vm13, %v6339_v51, %v2190_v55  ;;  %v2193_v31 = vrot.slane %v8177_v18, 5  ;;  %7269 = vmatprep.mubr.bf16.mxu0 %v6369_v7  ;;  %v2197_v2 = vrot.slane %v8196_v17, 5  ;;  %v8545_v8 = vld [vmem:[#allocation2 + $0x78] sm:$0xf] }
  0xc0   : > { %v1508_v27 = vrot.slane %v1507_v38, 4  ;;  %v2187_v33 = vsel %vm8353_vm13, %v2185_v58, %v2186_v61  ;;  %7348 = vmatpush3.bf16.msra.mxu0 %v7641_v4  ;;  %v8436_v61 = vld [vmem:[#allocation2 + $0x18] sm:$0xf]  ;;  %v2200_v55 = vrot.slane %v8198_v24, 5  ;;  %v6314_v4 = vcombine.low %v8443_v54, %v8408_v30 }
  0xc1   : > { %v1503_v44 = vsel %vm7899_vm9, %v1498_v63, %v1502_v16  ;;  %v6370_v39 = vcombine.low %v2184_v57, %v2187_v33  ;;  %v6313_v51 = vcombine.low %v8436_v61, %v8383_v45  ;;  %v2194_v18 = vsel %vm8353_vm13, %v2192_v9, %v2193_v31  ;;  %7349 = vmatprep.subr.bf16.mxu0 %v7645_v59  ;;  %v2117_v9 = vld [vmem:[#allocation2 + $0x60] sm:$0xe]  ;;  %v7643_v45 = vld [vmem:[%s10614_s3 + $0xe8] sm:$0xff]  }
  0xc2   : > { %v1513_v38 = vsel %vm7899_vm9, %v1508_v27, %v1512_v32  ;;  %v6371_v57 = vcombine.low %v2191_v56, %v2194_v18  ;;  %v2199_v58 = vrot.slane %v2197_v2, 4  ;;  %v7649_v32 = vld [vmem:[%s10614_s3 + $0x120] sm:$0xff]   ;;  %v2198_v3 = vsel %vm8353_vm13, %v6340_v46, %v2197_v2 }
  0xc3   : > { %v6302_v16 = vcombine.low %v1503_v44, %v1513_v38  ;;  %7270 = vmatmul.mubr.bf16.gmra.mxu0 %v6370_v39  ;;  %v6341_v63 = vrot.slane %v2115_v22, 9  ;;  %v2204_v24 = vrot.slane %v8294_v47, 5  ;;  %v2207_v7 = vrot.slane %v8296_v42, 5  ;;  %v2118_v44 = vld [vmem:[#allocation2 + $0x6c] sm:$0xe] }
  0xc4   : > { %7273 = vmatprep.mubr.bf16.mxu0 %v6371_v57  ;;  %v2201_v27 = vsel %vm8353_vm13, %v2199_v58, %v2200_v55  ;;  %v6342_v33 = vrot.slane %v2116_v28, 9  ;;  %v2211_v56 = vrot.slane %v8324_v19, 5  ;;  %v2214_v31 = vrot.slane %v8326_v50, 5  ;;  %7350 = vmatpush3.bf16.msra.mxu0 %v7645_v59  ;;  %v8469_v38 = vld [vmem:[#allocation2 + $0x64] sm:$0xf] }
  0xc5   : > { %7198 = vmatmul.mubr.bf16.gmra.mxu1 %v6302_v16  ;;  %v2205_v39 = vsel %vm8353_vm13, %v6341_v63, %v2204_v24  ;;  %v2206_v28 = vrot.slane %v2204_v24, 4  ;;  %7351 = vmatprep.subr.bf16.mxu0 %v7649_v32  ;;  %v6343_v2 = vrot.slane %v2117_v9, 9  ;;  %v2218_v49 = vrot.slane %v8469_v38, 5  ;;  %v8477_v55 = vld [vmem:[#allocation2 + $0x70] sm:$0xf] }
  0xc6   : > { %7217 = vmatprep.mubr.bf16.mxu1 %v6311_v29  ;;  %v2213_v50 = vrot.slane %v2211_v56, 4  ;;  %v6372_v29 = vcombine.low %v2198_v3, %v2201_v27  ;;  %v6344_v18 = vrot.slane %v2118_v44, 9  ;;  %v2225_v16 = vrot.slane %v8477_v55, 5  ;;  %v2119_v57 = vld [vmem:[#allocation2 + $0x78] sm:$0xe]  ;;  %v8485_v63 = vld [vmem:[%s10614_s3 + $0xf0] sm:$0xff]  }
  0xc7   : > { %v2208_v59 = vsel %vm8353_vm13, %v2206_v28, %v2207_v7  ;;  %v8480_v58 = vld [vmem:[#allocation2 + $0x84] sm:$0xe]  ;;  %v8489_v3 = vsel %vm8353_vm13, %v6342_v33, %v2211_v56  ;;  %v2220_v9 = vrot.slane %v2218_v49, 4  ;;  %v8495_v27 = vld [vmem:[#allocation2 + $0x90] sm:$0xe]  ;;  %v8501_v28 = vsel %vm8353_vm13, %v6343_v2, %v2218_v49 }
  0xc8   : > { %v6373_v24 = vcombine.low %v2205_v39, %v2208_v59  ;;  %v8493_v7 = vsel %vm8353_vm13, %v2213_v50, %v2214_v31  ;;  %7352 = vmatpush3.bf16.msra.mxu0 %v7649_v32  ;;  %v2227_v39 = vrot.slane %v2225_v16, 4  ;;  %v7747_v59 = vld [vmem:[#allocation2 + $0x74] sm:$0x1]  ;;  %v8509_v56 = vld [vmem:[#allocation2 + $0x60] sm:$0xf]  ;;  %v6345_v32 = vrot.slane %v2119_v57, 9 }
  0xc9   : > { %v2228_v46 = vrot.slane %v7747_v59, 5  ;;  %v8507_v33 = vsel %vm8353_vm13, %v2220_v9, %v2221_v15  ;;  %7353 = vmatprep.subr.bf16.mxu0 %v7653_v43  ;;  %v8513_v50 = vld [vmem:[#allocation2 + $0x7c] sm:$0xf]  ;;  %v6374_v49 = vcombine.low %v8489_v3, %v8493_v7  ;;  %v8520_v13 = vsel %vm8353_vm13, %v6344_v18, %v2225_v16  ;;  %v7750_v9 = vld [vmem:[#allocation2 + $0x80] sm:$0x1]  ;;  %v7657_v57 = vld [vmem:[%s10614_s3 + $0x110] sm:$0xff]  }
  0xca   : > { %v2232_v2 = vrot.slane %v8513_v50, 5  ;;  %v2235_v59 = vrot.slane %v7750_v9, 5  ;;  %v8534_v18 = vld [vmem:[#allocation2 + $0x6c] sm:$0xf]  ;;  %v6346_v3 = vrot.slane %v8480_v58, 9  ;;  %v2246_v9 = vrot.slane %v8226_v62, 5 }
  0xcb   : > { %7274 = vmatmul.mubr.bf16.gmra.mxu0 %v6372_v29  ;;  %v8524_v15 = vsel %vm8353_vm13, %v2227_v39, %v2228_v46  ;;  %v6375_v29 = vcombine.low %v8501_v28, %v8507_v33  ;;  %v2122_v7 = vld [vmem:[#allocation2 + $0x9c] sm:$0xe]  ;;  %v7755_v58 = vld [vmem:[#allocation2 + $0x8c] sm:$0x1]  ;;  %v6347_v33 = vrot.slane %v8495_v27, 9  ;;  %v10648_v30 = vcombine.low %v8169_v35, %v8175_v20 }
  0xcc   : > { %7277 = vmatprep.mubr.bf16.mxu0 %v6373_v24  ;;  %v2234_v16 = vrot.slane %v2232_v2, 4  ;;  %v7752_v39 = vld [vmem:[%s10614_s3 + $0xf8] sm:$0xff]   ;;  %v2242_v28 = vrot.slane %v7755_v58, 5  ;;  %7354 = vmatpush3.bf16.msra.mxu0 %v7653_v43  ;;  %v7661_v27 = vld [vmem:[%s10614_s3 + $0x108] sm:$0xff]   ;;  %v8572_v46 = vld [vmem:[#allocation2 + $0x84] sm:$0xf] }
  0xcd   : > { %7218 = vmatmul.mubr.bf16.vlgmr.msra.gmra.mxu1 %v6312_v5  ;;  %v8549_v5 = vld [vmem:[#allocation2 + $0x88] sm:$0xf]  ;;  %7355 = vmatprep.subr.bf16.mxu0 %v7657_v57  ;;  %v2248_v44 = vrot.slane %v2246_v9, 4  ;;  %v2983_v22 = vld [vmem:[#allocation2 + $0x18] sm:$0xf] }
  0xce   : > { %7298 = vmatpush3.bf16.msra.mxu1 %v7752_v39  ;;  %7221 = vmatprep.mubr.bf16.mxu1 %v6313_v51  ;;  %v2239_v24 = vrot.slane %v8549_v5, 5  ;;  %v8561_v51 = vsel %vm8353_vm13, %v6345_v32, %v2232_v2  ;;  %v2249_v39 = vrot.slane %v8234_v12, 5  ;;  %v8570_v58 = vsel %vm8353_vm13, %v2234_v16, %v2235_v59  ;;  %v2123_v2 = vld [vmem:[#allocation2 + $0xa8] sm:$0xe]  ;;  %v7647_v12 = vld [vmem:[%s10614_s3 + $0xe0] sm:$0xff]  }
  0xcf   : > { %7299 = vmatprep.subr.bf16.mxu1 %v8485_v63  ;;  %v6348_v32 = vrot.slane %v2122_v7, 9  ;;  %v2253_v59 = vrot.slane %v8265_v37, 5  ;;  %v2256_v16 = vrot.slane %v8268_v41, 5  ;;  %v8592_v7 = vsel %vm8353_vm13, %v6347_v33, %v2246_v9  ;;  %v2980_v41 = vld [vmem:[#allocation2 + $0xc] sm:$0xf] }
  0xd0   : > { %v2241_v1 = vrot.slane %v2239_v24, 4  ;;  %v8581_v31 = vsel %vm8353_vm13, %v6346_v3, %v2239_v24  ;;  %v2260_v3 = vrot.slane %v8341_v23, 5  ;;  %v7665_v24 = vld [vmem:[%s10614_s3 + $0x100] sm:$0xff]   ;;  %7356 = vmatpush3.bf16.msra.mxu0 %v7657_v57  ;;  %v6349_v33 = vrot.slane %v2123_v2, 9  ;;  %v8608_v9 = vld [vmem:[#allocation2 + $0x10] sm:$0xf] }
  0xd1   : > { %10647 = vst [vmem:[#allocation5_spill] sm:$0xff] %v8608_v9  ;;  %v6377_v42 = vcombine.low %v8561_v51, %v8570_v58  ;;  %7357 = vmatprep.subr.bf16.mxu0 %v7661_v27  ;;  %v8639_v2 = vld [vmem:[#allocation2 + $0x14] sm:$0x1]  ;;  %v3038_v61 = vshll.u32 %v8608_v9, 16  ;;  %v3056_v51 = vshll.u32 %v2983_v22, 16 }
  0xd2   : > { %7300 = vmatpush3.bf16.msra.mxu1 %v8485_v63  ;;  %v8588_v43 = vsel %vm8353_vm13, %v2241_v1, %v2242_v28  ;;  %v8602_v63 = vsel %vm8353_vm13, %v2248_v44, %v2249_v39  ;;  %v8606_v1 = vsel %vm8353_vm13, %v6348_v32, %v2253_v59  ;;  %v2255_v28 = vrot.slane %v2253_v59, 4  ;;  %v2124_v39 = vld [vmem:[#allocation2 + $0xb4] sm:$0xe]  ;;  %10649 = vst [vmem:[#allocation6_spill] sm:$0xff] %v8639_v2  ;;  %v8641_v59 = vld [vmem:[#allocation2 + $0x1c] sm:$0xf] }
  0xd3   : > { %7301 = vmatprep.subr.bf16.mxu1 %v7643_v45  ;;  %7278 = vmatmul.mubr.bf16.gmra.mxu0 %v6374_v49  ;;  %v2262_v57 = vrot.slane %v2260_v3, 4  ;;  %v2263_v44 = vrot.slane %v8343_v21, 5  ;;  %v7651_v49 = vld [vmem:[%s10614_s3 + $0xd8] sm:$0xff]   ;;  %v2267_v32 = vrot.slane %v8390_v53, 5  ;;  %v8650_v35 = vsel %vm8353_vm13, %v6349_v33, %v2260_v3 }
  0xd4   : > { %7281 = vmatprep.mubr.bf16.mxu0 %v6375_v29  ;;  %v8625_v58 = vsel %vm8353_vm13, %v2255_v28, %v2256_v16  ;;  %v8646_v16 = vld [vmem:[%s10614_s3 + $0x1b8] sm:$0xff]   ;;  %7358 = vmatpush3.bf16.msra.mxu0 %v7661_v27  ;;  %v3029_v28 = vshrl.u32 %v2980_v41, 16  ;;  %v2270_v29 = vrot.slane %v8394_v14, 5  ;;  %v3032_v21 = vshll.u32 %v2980_v41, 16  ;;  %v7655_v14 = vld [vmem:[%s10614_s3 + $0xd0] sm:$0xff]  }
  0xd5   : > { %7222 = vmatmul.mubr.bf16.gmra.mxu1 %v6314_v4  ;;  %v8654_v20 = vsel %vm8353_vm13, %v2262_v57, %v2263_v44  ;;  %7359 = vmatprep.subr.bf16.mxu0 %v7665_v24  ;;  %v3042_v27 = vshrl.u32 %v8608_v9, 16  ;;  %v2986_v4 = vld [vmem:[#allocation2 + $0x24] sm:$0xf]  ;;  %v2269_v54 = vrot.slane %v2267_v32, 4  ;;  %v3053_v33 = vshrl.u32 %v2983_v22, 16 }
  0xd6   : > { %7225 = vmatprep.mubr.bf16.mxu1 %v10648_v30  ;;  %7302 = vmatpush3.bf16.msra.mxu1 %v7643_v45  ;;  %v6350_v45 = vrot.slane %v2124_v39, 9  ;;  %v8656_v30 = vld [vmem:[#allocation2 + $0x20] sm:$0x1]  ;;  %v3031_v3 = vrot.slane %v3029_v28, 4  ;;  %v3034_v57 = vrot.slane %v3032_v21, 5  ;;  %v8661_v44 = vrot.slane %v3038_v61, 5 }
  0xd7   : > { %7303 = vmatprep.subr.bf16.mxu1 %v7647_v12  ;;  %v3044_v39 = vrot.slane %v3042_v27, 4  ;;  %v3048_v26 = vshll.u32 %v8639_v2, 16  ;;  %v3055_v22 = vrot.slane %v3053_v33, 4  ;;  %v3062_v61 = vshll.u32 %v8641_v59, 16 }
  0xd8   : > { %v8671_v41 = vsel %vm8353_vm13, %v6350_v45, %v2267_v32  ;;  %7360 = vmatpush3.bf16.msra.mxu0 %v7665_v24  ;;  %v10650_v21 = vcombine.low %v8520_v13, %v8524_v15  ;;  %v3035_v28 = vor.u32 %v3034_v57, %v3031_v3  ;;  %v3066_v2 = vshrl.u32 %v8641_v59, 16  ;;  %v8686_v45 = vld [vmem:[#allocation2 + $0x2c] sm:$0x1]  ;;  %v2989_v3 = vld [vmem:[#allocation2 + $0x30] sm:$0xf] }
  0xd9   : > { %v3045_v27 = vor.u32 %v3044_v39, %v8661_v44  ;;  %v3072_v9 = vshll.u32 %v8656_v30, 16  ;;  %7441 = vmatprep.subr.bf16.mxu0 %v8646_v16  ;;  %v10651_v24 = vcombine.low %v8192_v11, %v8196_v17  ;;  %v8684_v32 = vrot.slane %v3062_v61, 5  ;;  %v7659_v57 = vld [vmem:[%s10614_s3 + $0xc8] sm:$0xff]  }
  0xda   : > { %7304 = vmatpush3.bf16.msra.mxu1 %v7647_v12  ;;  %v3058_v12 = vrot.slane %v3056_v51, 5  ;;  %v3077_v13 = vshrl.u32 %v2986_v4, 16  ;;  %v3080_v15 = vshll.u32 %v2986_v4, 16  ;;  %v10652_v33 = vcombine.low %v8290_v34, %v8294_v47  ;;  %v8710_v47 = vld [vmem:[#allocation2 + $0x40] sm:$0xf] }
  0xdb   : > { %7305 = vmatprep.subr.bf16.mxu1 %v7651_v49  ;;  %7282 = vmatmul.mubr.bf16.gmra.mxu0 %v10650_v21  ;;  %v8696_v11 = vsel %vm8353_vm13, %v2269_v54, %v2270_v29  ;;  %v3036_v17 = vrot.slane %v3035_v28, 4  ;;  %v3068_v39 = vrot.slane %v3066_v2, 4  ;;  %v3046_v4 = vrot.slane %v3045_v27, 4  ;;  %v2992_v27 = vld [vmem:[#allocation2 + $0x3c] sm:$0xf] }
  0xdc   : > { %7285 = vmatprep.mubr.bf16.mxu0 %v6377_v42  ;;  %v3059_v51 = vor.u32 %v3058_v12, %v3055_v22  ;;  %v3050_v42 = vrot.slane %v3048_v26, 5  ;;  %v8698_v22 = vld [vmem:[#allocation2 + $0x34] sm:$0xf]  ;;  %v3079_v12 = vrot.slane %v3077_v13, 4  ;;  %v3082_v61 = vrot.slane %v3080_v15, 5 }
  0xdd   : > { %7226 = vmatmul.mubr.bf16.gmra.mxu1 %v10651_v24  ;;  %v3086_v34 = vshll.u32 %v8664_v10, 16  ;;  %v3069_v21 = vor.u32 %v3068_v39, %v8684_v32  ;;  %v3090_v54 = vshrl.u32 %v8664_v10, 16  ;;  %v3074_v29 = vrot.slane %v3072_v9, 5  ;;  %v8718_v39 = vld [vmem:[#allocation2 + $0x38] sm:$0x1] }
  0xde   : > { %7229 = vmatprep.mubr.bf16.mxu1 %v10652_v33  ;;  %7306 = vmatpush3.bf16.msra.mxu1 %v7651_v49  ;;  %v3060_v49 = vrot.slane %v3059_v51, 4  ;;  %v3083_v2 = vor.u32 %v3082_v61, %v3079_v12  ;;  %v3096_v15 = vshll.u32 %v8686_v45, 16  ;;  %v3101_v33 = vshrl.u32 %v2989_v3, 16  ;;  %v7663_v51 = vld [vmem:[%s10614_s3 + $0xc0] sm:$0xff]  }
  0xdf   : > { %7307 = vmatprep.subr.bf16.mxu1 %v7655_v14  ;;  %v8707_v28 = vrot.slane %v3086_v34, 5  ;;  %v3070_v24 = vrot.slane %v3069_v21, 4  ;;  %v3092_v13 = vrot.slane %v3090_v54, 4  ;;  %v3041_v9 = vsel %vm7899_vm9, %v3036_v17, %v8661_v44 }
  0xe0   : > { %v3104_v12 = vshll.u32 %v2989_v3, 16  ;;  %v3114_v61 = vshrl.u32 %v8698_v22, 16  ;;  %v10653_v34 = vcombine.low %v8581_v31, %v8588_v43  ;;  %v3051_v21 = vsel %vm7899_vm9, %v3046_v4, %v3050_v42 }
  0xe1   : > { %v3065_v54 = vsel %vm7899_vm9, %v3060_v49, %v8684_v32  ;;  %v3093_v44 = vor.u32 %v3092_v13, %v8707_v28  ;;  %v3103_v17 = vrot.slane %v3101_v33, 4  ;;  %v10654_v3 = vcombine.low %v8314_v40, %v8324_v19  ;;  %v2995_v32 = vld [vmem:[#allocation2 + $0x48] sm:$0xf] }
  0xe2   : > { %7308 = vmatpush3.bf16.msra.mxu1 %v7655_v14  ;;  %v3110_v14 = vshll.u32 %v8698_v22, 16  ;;  %v10655_v26 = vcombine.low %v8592_v7, %v8602_v63  ;;  %v3075_v31 = vsel %vm7899_vm9, %v3070_v24, %v3074_v29  ;;  %v3084_v43 = vrot.slane %v3083_v2, 4  ;;  %v8746_v63 = vld [vmem:[#allocation2 + $0x4c] sm:$0xf] }
  0xe3   : > { %7309 = vmatprep.subr.bf16.mxu1 %v7659_v57  ;;  %7286 = vmatmul.mubr.bf16.gmra.mxu0 %v10653_v34  ;;  %v3106_v42 = vrot.slane %v3104_v12, 5  ;;  %v8741_v34 = vld [vmem:[#allocation2 + $0x44] sm:$0x1]  ;;  %v10656_v49 = vcombine.low %v8509_v56, %v8469_v38  ;;  %v3094_v40 = vrot.slane %v3093_v44, 4  ;;  %v3098_v19 = vrot.slane %v3096_v15, 5 }
  0xe4   : > { %7289 = vmatprep.mubr.bf16.mxu0 %v10655_v26  ;;  %v8739_v4 = vrot.slane %v3110_v14, 5  ;;  %v3116_v13 = vrot.slane %v3114_v61, 4  ;;  %v3125_v7 = vshrl.u32 %v2992_v27, 16  ;;  %v8751_v26 = vld [vmem:[%s10614_s3 + $0x178] sm:$0xff]   ;;  %v3128_v2 = vshll.u32 %v2992_v27, 16 }
  0xe5   : > { %7230 = vmatmul.mubr.bf16.gmra.mxu1 %v10654_v3  ;;  %v3107_v29 = vor.u32 %v3106_v42, %v3103_v17  ;;  %v3134_v24 = vshll.u32 %v8710_v47, 16  ;;  %v3138_v38 = vshrl.u32 %v8710_v47, 16  ;;  %v8755_v56 = vcombine.low %v3041_v9, %v3051_v21  ;;  %v8766_v27 = vld [vmem:[#allocation2 + $0x50] sm:$0x1]  ;;  %v2998_v17 = vld [vmem:[#allocation2 + $0x54] sm:$0xf] }
  0xe6   : > { %7233 = vmatprep.mubr.bf16.mxu1 %v10656_v49  ;;  %7310 = vmatpush3.bf16.msra.mxu1 %v7659_v57  ;;  %v3117_v57 = vor.u32 %v3116_v13, %v8739_v4  ;;  %v3120_v15 = vshll.u32 %v8718_v39, 16  ;;  %v3127_v33 = vrot.slane %v3125_v7, 4  ;;  %v8759_v12 = vcombine.low %v3065_v54, %v3075_v31  ;;  %v8771_v49 = vld [vmem:[#allocation2 + $0x58] sm:$0xf] }
  0xe7   : > { %7311 = vmatprep.subr.bf16.mxu1 %v7663_v51  ;;  %v3089_v14 = vsel %vm7899_vm9, %v3084_v43, %v8707_v28  ;;  %v3130_v61 = vrot.slane %v3128_v2, 5  ;;  %v8764_v44 = vrot.slane %v3134_v24, 5  ;;  %v8768_v9 = vrot.slane %v3107_v29, 4 }
  0xe8   : > { %v3140_v21 = vrot.slane %v3138_v38, 4  ;;  %v3144_v3 = vshll.u32 %v8741_v34, 16  ;;  %v3149_v42 = vshrl.u32 %v2995_v32, 16  ;;  %v3099_v28 = vsel %vm7899_vm9, %v3094_v40, %v3098_v19 }
  0xe9   : > { %v3131_v54 = vor.u32 %v3130_v61, %v3127_v33  ;;  %v3152_v31 = vshll.u32 %v2995_v32, 16  ;;  %v3158_v43 = vshll.u32 %v8746_v63, 16  ;;  %v3118_v13 = vrot.slane %v3117_v57, 4 }
  0xea   : > { %7312 = vmatpush3.bf16.msra.mxu1 %v7663_v51  ;;  %v10657_v51 = vcombine.low %v8606_v1, %v8625_v58  ;;  %v3122_v7 = vrot.slane %v3120_v15, 5  ;;  %v3141_v29 = vor.u32 %v3140_v21, %v8764_v44  ;;  %v3151_v2 = vrot.slane %v3149_v42, 4  ;;  %v8789_v1 = vld [vmem:[#allocation2 + $0x5c] sm:$0x1]  ;;  %v3001_v58 = vld [vmem:[#allocation2 + $0x60] sm:$0xf] }
  0xeb   : > { %7393 = vmatprep.subr.bf16.mxu1 %v8751_v26  ;;  %v10658_v24 = vcombine.low %v8534_v18, %v8477_v55  ;;  %v10659_v40 = vcombine.low %v8650_v35, %v8654_v20  ;;  %v3132_v32 = vrot.slane %v3131_v54, 4  ;;  %v3146_v19 = vrot.slane %v3144_v3, 5 }
  0xec   : > { %7290 = vmatmul.mubr.bf16.gmra.mxu0 %v10657_v51  ;;  %v3154_v38 = vrot.slane %v3152_v31, 5  ;;  %v8787_v33 = vrot.slane %v3158_v43, 5  ;;  %v10660_v57 = vcombine.low %v8545_v8, %v8513_v50  ;;  %v3142_v15 = vrot.slane %v3141_v29, 4  ;;  %v8805_v31 = vld [vmem:[#allocation2 + $0x64] sm:$0xf] }
  0xed   : > { %7234 = vmatmul.mubr.bf16.gmra.mxu1 %v10658_v24  ;;  %7293 = vmatprep.mubr.bf16.mxu0 %v10659_v40  ;;  %v3162_v55 = vshrl.u32 %v8746_v63, 16  ;;  %v3168_v18 = vshll.u32 %v8766_v27, 16  ;;  %v3173_v61 = vshrl.u32 %v2998_v17, 16  ;;  %v8796_v35 = vcombine.low %v3089_v14, %v3099_v28 }
  0xee   : > { %7237 = vmatprep.mubr.bf16.mxu1 %v10660_v57  ;;  %v3113_v20 = vsel %vm7899_vm9, %v8768_v9, %v8739_v4  ;;  %v3176_v21 = vshll.u32 %v2998_v17, 16  ;;  %v3182_v3 = vshll.u32 %v8771_v49, 16  ;;  %v3123_v50 = vsel %vm7899_vm9, %v3118_v13, %v3122_v7  ;;  %v8814_v4 = vld [vmem:[#allocation2 + $0x68] sm:$0x1]  ;;  %v3004_v17 = vld [vmem:[#allocation2 + $0x6c] sm:$0xf] }
  0xef   : > { %v3155_v8 = vor.u32 %v3154_v38, %v3151_v2  ;;  %v3164_v42 = vrot.slane %v3162_v55, 4  ;;  %v3175_v54 = vrot.slane %v3173_v61, 4  ;;  %v3137_v14 = vsel %vm7899_vm9, %v3132_v32, %v8764_v44  ;;  %v8825_v61 = vld [vmem:[#allocation2 + $0x70] sm:$0xf] }
  0xf0   : > { %v8810_v28 = vrot.slane %v3168_v18, 5  ;;  %v3178_v43 = vrot.slane %v3176_v21, 5  ;;  %v8812_v51 = vrot.slane %v3182_v3, 5  ;;  %v3186_v13 = vshrl.u32 %v8771_v49, 16 }
  0xf1   : > { %v3165_v9 = vor.u32 %v3164_v42, %v8787_v33  ;;  %v3192_v7 = vshll.u32 %v8789_v1, 16  ;;  %v3197_v29 = vshrl.u32 %v3001_v58, 16  ;;  %v3147_v2 = vsel %vm7899_vm9, %v3142_v15, %v3146_v19 }
  0xf2   : > { %v3179_v24 = vor.u32 %v3178_v43, %v3175_v54  ;;  %v3200_v44 = vshll.u32 %v3001_v58, 16  ;;  %v3206_v40 = vshll.u32 %v8805_v31, 16  ;;  %v10661_v32 = vcombine.low %v8671_v41, %v8696_v11  ;;  %v8834_v41 = vld [vmem:[#allocation2 + $0x74] sm:$0x1]  ;;  %v3007_v11 = vld [vmem:[#allocation2 + $0x78] sm:$0xf] }
  0xf3   : > { %v3156_v38 = vrot.slane %v3155_v8, 4  ;;  %v3166_v57 = vrot.slane %v3165_v9, 4  ;;  %v3188_v55 = vrot.slane %v3186_v13, 4  ;;  %v3199_v18 = vrot.slane %v3197_v29, 4 }
  0xf4   : > { %7294 = vmatmul.mubr.bf16.gmra.mxu0 %v10661_v32  ;;  %v10662_v21 = vcombine.low %v8572_v46, %v8549_v5  ;;  %v3194_v19 = vrot.slane %v3192_v7, 5  ;;  %v3202_v58 = vrot.slane %v3200_v44, 5  ;;  %v8831_v15 = vrot.slane %v3206_v40, 5 }
  0xf5   : > { %7361 = vmatprep.mubr.bf16.mxu0 %v8755_v56  ;;  %v3210_v3 = vshrl.u32 %v8805_v31, 16  ;;  %v10663_v8 = vcombine.low %v8224_v60, %v8226_v62  ;;  %v8839_v42 = vcombine.low %v3113_v20, %v3123_v50  ;;  %v3189_v46 = vor.u32 %v3188_v55, %v8812_v51  ;;  %v8848_v62 = vld [vmem:[#allocation2 + $0x7c] sm:$0xf]  ;;  %v7673_v20 = vld [vmem:[%s10614_s3 + $0x1b0] sm:$0xff]   ;;  %v3010_v55 = vld [vmem:[#allocation2 + $0x84] sm:$0xf] }
  0xf6   : > { %7238 = vmatmul.mubr.bf16.gmra.mxu1 %v10662_v21  ;;  %v3216_v5 = vshll.u32 %v8814_v4, 16  ;;  %v3221_v56 = vshrl.u32 %v3004_v17, 16  ;;  %v8843_v54 = vcombine.low %v3137_v14, %v3147_v2  ;;  %v3180_v43 = vrot.slane %v3179_v24, 4 }
  0xf7   : > { %7241 = vmatprep.mubr.bf16.mxu1 %v10663_v8  ;;  %v3203_v9 = vor.u32 %v3202_v58, %v3199_v18  ;;  %v3212_v13 = vrot.slane %v3210_v3, 4  ;;  %v3161_v7 = vsel %vm7899_vm9, %v3156_v38, %v8787_v33  ;;  %v3190_v29 = vrot.slane %v3189_v46, 4  ;;  %v8859_v33 = vld [vmem:[#allocation2 + $0x80] sm:$0x1]  ;;  %v7677_v58 = vld [vmem:[%s10614_s3 + $0x1a8] sm:$0xff]  }
  0xf8   : > { %v3223_v44 = vrot.slane %v3221_v56, 4  ;;  %v3224_v60 = vshll.u32 %v3004_v17, 16  ;;  %v3171_v50 = vsel %vm7899_vm9, %v3166_v57, %v8810_v28  ;;  %v3230_v2 = vshll.u32 %v8825_v61, 16  ;;  %v8875_v56 = vld [vmem:[#allocation2 + $0x88] sm:$0xf] }
  0xf9   : > { %v3213_v14 = vor.u32 %v3212_v13, %v8831_v15  ;;  %v3234_v24 = vshrl.u32 %v8825_v61, 16  ;;  %v8861_v40 = vrot.slane %v3216_v5, 5  ;;  %v3240_v32 = vshll.u32 %v8834_v41, 16  ;;  %v8883_v13 = vld [vmem:[#allocation2 + $0x8c] sm:$0x1] }
  0xfa   : > { %v3226_v17 = vrot.slane %v3224_v60, 5  ;;  %v3245_v38 = vshrl.u32 %v3007_v11, 16  ;;  %v3185_v18 = vsel %vm7899_vm9, %v3180_v43, %v8812_v51  ;;  %v3195_v28 = vsel %vm7899_vm9, %v3190_v29, %v3194_v19  ;;  %10665 = vst [vmem:[#allocation7_spill] sm:$0xff] %v8883_v13 }
  0xfb   : > { %v3204_v57 = vrot.slane %v3203_v9, 4  ;;  %v8869_v21 = vrot.slane %v3230_v2, 5  ;;  %v3214_v3 = vrot.slane %v3213_v14, 4  ;;  %v3236_v46 = vrot.slane %v3234_v24, 4  ;;  %v7666_v24 = vld [vmem:[#allocation2 + $0xc] sm:$0xff]  }
  0xfc   : > { %7362 = vmatmul.mubr.bf16.vlgmr.msra.gmra.mxu0 %v8759_v12  ;;  %v3227_v8 = vor.u32 %v3226_v17, %v3223_v44  ;;  %v3242_v5 = vrot.slane %v3240_v32, 5  ;;  %v10664_v51 = vcombine.low %v8263_v36, %v8265_v37  ;;  %v3247_v19 = vrot.slane %v3245_v38, 4 }
  0xfd   : > { %7442 = vmatpush3.bf16.msra.mxu0 %v8646_v16  ;;  %v3248_v43 = vshll.u32 %v3007_v11, 16  ;;  %v3254_v12 = vshll.u32 %v8848_v62, 16  ;;  %v3258_v9 = vshrl.u32 %v8848_v62, 16  ;;  %v10666_v29 = vcombine.low %v8335_v25, %v8341_v23  ;;  %7365 = vmatprep.mubr.bf16.mxu0 %v8796_v35 }
  0xfe   : > { %7242 = vmatmul.mubr.bf16.gmra.mxu1 %v10664_v51  ;;  %v8889_v44 = vcombine.low %v3161_v7, %v3171_v50  ;;  %v3228_v36 = vrot.slane %v3227_v8, 4  ;;  %v3237_v37 = vor.u32 %v3236_v46, %v8869_v21  ;;  %v3264_v16 = vshll.u32 %v8859_v33, 16  ;;  %7443 = vmatprep.subr.bf16.mxu0 %v7673_v20  ;;  %v3013_v7 = vld [vmem:[#allocation2 + $0x90] sm:$0xf]  ;;  %v8900_v50 = vld [vmem:[#allocation2 + $0x94] sm:$0xf] }
  0xff   : > { %7245 = vmatprep.mubr.bf16.mxu1 %v10666_v29  ;;  %v3250_v11 = vrot.slane %v3248_v43, 5  ;;  %v8893_v60 = vrot.slane %v3254_v12, 5  ;;  %v3260_v14 = vrot.slane %v3258_v9, 4  ;;  %v3269_v2 = vshrl.u32 %v3010_v55, 16  ;;  %10667 = vst [vmem:[#allocation8_spill] sm:$0xff] %v8900_v50 }
 0x100   : > { %v8895_v17 = vcombine.low %v3185_v18, %v3195_v28  ;;  %v3209_v25 = vsel %vm7899_vm9, %v3204_v57, %v8831_v15  ;;  %v3238_v23 = vrot.slane %v3237_v37, 4  ;;  %v3272_v35 = vshll.u32 %v3010_v55, 16  ;;  %v7681_v15 = vld [vmem:[%s10614_s3 + $0x1a0] sm:$0xff]   ;;  %v3016_v37 = vld [vmem:[#allocation2 + $0x9c] sm:$0xf] }
 0x101   : > { %7444 = vmatpush3.bf16.msra.mxu0 %v7673_v20  ;;  %v3251_v32 = vor.u32 %v3250_v11, %v3247_v19  ;;  %v3261_v38 = vor.u32 %v3260_v14, %v8893_v60  ;;  %v3271_v8 = vrot.slane %v3269_v2, 4  ;;  %v3278_v46 = vshll.u32 %v8875_v56, 16  ;;  %v7685_v14 = vld [vmem:[%s10614_s3 + $0x198] sm:$0xff]  }
 0x102   : > { %7445 = vmatprep.subr.bf16.mxu0 %v7677_v58  ;;  %v3219_v18 = vsel %vm7899_vm9, %v3214_v3, %v8861_v40  ;;  %v3274_v55 = vrot.slane %v3272_v35, 5  ;;  %v3282_v28 = vshrl.u32 %v8875_v56, 16  ;;  %v3288_v20 = vshll.u32 %v8883_v13, 16  ;;  %v8921_v40 = vld [vmem:[#allocation2 + $0x98] sm:$0x1] }
 0x103   : > { %v3233_v57 = vsel %vm7899_vm9, %v3228_v36, %v8869_v21  ;;  %v3243_v51 = vsel %vm7899_vm9, %v3238_v23, %v3242_v5  ;;  %v8917_v19 = vrot.slane %v3264_v16, 5  ;;  %v8919_v43 = vrot.slane %v3278_v46, 5  ;;  %10668 = vst [vmem:[#allocation9_spill] sm:$0xff] %v8921_v40  ;;  %v485_v13 = vld [vmem:[#allocation2 + $0xc0] sm:$0x1] }
 0x104   : > { %7366 = vmatmul.mubr.bf16.gmra.mxu0 %v8839_v42  ;;  %v8924_v3 = vrot.slane %v3251_v32, 4  ;;  %v8926_v12 = vrot.slane %v3261_v38, 4  ;;  %v3284_v9 = vrot.slane %v3282_v28, 4  ;;  %v3293_v29 = vshrl.u32 %v3013_v7, 16  ;;  %v3019_v32 = vld [vmem:[#allocation2 + $0xa8] sm:$0xf] }
 0x105   : > { %v10669_v21 = vcombine.low %v8388_v52, %v8390_v53  ;;  %7369 = vmatprep.mubr.bf16.mxu0 %v8843_v54  ;;  %v8932_v5 = vcombine.low %v3209_v25, %v3219_v18  ;;  %v3275_v36 = vor.u32 %v3274_v55, %v3271_v8  ;;  %v3296_v16 = vshll.u32 %v3013_v7, 16  ;;  %7446 = vmatpush3.bf16.msra.mxu0 %v7677_v58  ;;  %v8943_v54 = vld [vmem:[#allocation2 + $0xa0] sm:$0xf]  ;;  %v7668_v25 = vld [vmem:[#allocation2 + $0x18] sm:$0xff]   ;;  %v8949_v7 = vld [vmem:[#allocation2 + $0xa4] sm:$0x1] }
 0x106   : > { %v3302_v11 = vshll.u32 %v8900_v50, 16  ;;  %v8935_v42 = vcombine.low %v3233_v57, %v3243_v51  ;;  %v3285_v2 = vor.u32 %v3284_v9, %v8919_v43  ;;  %v8941_v52 = vrot.slane %v3288_v20, 5  ;;  %10670 = vst [vmem:[#allocation10_spill] sm:$0xff] %v8943_v54  ;;  %7447 = vmatprep.subr.bf16.mxu0 %v7681_v15  ;;  %10671 = vst [vmem:[#allocation11_spill] sm:$0xff] %v8949_v7  ;;  %v8959_v55 = vld [vmem:[#allocation2 + $0xac] sm:$0xf] }
 0x107   : > { %7246 = vmatmul.mubr.bf16.gmra.mxu1 %v10669_v21  ;;  %v3295_v53 = vrot.slane %v3293_v29, 4  ;;  %v3298_v23 = vrot.slane %v3296_v16, 5  ;;  %v3306_v58 = vshrl.u32 %v8900_v50, 16  ;;  %v3317_v46 = vshrl.u32 %v3016_v37, 16  ;;  %10672 = vst [vmem:[#allocation12_spill] sm:$0xff] %v8959_v55  ;;  %v7670_v28 = vld [vmem:[#allocation2 + $0x24] sm:$0xff]  }
 0x108   : > { %7313 = vmatprep.mubr.bf16.mxu1 %v7666_v24  ;;  %v8945_v35 = vrot.slane %v3302_v11, 5  ;;  %v3312_v24 = vshll.u32 %v8921_v40, 16  ;;  %v3320_v18 = vshll.u32 %v3016_v37, 16  ;;  %v8961_v20 = vrot.slane %v3275_v36, 4  ;;  %v7671_v37 = vld [vmem:[%s10614_s3 + $0x170] sm:$0xff]  }
 0x109   : > { %v3299_v57 = vor.u32 %v3298_v23, %v3295_v53  ;;  %v3308_v51 = vrot.slane %v3306_v58, 4  ;;  %v3326_v9 = vshll.u32 %v8943_v54, 16  ;;  %7448 = vmatpush3.bf16.msra.mxu0 %v7681_v15  ;;  %v8964_v29 = vrot.slane %v3285_v2, 4  ;;  %v7689_v15 = vld [vmem:[%s10614_s3 + $0x190] sm:$0xff]  }
 0x10a   : > { %v3319_v21 = vrot.slane %v3317_v46, 4  ;;  %v3322_v16 = vrot.slane %v3320_v18, 5  ;;  %v3330_v11 = vshrl.u32 %v8943_v54, 16  ;;  %7449 = vmatprep.subr.bf16.mxu0 %v7685_v14  ;;  %v8973_v53 = vrot.slane %v3312_v24, 5  ;;  %v7672_v24 = vld [vmem:[#allocation2 + $0x30] sm:$0xff]   ;;  %v7674_v54 = vld [vmem:[#allocation2 + $0x3c] sm:$0xff]  }
 0x10b   : > { %v8970_v38 = vrot.slane %v3299_v57, 4  ;;  %v3309_v36 = vor.u32 %v3308_v51, %v8945_v35  ;;  %v8975_v23 = vrot.slane %v3326_v9, 5  ;;  %v3336_v46 = vshll.u32 %v8949_v7, 16 }
 0x10c   : > { %7370 = vmatmul.mubr.bf16.gmra.mxu0 %v8889_v44  ;;  %v3323_v2 = vor.u32 %v3322_v16, %v3319_v21  ;;  %v3332_v58 = vrot.slane %v3330_v11, 4  ;;  %v3341_v18 = vshrl.u32 %v3019_v32, 16  ;;  %v8989_v44 = vld [vmem:[#allocation2 + $0xb0] sm:$0x1]  ;;  %v3344_v51 = vshll.u32 %v3019_v32, 16 }
 0x10d   : > { %7373 = vmatprep.mubr.bf16.mxu0 %v8895_v17  ;;  %v8987_v57 = vrot.slane %v3309_v36, 4  ;;  %10673 = vst [vmem:[#allocation13_spill] sm:$0xff] %v8989_v44  ;;  %v3350_v9 = vshll.u32 %v8959_v55, 16  ;;  %v8996_v17 = vrot.slane %v3336_v46, 5  ;;  %v3022_v11 = vld [vmem:[#allocation2 + $0xb4] sm:$0xf]  ;;  %7450 = vmatpush3.bf16.msra.mxu0 %v7685_v14 }
 0x10e   : > { %v8993_v21 = vrot.slane %v3323_v2, 4  ;;  %v3343_v16 = vrot.slane %v3341_v18, 4  ;;  %v7675_v36 = vld [vmem:[%s10614_s3 + $0x168] sm:$0xff]   ;;  %v3346_v32 = vrot.slane %v3344_v51, 5  ;;  %v3354_v2 = vshrl.u32 %v8959_v55, 16  ;;  %7451 = vmatprep.subr.bf16.mxu0 %v7689_v15 }
 0x10f   : > { %7314 = vmatmul.mubr.bf16.vlgmr.msra.gmra.mxu1 %v7668_v25  ;;  %v3333_v25 = vor.u32 %v3332_v58, %v8975_v23  ;;  %v9008_v58 = vld [vmem:[#allocation2 + $0xb8] sm:$0xf]  ;;  %v3360_v51 = vshll.u32 %v8989_v44, 16  ;;  %v9024_v55 = vld [vmem:[#allocation2 + $0xbc] sm:$0x1]  ;;  %v3365_v46 = vshrl.u32 %v3022_v11, 16 }
 0x110   : > { %7394 = vmatpush3.bf16.msra.mxu1 %v8751_v26  ;;  %7317 = vmatprep.mubr.bf16.mxu1 %v7670_v28  ;;  %v9005_v28 = vrot.slane %v3350_v9, 5  ;;  %10674 = vst [vmem:[#allocation14_spill] sm:$0xff] %v9008_v58  ;;  %v7693_v9 = vld [vmem:[%s10614_s3 + $0x188] sm:$0xff]   ;;  %v3347_v26 = vor.u32 %v3346_v32, %v3343_v16  ;;  %v3356_v8 = vrot.slane %v3354_v2, 4  ;;  %v3368_v7 = vshll.u32 %v3022_v11, 16 }
 0x111   : > { %7395 = vmatprep.subr.bf16.mxu1 %v7671_v37  ;;  %v9018_v18 = vrot.slane %v3333_v25, 4  ;;  %v7679_v25 = vld [vmem:[%s10614_s3 + $0x160] sm:$0xff]   ;;  %v3329_v14 = vsel %vm7899_vm9, %v8993_v21, %v8975_v23  ;;  %v3374_v32 = vshll.u32 %v9008_v58, 16  ;;  %v3378_v11 = vshrl.u32 %v9008_v58, 16  ;;  %7452 = vmatpush3.bf16.msra.mxu0 %v7689_v15  ;;  %v542_v15 = vld [vmem:[#allocation2 + $0xc8] sm:$0xf] }
 0x112   : > { %v3348_v2 = vrot.slane %v3347_v26, 4  ;;  %v3357_v44 = vor.u32 %v3356_v8, %v9005_v28  ;;  %v3362_v40 = vrot.slane %v3360_v51, 5  ;;  %v3367_v50 = vrot.slane %v3365_v46, 4  ;;  %v7697_v23 = vld [vmem:[%s10614_s3 + $0x180] sm:$0xff]   ;;  %7453 = vmatprep.subr.bf16.mxu0 %v7693_v9 }
 0x113   : > { %v3339_v16 = vsel %vm7899_vm9, %v9018_v18, %v8996_v17  ;;  %v3370_v21 = vrot.slane %v3368_v7, 5  ;;  %v9045_v17 = vrot.slane %v3374_v32, 5  ;;  %v3380_v18 = vrot.slane %v3378_v11, 4 }
 0x114   : > { %7396 = vmatpush3.bf16.msra.mxu1 %v7671_v37  ;;  %v6921_v37 = vld [vmem:[%s7826_s6 + $0x78] sm:$0xff]   ;;  %7374 = vmatmul.mubr.bf16.gmra.mxu0 %v8932_v5  ;;  %v3384_v58 = vshll.u32 %v9024_v55, 16  ;;  %v3353_v8 = vsel %vm7899_vm9, %v3348_v2, %v9005_v28  ;;  %v3358_v26 = vrot.slane %v3357_v44, 4  ;;  %v486_v11 = vsel %vm7829_vm4, 0, %v485_v13  ;;  %v9065_v13 = vld [vmem:[#allocation2 + $0xc] sm:$0xe] }
 0x115   : > { %7397 = vmatprep.subr.bf16.mxu1 %v7675_v36  ;;  %7377 = vmatprep.mubr.bf16.mxu0 %v8935_v42  ;;  %v6825_v46 = vunpack.c.l.bf16 %v6921_v37  ;;  %v6826_v51 = vunpack.c.h.bf16 %v6921_v37  ;;  %v3371_v5 = vor.u32 %v3370_v21, %v3367_v50  ;;  %v3381_v7 = vor.u32 %v3380_v18, %v9045_v17  ;;  %v7683_v42 = vld [vmem:[%s10614_s3 + $0x158] sm:$0xff]   ;;  %487 = vst [vmem:[#allocation2 + $0xc0] sm:$0x1] %v486_v11  ;;  %v10682_v11 = vld [vmem:[#allocation5_spill] sm:$0xff] }
 0x116   : > { %v3386_v32 = vrot.slane %v3384_v58, 5  ;;  %7454 = vmatpush3.bf16.msra.mxu0 %v7693_v9  ;;  %v543_v28 = vsel %vm7836_vm5, 0, %v542_v15  ;;  %v3735_v58 = vld [vmem:[#allocation2 + $0x18] sm:$0xe]  ;;  %v10676_v37 = vsel %vm7899_vm9, %v8926_v12, %v8917_v19  ;;  %v10678_v2 = vsel %vm7899_vm9, %v8964_v29, %v8941_v52  ;;  %v7676_v19 = vld [vmem:[#allocation2 + $0x48] sm:$0xff]  }
 0x117   : > { %7318 = vmatmul.mubr.bf16.gmra.mxu1 %v7672_v24  ;;  %v3363_v24 = vsel %vm7899_vm9, %v3358_v26, %v3362_v40  ;;  %v10677_v40 = vsel %vm7899_vm9, %v8924_v3, %v8893_v60  ;;  %v10679_v21 = vsel %vm7899_vm9, %v8961_v20, %v8919_v43  ;;  %v3372_v15 = vrot.slane %v3371_v5, 4  ;;  %544 = vst [vmem:[#allocation2 + $0xc8] sm:$0xf] %v543_v28  ;;  %v9090_v60 = vld [vmem:[%s10614_s3 + $0x238] sm:$0xff]   ;;  %v7758_v20 = vld [vmem:[%s10612_s1] ss:$0 sm:$0xff] }
 0x118   : > { %7321 = vmatprep.mubr.bf16.mxu1 %v7674_v54  ;;  %7398 = vmatpush3.bf16.msra.mxu1 %v7675_v36  ;;  %v7757_v54 = vld [vmem:[%s10611_s0] ss:$0 sm:$0xff]  ;;  %v6456_v9 = vcombine.low %v10677_v40, %v10676_v37  ;;  %v6457_v18 = vcombine.low %v10679_v21, %v10678_v2  ;;  %v3382_v26 = vrot.slane %v3381_v7, 4  ;;  %v10680_v3 = vsel %vm7899_vm9, %v8987_v57, %v8973_v53  ;;  %v10683_v40 = vld [vmem:[#allocation6_spill] sm:$0xff] }
 0x119   : > { %7399 = vmatprep.subr.bf16.mxu1 %v7679_v25  ;;  %v338_v50 = vmul.f32 %v7757_v54, %v6825_v46  ;;  %v339_v44 = vmul.f32 %v7757_v54, %v6826_v51  ;;  %7455 = vmatprep.subr.bf16.mxu0 %v7697_v23  ;;  %v10681_v43 = vsel %vm7899_vm9, %v8970_v38, %v8945_v35  ;;  %v7678_v51 = vld [vmem:[#allocation2 + $0x54] sm:$0xff]   ;;  %v6471_v53 = vrot.slane %v9065_v13, 9  ;;  %v3736_v35 = vld [vmem:[#allocation2 + $0x24] sm:$0xe] }
 0x11a   : > { %v9102_v12 = vcombine.low %v10681_v43, %v10680_v3  ;;  %v9104_v52 = vcombine.low %v3329_v14, %v3339_v16  ;;  %v9109_v5 = vcombine.low %v3353_v8, %v3363_v24  ;;  %v6472_v57 = vrot.slane %v3735_v58, 9  ;;  %v7687_v38 = vld [vmem:[%s10614_s3 + $0x150] sm:$0xff]   ;;  %7456 = vmatpush3.bf16.msra.mxu0 %v7697_v23  ;;  %v7691_v58 = vld [vmem:[%s10614_s3 + $0x148] sm:$0xff]  }
 0x11b   : > { %v377_v29 = vadd.f32 %v7758_v20, %v338_v50  ;;  %v378_v46 = vadd.f32 %v7758_v20, %v339_v44  ;;  %v3807_v7 = vrot.slane %v8641_v59, 5  ;;  %v3377_v14 = vsel %vm7899_vm9, %v3372_v15, %v9045_v17  ;;  %7537 = vmatprep.subr.bf16.mxu0 %v9090_v60  ;;  %v3737_v23 = vld [vmem:[#allocation2 + $0x30] sm:$0xe] }
 0x11c   : > { %7400 = vmatpush3.bf16.msra.mxu1 %v7679_v25  ;;  %v3387_v25 = vsel %vm7899_vm9, %v3382_v26, %v3386_v32  ;;  %7378 = vmatmul.mubr.bf16.gmra.mxu0 %v6456_v9  ;;  %v3800_v24 = vrot.slane %v10682_v11, 5  ;;  %v3810_v50 = vrot.slane %v8656_v30, 5  ;;  %v6473_v32 = vrot.slane %v3736_v35, 9  ;;  %v7680_v26 = vld [vmem:[#allocation2 + $0x60] sm:$0xff]  }
 0x11d   : > { %7401 = vmatprep.subr.bf16.mxu1 %v7683_v42  ;;  %v409_v16 = vmax.f32 %v377_v29, 0.0  ;;  %v410_v8 = vmax.f32 %v378_v46, 0.0  ;;  %v9124_v59 = vsel %vm8353_vm13, %v6472_v57, %v3807_v7  ;;  %v3809_v54 = vrot.slane %v3807_v7, 4  ;;  %7381 = vmatprep.mubr.bf16.mxu0 %v6457_v18  ;;  %v7682_v7 = vld [vmem:[#allocation2 + $0x6c] sm:$0xff]  }
 0x11e   : > { %v3814_v28 = vrot.slane %v8664_v10, 5  ;;  %v9132_v37 = vcombine.low %v3377_v14, %v3387_v25  ;;  %v3803_v30 = vrot.slane %v10683_v40, 5  ;;  %v3817_v2 = vrot.slane %v8686_v45, 5  ;;  %v1060_v35 = vld [vmem:[#allocation2 + $0xc8] sm:$0x1]  ;;  %v9362_v40 = vpop.f32.mrf.mxu0 }
 0x11f   : > { %7322 = vmatmul.mubr.bf16.gmra.mxu1 %v7676_v19  ;;  %v6729_v17 = vpack.c.bf16 %v409_v16, %v409_v16  ;;  %v6730_v44 = vpack.c.bf16 %v410_v8, %v410_v8  ;;  %v9137_v9 = vsel %vm8353_vm13, %v3809_v54, %v3810_v50  ;;  %v6474_v20 = vrot.slane %v3737_v23, 9  ;;  %v3743_v23 = vld [vmem:[#allocation2 + $0x78] sm:$0xe]  ;;  %10695 = vst [vmem:[#allocation4_spill] sm:$0xff] %v9362_v40 }
 0x120   : > { %7325 = vmatprep.mubr.bf16.mxu1 %v7678_v51  ;;  %7402 = vmatpush3.bf16.msra.mxu1 %v7683_v42  ;;  %v3738_v42 = vld [vmem:[#allocation2 + $0x3c] sm:$0xe]  ;;  %v6504_v19 = vcombine.low %v9124_v59, %v9137_v9  ;;  %v9144_v3 = vsel %vm8353_vm13, %v6473_v32, %v3814_v28  ;;  %v3816_v43 = vrot.slane %v3814_v28, 4  ;;  %v1056_v51 = vld [vmem:[#allocation2 + $0xc0] sm:$0xf]  ;;  %v3821_v45 = vrot.slane %v8698_v22, 5 }
 0x121   : > { %7403 = vmatprep.subr.bf16.mxu1 %v7687_v38  ;;  %v886_v21 = vshrl.u32 %v6729_v17, 16  ;;  %v889_v10 = vshll.u32 %v6729_v17, 16  ;;  %v894_v18 = vshrl.u32 %v6730_v44, 16  ;;  %v897_v15 = vshll.u32 %v6730_v44, 16  ;;  %v7695_v22 = vld [vmem:[%s10614_s3 + $0x140] sm:$0xff]  }
 0x122   : > { %v3824_v57 = vrot.slane %v8718_v39, 5  ;;  %v9150_v14 = vsel %vm8353_vm13, %v3816_v43, %v3817_v2  ;;  %v6475_v25 = vrot.slane %v3738_v42, 9  ;;  %v3828_v16 = vrot.slane %v8710_v47, 5  ;;  %v3739_v39 = vld [vmem:[#allocation2 + $0x48] sm:$0xe]  ;;  %v9184_v43 = vld [vmem:[%s10614_s3 + $0x1f8] sm:$0xff]  }
 0x123   : > { %v888_v29 = vrot.slane %v886_v21, 7  ;;  %v896_v46 = vrot.slane %v894_v18, 7  ;;  %v3831_v8 = vrot.slane %v8741_v34, 5  ;;  %v9162_v47 = vsel %vm8353_vm13, %v6474_v20, %v3821_v45  ;;  %v3740_v28 = vld [vmem:[#allocation2 + $0x54] sm:$0xe] }
 0x124   : > { %7404 = vmatpush3.bf16.msra.mxu1 %v7687_v38  ;;  %7382 = vmatmul.mubr.bf16.gmra.mxu0 %v9102_v12  ;;  %v6505_v38 = vcombine.low %v9144_v3, %v9150_v14  ;;  %v3823_v34 = vrot.slane %v3821_v45, 4  ;;  %v9166_v32 = vsel %vm8353_vm13, %v6475_v25, %v3828_v16  ;;  %v3838_v42 = vrot.slane %v8766_v27, 5  ;;  %v7694_v27 = vld [vmem:[#allocation2 + $0xb4] sm:$0xff]  }
 0x125   : > { %7405 = vmatprep.subr.bf16.mxu1 %v7691_v58  ;;  %v891_v54 = vor.u32 %v889_v10, %v888_v29  ;;  %v892_v50 = vrot.slane %v888_v29, 4  ;;  %v899_v17 = vor.u32 %v897_v15, %v896_v46  ;;  %v901_v44 = vrot.slane %v896_v46, 4  ;;  %7385 = vmatprep.mubr.bf16.mxu0 %v9104_v52 }
 0x126   : > { %v3830_v10 = vrot.slane %v3828_v16, 4  ;;  %v9177_v18 = vsel %vm8353_vm13, %v3823_v34, %v3824_v57  ;;  %v6476_v52 = vrot.slane %v3739_v39, 9  ;;  %v3835_v15 = vrot.slane %v8746_v63, 5  ;;  %v3742_v63 = vld [vmem:[#allocation2 + $0x6c] sm:$0xe] }
 0x127   : > { %7326 = vmatmul.mubr.bf16.gmra.mxu1 %v7680_v26  ;;  %v900_v2 = vsel %vm7912_vm10, %v892_v50, %v899_v17  ;;  %v1057_v12 = vsel %vm7836_vm5, %v891_v54, %v1056_v51  ;;  %v1061_v21 = vsel %vm7829_vm4, %v901_v44, %v1060_v35  ;;  %v3741_v26 = vld [vmem:[#allocation2 + $0x60] sm:$0xe]  ;;  %v6477_v29 = vrot.slane %v3740_v28, 9 }
 0x128   : > { %7329 = vmatprep.mubr.bf16.mxu1 %v7682_v7  ;;  %7406 = vmatpush3.bf16.msra.mxu1 %v7691_v58  ;;  %1058 = vst [vmem:[#allocation2 + $0xc0] sm:$0xf] %v1057_v12  ;;  %1059 = vst [vmem:[#allocation2 + $0xc4] sm:$0xf] %v900_v2  ;;  %v9190_v20 = vsel %vm8353_vm13, %v3830_v10, %v3831_v8  ;;  %v3842_v46 = vrot.slane %v8771_v49, 5  ;;  %v9197_v51 = vsel %vm8353_vm13, %v6476_v52, %v3835_v15  ;;  %v7684_v7 = vld [vmem:[#allocation2 + $0x78] sm:$0xff]  }
 0x129   : > { %1062 = vst [vmem:[#allocation2 + $0xc8] sm:$0x1] %v1061_v21  ;;  %7407 = vmatprep.subr.bf16.mxu1 %v7695_v22  ;;  %v3837_v45 = vrot.slane %v3835_v15, 4  ;;  %v3845_v57 = vrot.slane %v8789_v1, 5  ;;  %v6478_v16 = vrot.slane %v3741_v26, 9  ;;  %v3849_v49 = vrot.slane %v8805_v31, 5 }
 0x12a   : > { %v9202_v35 = vsel %vm8353_vm13, %v6477_v29, %v3842_v46  ;;  %v3844_v25 = vrot.slane %v3842_v46, 4  ;;  %v7686_v8 = vld [vmem:[#allocation2 + $0x84] sm:$0xff]   ;;  %v3852_v50 = vrot.slane %v8814_v4, 5  ;;  %v6479_v17 = vrot.slane %v3742_v63, 9 }
 0x12b   : > { %v9207_v54 = vsel %vm8353_vm13, %v3837_v45, %v3838_v42  ;;  %v3856_v1 = vrot.slane %v8825_v61, 5  ;;  %v9213_v44 = vrot.slane %v3800_v24, 4  ;;  %v3851_v39 = vrot.slane %v3849_v49, 4  ;;  %v3744_v52 = vld [vmem:[#allocation2 + $0x84] sm:$0xe] }
 0x12c   : > { %7408 = vmatpush3.bf16.msra.mxu1 %v7695_v22  ;;  %v9220_v22 = vsel %vm8353_vm13, %v3844_v25, %v3845_v57  ;;  %7386 = vmatmul.mubr.bf16.gmra.mxu0 %v9109_v5  ;;  %v9227_v61 = vsel %vm8353_vm13, %v6478_v16, %v3849_v49  ;;  %v3859_v28 = vrot.slane %v8834_v41, 5  ;;  %v6480_v63 = vrot.slane %v3743_v23, 9  ;;  %v3745_v45 = vld [vmem:[#allocation2 + $0x90] sm:$0xe]  ;;  %v3746_v23 = vld [vmem:[#allocation2 + $0x9c] sm:$0xe] }
 0x12d   : > { %7489 = vmatprep.subr.bf16.mxu1 %v9184_v43  ;;  %v3858_v34 = vrot.slane %v3856_v1, 4  ;;  %7389 = vmatprep.mubr.bf16.mxu0 %v9132_v37  ;;  %v9237_v5 = vsel %vm8353_vm13, %v3851_v39, %v3852_v50  ;;  %v9241_v10 = vsel %vm8353_vm13, %v6479_v17, %v3856_v1  ;;  %v7688_v49 = vld [vmem:[#allocation2 + $0x90] sm:$0xff]   ;;  %v3863_v17 = vrot.slane %v8848_v62, 5  ;;  %v7690_v39 = vld [vmem:[#allocation2 + $0x9c] sm:$0xff]  }
 0x12e   : > { %v3866_v1 = vrot.slane %v8859_v33, 5 }
 0x12f   : > { %7330 = vmatmul.mubr.bf16.gmra.mxu1 %v7684_v7  ;;  %v3025_v2 = vld [vmem:[#allocation2 + $0xc0] sm:$0xf]  ;;  %v9231_v12 = vld [vmem:[#allocation2 + $0xc4] sm:$0xf]  ;;  %v9250_v46 = vsel %vm8353_vm13, %v3858_v34, %v3859_v28  ;;  %v6481_v34 = vrot.slane %v3744_v52, 9  ;;  %v3870_v28 = vrot.slane %v8875_v56, 5 }
 0x130   : > { %v9233_v21 = vld [vmem:[#allocation2 + $0xc8] sm:$0x1]  ;;  %7333 = vmatprep.mubr.bf16.mxu1 %v7686_v8  ;;  %v3389_v41 = vshrl.u32 %v3025_v2, 16  ;;  %v3392_v15 = vshll.u32 %v3025_v2, 16  ;;  %v3398_v42 = vshll.u32 %v9231_v12, 16  ;;  %v3402_v37 = vshrl.u32 %v9231_v12, 16 }
 0x131   : > { %v3408_v26 = vshll.u32 %v9233_v21, 16  ;;  %v9264_v62 = vsel %vm8353_vm13, %v6481_v34, %v3870_v28  ;;  %v3872_v33 = vrot.slane %v3870_v28, 4  ;;  %v10686_v52 = vld [vmem:[#allocation8_spill] sm:$0xff]  ;;  %v3748_v34 = vld [vmem:[#allocation2 + $0xb4] sm:$0xe]  ;;  %v3908_v6 = vrot.slane %v9233_v21, 5 }
 0x132   : > { %v3391_v57 = vrot.slane %v3389_v41, 4  ;;  %v3394_v7 = vrot.slane %v3392_v15, 5  ;;  %v3400_v25 = vrot.slane %v3398_v42, 5  ;;  %v3404_v16 = vrot.slane %v3402_v37, 4  ;;  %v10685_v42 = vld [vmem:[#allocation7_spill] sm:$0xff]  ;;  %v7696_v11 = vld [vmem:[#allocation2 + $0xc0] sm:$0xff]  }
 0x133   : > { %v3410_v8 = vrot.slane %v3408_v26, 5  ;;  %v9259_v41 = vsel %vm8353_vm13, %v6480_v63, %v3863_v17  ;;  %v3865_v15 = vrot.slane %v3863_v17, 4  ;;  %v3873_v37 = vrot.slane %v10685_v42, 5  ;;  %v10687_v63 = vld [vmem:[#allocation9_spill] sm:$0xff] }
 0x134   : > { %v3395_v2 = vor.u32 %v3394_v7, %v3391_v57  ;;  %v3405_v29 = vor.u32 %v3404_v16, %v3400_v25  ;;  %v6482_v26 = vrot.slane %v3745_v45, 9  ;;  %v3877_v57 = vrot.slane %v10686_v52, 5  ;;  %v3747_v17 = vld [vmem:[#allocation2 + $0xa8] sm:$0xe]  ;;  %v10690_v52 = vld [vmem:[#allocation12_spill] sm:$0xff] }
 0x135   : > { %v9268_v56 = vsel %vm8353_vm13, %v3865_v15, %v3866_v1  ;;  %v3880_v7 = vrot.slane %v10687_v63, 5  ;;  %v6483_v16 = vrot.slane %v3746_v23, 9  ;;  %v9280_v1 = vsel %vm8353_vm13, %v3872_v33, %v3873_v37  ;;  %v7692_v37 = vld [vmem:[#allocation2 + $0xa8] sm:$0xff]  }
 0x136   : > { %v3396_v50 = vrot.slane %v3395_v2, 4  ;;  %v3406_v4 = vrot.slane %v3405_v29, 4  ;;  %v7698_v2 = vld [vmem:[#allocation2 + $0x18] sm:$0xff]   ;;  %v6484_v42 = vrot.slane %v3747_v17, 9  ;;  %v3891_v63 = vrot.slane %v10690_v52, 5 }
 0x137   : > { %7334 = vmatmul.mubr.bf16.gmra.mxu1 %v7688_v49  ;;  %v488_v49 = vld [vmem:[#allocation2 + $0xcc] sm:$0x1]  ;;  %v6485_v23 = vrot.slane %v3748_v34, 9  ;;  %v3801_v21 = vsel %vm8353_vm13, %v6471_v53, %v3800_v24 }
 0x138   : > { %7337 = vmatprep.mubr.bf16.mxu1 %v7690_v39  ;;  %v3401_v29 = vsel %vm7899_vm9, %v3396_v50, %v3400_v25  ;;  %v3411_v45 = vsel %vm7899_vm9, %v3406_v4, %v3410_v8  ;;  %v9286_v39 = vsel %vm8353_vm13, %v6482_v26, %v3877_v57  ;;  %v3879_v25 = vrot.slane %v3877_v57, 4  ;;  %v10688_v50 = vld [vmem:[#allocation10_spill] sm:$0xff]  ;;  %v10689_v8 = vld [vmem:[#allocation11_spill] sm:$0xff]  ;;  %v3749_v57 = vld [vmem:[#allocation2 + $0xc0] sm:$0xe] }
 0x139   : > { %v6462_v28 = vcombine.low %v3401_v29, %v3411_v45  ;;  %v3884_v4 = vrot.slane %v10688_v50, 5  ;;  %v3887_v15 = vrot.slane %v10689_v8, 5  ;;  %v10691_v29 = vld [vmem:[#allocation13_spill] sm:$0xff]  ;;  %v10692_v26 = vld [vmem:[#allocation14_spill] sm:$0xff] }
 0x13a   : > { %v9293_v33 = vsel %vm8353_vm13, %v3879_v25, %v3880_v7  ;;  %v3894_v45 = vrot.slane %v10691_v29, 5  ;;  %v3898_v31 = vrot.slane %v10692_v26, 5  ;;  %v9305_v7 = vsel %vm8353_vm13, %v6484_v42, %v3891_v63  ;;  %v7699_v42 = vld [vmem:[#allocation2 + $0x24] sm:$0xff]  }
 0x13b   : > { %7390 = vmatmul.mubr.bf16.gmra.mxu0 %v6462_v28  ;;  %v9301_v50 = vsel %vm8353_vm13, %v6483_v16, %v3884_v4  ;;  %v3886_v28 = vrot.slane %v3884_v4, 4  ;;  %v3893_v25 = vrot.slane %v3891_v63, 4  ;;  %v489_v16 = vsel %vm7829_vm4, 0, %v488_v49  ;;  %v7702_v49 = vld [vmem:[#allocation2 + $0x30] sm:$0xff]   ;;  %v7709_v24 = vld [vmem:[%s10614_s3 + $0x228] sm:$0xff]  }
 0x13c   : > { %7457 = vmatprep.mubr.bf16.mxu0 %v7698_v2  ;;  %v9309_v34 = vsel %vm8353_vm13, %v6485_v23, %v3898_v31  ;;  %v3900_v8 = vrot.slane %v3898_v31, 4  ;;  %v3901_v2 = vrot.slane %v9024_v55, 5  ;;  %v6486_v4 = vrot.slane %v3749_v57, 9  ;;  %490 = vst [vmem:[#allocation2 + $0xcc] sm:$0x1] %v489_v16  ;;  %v7713_v57 = vld [vmem:[%s10614_s3 + $0x220] sm:$0xff]  }
 0x13d   : > { %v9314_v52 = vsel %vm8353_vm13, %v3886_v28, %v3887_v15  ;;  %v3905_v29 = vrot.slane %v9231_v12, 5  ;;  %v9323_v31 = vsel %vm8353_vm13, %v3893_v25, %v3894_v45  ;;  %v7705_v45 = vld [vmem:[%s10614_s3 + $0x230] sm:$0xff]   ;;  %v4620_v28 = vld [vmem:[#allocation2 + $0x1c] sm:$0xf]  ;;  %v9367_v25 = vpop.f32.mrf.mxu0  ;;  %v5373_v16 = vld [vmem:[#allocation2 + $0x18] sm:$0xe] }
 0x13e   : > { %v9327_v55 = vsel %vm8353_vm13, %v3900_v8, %v3901_v2  ;;  %10696 = vst [vmem:[#allocation7_spill] sm:$0xff] %v9367_v25  ;;  %v9369_v8 = vld [vmem:[#allocation2 + $0x20] sm:$0x1]  ;;  %v5439_v2 = vrot.slane %v4620_v28, 5  ;;  %v9395_v23 = vld [vmem:[#allocation2 + $0x2c] sm:$0x1] }
 0x13f   : > { %7338 = vmatmul.mubr.bf16.gmra.mxu1 %v7692_v37  ;;  %v9336_v15 = vsel %vm8353_vm13, %v6486_v4, %v3905_v29  ;;  %v3907_v37 = vrot.slane %v3905_v29, 4 }
 0x140   : > { %7341 = vmatprep.mubr.bf16.mxu1 %v7694_v27  ;;  %10693 = vst [vmem:[#allocation5_spill] sm:$0xff] %v9336_v15  ;;  %v3804_v27 = vsel %vm8353_vm13, %v9213_v44, %v3803_v30  ;;  %v7703_v30 = vld [vmem:[#allocation2 + $0x3c] sm:$0xff]   ;;  %v7706_v44 = vld [vmem:[#allocation2 + $0x48] sm:$0xff]  }
 0x141   : > { %v9354_v26 = vsel %vm8353_vm13, %v3907_v37, %v3908_v6  ;;  %v6503_v53 = vcombine.low %v3801_v21, %v3804_v27  ;;  %v4681_v6 = vshrl.u32 %v4620_v28, 16  ;;  %v7707_v37 = vld [vmem:[#allocation2 + $0x54] sm:$0xff]   ;;  %v9377_v27 = vpop.f32.mrf.mxu0 }
 0x142   : > { %10694 = vst [vmem:[#allocation6_spill] sm:$0xff] %v9354_v26  ;;  %v7717_v21 = vld [vmem:[%s10614_s3 + $0x218] sm:$0xff]   ;;  %10697 = vst [vmem:[#allocation8_spill] sm:$0xff] %v9377_v27  ;;  %v9427_v27 = vpop.f32.mrf.mxu1  ;;  %v10708_v26 = vcombine.low %v9202_v35, %v9220_v22 }
 0x143   : > { %7458 = vmatmul.mubr.bf16.vlgmr.msra.gmra.mxu0 %v7699_v42  ;;  %v4677_v42 = vshll.u32 %v4620_v28, 16  ;;  %v4622_v28 = vld [vmem:[#allocation2 + $0x24] sm:$0xf]  ;;  %v4683_v9 = vrot.slane %v4681_v6, 4  ;;  %v9397_v63 = vpop.f32.mrf.mxu0  ;;  %v4687_v6 = vshll.u32 %v9369_v8, 16  ;;  %10701 = vst [vmem:[#allocation11_spill] sm:$0xff] %v9427_v27 }
 0x144   : > { %7538 = vmatpush3.bf16.msra.mxu0 %v9090_v60  ;;  %7461 = vmatprep.mubr.bf16.mxu0 %v7702_v49  ;;  %v4619_v60 = vld [vmem:[#allocation2 + $0x18] sm:$0xf]  ;;  %v7704_v49 = vld [vmem:[%s10614_s3 + $0x1f0] sm:$0xff]   ;;  %10698 = vst [vmem:[#allocation9_spill] sm:$0xff] %v9397_v63  ;;  %v4692_v3 = vshrl.u32 %v4622_v28, 16  ;;  %v4695_v14 = vshll.u32 %v4622_v28, 16 }
 0x145   : > { %7539 = vmatprep.subr.bf16.mxu0 %v7705_v45  ;;  %v4668_v4 = vshrl.u32 %v4619_v60, 16  ;;  %v4671_v29 = vshll.u32 %v4619_v60, 16  ;;  %v9390_v59 = vrot.slane %v4677_v42, 5  ;;  %v9431_v25 = vrot.slane %v4687_v6, 5  ;;  %v4628_v6 = vld [vmem:[#allocation2 + $0x3c] sm:$0xf] }
 0x147   : > { %7342 = vmatmul.mubr.bf16.gmra.mxu1 %v7696_v11  ;;  %v7708_v11 = vld [vmem:[%s10614_s3 + $0x1e8] sm:$0xff]   ;;  %v4670_v60 = vrot.slane %v4668_v4, 4  ;;  %v4673_v13 = vrot.slane %v4671_v29, 5  ;;  %v9399_v29 = vld [vmem:[#allocation2 + $0x34] sm:$0xf]  ;;  %v4684_v28 = vor.u32 %v4683_v9, %v9390_v59 }
 0x148   : > { %7409 = vmatprep.mubr.bf16.mxu1 %v6503_v53  ;;  %7540 = vmatpush3.bf16.msra.mxu0 %v7705_v45  ;;  %v4623_v45 = vld [vmem:[#allocation2 + $0x28] sm:$0xf]  ;;  %v7710_v53 = vld [vmem:[#allocation2 + $0x60] sm:$0xff]  }
 0x149   : > { %7541 = vmatprep.subr.bf16.mxu0 %v7709_v24  ;;  %v5446_v12 = vrot.slane %v4623_v45, 5  ;;  %v4705_v4 = vshrl.u32 %v4623_v45, 16  ;;  %v4674_v58 = vor.u32 %v4673_v13, %v4670_v60  ;;  %v7725_v13 = vld [vmem:[%s10614_s3 + $0x208] sm:$0xff]   ;;  %v4697_v60 = vrot.slane %v4695_v14, 5  ;;  %v9437_v14 = vld [vmem:[#allocation2 + $0x40] sm:$0xf] }
 0x14b   : > { %7462 = vmatmul.mubr.bf16.gmra.mxu0 %v7703_v30  ;;  %v5441_v30 = vrot.slane %v5439_v2, 4 }
 0x14c   : > { %7465 = vmatprep.mubr.bf16.mxu0 %v7706_v44  ;;  %7542 = vmatpush3.bf16.msra.mxu0 %v7709_v24  ;;  %v6607_v24 = vrot.slane %v5373_v16, 9  ;;  %v5442_v44 = vrot.slane %v9369_v8, 5  ;;  %v7721_v16 = vld [vmem:[%s10614_s3 + $0x210] sm:$0xff]   ;;  %v4729_v8 = vshrl.u32 %v9399_v29, 16 }
 0x14d   : > { %7543 = vmatprep.subr.bf16.mxu0 %v7713_v57 }
 0x14e   : > { %v9407_v42 = vsel %vm8353_vm13, %v5441_v30, %v5442_v44  ;;  %v4725_v30 = vshll.u32 %v9399_v29, 16  ;;  %v4694_v44 = vrot.slane %v4692_v3, 4  ;;  %v5375_v3 = vld [vmem:[#allocation2 + $0x30] sm:$0xe] }
 0x14f   : > { %7410 = vmatmul.mubr.bf16.vlgmr.msra.gmra.mxu1 %v6504_v19  ;;  %v5374_v19 = vld [vmem:[#allocation2 + $0x24] sm:$0xe] }
 0x150   : > { %7490 = vmatpush3.bf16.msra.mxu1 %v9184_v43  ;;  %7413 = vmatprep.mubr.bf16.mxu1 %v6505_v38  ;;  %v4625_v43 = vld [vmem:[#allocation2 + $0x30] sm:$0xf]  ;;  %v4701_v38 = vshll.u32 %v4623_v45, 16  ;;  %v6608_v17 = vrot.slane %v5374_v19, 9  ;;  %v10700_v19 = vcombine.low %v9162_v47, %v9177_v18  ;;  %v9442_v47 = vrot.slane %v4674_v58, 4 }
 0x151   : > { %7491 = vmatprep.subr.bf16.mxu1 %v7704_v49  ;;  %7544 = vmatpush3.bf16.msra.mxu0 %v7713_v57  ;;  %v9403_v57 = vsel %vm8353_vm13, %v6607_v24, %v5439_v2  ;;  %v4716_v45 = vshrl.u32 %v4625_v43, 16  ;;  %v4719_v63 = vshll.u32 %v4625_v43, 16  ;;  %v7712_v2 = vld [vmem:[%s10614_s3 + $0x1e0] sm:$0xff]   ;;  %v5449_v24 = vrot.slane %v9395_v23, 5  ;;  %v7714_v43 = vld [vmem:[#allocation2 + $0x78] sm:$0xff]  }
 0x152   : > { %7545 = vmatprep.subr.bf16.mxu0 %v7717_v21  ;;  %v9422_v9 = vrot.slane %v4701_v38, 5  ;;  %v9435_v40 = vsel %vm8353_vm13, %v6608_v17, %v5446_v12  ;;  %v10702_v38 = vcombine.low %v9166_v32, %v9190_v20  ;;  %v9444_v18 = vrot.slane %v4684_v28, 4  ;;  %v7716_v17 = vld [vmem:[%s10614_s3 + $0x1d8] sm:$0xff]  }
 0x153   : > { %7466 = vmatmul.mubr.bf16.gmra.mxu0 %v7707_v37  ;;  %v5448_v37 = vrot.slane %v5446_v12, 4  ;;  %v4711_v32 = vshll.u32 %v9395_v23, 16  ;;  %v9454_v20 = vld [vmem:[#allocation2 + $0x38] sm:$0x1]  ;;  %v9456_v58 = vrot.slane %v4725_v30, 5  ;;  %v9465_v23 = vpop.f32.mrf.mxu1  ;;  %v4743_v30 = vshll.u32 %v4628_v6, 16 }
 0x154   : > { %7492 = vmatpush3.bf16.msra.mxu1 %v7704_v49  ;;  %7469 = vmatprep.mubr.bf16.mxu0 %v7710_v53  ;;  %v7711_v49 = vld [vmem:[#allocation2 + $0x6c] sm:$0xff]   ;;  %v9417_v53 = vpop.f32.mrf.mxu0  ;;  %10704 = vst [vmem:[#allocation13_spill] sm:$0xff] %v9465_v23 }
 0x155   : > { %7493 = vmatprep.subr.bf16.mxu1 %v7708_v11  ;;  %7546 = vmatpush3.bf16.msra.mxu0 %v7717_v21  ;;  %10699 = vst [vmem:[#allocation10_spill] sm:$0xff] %v9417_v53  ;;  %v4707_v21 = vrot.slane %v4705_v4, 4  ;;  %v4718_v4 = vrot.slane %v4716_v45, 4  ;;  %v9451_v12 = vsel %vm8353_vm13, %v5448_v37, %v5449_v24  ;;  %v4698_v45 = vor.u32 %v4697_v60, %v4694_v44  ;;  %v5376_v44 = vld [vmem:[#allocation2 + $0x3c] sm:$0xe] }
 0x156   : > { %7547 = vmatprep.subr.bf16.mxu0 %v7721_v16  ;;  %v9458_v28 = vpop.f32.mrf.mxu0  ;;  %v5453_v37 = vrot.slane %v9399_v29, 5  ;;  %v4740_v24 = vshrl.u32 %v4628_v6, 16  ;;  %v4753_v53 = vshrl.u32 %v9437_v14, 16  ;;  %v4735_v60 = vshll.u32 %v9454_v20, 16 }
 0x157   : > { %7414 = vmatmul.mubr.bf16.gmra.mxu1 %v10700_v19  ;;  %v4721_v19 = vrot.slane %v4719_v63, 5  ;;  %10703 = vst [vmem:[#allocation12_spill] sm:$0xff] %v9458_v28  ;;  %v7729_v63 = vld [vmem:[%s10614_s3 + $0x200] sm:$0xff]   ;;  %v5460_v29 = vrot.slane %v9437_v14, 5  ;;  %v9501_v28 = vpop.f32.mrf.mxu1  ;;  %v4745_v36 = vrot.slane %v4743_v30, 5  ;;  %v6610_v15 = vrot.slane %v5376_v44, 9 }
 0x158   : > { %7417 = vmatprep.mubr.bf16.mxu1 %v10702_v38  ;;  %7494 = vmatpush3.bf16.msra.mxu1 %v7708_v11  ;;  %v4731_v11 = vrot.slane %v4729_v8, 4  ;;  %v6609_v38 = vrot.slane %v5375_v3, 9  ;;  %v4749_v8 = vshll.u32 %v9437_v14, 16  ;;  %v5456_v3 = vrot.slane %v9454_v20, 5  ;;  %10707 = vst [vmem:[#allocation15_spill] sm:$0xff] %v9501_v28  ;;  %v7718_v14 = vld [vmem:[#allocation2 + $0x90] sm:$0xff]  }
 0x159   : > { %7495 = vmatprep.subr.bf16.mxu1 %v7712_v2  ;;  %7548 = vmatpush3.bf16.msra.mxu0 %v7721_v16  ;;  %v4708_v16 = vor.u32 %v4707_v21, %v9422_v9  ;;  %v9478_v21 = vld [vmem:[#allocation2 + $0x44] sm:$0x1]  ;;  %v10706_v20 = vcombine.low %v9197_v51, %v9207_v54  ;;  %v4632_v54 = vld [vmem:[#allocation2 + $0x4c] sm:$0xf] }
 0x15a   : > { %7549 = vmatprep.subr.bf16.mxu0 %v7725_v13  ;;  %v4732_v6 = vor.u32 %v4731_v11, %v9456_v58  ;;  %v9496_v27 = vsel %vm8353_vm13, %v6609_v38, %v5453_v37  ;;  %v7715_v11 = vld [vmem:[#allocation2 + $0x84] sm:$0xff]   ;;  %v5463_v51 = vrot.slane %v9478_v21, 5 }
 0x15b   : > { %7470 = vmatmul.mubr.bf16.gmra.mxu0 %v7711_v49  ;;  %v4722_v49 = vor.u32 %v4721_v19, %v4718_v4  ;;  %v9488_v4 = vpop.f32.mrf.mxu0  ;;  %v9490_v19 = vrot.slane %v4698_v45, 4  ;;  %v9492_v23 = vrot.slane %v4708_v16, 4  ;;  %v9503_v45 = vrot.slane %v4749_v8, 5 }
 0x15c   : > { %7496 = vmatpush3.bf16.msra.mxu1 %v7712_v2  ;;  %7473 = vmatprep.mubr.bf16.mxu0 %v7714_v43  ;;  %v7720_v2 = vld [vmem:[%s10614_s3 + $0x1d0] sm:$0xff]   ;;  %v9483_v43 = vrot.slane %v4711_v32, 5  ;;  %10705 = vst [vmem:[#allocation14_spill] sm:$0xff] %v9488_v4  ;;  %v4631_v32 = vld [vmem:[#allocation2 + $0x48] sm:$0xf]  ;;  %v4742_v4 = vrot.slane %v4740_v24, 4 }
 0x15d   : > { %7497 = vmatprep.subr.bf16.mxu1 %v7716_v17  ;;  %7550 = vmatpush3.bf16.msra.mxu0 %v7725_v13  ;;  %v5455_v13 = vrot.slane %v5453_v37, 4  ;;  %v4755_v16 = vrot.slane %v4753_v53, 4  ;;  %v4723_v38 = vrot.slane %v4722_v49, 4  ;;  %v4737_v37 = vrot.slane %v4735_v60, 5  ;;  %v7724_v24 = vld [vmem:[%s10614_s3 + $0x1c8] sm:$0xff]   ;;  %v9512_v28 = vpop.f32.mrf.mxu0 }
 0x15e   : > { %7551 = vmatprep.subr.bf16.mxu0 %v7729_v63  ;;  %v4733_v30 = vrot.slane %v4732_v6, 4  ;;  %v5462_v8 = vrot.slane %v5460_v29, 4  ;;  %v4764_v53 = vshrl.u32 %v4631_v32, 16  ;;  %10709 = vst [vmem:[#allocation16_spill] sm:$0xff] %v9512_v28  ;;  %v4704_v35 = vsel %vm7899_vm9, %v9490_v19, %v9422_v9  ;;  %v9526_v60 = vld [vmem:[#allocation2 + $0x50] sm:$0x1] }
 0x15f   : > { %7418 = vmatmul.mubr.bf16.gmra.mxu1 %v10706_v20  ;;  %v4767_v20 = vshll.u32 %v4631_v32, 16  ;;  %v9520_v22 = vsel %vm8353_vm13, %v5455_v13, %v5456_v3  ;;  %v4746_v44 = vor.u32 %v4745_v36, %v4742_v4  ;;  %v4756_v49 = vor.u32 %v4755_v16, %v9503_v45  ;;  %v5377_v6 = vld [vmem:[#allocation2 + $0x48] sm:$0xe]  ;;  %v7728_v3 = vld [vmem:[%s10614_s3 + $0x1c0] sm:$0xff]  }
 0x160   : > { %7421 = vmatprep.mubr.bf16.mxu1 %v10708_v26  ;;  %7498 = vmatpush3.bf16.msra.mxu1 %v7716_v17  ;;  %v4759_v26 = vshll.u32 %v9478_v21, 16  ;;  %v5467_v17 = vrot.slane %v4632_v54, 5  ;;  %v4773_v32 = vshll.u32 %v4632_v54, 16  ;;  %v4777_v28 = vshrl.u32 %v4632_v54, 16  ;;  %v7719_v19 = vld [vmem:[#allocation2 + $0x9c] sm:$0xff]  }
 0x161   : > { %7499 = vmatprep.subr.bf16.mxu1 %v7720_v2  ;;  %7552 = vmatpush3.bf16.msra.mxu0 %v7729_v63  ;;  %v9523_v63 = vpop.f32.mrf.mxu1  ;;  %v4714_v9 = vsel %vm7899_vm9, %v9492_v23, %v9483_v43  ;;  %v4728_v21 = vsel %vm7899_vm9, %v4723_v38, %v9456_v58  ;;  %v9537_v36 = vsel %vm8353_vm13, %v6610_v15, %v5460_v29  ;;  %v4766_v23 = vrot.slane %v4764_v53, 4  ;;  %v9548_v58 = vpop.f32.mrf.mxu0  ;;  %v7722_v53 = vld [vmem:[#allocation2 + $0xa8] sm:$0xff]  }
 0x162   : > { %10710 = vst [vmem:[#allocation17_spill] sm:$0xff] %v9523_v63  ;;  %v9546_v4 = vsel %vm8353_vm13, %v5462_v8, %v5463_v51  ;;  %v4769_v43 = vrot.slane %v4767_v20, 5  ;;  %v4761_v13 = vrot.slane %v4759_v26, 5  ;;  %v6611_v15 = vrot.slane %v5377_v6, 9  ;;  %v4635_v26 = vld [vmem:[#allocation2 + $0x58] sm:$0xf] }
 0x163   : > { %7474 = vmatmul.mubr.bf16.gmra.mxu0 %v7715_v11  ;;  %v5469_v29 = vrot.slane %v5467_v17, 4  ;;  %v5470_v11 = vrot.slane %v9526_v60, 5  ;;  %v9554_v16 = vpop.f32.mrf.mxu1  ;;  %v4747_v38 = vrot.slane %v4746_v44, 4  ;;  %v9556_v51 = vrot.slane %v4773_v32, 5  ;;  %v4634_v44 = vld [vmem:[#allocation2 + $0x54] sm:$0xf] }
 0x164   : > { %7477 = vmatprep.mubr.bf16.mxu0 %v7718_v14  ;;  %7500 = vmatpush3.bf16.msra.mxu1 %v7720_v2  ;;  %v4738_v2 = vsel %vm7899_vm9, %v4733_v30, %v4737_v37  ;;  %v10711_v14 = vcombine.low %v9227_v61, %v9237_v5  ;;  %10712 = vst [vmem:[#allocation18_spill] sm:$0xff] %v9554_v16  ;;  %v4757_v37 = vrot.slane %v4756_v49, 4  ;;  %v4779_v54 = vrot.slane %v4777_v28, 4  ;;  %v5378_v30 = vld [vmem:[#allocation2 + $0x54] sm:$0xe] }
 0x165   : > { %7501 = vmatprep.subr.bf16.mxu1 %v7724_v24  ;;  %v10713_v8 = vcombine.low %v9241_v10, %v9250_v46  ;;  %v10714_v61 = vsel %vm7899_vm9, %v9444_v18, %v9431_v25  ;;  %v10715_v5 = vsel %vm7899_vm9, %v9442_v47, %v9390_v59  ;;  %v9577_v46 = vcombine.low %v4704_v35, %v4714_v9  ;;  %v9583_v59 = vpop.f32.mrf.mxu0  ;;  %v4637_v32 = vld [vmem:[#allocation2 + $0x60] sm:$0xf]  ;;  %v9594_v9 = vpop.f32.mrf.mxu1 }
 0x166   : > { %v9571_v20 = vcombine.low %v10715_v5, %v10714_v61  ;;  %v4770_v18 = vor.u32 %v4769_v43, %v4766_v23  ;;  %10716 = vst [vmem:[#allocation19_spill] sm:$0xff] %v9583_v59  ;;  %v9587_v47 = vsel %vm8353_vm13, %v6611_v15, %v5467_v17  ;;  %v9591_v49 = vsel %vm8353_vm13, %v5469_v29, %v5470_v11  ;;  %v9602_v23 = vld [vmem:[#allocation2 + $0x5c] sm:$0x1]  ;;  %v9604_v11 = vld [vmem:[#allocation2 + $0x64] sm:$0xf] }
 0x167   : > { %7422 = vmatmul.mubr.bf16.gmra.mxu1 %v10711_v14  ;;  %v4783_v35 = vshll.u32 %v9526_v60, 16  ;;  %v6612_v6 = vrot.slane %v5378_v30, 9  ;;  %10717 = vst [vmem:[#allocation20_spill] sm:$0xff] %v9594_v9  ;;  %v4780_v17 = vor.u32 %v4779_v54, %v9556_v51  ;;  %v5474_v43 = vrot.slane %v4635_v26, 5  ;;  %v9610_v54 = vpop.f32.mrf.mxu0  ;;  %v9621_v61 = vld [vmem:[#allocation2 + $0x70] sm:$0xf] }
 0x168   : > { %7425 = vmatprep.mubr.bf16.mxu1 %v10713_v8  ;;  %7502 = vmatpush3.bf16.msra.mxu1 %v7724_v24  ;;  %v9579_v24 = vcombine.low %v4728_v21, %v4738_v2  ;;  %v4752_v21 = vsel %vm7899_vm9, %v4747_v38, %v9503_v45  ;;  %v4762_v2 = vsel %vm7899_vm9, %v4757_v37, %v4761_v13  ;;  %v4788_v60 = vshrl.u32 %v4634_v44, 16  ;;  %v7723_v37 = vld [vmem:[#allocation2 + $0xb4] sm:$0xff]  }
 0x169   : > { %7503 = vmatprep.subr.bf16.mxu1 %v7728_v3  ;;  %v4791_v15 = vshll.u32 %v4634_v44, 16  ;;  %v4797_v29 = vshll.u32 %v4635_v26, 16  ;;  %v9608_v45 = vrot.slane %v4770_v18, 4  ;;  %v4812_v38 = vshrl.u32 %v4637_v32, 16  ;;  %10718 = vst [vmem:[#allocation21_spill] sm:$0xff] %v9610_v54  ;;  %v9626_v18 = vpop.f32.mrf.mxu1 }
 0x16a   : > { %v4815_v13 = vshll.u32 %v4637_v32, 16  ;;  %v9612_v30 = vcombine.low %v4752_v21, %v4762_v2  ;;  %v9614_v8 = vrot.slane %v4783_v35, 5  ;;  %v10719_v5 = vcombine.low %v9259_v41, %v9268_v56  ;;  %10720 = vst [vmem:[#allocation22_spill] sm:$0xff] %v9626_v18  ;;  %v4640_v21 = vld [vmem:[#allocation2 + $0x6c] sm:$0xf]  ;;  %v7726_v2 = vld [vmem:[#allocation2 + $0xc0] sm:$0xff]   ;;  %v9642_v18 = vpop.f32.mrf.mxu0 }
 0x16b   : > { %7478 = vmatmul.mubr.bf16.gmra.mxu0 %v7719_v19  ;;  %v4801_v19 = vshrl.u32 %v4635_v26, 16  ;;  %v9628_v26 = vrot.slane %v4780_v17, 4  ;;  %v5476_v44 = vrot.slane %v5474_v43, 4  ;;  %v4821_v35 = vshll.u32 %v9604_v11, 16  ;;  %v5379_v17 = vld [vmem:[#allocation2 + $0x60] sm:$0xe] }
 0x16c   : > { %7481 = vmatprep.mubr.bf16.mxu0 %v7722_v53  ;;  %7504 = vmatpush3.bf16.msra.mxu1 %v7728_v3  ;;  %v9618_v3 = vsel %vm8353_vm13, %v6612_v6, %v5474_v43  ;;  %v5477_v53 = vrot.slane %v9602_v23, 5  ;;  %v4825_v32 = vshrl.u32 %v9604_v11, 16  ;;  %v10721_v6 = vcombine.low %v9264_v62, %v9280_v1  ;;  %10722 = vst [vmem:[#allocation23_spill] sm:$0xff] %v9642_v18  ;;  %v4639_v62 = vld [vmem:[#allocation2 + $0x68] sm:$0x1] }
 0x16d   : > { %v4790_v14 = vrot.slane %v4788_v60, 4  ;;  %v4793_v25 = vrot.slane %v4791_v15, 5  ;;  %v9635_v10 = vrot.slane %v4797_v29, 5  ;;  %v4803_v41 = vrot.slane %v4801_v19, 4  ;;  %v9646_v29 = vpop.f32.mrf.mxu1  ;;  %v4642_v18 = vld [vmem:[#allocation2 + $0x74] sm:$0x1] }
 0x16e   : > { %v5481_v43 = vrot.slane %v9604_v11, 5  ;;  %v4817_v28 = vrot.slane %v4815_v13, 5  ;;  %v4836_v1 = vshrl.u32 %v4640_v21, 16  ;;  %v4845_v60 = vshll.u32 %v9621_v61, 16  ;;  %10723 = vst [vmem:[#allocation24_spill] sm:$0xff] %v9646_v29 }
 0x16f   : > { %7426 = vmatmul.mubr.bf16.gmra.mxu1 %v10719_v5  ;;  %v4814_v5 = vrot.slane %v4812_v38, 4  ;;  %v4849_v15 = vshrl.u32 %v9621_v61, 16  ;;  %v9650_v19 = vsel %vm8353_vm13, %v5476_v44, %v5477_v53  ;;  %v4807_v11 = vshll.u32 %v9602_v23, 16 }
 0x170   : > { %7429 = vmatprep.mubr.bf16.mxu1 %v10721_v6  ;;  %v4839_v6 = vshll.u32 %v4640_v21, 16  ;;  %v9653_v38 = vrot.slane %v4821_v35, 5  ;;  %v4827_v13 = vrot.slane %v4825_v32, 4  ;;  %v4786_v21 = vsel %vm7899_vm9, %v9628_v26, %v9614_v8  ;;  %v5380_v35 = vld [vmem:[#allocation2 + $0x6c] sm:$0xe] }
 0x171   : > { %v4794_v56 = vor.u32 %v4793_v25, %v4790_v14  ;;  %v4804_v9 = vor.u32 %v4803_v41, %v9635_v10  ;;  %v6613_v29 = vrot.slane %v5379_v17, 9  ;;  %v5483_v16 = vrot.slane %v5481_v43, 4  ;;  %v9667_v14 = vpop.f32.mrf.mxu1  ;;  %v7727_v8 = vld [vmem:[#allocation2 + $0xcc] sm:$0xff]  }
 0x172   : > { %v5484_v63 = vrot.slane %v4639_v62, 5  ;;  %v4818_v53 = vor.u32 %v4817_v28, %v4814_v5  ;;  %v4831_v44 = vshll.u32 %v4639_v62, 16  ;;  %v4838_v32 = vrot.slane %v4836_v1, 4  ;;  %10726 = vst [vmem:[#allocation26_spill] sm:$0xff] %v9667_v14 }
 0x173   : > { %7482 = vmatmul.mubr.bf16.gmra.mxu0 %v7723_v37  ;;  %v4643_v37 = vld [vmem:[#allocation2 + $0x78] sm:$0xf]  ;;  %v9660_v23 = vpop.f32.mrf.mxu0  ;;  %v9662_v54 = vrot.slane %v4845_v60, 5  ;;  %v4851_v59 = vrot.slane %v4849_v15, 4  ;;  %v10725_v25 = vcombine.low %v9286_v39, %v9293_v33  ;;  %v4828_v26 = vor.u32 %v4827_v13, %v9653_v38 }
 0x174   : > { %7485 = vmatprep.mubr.bf16.mxu0 %v7726_v2  ;;  %10724 = vst [vmem:[#allocation25_spill] sm:$0xff] %v9660_v23  ;;  %v4841_v2 = vrot.slane %v4839_v6, 5  ;;  %v5488_v28 = vrot.slane %v9621_v61, 5  ;;  %v4860_v41 = vshrl.u32 %v4643_v37, 16  ;;  %v4863_v17 = vshll.u32 %v4643_v37, 16 }
 0x175   : > { %v10727_v5 = vcombine.low %v9301_v50, %v9314_v52  ;;  %v9674_v62 = vpop.f32.mrf.mxu0  ;;  %v4795_v1 = vrot.slane %v4794_v56, 4  ;;  %v4805_v6 = vrot.slane %v4804_v9, 4  ;;  %v4809_v60 = vrot.slane %v4807_v11, 5  ;;  %v9687_v9 = vld [vmem:[#allocation2 + $0x7c] sm:$0xf]  ;;  %v9689_v11 = vpop.f32.mrf.mxu1 }
 0x176   : > { %10728 = vst [vmem:[#allocation27_spill] sm:$0xff] %v9674_v62  ;;  %v9678_v39 = vsel %vm8353_vm13, %v6613_v29, %v5481_v43  ;;  %v9682_v33 = vsel %vm8353_vm13, %v5483_v16, %v5484_v63  ;;  %v4833_v61 = vrot.slane %v4831_v44, 5  ;;  %v6614_v15 = vrot.slane %v5380_v35, 9  ;;  %10730 = vst [vmem:[#allocation29_spill] sm:$0xff] %v9689_v11 }
 0x177   : > { %7430 = vmatmul.mubr.bf16.gmra.mxu1 %v10725_v25  ;;  %v5491_v13 = vrot.slane %v4642_v18, 5  ;;  %v9684_v37 = vpop.f32.mrf.mxu0  ;;  %v4819_v50 = vrot.slane %v4818_v53, 4  ;;  %v4842_v52 = vor.u32 %v4841_v2, %v4838_v32  ;;  %v4852_v25 = vor.u32 %v4851_v59, %v9662_v54  ;;  %v4646_v2 = vld [vmem:[#allocation2 + $0x84] sm:$0xf] }
 0x178   : > { %7433 = vmatprep.mubr.bf16.mxu1 %v10727_v5  ;;  %10729 = vst [vmem:[#allocation28_spill] sm:$0xff] %v9684_v37  ;;  %v4855_v56 = vshll.u32 %v4642_v18, 16  ;;  %v4829_v43 = vrot.slane %v4828_v26, 4  ;;  %v5490_v29 = vrot.slane %v5488_v28, 4  ;;  %v4862_v5 = vrot.slane %v4860_v41, 4 }
 0x179   : > { %v4865_v63 = vrot.slane %v4863_v17, 5  ;;  %v9691_v16 = vpop.f32.mrf.mxu0  ;;  %v10732_v44 = vcombine.low %v9403_v57, %v9407_v42  ;;  %v10733_v59 = vsel %vm7899_vm9, %v9608_v45, %v9556_v51  ;;  %v4800_v35 = vsel %vm7899_vm9, %v4795_v1, %v9635_v10  ;;  %v5381_v42 = vld [vmem:[#allocation2 + $0x78] sm:$0xe]  ;;  %v4645_v1 = vld [vmem:[#allocation2 + $0x80] sm:$0x1] }
 0x17a   : > { %10731 = vst [vmem:[#allocation30_spill] sm:$0xff] %v9691_v16  ;;  %v9701_v18 = vcombine.low %v10733_v59, %v4786_v21  ;;  %v4810_v32 = vsel %vm7899_vm9, %v4805_v6, %v4809_v60  ;;  %v4869_v51 = vshll.u32 %v9687_v9, 16  ;;  %v4873_v45 = vshrl.u32 %v9687_v9, 16  ;;  %v9724_v60 = vpop.f32.mrf.mxu1  ;;  %v4655_v16 = vld [vmem:[#allocation2 + $0xa8] sm:$0xf] }
 0x17b   : > { %7486 = vmatmul.mubr.bf16.gmra.mxu0 %v7727_v8  ;;  %v5495_v8 = vrot.slane %v9687_v9, 5  ;;  %v9715_v21 = vpop.f32.mrf.mxu0  ;;  %v9719_v26 = vsel %vm8353_vm13, %v6614_v15, %v5488_v28  ;;  %v4843_v10 = vrot.slane %v4842_v52, 4  ;;  %v4853_v41 = vrot.slane %v4852_v25, 4  ;;  %10735 = vst [vmem:[#allocation31_spill] sm:$0xff] %v9724_v60 }
 0x17c   : > { %7553 = vmatprep.mubr.bf16.mxu0 %v10732_v44  ;;  %v4857_v17 = vrot.slane %v4855_v56, 5  ;;  %v10734_v6 = vcombine.low %v9305_v7, %v9323_v31  ;;  %v4824_v9 = vsel %vm7899_vm9, %v4819_v50, %v9653_v38  ;;  %v4834_v44 = vsel %vm7899_vm9, %v4829_v43, %v4833_v61  ;;  %v5382_v56 = vld [vmem:[#allocation2 + $0x84] sm:$0xe] }
 0x17d   : > { %v9733_v28 = vsel %vm8353_vm13, %v5490_v29, %v5491_v13  ;;  %v4866_v15 = vor.u32 %v4865_v63, %v4862_v5  ;;  %v10736_v52 = vcombine.low %v9309_v34, %v9327_v55  ;;  %v9738_v7 = vpop.f32.mrf.mxu0  ;;  %v9740_v31 = vcombine.low %v4800_v35, %v4810_v32  ;;  %v4647_v13 = vld [vmem:[#allocation2 + $0x88] sm:$0xf]  ;;  %v9755_v35 = vld [vmem:[#allocation2 + $0x94] sm:$0xf]  ;;  %v9757_v32 = vpop.f32.mrf.mxu1 }
 0x17e   : > { %v6615_v25 = vrot.slane %v5381_v42, 9  ;;  %v4884_v59 = vshrl.u32 %v4646_v2, 16  ;;  %v4887_v38 = vshll.u32 %v4646_v2, 16  ;;  %v5497_v50 = vrot.slane %v5495_v8, 4  ;;  %10737 = vst [vmem:[#allocation32_spill] sm:$0xff] %v9757_v32 }
 0x17f   : > { %7434 = vmatmul.mubr.bf16.gmra.mxu1 %v10734_v6  ;;  %v5498_v6 = vrot.slane %v4645_v1, 5  ;;  %v9742_v61 = vrot.slane %v4869_v51, 5  ;;  %v4875_v43 = vrot.slane %v4873_v45, 4  ;;  %v9744_v29 = vpop.f32.mrf.mxu0  ;;  %v9746_v5 = vcombine.low %v4824_v9, %v4834_v44  ;;  %v4649_v44 = vld [vmem:[#allocation2 + $0x90] sm:$0xf] }
 0x180   : > { %7437 = vmatprep.mubr.bf16.mxu1 %v10736_v52  ;;  %v4848_v55 = vsel %vm7899_vm9, %v4843_v10, %v9662_v54  ;;  %v4858_v63 = vsel %vm7899_vm9, %v4853_v41, %v4857_v17  ;;  %v10738_v2 = vcombine.low %v9435_v40, %v9451_v12  ;;  %v9762_v42 = vrot.slane %v4866_v15, 4  ;;  %v4648_v10 = vld [vmem:[#allocation2 + $0x8c] sm:$0x1] }
 0x181   : > { %v4879_v51 = vshll.u32 %v4645_v1, 16  ;;  %v6616_v45 = vrot.slane %v5382_v56, 9  ;;  %v5502_v9 = vrot.slane %v4647_v13, 5  ;;  %v9764_v52 = vpop.f32.mrf.mxu0  ;;  %v10739_v54 = vcombine.low %v9496_v27, %v9520_v22  ;;  %v5383_v27 = vld [vmem:[#allocation2 + $0x90] sm:$0xe] }
 0x182   : > { %v4886_v41 = vrot.slane %v4884_v59, 4  ;;  %v4889_v17 = vrot.slane %v4887_v38, 5  ;;  %v4893_v34 = vshll.u32 %v4647_v13, 16  ;;  %v4897_v57 = vshrl.u32 %v4647_v13, 16 }
 0x183   : > { %7554 = vmatmul.mubr.bf16.vlgmr.msra.gmra.mxu0 %v10738_v2  ;;  %v9769_v53 = vcombine.low %v4848_v55, %v4858_v63  ;;  %v9773_v40 = vsel %vm8353_vm13, %v6615_v25, %v5495_v8  ;;  %v9777_v12 = vsel %vm8353_vm13, %v5497_v50, %v5498_v6  ;;  %v4876_v1 = vor.u32 %v4875_v43, %v9742_v61  ;;  %v9780_v15 = vpop.f32.mrf.mxu0  ;;  %v10742_v55 = vld [vmem:[#allocation5_spill] sm:$0xff]  ;;  %v10743_v8 = vld [vmem:[#allocation6_spill] sm:$0xff] }
 0x184   : > { %7557 = vmatprep.mubr.bf16.mxu0 %v10739_v54  ;;  %v4908_v22 = vshrl.u32 %v4649_v44, 16  ;;  %v4911_v56 = vshll.u32 %v4649_v44, 16  ;;  %v4917_v59 = vshll.u32 %v9755_v35, 16  ;;  %v4921_v38 = vshrl.u32 %v9755_v35, 16 }
 0x185   : > { %10740 = vst [vmem:[#allocation33_spill] sm:$0xff] %v9769_v53  ;;  %v9784_v13 = vpop.f32.mrf.mxu1  ;;  %v10744_v25 = vcombine.low %v10742_v55, %v10743_v8  ;;  %v9789_v63 = vrot.slane %v4879_v51, 5  ;;  %v9793_v50 = vsel %vm8353_vm13, %v6616_v45, %v5502_v9  ;;  %v5504_v6 = vrot.slane %v5502_v9, 4  ;;  %v9796_v2 = vpop.f32.mrf.mxu0  ;;  %v9804_v8 = vld [vmem:[#allocation2 + $0xa0] sm:$0xf] }
 0x186   : > { %10741 = vst [vmem:[#allocation34_spill] sm:$0xff] %v9784_v13  ;;  %v5505_v43 = vrot.slane %v4648_v10, 5  ;;  %10745 = vst [vmem:[#allocation5_spill] sm:$0xff] %v9796_v2  ;;  %v4890_v54 = vor.u32 %v4889_v17, %v4886_v41  ;;  %v9802_v55 = vrot.slane %v4893_v34, 5  ;;  %v4899_v51 = vrot.slane %v4897_v57, 4 }
 0x187   : > { %7438 = vmatmul.mubr.bf16.gmra.mxu1 %v10744_v25  ;;  %v4652_v25 = vld [vmem:[#allocation2 + $0x9c] sm:$0xf]  ;;  %v9806_v45 = vpop.f32.mrf.mxu1  ;;  %v9808_v9 = vrot.slane %v4876_v1, 4  ;;  %v4903_v13 = vshll.u32 %v4648_v10, 16  ;;  %v6617_v32 = vrot.slane %v5383_v27, 9  ;;  %v5509_v60 = vrot.slane %v9755_v35, 5  ;;  %v9813_v11 = vpop.f32.mrf.mxu0 }
 0x188   : > { %7505 = vmatprep.mubr.bf16.mxu1 %v9571_v20  ;;  %10746 = vst [vmem:[#allocation6_spill] sm:$0xff] %v9806_v45  ;;  %v9810_v20 = vld [vmem:[#allocation2 + $0x98] sm:$0x1]  ;;  %10747 = vst [vmem:[#allocation35_spill] sm:$0xff] %v9813_v11  ;;  %v4910_v44 = vrot.slane %v4908_v22, 4  ;;  %v4913_v41 = vrot.slane %v4911_v56, 5  ;;  %v10749_v45 = vcombine.low %v9537_v36, %v9546_v4  ;;  %v10751_v22 = vcombine.low %v9587_v47, %v9591_v49 }
 0x189   : > { %v9815_v34 = vrot.slane %v4917_v59, 5  ;;  %v4923_v57 = vrot.slane %v4921_v38, 4  ;;  %v9817_v17 = vpop.f32.mrf.mxu1  ;;  %v4932_v1 = vshrl.u32 %v4652_v25, 16  ;;  %v4935_v10 = vshll.u32 %v4652_v25, 16  ;;  %v9824_v35 = vpop.f32.mrf.mxu0  ;;  %v9870_v11 = vld [vmem:[#allocation2 + $0xb0] sm:$0x1] }
 0x18a   : > { %10748 = vst [vmem:[#allocation36_spill] sm:$0xff] %v9817_v17  ;;  %v4941_v14 = vshll.u32 %v9804_v8, 16  ;;  %v4945_v27 = vshrl.u32 %v9804_v8, 16  ;;  %10750 = vst [vmem:[#allocation37_spill] sm:$0xff] %v9824_v35  ;;  %v9831_v56 = vsel %vm8353_vm13, %v5504_v6, %v5505_v43  ;;  %v9833_v59 = vrot.slane %v4890_v54, 4 }
 0x18b   : > { %7558 = vmatmul.mubr.bf16.gmra.mxu0 %v10749_v45  ;;  %v4900_v36 = vor.u32 %v4899_v51, %v9802_v55  ;;  %v4927_v4 = vshll.u32 %v9810_v20, 16  ;;  %v9837_v38 = vpop.f32.mrf.mxu1  ;;  %v9843_v45 = vrot.slane %v4903_v13, 5  ;;  %v9847_v47 = vsel %vm8353_vm13, %v6617_v32, %v5509_v60  ;;  %v5384_v6 = vld [vmem:[#allocation2 + $0x9c] sm:$0xe]  ;;  %v9850_v43 = vpop.f32.mrf.mxu0 }
 0x18c   : > { %7561 = vmatprep.mubr.bf16.mxu0 %v10751_v22  ;;  %10752 = vst [vmem:[#allocation38_spill] sm:$0xff] %v9837_v38  ;;  %v5512_v49 = vrot.slane %v9810_v20, 5  ;;  %10753 = vst [vmem:[#allocation39_spill] sm:$0xff] %v9850_v43  ;;  %v5511_v54 = vrot.slane %v5509_v60, 4  ;;  %v4914_v51 = vor.u32 %v4913_v41, %v4910_v44  ;;  %v4924_v22 = vor.u32 %v4923_v57, %v9815_v34  ;;  %v4654_v38 = vld [vmem:[#allocation2 + $0xa4] sm:$0x1] }
 0x18d   : > { %v5516_v17 = vrot.slane %v9804_v8, 5  ;;  %v9854_v25 = vpop.f32.mrf.mxu1  ;;  %v4934_v13 = vrot.slane %v4932_v1, 4  ;;  %v4937_v32 = vrot.slane %v4935_v10, 5  ;;  %v9857_v37 = vrot.slane %v4941_v14, 5  ;;  %v9860_v62 = vpop.f32.mrf.mxu0  ;;  %v4656_v57 = vld [vmem:[#allocation2 + $0xac] sm:$0xf] }
 0x18e   : > { %v4947_v20 = vrot.slane %v4945_v27, 4  ;;  %10754 = vst [vmem:[#allocation40_spill] sm:$0xff] %v9860_v62  ;;  %v4896_v60 = vsel %vm7899_vm9, %v9833_v59, %v9802_v55  ;;  %v4901_v44 = vrot.slane %v4900_v36, 4  ;;  %v4929_v8 = vrot.slane %v4927_v4, 5  ;;  %v5385_v1 = vld [vmem:[#allocation2 + $0xa8] sm:$0xe] }
 0x18f   : > { %7506 = vmatmul.mubr.bf16.vlgmr.msra.gmra.mxu1 %v9577_v46  ;;  %v6618_v41 = vrot.slane %v5384_v6, 9  ;;  %v9866_v23 = vpop.f32.mrf.mxu1  ;;  %v5519_v46 = vrot.slane %v4654_v38, 5  ;;  %v5523_v14 = vrot.slane %v4656_v57, 5  ;;  %v4956_v10 = vshrl.u32 %v4655_v16, 16  ;;  %v9868_v53 = vpop.f32.mrf.mxu0 }
 0x190   : > { %7509 = vmatprep.mubr.bf16.mxu1 %v9579_v24  ;;  %v4959_v27 = vshll.u32 %v4655_v16, 16  ;;  %v4915_v24 = vrot.slane %v4914_v51, 4  ;;  %v4925_v62 = vrot.slane %v4924_v22, 4  ;;  %v5518_v43 = vrot.slane %v5516_v17, 4 }
 0x191   : > { %v4951_v35 = vshll.u32 %v4654_v38, 16  ;;  %v9872_v55 = vpop.f32.mrf.mxu1  ;;  %v10755_v59 = vcombine.low %v9618_v3, %v9650_v19  ;;  %v4938_v36 = vor.u32 %v4937_v32, %v4934_v13  ;;  %v4948_v4 = vor.u32 %v4947_v20, %v9857_v37  ;;  %v9878_v16 = vpop.f32.mrf.mxu0 }
 0x192   : > { %v4965_v6 = vshll.u32 %v4656_v57, 16  ;;  %v4969_v2 = vshrl.u32 %v4656_v57, 16  ;;  %v10756_v51 = vcombine.low %v9678_v39, %v9682_v33  ;;  %v4906_v38 = vsel %vm7899_vm9, %v4901_v44, %v9843_v45 }
 0x193   : > { %7562 = vmatmul.mubr.bf16.gmra.mxu0 %v10755_v59  ;;  %v9888_v22 = vsel %vm8353_vm13, %v5511_v54, %v5512_v49  ;;  %v9892_v3 = vsel %vm8353_vm13, %v6618_v41, %v5516_v17  ;;  %v6619_v19 = vrot.slane %v5385_v1, 9  ;;  %v1985_v13 = vpop.f32.mrf.mxu1  ;;  %v5525_v32 = vrot.slane %v5523_v14, 4  ;;  %v9895_v33 = vpop.f32.mrf.mxu0 }
 0x194   : > { %7565 = vmatprep.mubr.bf16.mxu0 %v10756_v51  ;;  %v5526_v20 = vrot.slane %v9870_v11, 5  ;;  %v4958_v57 = vrot.slane %v4956_v10, 4  ;;  %v4961_v39 = vrot.slane %v4959_v27, 5  ;;  %v4920_v45 = vsel %vm7899_vm9, %v4915_v24, %v9815_v34  ;;  %v545_v34 = vld [vmem:[#allocation2 + $0xd4] sm:$0xf] }
 0x195   : > { %v4930_v49 = vsel %vm7899_vm9, %v4925_v62, %v4929_v8  ;;  %v9904_v17 = vsel %vm8353_vm13, %v5518_v43, %v5519_v46  ;;  %v9906_v54 = vrot.slane %v4951_v35, 5  ;;  %v7223_v44 = vpop.f32.mrf.mxu1  ;;  %v9909_v41 = vrot.slane %v4938_v36, 4  ;;  %v9916_v62 = vpop.f32.mrf.mxu0  ;;  %v5386_v46 = vld [vmem:[#allocation2 + $0xb4] sm:$0xe] }
 0x196   : > { %v9911_v1 = vrot.slane %v4948_v4, 4  ;;  %v9913_v10 = vrot.slane %v4965_v6, 5  ;;  %v4971_v27 = vrot.slane %v4969_v2, 4  ;;  %v6647_v43 = vcombine.low %v9773_v40, %v9777_v12  ;;  %v9955_v4 = vld [vmem:[#allocation2 + $0xb4] sm:$0xf] }
 0x197   : > { %7510 = vmatmul.mubr.bf16.gmra.mxu1 %v9612_v30  ;;  %v10757_v30 = vsel %vm7899_vm9, %v9808_v9, %v9789_v63  ;;  %v10758_v35 = vsel %vm7899_vm9, %v9762_v42, %v9742_v61  ;;  %v1998_v40 = vpop.f32.mrf.mxu1  ;;  %v9936_v12 = vcombine.low %v4896_v60, %v4906_v38  ;;  %v9940_v63 = vsel %vm8353_vm13, %v6619_v19, %v5523_v14  ;;  %v9946_v42 = vld [vmem:[#allocation2 + $0xbc] sm:$0x1]  ;;  %v9948_v24 = vpop.f32.mrf.mxu0 }
 0x198   : > { %7513 = vmatprep.mubr.bf16.mxu1 %v9701_v18  ;;  %v9930_v8 = vcombine.low %v10758_v35, %v10757_v30  ;;  %v9944_v9 = vsel %vm8353_vm13, %v5525_v32, %v5526_v20  ;;  %v4962_v61 = vor.u32 %v4961_v39, %v4958_v57  ;;  %v9950_v59 = vcombine.low %v4920_v45, %v4930_v49  ;;  %v9971_v20 = vld [vmem:[#allocation2 + $0xb8] sm:$0xf]  ;;  %v10761_v39 = vld [vmem:[#allocation4_spill] sm:$0xff] }
 0x199   : > { %v4975_v60 = vshll.u32 %v9870_v11, 16  ;;  %v546_v6 = vsel %vm7836_vm5, 0, %v545_v34  ;;  %v7224_v51 = vpop.f32.mrf.mxu1  ;;  %v10760_v38 = vcombine.low %v9719_v26, %v9733_v28  ;;  %v4972_v32 = vor.u32 %v4971_v27, %v9913_v10  ;;  %v9975_v28 = vpop.f32.mrf.mxu0  ;;  %v10762_v30 = vld [vmem:[#allocation7_spill] sm:$0xff]  ;;  %v10763_v35 = vld [vmem:[#allocation8_spill] sm:$0xff] }
 0x19a   : > { %v6620_v57 = vrot.slane %v5386_v46, 9  ;;  %547 = vst [vmem:[#allocation2 + $0xd4] sm:$0xf] %v546_v6  ;;  %v1991_v26 = vadd.f32 %v9854_v25, %v10761_v39  ;;  %v5530_v49 = vrot.slane %v9971_v20, 5  ;;  %v1983_v27 = vadd.f32 %v9866_v23, %v10762_v30  ;;  %v10765_v39 = vld [vmem:[#allocation10_spill] sm:$0xff]  ;;  %v10767_v34 = vld [vmem:[#allocation12_spill] sm:$0xff] }
 0x19b   : > { %7566 = vmatmul.mubr.bf16.gmra.mxu0 %v10760_v38  ;;  %v1994_v46 = vadd.f32 %v9872_v55, %v10763_v35  ;;  %v2001_v14 = vpop.f32.mrf.mxu1  ;;  %v9985_v6 = vrot.slane %v4962_v61, 4  ;;  %v4980_v25 = vshrl.u32 %v9955_v4, 16  ;;  %v10764_v38 = vld [vmem:[#allocation9_spill] sm:$0xff]  ;;  %v2007_v19 = vadd.f32 %v7223_v44, %v10765_v39  ;;  %v9990_v45 = vpop.f32.mrf.mxu0  ;;  %v4662_v44 = vld [vmem:[#allocation2 + $0xc4] sm:$0xf]  ;;  %v10768_v35 = vld [vmem:[#allocation14_spill] sm:$0xff] }
 0x19c   : > { %7569 = vmatprep.mubr.bf16.mxu0 %v6647_v43  ;;  %v1986_v43 = vadd.f32 %v1985_v13, %v10764_v38  ;;  %10766 = vst [vmem:[#allocation3_spill] sm:$0xff] %v9990_v45  ;;  %v9992_v11 = vrot.slane %v4975_v60, 5  ;;  %v4983_v36 = vshll.u32 %v9955_v4, 16  ;;  %v1999_v23 = vadd.f32 %v1998_v40, %v10767_v34  ;;  %v10769_v60 = vld [vmem:[#allocation16_spill] sm:$0xff]  ;;  %v10009_v34 = vld [vmem:[#allocation2 + $0xc8] sm:$0x1] }
 0x19d   : > { %v7227_v30 = vpop.f32.mrf.mxu1  ;;  %v9997_v55 = vrot.slane %v4972_v32, 4  ;;  %v10001_v61 = vsel %vm8353_vm13, %v6620_v57, %v5530_v49  ;;  %v4989_v13 = vshll.u32 %v9971_v20, 16  ;;  %v2010_v38 = vadd.f32 %v7224_v51, %v10768_v35  ;;  %v10007_v4 = vpop.f32.mrf.mxu0  ;;  %v4661_v45 = vld [vmem:[#allocation2 + $0xc0] sm:$0xf] }
 0x19e   : > { %v2002_v39 = vadd.f32 %v2001_v14, %v10769_v60  ;;  %v5532_v40 = vrot.slane %v5530_v49, 4  ;;  %v10012_v32 = vadd.f32 %v9715_v21, %v1991_v26  ;;  %v2023_v57 = vadd.f32 %v7227_v30, %v9548_v58  ;;  %v10773_v30 = vld [vmem:[#allocation5_spill] sm:$0xff] }
 0x19f   : > { %7514 = vmatmul.mubr.bf16.gmra.mxu1 %v9740_v31  ;;  %v5387_v31 = vld [vmem:[#allocation2 + $0xc0] sm:$0xe]  ;;  %v2014_v2 = vpop.f32.mrf.mxu1  ;;  %v5537_v18 = vrot.slane %v4662_v44, 5  ;;  %v10016_v51 = vadd.f32 %v9738_v7, %v1983_v27  ;;  %v10019_v14 = vadd.f32 %v9744_v29, %v1994_v46  ;;  %v10022_v49 = vpop.f32.mrf.mxu0  ;;  %v4968_v21 = vsel %vm7899_vm9, %v9985_v6, %v9913_v10  ;;  %v10775_v10 = vld [vmem:[#allocation21_spill] sm:$0xff] }
 0x1a0   : > { %7517 = vmatprep.mubr.bf16.mxu1 %v9746_v5  ;;  %v10770_v5 = vld [vmem:[#allocation19_spill] sm:$0xff]  ;;  %v10029_v58 = vadd.f32 %v9764_v52, %v1986_v43  ;;  %v10032_v26 = vadd.f32 %v9780_v15, %v2007_v19  ;;  %v10772_v29 = vcombine.low %v9793_v50, %v9831_v56  ;;  %v6621_v27 = vrot.slane %v5387_v31, 9  ;;  %v10778_v56 = vld [vmem:[#allocation37_spill] sm:$0xff] }
 0x1a1   : > { %v2015_v35 = vadd.f32 %v2014_v2, %v10770_v5  ;;  %v7228_v7 = vpop.f32.mrf.mxu1  ;;  %v4993_v2 = vshrl.u32 %v9971_v20, 16  ;;  %v5540_v46 = vrot.slane %v10009_v34, 5  ;;  %v10040_v60 = vadd.f32 %v10773_v30, %v1999_v23  ;;  %v10043_v52 = vpop.f32.mrf.mxu0  ;;  %v10777_v43 = vld [vmem:[#allocation35_spill] sm:$0xff] }
 0x1a2   : > { %10771 = vst [vmem:[#allocation4_spill] sm:$0xff] %v10032_v26  ;;  %v2026_v6 = vadd.f32 %v7228_v7, %v10775_v10  ;;  %v10776_v15 = vcombine.low %v9847_v47, %v9888_v22  ;;  %v5004_v19 = vshrl.u32 %v4661_v45, 16  ;;  %v10049_v50 = vadd.f32 %v10777_v43, %v2010_v38  ;;  %v10779_v30 = vld [vmem:[#allocation39_spill] sm:$0xff]  ;;  %v10781_v22 = vld [vmem:[#allocation40_spill] sm:$0xff]  ;;  %v10782_v43 = vld [vmem:[#allocation33_spill] sm:$0xff] }
 0x1a3   : > { %7570 = vmatmul.mubr.bf16.gmra.mxu0 %v10772_v29  ;;  %10774 = vst [vmem:[#allocation7_spill] sm:$0xff] %v10040_v60  ;;  %v10052_v20 = vadd.f32 %v10778_v56, %v2002_v39  ;;  %v2017_v31 = vpop.f32.mrf.mxu1  ;;  %v5539_v5 = vrot.slane %v5537_v18, 4  ;;  %v5007_v29 = vshll.u32 %v4661_v45, 16  ;;  %v5013_v23 = vshll.u32 %v4662_v44, 16  ;;  %v10780_v7 = vld [vmem:[#allocation23_spill] sm:$0xff]  ;;  %v10058_v26 = vpop.f32.mrf.mxu0 }
 0x1a4   : > { %7573 = vmatprep.mubr.bf16.mxu0 %v10776_v15  ;;  %v10055_v60 = vadd.f32 %v10779_v30, %v2023_v57  ;;  %v2018_v10 = vadd.f32 %v2017_v31, %v10780_v7  ;;  %v5017_v47 = vshrl.u32 %v4662_v44, 16  ;;  %v10061_v15 = vadd.f32 %v10781_v22, %v2015_v35  ;;  %v10783_v30 = vld [vmem:[#allocation25_spill] sm:$0xff] }
 0x1a5   : > { %v10064_v38 = vadd.f32 %v9868_v53, %v2026_v6  ;;  %v7231_v39 = vpop.f32.mrf.mxu1  ;;  %v4978_v45 = vsel %vm7899_vm9, %v9997_v55, %v9992_v11  ;;  %v4982_v57 = vrot.slane %v4980_v25, 4  ;;  %v4985_v56 = vrot.slane %v4983_v36, 5  ;;  %v10075_v35 = vpop.f32.mrf.mxu0 }
 0x1a6   : > { %v10071_v31 = vrot.slane %v4989_v13, 5  ;;  %v2039_v44 = vadd.f32 %v7231_v39, %v10783_v30  ;;  %v10784_v53 = vrot.slane %v9946_v42, 5  ;;  %v4995_v7 = vrot.slane %v4993_v2, 4  ;;  %v10785_v13 = vld [vmem:[#allocation27_spill] sm:$0xff] }
 0x1a7   : > { %7518 = vmatmul.mubr.bf16.gmra.mxu1 %v10782_v43  ;;  %v10082_v22 = vadd.f32 %v9878_v16, %v2018_v10  ;;  %v2030_v11 = vpop.f32.mrf.mxu1  ;;  %v10086_v36 = vsel %vm8353_vm13, %v6621_v27, %v5537_v18  ;;  %v10090_v25 = vsel %vm8353_vm13, %v5539_v5, %v5540_v46  ;;  %v5009_v55 = vrot.slane %v5007_v29, 5  ;;  %v10093_v43 = vpop.f32.mrf.mxu0 }
 0x1a8   : > { %7521 = vmatprep.mubr.bf16.mxu1 %v9930_v8  ;;  %v5534_v6 = vsel %vm8353_vm13, %v5532_v40, %v10784_v53  ;;  %v5006_v8 = vrot.slane %v5004_v19, 4  ;;  %v2031_v39 = vadd.f32 %v2030_v11, %v10785_v13  ;;  %v10095_v40 = vrot.slane %v5013_v23, 5  ;;  %v4665_v23 = vld [vmem:[#allocation2 + $0xd0] sm:$0xf]  ;;  %v10132_v53 = vld [vmem:[#allocation2 + $0xd4] sm:$0x1] }
 0x1a9   : > { %v5019_v2 = vrot.slane %v5017_v47, 4  ;;  %v10098_v16 = vadd.f32 %v9895_v33, %v2039_v44  ;;  %v7232_v10 = vpop.f32.mrf.mxu1  ;;  %v10786_v18 = vcombine.low %v9892_v3, %v9904_v17  ;;  %v10787_v27 = vsel %vm7899_vm9, %v9911_v1, %v9906_v54  ;;  %v5388_v3 = vld [vmem:[#allocation2 + $0xcc] sm:$0xe]  ;;  %v10789_v17 = vld [vmem:[#allocation28_spill] sm:$0xff]  ;;  %v10119_v30 = vpop.f32.mrf.mxu0 }
 0x1aa   : > { %v10788_v46 = vsel %vm7899_vm9, %v9909_v41, %v9857_v37  ;;  %v10115_v5 = vcombine.low %v4968_v21, %v4978_v45  ;;  %v6652_v33 = vcombine.low %v10001_v61, %v5534_v6  ;;  %v4986_v29 = vor.u32 %v4985_v56, %v4982_v57  ;;  %v4664_v41 = vld [vmem:[#allocation2 + $0xcc] sm:$0xf] }
 0x1ab   : > { %7574 = vmatmul.mubr.bf16.gmra.mxu0 %v10786_v18  ;;  %v10113_v19 = vcombine.low %v10788_v46, %v10787_v27  ;;  %v2042_v47 = vadd.f32 %v7232_v10, %v10789_v17  ;;  %v10790_v54 = vcombine.low %v9940_v63, %v9944_v9  ;;  %v4999_v1 = vshll.u32 %v9946_v42, 16  ;;  %v2033_v45 = vpop.f32.mrf.mxu1  ;;  %v10791_v63 = vld [vmem:[#allocation30_spill] sm:$0xff]  ;;  %v10793_v17 = vld [vmem:[#allocation13_spill] sm:$0xff] }
 0x1ac   : > { %v5544_v37 = vrot.slane %v4665_v23, 5  ;;  %v10126_v21 = vadd.f32 %v9916_v62, %v2031_v39  ;;  %v4996_v61 = vor.u32 %v4995_v7, %v10071_v31  ;;  %v6653_v57 = vcombine.low %v10086_v36, %v10090_v25  ;;  %v10135_v6 = vpop.f32.mrf.mxu0 }
 0x1ad   : > { %7577 = vmatprep.mubr.bf16.mxu0 %v10790_v54  ;;  %v5010_v56 = vor.u32 %v5009_v55, %v5006_v8  ;;  %v5023_v44 = vshll.u32 %v10009_v34, 16  ;;  %v2034_v9 = vadd.f32 %v2033_v45, %v10791_v63  ;;  %v5020_v42 = vor.u32 %v5019_v2, %v10095_v40  ;;  %v7235_v13 = vpop.f32.mrf.mxu1  ;;  %v10792_v34 = vld [vmem:[#allocation11_spill] sm:$0xff] }
 0x1ae   : > { %v6622_v11 = vrot.slane %v5388_v3, 9  ;;  %v10139_v62 = vadd.f32 %v9948_v24, %v2042_v47  ;;  %v5028_v7 = vshrl.u32 %v4664_v41, 16  ;;  %v5031_v36 = vshll.u32 %v4664_v41, 16  ;;  %v10144_v39 = vpop.f32.mrf.mxu0 }
 0x1af   : > { %7522 = vmatmul.mubr.bf16.gmra.mxu1 %v9936_v12  ;;  %v5037_v25 = vshll.u32 %v4665_v23, 16  ;;  %v5041_v8 = vshrl.u32 %v4665_v23, 16  ;;  %v2055_v55 = vadd.f32 %v7235_v13, %v10792_v34  ;;  %v5546_v10 = vrot.slane %v5544_v37, 4  ;;  %v2046_v24 = vpop.f32.mrf.mxu1 }
 0x1b0   : > { %7525 = vmatprep.mubr.bf16.mxu1 %v9950_v59  ;;  %v5547_v2 = vrot.slane %v10132_v53, 5  ;;  %v10148_v18 = vadd.f32 %v9975_v28, %v2034_v9  ;;  %v4987_v27 = vrot.slane %v4986_v29, 4  ;;  %v4997_v46 = vrot.slane %v4996_v61, 4  ;;  %v10151_v23 = vpop.f32.mrf.mxu0  ;;  %v10794_v59 = vld [vmem:[#allocation3_spill] sm:$0xff] }
 0x1b1   : > { %v5001_v12 = vrot.slane %v4999_v1, 5  ;;  %v5025_v3 = vrot.slane %v5023_v44, 5  ;;  %v2047_v47 = vadd.f32 %v2046_v24, %v10793_v17  ;;  %v5011_v54 = vrot.slane %v5010_v56, 4  ;;  %v7236_v63 = vpop.f32.mrf.mxu1  ;;  %v10795_v61 = vld [vmem:[#allocation15_spill] sm:$0xff] }
 0x1b2   : > { %v5021_v41 = vrot.slane %v5020_v42, 4  ;;  %v10154_v45 = vadd.f32 %v10794_v59, %v2055_v55  ;;  %v5545_v28 = vsel %vm8353_vm13, %v6622_v11, %v5544_v37  ;;  %v5030_v9 = vrot.slane %v5028_v7, 4  ;;  %v10159_v44 = vpop.f32.mrf.mxu0 }
 0x1b3   : > { %7578 = vmatmul.mubr.bf16.gmra.mxu0 %v6652_v33  ;;  %v5033_v13 = vrot.slane %v5031_v36, 5  ;;  %v5039_v29 = vrot.slane %v5037_v25, 5  ;;  %v2058_v1 = vadd.f32 %v7236_v63, %v10795_v61  ;;  %v5548_v56 = vsel %vm8353_vm13, %v5546_v10, %v5547_v2  ;;  %v2049_v55 = vpop.f32.mrf.mxu1  ;;  %v10796_v33 = vld [vmem:[#allocation17_spill] sm:$0xff]  ;;  %v10800_v61 = vld [vmem:[#allocation24_spill] sm:$0xff] }
 0x1b4   : > { %7581 = vmatprep.mubr.bf16.mxu0 %v6653_v57  ;;  %v5043_v42 = vrot.slane %v5041_v8, 4  ;;  %v10164_v34 = vadd.f32 %v10007_v4, %v2047_v47  ;;  %v2050_v24 = vadd.f32 %v2049_v55, %v10796_v33  ;;  %v4992_v37 = vsel %vm7899_vm9, %v4987_v27, %v10071_v31  ;;  %v7295_v7 = vpop.f32.mrf.mxu0  ;;  %v10797_v31 = vld [vmem:[#allocation18_spill] sm:$0xff] }
 0x1b5   : > { %v5002_v11 = vsel %vm7899_vm9, %v4997_v46, %v5001_v12  ;;  %v10173_v57 = vadd.f32 %v10022_v49, %v2058_v1  ;;  %v5016_v4 = vsel %vm7899_vm9, %v5011_v54, %v10095_v40  ;;  %v5026_v36 = vsel %vm7899_vm9, %v5021_v41, %v5025_v3  ;;  %v10798_v12 = vld [vmem:[#allocation20_spill] sm:$0xff]  ;;  %v10801_v55 = vld [vmem:[#allocation26_spill] sm:$0xff] }
 0x1b6   : > { %v7239_v48 = vpop.f32.mrf.mxu1  ;;  %v6654_v25 = vcombine.low %v5545_v28, %v5548_v56  ;;  %v5034_v8 = vor.u32 %v5033_v13, %v5030_v9  ;;  %v5044_v2 = vor.u32 %v5043_v42, %v5039_v29  ;;  %v5047_v49 = vshll.u32 %v10132_v53, 16  ;;  %v2547_v27 = vpop.f32.mrf.mxu0 }
 0x1b7   : > { %7526 = vmatmul.mubr.bf16.gmra.mxu1 %v10113_v19  ;;  %v2071_v10 = vadd.f32 %v7239_v48, %v10797_v31  ;;  %v10185_v46 = vadd.f32 %v10043_v52, %v2050_v24  ;;  %v6596_v54 = vcombine.low %v4992_v37, %v5002_v11  ;;  %v6597_v41 = vcombine.low %v5016_v4, %v5026_v36  ;;  %v10802_v4 = vld [vmem:[#allocation29_spill] sm:$0xff] }
 0x1b8   : > { %7529 = vmatprep.mubr.bf16.mxu1 %v10115_v5  ;;  %v2062_v19 = vpop.f32.mrf.mxu1  ;;  %v7296_v40 = vpop.f32.mrf.mxu0  ;;  %v5035_v59 = vrot.slane %v5034_v8, 4  ;;  %v10799_v5 = vld [vmem:[#allocation22_spill] sm:$0xff]  ;;  %v5045_v28 = vrot.slane %v5044_v2, 4  ;;  %v5049_v53 = vrot.slane %v5047_v49, 5 }
 0x1b9   : > { %v2063_v17 = vadd.f32 %v2062_v19, %v10798_v12  ;;  %v10189_v47 = vadd.f32 %v10058_v26, %v2071_v10  ;;  %v10803_v10 = vld [vmem:[#allocation31_spill] sm:$0xff]  ;;  %v10804_v19 = vld [vmem:[#allocation32_spill] sm:$0xff] }
 0x1ba   : > { %v7240_v3 = vpop.f32.mrf.mxu1  ;;  %v2550_v9 = vpop.f32.mrf.mxu0  ;;  %v5040_v24 = vsel %vm7899_vm9, %v5035_v59, %v5039_v29  ;;  %v5050_v37 = vsel %vm7899_vm9, %v5045_v28, %v5049_v53 }
 0x1bb   : > { %7582 = vmatmul.mubr.bf16.gmra.mxu0 %v6654_v25  ;;  %v2074_v63 = vadd.f32 %v7240_v3, %v10799_v5  ;;  %v10193_v52 = vadd.f32 %v10075_v35, %v2063_v17  ;;  %v6598_v31 = vcombine.low %v5040_v24, %v5050_v37 }
 0x1bc   : > { %v2065_v13 = vpop.f32.mrf.mxu1  ;;  %v7363_v56 = vpop.f32.mrf.mxu0 }
 0x1bd   : > { %v2066_v1 = vadd.f32 %v2065_v13, %v10800_v61  ;;  %v10197_v26 = vadd.f32 %v10093_v43, %v2074_v63  ;;  %v10806_v63 = vld [vmem:[#allocation6_spill] sm:$0xff]  ;;  %v10807_v61 = vld [vmem:[#allocation36_spill] sm:$0xff] }
 0x1be   : > { %v7243_v42 = vpop.f32.mrf.mxu1  ;;  %v3575_v35 = vpop.f32.mrf.mxu0 }
 0x1bf   : > { %7530 = vmatmul.mubr.bf16.gmra.mxu1 %v6596_v54  ;;  %v2087_v33 = vadd.f32 %v7243_v42, %v10801_v55  ;;  %v10205_v11 = vadd.f32 %v10119_v30, %v2066_v1  ;;  %v10805_v54 = vld [vmem:[#allocation34_spill] sm:$0xff] }
 0x1c0   : > { %7533 = vmatprep.mubr.bf16.mxu1 %v6597_v41  ;;  %v2078_v48 = vpop.f32.mrf.mxu1  ;;  %v7364_v43 = vpop.f32.mrf.mxu0 }
 0x1c1   : > { %v2079_v36 = vadd.f32 %v2078_v48, %v10802_v4  ;;  %v10209_v25 = vadd.f32 %v10135_v6, %v2087_v33  ;;  %v10808_v33 = vld [vmem:[#allocation38_spill] sm:$0xff] }
 0x1c2   : > { %v7244_v8 = vpop.f32.mrf.mxu1  ;;  %v3578_v49 = vpop.f32.mrf.mxu0 }
 0x1c3   : > { %v2090_v2 = vadd.f32 %v7244_v8, %v10803_v10  ;;  %v10213_v29 = vadd.f32 %v10144_v39, %v2079_v36 }
 0x1c4   : > { %v2081_v0 = vpop.f32.mrf.mxu1  ;;  %v7367_v30 = vpop.f32.mrf.mxu0 }
 0x1c5   : > { %v2082_v12 = vadd.f32 %v2081_v0, %v10804_v19  ;;  %v10217_v17 = vadd.f32 %v10151_v23, %v2090_v2 }
 0x1c6   : > { %v3591_v41 = vpop.f32.mrf.mxu0 }
 0x1c7   : > { %v7247_v3 = vpop.f32.mrf.mxu1  ;;  %7534 = vmatmul.mubr.bf16.gmra.mxu1 %v6598_v31  ;;  %v10221_v59 = vadd.f32 %v10159_v44, %v2082_v12 }
 0x1c8   : > { %v2103_v6 = vadd.f32 %v7247_v3, %v10805_v54  ;;  %v7368_v39 = vpop.f32.mrf.mxu0 }
 0x1c9   : > { %v2094_v5 = vpop.f32.mrf.mxu1 }
 0x1ca   : > { %v2095_v28 = vadd.f32 %v2094_v5, %v10806_v63  ;;  %v10224_v53 = vadd.f32 %v7295_v7, %v2103_v6  ;;  %v3594_v42 = vpop.f32.mrf.mxu0  ;;  %v10809_v6 = vld [vmem:[#allocation4_spill] sm:$0xff] }
 0x1cb   : > { %v7248_v13 = vpop.f32.mrf.mxu1 }
 0x1cc   : > { %v2106_v1 = vadd.f32 %v7248_v13, %v10807_v61  ;;  %v10227_v23 = vadd.f32 %v2547_v27, %v2095_v28  ;;  %v7371_v37 = vpop.f32.mrf.mxu0  ;;  %v10810_v28 = vld [vmem:[#allocation7_spill] sm:$0xff] }
 0x1cd   : > { %v2097_v55 = vpop.f32.mrf.mxu1 }
 0x1ce   : > { %v2098_v24 = vadd.f32 %v2097_v55, %v10808_v33  ;;  %v10230_v48 = vadd.f32 %v7296_v40, %v2106_v1  ;;  %v3607_v36 = vpop.f32.mrf.mxu0 }
 0x1cf   : > { %v7315_v44 = vpop.f32.mrf.mxu1 }
 0x1d0   : > { %v2950_v4 = vadd.f32 %v7315_v44, %v10012_v32  ;;  %v10233_v8 = vadd.f32 %v2550_v9, %v2098_v24  ;;  %v7372_v10 = vpop.f32.mrf.mxu0 }
 0x1d1   : > { %v2821_v7 = vpop.f32.mrf.mxu1 }
 0x1d2   : > { %v2948_v31 = vadd.f32 %v2821_v7, %v10016_v51  ;;  %v10236_v2 = vadd.f32 %v7363_v56, %v2950_v4  ;;  %v3610_v19 = vpop.f32.mrf.mxu0 }
 0x1d3   : > { %v7316_v27 = vpop.f32.mrf.mxu1 }
 0x1d4   : > { %v2951_v0 = vadd.f32 %v7316_v27, %v10019_v14  ;;  %v10239_v12 = vadd.f32 %v3575_v35, %v2948_v31  ;;  %v7375_v54 = vpop.f32.mrf.mxu0 }
 0x1d5   : > { %v2824_v40 = vpop.f32.mrf.mxu1 }
 0x1d6   : > { %v2949_v3 = vadd.f32 %v2824_v40, %v10029_v58  ;;  %v10242_v32 = vadd.f32 %v7364_v43, %v2951_v0  ;;  %v3623_v63 = vpop.f32.mrf.mxu0 }
 0x1d7   : > { %v7319_v9 = vpop.f32.mrf.mxu1 }
 0x1d8   : > { %v2954_v5 = vadd.f32 %v7319_v9, %v10809_v6  ;;  %v10245_v51 = vadd.f32 %v3578_v49, %v2949_v3  ;;  %v7376_v61 = vpop.f32.mrf.mxu0 }
 0x1d9   : > { %v2837_v56 = vpop.f32.mrf.mxu1 }
 0x1da   : > { %v2952_v13 = vadd.f32 %v2837_v56, %v10810_v28  ;;  %v10248_v14 = vadd.f32 %v7367_v30, %v2954_v5  ;;  %v3626_v55 = vpop.f32.mrf.mxu0 }
 0x1db   : > { %v7320_v35 = vpop.f32.mrf.mxu1 }
 0x1dc   : > { %v2955_v1 = vadd.f32 %v7320_v35, %v10049_v50  ;;  %v10251_v58 = vadd.f32 %v3591_v41, %v2952_v13  ;;  %v7379_v24 = vpop.f32.mrf.mxu0 }
 0x1dd   : > { %v2840_v43 = vpop.f32.mrf.mxu1 }
 0x1de   : > { %v2953_v33 = vadd.f32 %v2840_v43, %v10052_v20  ;;  %v10254_v44 = vadd.f32 %v7368_v39, %v2955_v1  ;;  %v3639_v7 = vpop.f32.mrf.mxu0 }
 0x1df   : > { %v7323_v49 = vpop.f32.mrf.mxu1 }
 0x1e0   : > { %v2958_v4 = vadd.f32 %v7323_v49, %v10055_v60  ;;  %v10257_v31 = vadd.f32 %v3594_v42, %v2953_v33  ;;  %v7380_v0 = vpop.f32.mrf.mxu0 }
 0x1e1   : > { %v2853_v30 = vpop.f32.mrf.mxu1 }
 0x1e2   : > { %v2956_v27 = vadd.f32 %v2853_v30, %v10061_v15  ;;  %v10260_v50 = vadd.f32 %v7371_v37, %v2958_v4  ;;  %v3642_v3 = vpop.f32.mrf.mxu0 }
 0x1e3   : > { %v7324_v41 = vpop.f32.mrf.mxu1 }
 0x1e4   : > { %v2959_v40 = vadd.f32 %v7324_v41, %v10064_v38  ;;  %v10263_v20 = vadd.f32 %v3607_v36, %v2956_v27  ;;  %v7383_v6 = vpop.f32.mrf.mxu0 }
 0x1e5   : > { %v2856_v39 = vpop.f32.mrf.mxu1 }
 0x1e6   : > { %v2957_v9 = vadd.f32 %v2856_v39, %v10082_v22  ;;  %v10266_v60 = vadd.f32 %v7372_v10, %v2959_v40  ;;  %v3655_v56 = vpop.f32.mrf.mxu0 }
 0x1e7   : > { %v7327_v42 = vpop.f32.mrf.mxu1 }
 0x1e8   : > { %v2962_v5 = vadd.f32 %v7327_v42, %v10098_v16  ;;  %v10269_v15 = vadd.f32 %v3610_v19, %v2957_v9  ;;  %v7384_v13 = vpop.f32.mrf.mxu0 }
 0x1e9   : > { %v2869_v37 = vpop.f32.mrf.mxu1 }
 0x1ea   : > { %v2960_v28 = vadd.f32 %v2869_v37, %v10126_v21  ;;  %v10272_v38 = vadd.f32 %v7375_v54, %v2962_v5  ;;  %v3658_v1 = vpop.f32.mrf.mxu0 }
 0x1eb   : > { %v7328_v36 = vpop.f32.mrf.mxu1 }
 0x1ec   : > { %v2963_v35 = vadd.f32 %v7328_v36, %v10139_v62  ;;  %v10275_v22 = vadd.f32 %v3623_v63, %v2960_v28  ;;  %v7387_v33 = vpop.f32.mrf.mxu0 }
 0x1ed   : > { %v2872_v10 = vpop.f32.mrf.mxu1 }
 0x1ee   : > { %v2961_v43 = vadd.f32 %v2872_v10, %v10148_v18  ;;  %v10278_v16 = vadd.f32 %v7376_v61, %v2963_v35  ;;  %v3671_v4 = vpop.f32.mrf.mxu0 }
 0x1ef   : > { %v7331_v19 = vpop.f32.mrf.mxu1 }
 0x1f0   : > { %v2966_v49 = vadd.f32 %v7331_v19, %v10154_v45  ;;  %v10281_v21 = vadd.f32 %v3626_v55, %v2961_v43  ;;  %v7388_v63 = vpop.f32.mrf.mxu0 }
 0x1f1   : > { %v2885_v54 = vpop.f32.mrf.mxu1 }
 0x1f2   : > { %v2964_v30 = vadd.f32 %v2885_v54, %v10164_v34  ;;  %v10284_v27 = vadd.f32 %v7379_v24, %v2966_v49  ;;  %v3674_v9 = vpop.f32.mrf.mxu0 }
 0x1f3   : > { %v7332_v62 = vpop.f32.mrf.mxu1 }
 0x1f4   : > { %v2967_v41 = vadd.f32 %v7332_v62, %v10173_v57  ;;  %v10287_v40 = vadd.f32 %v3639_v7, %v2964_v30 }
 0x1f5   : > { %v2888_v18 = vpop.f32.mrf.mxu1 }
 0x1f6   : > { %v2965_v61 = vadd.f32 %v2888_v18, %v10185_v46  ;;  %v10290_v39 = vadd.f32 %v7380_v0, %v2967_v41 }
 0x1f7   : > { %v7335_v45 = vpop.f32.mrf.mxu1 }
 0x1f8   : > { %v2970_v55 = vadd.f32 %v7335_v45, %v10189_v47  ;;  %v10293_v42 = vadd.f32 %v3642_v3, %v2965_v61 }
 0x1f9   : > { %v2901_v34 = vpop.f32.mrf.mxu1 }
 0x1fa   : > { %v2968_v24 = vadd.f32 %v2901_v34, %v10193_v52  ;;  %v10296_v5 = vadd.f32 %v7383_v6, %v2970_v55 }
 0x1fb   : > { %v7336_v37 = vpop.f32.mrf.mxu1  ;;  %v7391_v57 = vpop.f32.mrf.mxu0 }
 0x1fc   : > { %v2971_v7 = vadd.f32 %v7336_v37, %v10197_v26  ;;  %v10299_v28 = vadd.f32 %v3655_v56, %v2968_v24 }
 0x1fd   : > { %v2904_v46 = vpop.f32.mrf.mxu1  ;;  %v3687_v0 = vpop.f32.mrf.mxu0 }
 0x1fe   : > { %10811 = vst [vmem:[#allocation8_spill] sm:$0xff] %v10299_v28  ;;  %v2969_v36 = vadd.f32 %v2904_v46, %v10205_v11  ;;  %v10302_v35 = vadd.f32 %v7384_v13, %v2971_v7 }
 0x1ff   : > { %v7339_v47 = vpop.f32.mrf.mxu1  ;;  %v7392_v3 = vpop.f32.mrf.mxu0 }
 0x200   : > { %10812 = vst [vmem:[#allocation9_spill] sm:$0xff] %v10302_v35  ;;  %v2974_v10 = vadd.f32 %v7339_v47, %v10209_v25  ;;  %v10305_v43 = vadd.f32 %v3658_v1, %v2969_v36 }
 0x201   : > { %v2917_v52 = vpop.f32.mrf.mxu1  ;;  %v3690_v6 = vpop.f32.mrf.mxu0 }
 0x202   : > { %10813 = vst [vmem:[#allocation10_spill] sm:$0xff] %v10305_v43  ;;  %v2972_v19 = vadd.f32 %v2917_v52, %v10213_v29  ;;  %v10308_v49 = vadd.f32 %v7387_v33, %v2974_v10 }
 0x203   : > { %v7340_v26 = vpop.f32.mrf.mxu1  ;;  %v7459_v56 = vpop.f32.mrf.mxu0 }
 0x204   : > { %v2975_v54 = vadd.f32 %v7340_v26, %v10217_v17  ;;  %v10311_v30 = vadd.f32 %v3671_v4, %v2972_v19 }
 0x205   : > { %v2920_v11 = vpop.f32.mrf.mxu1  ;;  %v4460_v13 = vpop.f32.mrf.mxu0 }
 0x206   : > { %10814 = vst [vmem:[#allocation12_spill] sm:$0xff] %v10311_v30  ;;  %v2973_v62 = vadd.f32 %v2920_v11, %v10221_v59  ;;  %v10314_v41 = vadd.f32 %v7388_v63, %v2975_v54 }
 0x207   : > { %v7343_v25 = vpop.f32.mrf.mxu1  ;;  %v10316_v1 = vpop.f32.mrf.mxu0 }
 0x208   : > { %10815 = vst [vmem:[#allocation14_spill] sm:$0xff] %v10314_v41  ;;  %v2978_v18 = vadd.f32 %v7343_v25, %v10224_v53  ;;  %v10319_v29 = vadd.f32 %v3674_v9, %v2973_v62 }
 0x209   : > { %v2933_v33 = vpop.f32.mrf.mxu1  ;;  %v10321_v61 = vpop.f32.mrf.mxu0 }
 0x20a   : > { %10816 = vst [vmem:[#allocation16_spill] sm:$0xff] %v10319_v29  ;;  %v2976_v17 = vadd.f32 %v2933_v33, %v10227_v23  ;;  %v10324_v4 = vadd.f32 %v7391_v57, %v2978_v18 }
 0x20b   : > { %v7344_v45 = vpop.f32.mrf.mxu1  ;;  %v7463_v55 = vpop.f32.mrf.mxu0 }
 0x20c   : > { %v2979_v59 = vadd.f32 %v7344_v45, %v10230_v48  ;;  %v10327_v63 = vadd.f32 %v3687_v0, %v2976_v17 }
 0x20d   : > { %v2936_v34 = vpop.f32.mrf.mxu1  ;;  %v10329_v24 = vpop.f32.mrf.mxu0 }
 0x20e   : > { %10817 = vst [vmem:[#allocation19_spill] sm:$0xff] %v10327_v63  ;;  %v2977_v53 = vadd.f32 %v2936_v34, %v10233_v8  ;;  %v10332_v9 = vadd.f32 %v7392_v3, %v2979_v59 }
 0x20f   : > { %v7411_v37 = vpop.f32.mrf.mxu1  ;;  %v10334_v7 = vpop.f32.mrf.mxu0 }
 0x210   : > { %10818 = vst [vmem:[#allocation5_spill] sm:$0xff] %v10332_v9  ;;  %v4202_v23 = vadd.f32 %v7411_v37, %v10236_v2  ;;  %v10337_v57 = vadd.f32 %v3690_v6, %v2977_v53 }
 0x211   : > { %v4073_v46 = vpop.f32.mrf.mxu1  ;;  %v10339_v36 = vpop.f32.mrf.mxu0 }
 0x212   : > { %10819 = vst [vmem:[#allocation21_spill] sm:$0xff] %v10337_v57  ;;  %v4200_v48 = vadd.f32 %v4073_v46, %v10239_v12  ;;  %v10342_v0 = vadd.f32 %v7459_v56, %v4202_v23 }
 0x213   : > { %v10344_v47 = vpop.f32.mrf.mxu1  ;;  %v7467_v10 = vpop.f32.mrf.mxu0 }
 0x214   : > { %v10346_v8 = vadd.f32 %v4460_v13, %v4200_v48 }
 0x215   : > { %v10348_v3 = vpop.f32.mrf.mxu1  ;;  %v10350_v52 = vpop.f32.mrf.mxu0 }
 0x217   : > { %v7415_v19 = vpop.f32.mrf.mxu1  ;;  %v10352_v2 = vpop.f32.mrf.mxu0 }
 0x218   : > { %v4206_v6 = vadd.f32 %v7415_v19, %v10248_v14 }
 0x219   : > { %v10355_v26 = vpop.f32.mrf.mxu1  ;;  %v10357_v54 = vpop.f32.mrf.mxu0 }
 0x21a   : > { %v10359_v12 = vadd.f32 %v7463_v55, %v4206_v6 }
 0x21b   : > { %v10361_v56 = vpop.f32.mrf.mxu1  ;;  %v7471_v11 = vpop.f32.mrf.mxu0 }
 0x21d   : > { %v10363_v13 = vpop.f32.mrf.mxu1  ;;  %v10365_v62 = vpop.f32.mrf.mxu0 }
 0x21f   : > { %v7419_v25 = vpop.f32.mrf.mxu1  ;;  %v10367_v18 = vpop.f32.mrf.mxu0 }
 0x220   : > { %v4210_v33 = vadd.f32 %v7419_v25, %v10260_v50 }
 0x221   : > { %v10370_v17 = vpop.f32.mrf.mxu1  ;;  %v10372_v14 = vpop.f32.mrf.mxu0 }
 0x222   : > { %v10374_v45 = vadd.f32 %v7467_v10, %v4210_v33 }
 0x223   : > { %v10376_v55 = vpop.f32.mrf.mxu1  ;;  %v7475_v59 = vpop.f32.mrf.mxu0 }
 0x225   : > { %v10378_v34 = vpop.f32.mrf.mxu1  ;;  %v10380_v53 = vpop.f32.mrf.mxu0 }
 0x227   : > { %v7423_v37 = vpop.f32.mrf.mxu1  ;;  %v10382_v23 = vpop.f32.mrf.mxu0 }
 0x228   : > { %10820 = vst [vmem:[#allocation35_spill] sm:$0xff] %v10382_v23  ;;  %v4214_v46 = vadd.f32 %v7423_v37, %v10272_v38 }
 0x229   : > { %v10385_v48 = vpop.f32.mrf.mxu1  ;;  %v10387_v50 = vpop.f32.mrf.mxu0 }
 0x22a   : > { %10821 = vst [vmem:[#allocation37_spill] sm:$0xff] %v10387_v50  ;;  %v10389_v19 = vadd.f32 %v7471_v11, %v4214_v46 }
 0x22b   : > { %v10391_v10 = vpop.f32.mrf.mxu1  ;;  %v7479_v6 = vpop.f32.mrf.mxu0 }
 0x22d   : > { %v10393_v25 = vpop.f32.mrf.mxu1  ;;  %v10395_v33 = vpop.f32.mrf.mxu0 }
 0x22e   : > { %10822 = vst [vmem:[#allocation39_spill] sm:$0xff] %v10395_v33 }
 0x22f   : > { %v7427_v57 = vpop.f32.mrf.mxu1  ;;  %v10397_v9 = vpop.f32.mrf.mxu0 }
 0x230   : > { %10823 = vst [vmem:[#allocation23_spill] sm:$0xff] %v10397_v9  ;;  %v4218_v63 = vadd.f32 %v7427_v57, %v10284_v27 }
 0x231   : > { %v10400_v29 = vpop.f32.mrf.mxu1  ;;  %v10402_v38 = vpop.f32.mrf.mxu0 }
 0x232   : > { %10824 = vst [vmem:[#allocation40_spill] sm:$0xff] %v10402_v38  ;;  %v10404_v37 = vadd.f32 %v7475_v59, %v4218_v63 }
 0x233   : > { %v10406_v11 = vpop.f32.mrf.mxu1  ;;  %v7483_v46 = vpop.f32.mrf.mxu0 }
 0x234   : > { %10825 = vst [vmem:[#allocation33_spill] sm:$0xff] %v10404_v37 }
 0x235   : > { %v10408_v41 = vpop.f32.mrf.mxu1  ;;  %v10410_v30 = vpop.f32.mrf.mxu0 }
 0x236   : > { %10826 = vst [vmem:[#allocation25_spill] sm:$0xff] %v10410_v30 }
 0x237   : > { %v7431_v43 = vpop.f32.mrf.mxu1  ;;  %v10412_v33 = vpop.f32.mrf.mxu0 }
 0x238   : > { %10827 = vst [vmem:[#allocation27_spill] sm:$0xff] %v10412_v33  ;;  %v4222_v9 = vadd.f32 %v7431_v43, %v10296_v5 }
 0x239   : > { %v10415_v50 = vpop.f32.mrf.mxu1  ;;  %v10417_v27 = vpop.f32.mrf.mxu0 }
 0x23a   : > { %10828 = vst [vmem:[#allocation28_spill] sm:$0xff] %v10415_v50  ;;  %10829 = vst [vmem:[#allocation30_spill] sm:$0xff] %v10417_v27  ;;  %v10419_v57 = vadd.f32 %v7479_v6, %v4222_v9 }
 0x23b   : > { %v10421_v63 = vpop.f32.mrf.mxu1  ;;  %v7487_v59 = vpop.f32.mrf.mxu0 }
 0x23c   : > { %10830 = vst [vmem:[#allocation11_spill] sm:$0xff] %v10419_v57  ;;  %10831 = vst [vmem:[#allocation13_spill] sm:$0xff] %v10421_v63 }
 0x23d   : > { %v10423_v38 = vpop.f32.mrf.mxu1  ;;  %v10425_v35 = vpop.f32.mrf.mxu0 }
 0x23e   : > { %10832 = vst [vmem:[#allocation3_spill] sm:$0xff] %v10423_v38  ;;  %10833 = vst [vmem:[#allocation15_spill] sm:$0xff] %v10425_v35 }
 0x23f   : > { %v7435_v28 = vpop.f32.mrf.mxu1  ;;  %v10427_v30 = vpop.f32.mrf.mxu0 }
 0x240   : > { %10834 = vst [vmem:[#allocation17_spill] sm:$0xff] %v10427_v30  ;;  %v4226_v33 = vadd.f32 %v7435_v28, %v10308_v49 }
 0x241   : > { %v10430_v37 = vpop.f32.mrf.mxu1  ;;  %v10432_v5 = vpop.f32.mrf.mxu0 }
 0x242   : > { %10835 = vst [vmem:[#allocation18_spill] sm:$0xff] %v10430_v37  ;;  %10836 = vst [vmem:[#allocation20_spill] sm:$0xff] %v10432_v5  ;;  %v10434_v43 = vadd.f32 %v7483_v46, %v4226_v33  ;;  %v4201_v37 = vadd.f32 %v10348_v3, %v10245_v51  ;;  %v4207_v51 = vadd.f32 %v10361_v56, %v10254_v44 }
 0x243   : > { %v10436_v9 = vpop.f32.mrf.mxu1  ;;  %v7555_v6 = vpop.f32.mrf.mxu0 }
 0x244   : > { %10837 = vst [vmem:[#allocation22_spill] sm:$0xff] %v10434_v43  ;;  %10838 = vst [vmem:[#allocation24_spill] sm:$0xff] %v10436_v9  ;;  %v4203_v43 = vadd.f32 %v10344_v47, %v10242_v32  ;;  %v4588_v32 = vadd.f32 %v10321_v61, %v4201_v37  ;;  %v4204_v47 = vadd.f32 %v10355_v26, %v10251_v58 }
 0x245   : > { %v10438_v27 = vpop.f32.mrf.mxu1  ;;  %v5712_v57 = vpop.f32.mrf.mxu0 }
 0x246   : > { %10839 = vst [vmem:[#allocation26_spill] sm:$0xff] %v10438_v27 }
 0x247   : > { %v7439_v38 = vpop.f32.mrf.mxu1  ;;  %v7556_v63 = vpop.f32.mrf.mxu0 }
 0x248   : > { %v4230_v35 = vadd.f32 %v7439_v38, %v10324_v4 }
 0x249   : > { %v10441_v50 = vpop.f32.mrf.mxu1  ;;  %v5715_v30 = vpop.f32.mrf.mxu0 }
 0x24a   : > { %10840 = vst [vmem:[#allocation29_spill] sm:$0xff] %v10441_v50  ;;  %v10443_v28 = vadd.f32 %v7487_v59, %v4230_v35  ;;  %v4590_v59 = vadd.f32 %v10316_v1, %v4203_v43  ;;  %v4205_v1 = vadd.f32 %v10363_v13, %v10257_v31  ;;  %v4594_v31 = vadd.f32 %v10334_v7, %v4207_v51 }
 0x24b   : > { %v10445_v49 = vpop.f32.mrf.mxu1  ;;  %v7559_v5 = vpop.f32.mrf.mxu0 }
 0x24c   : > { %10841 = vst [vmem:[#allocation31_spill] sm:$0xff] %v10443_v28  ;;  %10842 = vst [vmem:[#allocation32_spill] sm:$0xff] %v10445_v49 }
 0x24d   : > { %v10447_v33 = vpop.f32.mrf.mxu1  ;;  %v5728_v46 = vpop.f32.mrf.mxu0 }
 0x24e   : > { %10843 = vst [vmem:[#allocation34_spill] sm:$0xff] %v10447_v33 }
 0x24f   : > { %v7507_v27 = vpop.f32.mrf.mxu1  ;;  %v7560_v9 = vpop.f32.mrf.mxu0 }
 0x250   : > { %v5343_v50 = vadd.f32 %v7507_v27, %v10342_v0 }
 0x251   : > { %v5214_v4 = vpop.f32.mrf.mxu1  ;;  %v5731_v38 = vpop.f32.mrf.mxu0 }
 0x252   : > { %v5341_v35 = vadd.f32 %v5214_v4, %v10346_v8  ;;  %v5841_v0 = vadd.f32 %v7555_v6, %v5343_v50  ;;  %v4591_v50 = vadd.f32 %v10329_v24, %v4204_v47  ;;  %v4211_v47 = vadd.f32 %v10376_v55, %v10266_v60 }
 0x253   : > { %v7508_v28 = vpop.f32.mrf.mxu1  ;;  %v10456_v33 = vpop.f32.mrf.mxu0 }
 0x254   : > { %v5344_v49 = vadd.f32 %v7508_v28, %v4590_v59  ;;  %v5839_v27 = vadd.f32 %v5712_v57, %v5341_v35  ;;  %v4208_v28 = vadd.f32 %v10370_v17, %v10263_v20  ;;  %v6071_v24 = vmul.f32 %v5841_v0, %v5841_v0 }
 0x255   : > { %v5217_v3 = vpop.f32.mrf.mxu1  ;;  %v10463_v23 = vpop.f32.mrf.mxu0 }
 0x256   : > { %v5842_v8 = vadd.f32 %v7556_v63, %v5344_v49  ;;  %v5342_v4 = vadd.f32 %v5217_v3, %v4588_v32  ;;  %v6069_v57 = vmul.f32 %v5839_v27, %v5839_v27 }
 0x257   : > { %v7511_v58 = vpop.f32.mrf.mxu1  ;;  %v10474_v61 = vpop.f32.mrf.mxu0 }
 0x258   : > { %v6835_v44 = vpack.c.bf16 %v5842_v8, %v5841_v0  ;;  %v5840_v26 = vadd.f32 %v5715_v30, %v5342_v4  ;;  %v5347_v56 = vadd.f32 %v7511_v58, %v10359_v12  ;;  %v4592_v12 = vadd.f32 %v10339_v36, %v4205_v1 }
 0x259   : > { %v5230_v37 = vpop.f32.mrf.mxu1  ;;  %v10479_v13 = vpop.f32.mrf.mxu0  ;;  %v6072_v51 = vmul.f32 %v5842_v8, %v5842_v8 }
 0x25a   : > { %6922 = vst [vmem:[%s10472_s11 + $0x8] sm:$0xff] %v6835_v44   ;;  %v6830_v63 = vpack.c.bf16 %v5840_v26, %v5839_v27  ;;  %v6031_v43 = vadd.f32 %v5840_v26, %v5839_v27  ;;  %v6070_v6 = vmul.f32 %v5840_v26, %v5840_v26  ;;  %v5345_v49 = vadd.f32 %v5230_v37, %v4591_v50 }
 0x25b   : > { %v7512_v30 = vpop.f32.mrf.mxu1  ;;  %v10485_v35 = vpop.f32.mrf.mxu0  ;;  %v5845_v3 = vadd.f32 %v7559_v5, %v5347_v56  ;;  %v4209_v44 = vadd.f32 %v10378_v34, %v10269_v15  ;;  %v4595_v26 = vadd.f32 %v10350_v52, %v4208_v28  ;;  %v4598_v15 = vadd.f32 %v10352_v2, %v4211_v47 }
 0x25c   : > { %6831 = vst [vmem:[%s10472_s11] sm:$0xff] %v6830_v63   ;;  %v6032_v59 = vadd.f32 %v6031_v43, %v5841_v0  ;;  %v6101_v7 = vadd.f32 %v6070_v6, %v6069_v57  ;;  %v5348_v32 = vadd.f32 %v7512_v30, %v4594_v31  ;;  %v5843_v27 = vadd.f32 %v5728_v46, %v5345_v49 }
 0x25d   : > { %v5233_v4 = vpop.f32.mrf.mxu1  ;;  %v10490_v58 = vpop.f32.mrf.mxu0  ;;  %v4215_v28 = vadd.f32 %v10391_v10, %v10278_v16  ;;  %v4596_v30 = vadd.f32 %v10357_v54, %v4209_v44 }
 0x25e   : > { %v6102_v20 = vadd.f32 %v6101_v7, %v6071_v24  ;;  %v6033_v17 = vadd.f32 %v6032_v59, %v5842_v8  ;;  %v5846_v36 = vadd.f32 %v7560_v9, %v5348_v32  ;;  %v5346_v1 = vadd.f32 %v5233_v4, %v4592_v12 }
 0x25f   : > { %v7515_v0 = vpop.f32.mrf.mxu1  ;;  %v10495_v50 = vpop.f32.mrf.mxu0  ;;  %v6073_v55 = vmul.f32 %v5843_v27, %v5843_v27  ;;  %v6075_v12 = vmul.f32 %v5845_v3, %v5845_v3 }
 0x260   : > { %v6034_v60 = vadd.f32 %v6033_v17, %v5843_v27  ;;  %v6103_v5 = vadd.f32 %v6102_v20, %v6072_v51  ;;  %v6845_v46 = vpack.c.bf16 %v5846_v36, %v5845_v3  ;;  %v5844_v56 = vadd.f32 %v5731_v38, %v5346_v1 }
 0x261   : > { %v5246_v37 = vpop.f32.mrf.mxu1  ;;  %v10497_v31 = vpop.f32.mrf.mxu0  ;;  %v5351_v9 = vadd.f32 %v7515_v0, %v10374_v45  ;;  %v4212_v38 = vadd.f32 %v10385_v48, %v10275_v22  ;;  %v6076_v48 = vmul.f32 %v5846_v36, %v5846_v36  ;;  %v4602_v1 = vadd.f32 %v10367_v18, %v4215_v28 }
 0x262   : > { %v6104_v8 = vadd.f32 %v6103_v5, %v6073_v55  ;;  %6924 = vst [vmem:[%s10472_s11 + $0x18] sm:$0xff] %v6845_v46   ;;  %v5349_v57 = vadd.f32 %v5246_v37, %v4595_v26  ;;  %v6840_v34 = vpack.c.bf16 %v5844_v56, %v5843_v27  ;;  %v6035_v52 = vadd.f32 %v6034_v60, %v5844_v56 }
 0x263   : > { %v6074_v63 = vmul.f32 %v5844_v56, %v5844_v56  ;;  %v7516_v43 = vpop.f32.mrf.mxu1  ;;  %v10502_v6 = vpop.f32.mrf.mxu0  ;;  %v5849_v32 = vadd.f32 %v10456_v33, %v5351_v9  ;;  %v4599_v4 = vadd.f32 %v10365_v62, %v4212_v38  ;;  %v4216_v62 = vadd.f32 %v10400_v29, %v10287_v40 }
 0x264   : > { %v5352_v49 = vadd.f32 %v7516_v43, %v4598_v15  ;;  %6923 = vst [vmem:[%s10472_s11 + $0x10] sm:$0xff] %v6840_v34   ;;  %v6036_v45 = vadd.f32 %v6035_v52, %v5845_v3  ;;  %v5847_v2 = vadd.f32 %v10463_v23, %v5349_v57  ;;  %v4213_v3 = vadd.f32 %v10393_v25, %v10281_v21 }
 0x265   : > { %v6105_v24 = vadd.f32 %v6104_v8, %v6074_v63  ;;  %v5249_v59 = vpop.f32.mrf.mxu1  ;;  %v10511_v7 = vpop.f32.mrf.mxu0  ;;  %v4219_v5 = vadd.f32 %v10406_v11, %v10290_v39  ;;  %v6079_v56 = vmul.f32 %v5849_v32, %v5849_v32  ;;  %v4603_v38 = vadd.f32 %v10380_v53, %v4216_v62  ;;  %v10846_v53 = vld [vmem:[#allocation8_spill] sm:$0xff] }
 0x266   : > { %v5850_v47 = vadd.f32 %v10474_v61, %v5352_v49  ;;  %v5350_v22 = vadd.f32 %v5249_v59, %v4596_v30  ;;  %v6037_v10 = vadd.f32 %v6036_v45, %v5846_v36  ;;  %v6077_v33 = vmul.f32 %v5847_v2, %v5847_v2  ;;  %v10844_v30 = vld [vmem:[#allocation35_spill] sm:$0xff]  ;;  %v10845_v59 = vld [vmem:[#allocation33_spill] sm:$0xff] }
 0x267   : > { %v6106_v16 = vadd.f32 %v6105_v24, %v6075_v12  ;;  %v7519_v51 = vpop.f32.mrf.mxu1  ;;  %v10515_v54 = vpop.f32.mrf.mxu0  ;;  %v4600_v46 = vadd.f32 %v10372_v14, %v4213_v3  ;;  %v4217_v14 = vadd.f32 %v10408_v41, %v10293_v42  ;;  %v4606_v12 = vadd.f32 %v10844_v30, %v4219_v5  ;;  %v10851_v5 = vld [vmem:[#allocation10_spill] sm:$0xff] }
 0x268   : > { %v6855_v27 = vpack.c.bf16 %v5850_v47, %v5849_v32  ;;  %v5848_v23 = vadd.f32 %v10479_v13, %v5350_v22  ;;  %v6038_v20 = vadd.f32 %v6037_v10, %v5847_v2  ;;  %v5355_v26 = vadd.f32 %v7519_v51, %v10389_v19  ;;  %v10848_v10 = vld [vmem:[#allocation9_spill] sm:$0xff] }
 0x269   : > { %v6107_v61 = vadd.f32 %v6106_v16, %v6076_v48  ;;  %v5262_v17 = vpop.f32.mrf.mxu1  ;;  %v10522_v44 = vpop.f32.mrf.mxu0  ;;  %v6080_v29 = vmul.f32 %v5850_v47, %v5850_v47  ;;  %v10847_v48 = vld [vmem:[#allocation28_spill] sm:$0xff]  ;;  %v10849_v51 = vld [vmem:[#allocation13_spill] sm:$0xff] }
 0x26a   : > { %6926 = vst [vmem:[%s10472_s11 + $0x28] sm:$0xff] %v6855_v27   ;;  %v6850_v36 = vpack.c.bf16 %v5848_v23, %v5847_v2  ;;  %v6078_v0 = vmul.f32 %v5848_v23, %v5848_v23  ;;  %v5353_v21 = vadd.f32 %v5262_v17, %v4599_v4  ;;  %v6039_v60 = vadd.f32 %v6038_v20, %v5848_v23  ;;  %v10850_v23 = vld [vmem:[#allocation37_spill] sm:$0xff] }
 0x26b   : > { %v6108_v25 = vadd.f32 %v6107_v61, %v6077_v33  ;;  %v7520_v13 = vpop.f32.mrf.mxu1  ;;  %v10526_v55 = vpop.f32.mrf.mxu0  ;;  %v5853_v15 = vadd.f32 %v10485_v35, %v5355_v26  ;;  %v4220_v16 = vadd.f32 %v10847_v48, %v10846_v53  ;;  %v4223_v3 = vadd.f32 %v10849_v51, %v10848_v10 }
 0x26c   : > { %6925 = vst [vmem:[%s10472_s11 + $0x20] sm:$0xff] %v6850_v36   ;;  %v5356_v18 = vadd.f32 %v7520_v13, %v4602_v1  ;;  %v6040_v37 = vadd.f32 %v6039_v60, %v5849_v32  ;;  %v5851_v19 = vadd.f32 %v10490_v58, %v5353_v21  ;;  %v4604_v4 = vadd.f32 %v10850_v23, %v4217_v14  ;;  %v10861_v23 = vld [vmem:[#allocation16_spill] sm:$0xff] }
 0x26d   : > { %v6109_v8 = vadd.f32 %v6108_v25, %v6078_v0  ;;  %v5265_v9 = vpop.f32.mrf.mxu1  ;;  %v10535_v57 = vpop.f32.mrf.mxu0  ;;  %v6083_v20 = vmul.f32 %v5853_v15, %v5853_v15 }
 0x26e   : > { %v5854_v34 = vadd.f32 %v10495_v50, %v5356_v18  ;;  %v5354_v40 = vadd.f32 %v5265_v9, %v4600_v46  ;;  %v6041_v11 = vadd.f32 %v6040_v37, %v5850_v47  ;;  %v6081_v35 = vmul.f32 %v5851_v19, %v5851_v19  ;;  %v10852_v18 = vld [vmem:[#allocation3_spill] sm:$0xff] }
 0x26f   : > { %v6110_v39 = vadd.f32 %v6109_v8, %v6079_v56  ;;  %v7523_v52 = vpop.f32.mrf.mxu1  ;;  %v10539_v63 = vpop.f32.mrf.mxu0  ;;  %v4221_v46 = vadd.f32 %v10852_v18, %v10851_v5 }
 0x270   : > { %v6865_v43 = vpack.c.bf16 %v5854_v34, %v5853_v15  ;;  %v5852_v58 = vadd.f32 %v10497_v31, %v5354_v40  ;;  %v6042_v28 = vadd.f32 %v6041_v11, %v5851_v19  ;;  %v5359_v32 = vadd.f32 %v7523_v52, %v10845_v59 }
 0x271   : > { %v6111_v50 = vadd.f32 %v6110_v39, %v6080_v29  ;;  %v5278_v49 = vpop.f32.mrf.mxu1  ;;  %v10546_v45 = vpop.f32.mrf.mxu0  ;;  %v6084_v21 = vmul.f32 %v5854_v34, %v5854_v34  ;;  %v10855_v39 = vld [vmem:[#allocation11_spill] sm:$0xff] }
 0x272   : > { %6928 = vst [vmem:[%s10472_s11 + $0x38] sm:$0xff] %v6865_v43   ;;  %v6860_v24 = vpack.c.bf16 %v5852_v58, %v5851_v19  ;;  %v6082_v2 = vmul.f32 %v5852_v58, %v5852_v58  ;;  %v5357_v42 = vadd.f32 %v5278_v49, %v4603_v38  ;;  %v6043_v47 = vadd.f32 %v6042_v28, %v5852_v58  ;;  %v10857_v28 = vld [vmem:[#allocation18_spill] sm:$0xff]  ;;  %v10859_v49 = vld [vmem:[#allocation24_spill] sm:$0xff] }
 0x273   : > { %v6112_v41 = vadd.f32 %v6111_v50, %v6081_v35  ;;  %v7524_v31 = vpop.f32.mrf.mxu1  ;;  %v10550_v22 = vpop.f32.mrf.mxu0  ;;  %v5857_v36 = vadd.f32 %v10502_v6, %v5359_v32  ;;  %v10858_v50 = vld [vmem:[#allocation14_spill] sm:$0xff] }
 0x274   : > { %6927 = vst [vmem:[%s10472_s11 + $0x30] sm:$0xff] %v6860_v24   ;;  %v5360_v27 = vadd.f32 %v7524_v31, %v4606_v12  ;;  %v6044_v33 = vadd.f32 %v6043_v47, %v5853_v15  ;;  %v5855_v17 = vadd.f32 %v10511_v7, %v5357_v42  ;;  %v10853_v7 = vld [vmem:[#allocation39_spill] sm:$0xff]  ;;  %v4227_v30 = vadd.f32 %v10859_v49, %v10858_v50  ;;  %v10860_v24 = vld [vmem:[#allocation40_spill] sm:$0xff] }
 0x275   : > { %v6113_v61 = vadd.f32 %v6112_v41, %v6082_v2  ;;  %v5281_v1 = vpop.f32.mrf.mxu1  ;;  %v10561_v62 = vpop.f32.mrf.mxu0  ;;  %v4607_v8 = vadd.f32 %v10853_v7, %v4220_v16  ;;  %v10854_v15 = vld [vmem:[#allocation23_spill] sm:$0xff]  ;;  %v4608_v2 = vadd.f32 %v10860_v24, %v4221_v46  ;;  %v6087_v59 = vmul.f32 %v5857_v36, %v5857_v36  ;;  %v10867_v7 = vld [vmem:[#allocation29_spill] sm:$0xff] }
 0x276   : > { %v5858_v0 = vadd.f32 %v10515_v54, %v5360_v27  ;;  %v5358_v26 = vadd.f32 %v5281_v1, %v4604_v4  ;;  %v6045_v60 = vadd.f32 %v6044_v33, %v5854_v34  ;;  %v6085_v6 = vmul.f32 %v5855_v17, %v5855_v17  ;;  %v10862_v4 = vld [vmem:[#allocation26_spill] sm:$0xff] }
 0x277   : > { %v6114_v25 = vadd.f32 %v6113_v61, %v6083_v20  ;;  %v7527_v13 = vpop.f32.mrf.mxu1  ;;  %v4610_v40 = vadd.f32 %v10854_v15, %v4223_v3  ;;  %v7580_v38 = vpop.f32.mrf.mxu0  ;;  %v4225_v20 = vadd.f32 %v10862_v4, %v10861_v23  ;;  %v10870_v15 = vld [vmem:[#allocation30_spill] sm:$0xff] }
 0x278   : > { %v6875_v56 = vpack.c.bf16 %v5858_v0, %v5857_v36  ;;  %v5856_v37 = vadd.f32 %v10522_v44, %v5358_v26  ;;  %v6046_v19 = vadd.f32 %v6045_v60, %v5855_v17  ;;  %v5363_v11 = vadd.f32 %v7527_v13, %v10855_v39  ;;  %v10856_v44 = vld [vmem:[#allocation12_spill] sm:$0xff]  ;;  %v10864_v26 = vld [vmem:[#allocation27_spill] sm:$0xff]  ;;  %v10865_v60 = vld [vmem:[#allocation22_spill] sm:$0xff] }
 0x279   : > { %v6115_v54 = vadd.f32 %v6114_v25, %v6084_v21  ;;  %v5294_v9 = vpop.f32.mrf.mxu1  ;;  %v4224_v35 = vadd.f32 %v10857_v28, %v10856_v44  ;;  %v6088_v16 = vmul.f32 %v5858_v0, %v5858_v0  ;;  %v5811_v27 = vpop.f32.mrf.mxu0  ;;  %v4614_v21 = vadd.f32 %v10864_v26, %v4227_v30  ;;  %v10871_v30 = vld [vmem:[#allocation21_spill] sm:$0xff] }
 0x27a   : > { %6930 = vst [vmem:[%s10472_s11 + $0x48] sm:$0xff] %v6875_v56   ;;  %v6870_v34 = vpack.c.bf16 %v5856_v37, %v5855_v17  ;;  %v6086_v29 = vmul.f32 %v5856_v37, %v5856_v37  ;;  %v5361_v52 = vadd.f32 %v5294_v9, %v4607_v8  ;;  %v6047_v43 = vadd.f32 %v6046_v19, %v5856_v37  ;;  %v10863_v17 = vld [vmem:[#allocation25_spill] sm:$0xff] }
 0x27b   : > { %v6116_v14 = vadd.f32 %v6115_v54, %v6085_v6  ;;  %v7528_v58 = vpop.f32.mrf.mxu1  ;;  %v5861_v31 = vadd.f32 %v10526_v55, %v5363_v11  ;;  %v7583_v37 = vpop.f32.mrf.mxu0  ;;  %v10868_v19 = vld [vmem:[#allocation5_spill] sm:$0xff]  ;;  %v10869_v6 = vld [vmem:[#allocation32_spill] sm:$0xff] }
 0x27c   : > { %6929 = vst [vmem:[%s10472_s11 + $0x40] sm:$0xff] %v6870_v34   ;;  %v5364_v12 = vadd.f32 %v7528_v58, %v4610_v40  ;;  %v6048_v32 = vadd.f32 %v6047_v43, %v5857_v36  ;;  %v5859_v41 = vadd.f32 %v10535_v57, %v5361_v52  ;;  %v4611_v57 = vadd.f32 %v10863_v17, %v4224_v35 }
 0x27d   : > { %v6117_v42 = vadd.f32 %v6116_v14, %v6086_v29  ;;  %v5297_v47 = vpop.f32.mrf.mxu1  ;;  %v4231_v54 = vadd.f32 %v10869_v6, %v10868_v19  ;;  %v4612_v40 = vadd.f32 %v10870_v15, %v4225_v20  ;;  %v6091_v34 = vmul.f32 %v5861_v31, %v5861_v31  ;;  %v5824_v49 = vpop.f32.mrf.mxu0 }
 0x27e   : > { %v5862_v53 = vadd.f32 %v10539_v63, %v5364_v12  ;;  %v5362_v48 = vadd.f32 %v5297_v47, %v4608_v2  ;;  %v6049_v51 = vadd.f32 %v6048_v32, %v5858_v0  ;;  %v6089_v55 = vmul.f32 %v5859_v41, %v5859_v41  ;;  %v10872_v12 = vld [vmem:[#allocation34_spill] sm:$0xff]  ;;  %v10873_v32 = vld [vmem:[#allocation15_spill] sm:$0xff] }
 0x27f   : > { %v6118_v10 = vadd.f32 %v6117_v42, %v6087_v59  ;;  %v7531_v3 = vpop.f32.mrf.mxu1  ;;  %v4229_v24 = vadd.f32 %v10872_v12, %v10871_v30  ;;  %v7584_v4 = vpop.f32.mrf.mxu0 }
 0x280   : > { %v6885_v33 = vpack.c.bf16 %v5862_v53, %v5861_v31  ;;  %v5860_v61 = vadd.f32 %v10546_v45, %v5362_v48  ;;  %v6050_v1 = vadd.f32 %v6049_v51, %v5859_v41  ;;  %v5367_v13 = vadd.f32 %v7531_v3, %v10865_v60  ;;  %v10866_v45 = vld [vmem:[#allocation19_spill] sm:$0xff] }
 0x281   : > { %v6119_v36 = vadd.f32 %v6118_v10, %v6088_v16  ;;  %v5310_v63 = vpop.f32.mrf.mxu1  ;;  %v4228_v8 = vadd.f32 %v10867_v7, %v10866_v45  ;;  %v6092_v44 = vmul.f32 %v5862_v53, %v5862_v53 }
 0x282   : > { %6932 = vst [vmem:[%s10472_s11 + $0x58] sm:$0xff] %v6885_v33   ;;  %v6880_v25 = vpack.c.bf16 %v5860_v61, %v5859_v41  ;;  %v6090_v0 = vmul.f32 %v5860_v61, %v5860_v61  ;;  %v5365_v5 = vadd.f32 %v5310_v63, %v4611_v57  ;;  %v6051_v46 = vadd.f32 %v6050_v1, %v5860_v61  ;;  %v10876_v33 = vld [vmem:[#allocation20_spill] sm:$0xff] }
 0x283   : > { %v6120_v18 = vadd.f32 %v6119_v36, %v6089_v55  ;;  %v7532_v56 = vpop.f32.mrf.mxu1  ;;  %v5865_v14 = vadd.f32 %v10550_v22, %v5367_v13  ;;  %v4615_v42 = vadd.f32 %v10873_v32, %v4228_v8  ;;  %v4616_v61 = vadd.f32 %v10876_v33, %v4229_v24  ;;  %v5827_v13 = vpop.f32.mrf.mxu0 }
 0x284   : > { %6931 = vst [vmem:[%s10472_s11 + $0x50] sm:$0xff] %v6880_v25   ;;  %v5368_v9 = vadd.f32 %v7532_v56, %v4614_v21  ;;  %v6052_v29 = vadd.f32 %v6051_v46, %v5861_v31  ;;  %v5863_v11 = vadd.f32 %v10561_v62, %v5365_v5 }
 0x285   : > { %v6121_v39 = vadd.f32 %v6120_v18, %v6090_v0  ;;  %v5313_v52 = vpop.f32.mrf.mxu1  ;;  %v6095_v17 = vmul.f32 %v5865_v14, %v5865_v14 }
 0x286   : > { %v5866_v43 = vadd.f32 %v7580_v38, %v5368_v9  ;;  %v5366_v58 = vadd.f32 %v5313_v52, %v4612_v40  ;;  %v6053_v35 = vadd.f32 %v6052_v29, %v5862_v53  ;;  %v6093_v41 = vmul.f32 %v5863_v11, %v5863_v11  ;;  %v10874_v38 = vld [vmem:[#allocation17_spill] sm:$0xff]  ;;  %v10875_v53 = vld [vmem:[#allocation31_spill] sm:$0xff] }
 0x287   : > { %v6122_v28 = vadd.f32 %v6121_v39, %v6091_v34  ;;  %v7535_v50 = vpop.f32.mrf.mxu1  ;;  %v4618_v31 = vadd.f32 %v10874_v38, %v4231_v54 }
 0x288   : > { %v6895_v2 = vpack.c.bf16 %v5866_v43, %v5865_v14  ;;  %v5864_v59 = vadd.f32 %v5811_v27, %v5366_v58  ;;  %v6054_v62 = vadd.f32 %v6053_v35, %v5863_v11  ;;  %v5371_v10 = vadd.f32 %v7535_v50, %v10875_v53 }
 0x289   : > { %v6123_v47 = vadd.f32 %v6122_v28, %v6092_v44  ;;  %v5326_v22 = vpop.f32.mrf.mxu1  ;;  %v6096_v25 = vmul.f32 %v5866_v43, %v5866_v43 }
 0x28a   : > { %6934 = vst [vmem:[%s10472_s11 + $0x68] sm:$0xff] %v6895_v2   ;;  %v6890_v48 = vpack.c.bf16 %v5864_v59, %v5863_v11  ;;  %v6094_v16 = vmul.f32 %v5864_v59, %v5864_v59  ;;  %v5369_v51 = vadd.f32 %v5326_v22, %v4615_v42  ;;  %v6055_v23 = vadd.f32 %v6054_v62, %v5864_v59 }
 0x28b   : > { %v6124_v3 = vadd.f32 %v6123_v47, %v6093_v41  ;;  %v7536_v20 = vpop.f32.mrf.mxu1  ;;  %v5869_v63 = vadd.f32 %v7583_v37, %v5371_v10 }
 0x28c   : > { %6933 = vst [vmem:[%s10472_s11 + $0x60] sm:$0xff] %v6890_v48   ;;  %v5372_v27 = vadd.f32 %v7536_v20, %v4618_v31  ;;  %v6056_v57 = vadd.f32 %v6055_v23, %v5865_v14  ;;  %v5867_v55 = vadd.f32 %v5824_v49, %v5369_v51 }
 0x28d   : > { %v6125_v1 = vadd.f32 %v6124_v3, %v6094_v16  ;;  %v5329_v36 = vpop.f32.mrf.mxu1  ;;  %v6099_v37 = vmul.f32 %v5869_v63, %v5869_v63 }
 0x28e   : > { %v5870_v26 = vadd.f32 %v7584_v4, %v5372_v27  ;;  %v5370_v21 = vadd.f32 %v5329_v36, %v4616_v61  ;;  %v6057_v60 = vadd.f32 %v6056_v57, %v5866_v43  ;;  %v6097_v56 = vmul.f32 %v5867_v55, %v5867_v55 }
 0x28f   : > { %v6126_v0 = vadd.f32 %v6125_v1, %v6095_v17 }
 0x290   : > { %v6905_v5 = vpack.c.bf16 %v5870_v26, %v5869_v63  ;;  %v5868_v18 = vadd.f32 %v5827_v13, %v5370_v21  ;;  %v6058_v46 = vadd.f32 %v6057_v60, %v5867_v55  ;;  %v6100_v15 = vmul.f32 %v5870_v26, %v5870_v26 }
 0x291   : > { %v6127_v45 = vadd.f32 %v6126_v0, %v6096_v25 }
 0x292   : > { %6936 = vst [vmem:[%s10472_s11 + $0x78] sm:$0xff] %v6905_v5   ;;  %v6900_v7 = vpack.c.bf16 %v5868_v18, %v5867_v55  ;;  %v6098_v8 = vmul.f32 %v5868_v18, %v5868_v18  ;;  %v6059_v6 = vadd.f32 %v6058_v46, %v5868_v18 }
 0x293   : > { %v6128_v19 = vadd.f32 %v6127_v45, %v6097_v56 }
 0x294   : > { %6935 = vst [vmem:[%s10472_s11 + $0x70] sm:$0xff] %v6900_v7   ;;  %v6060_v54 = vadd.f32 %v6059_v6, %v5869_v63 }
 0x295   : > { %v6129_v9 = vadd.f32 %v6128_v19, %v6098_v8 }
 0x296   : > { %v6061_v40 = vadd.f32 %v6060_v54, %v5870_v26 }
 0x297   : > { %v6130_v34 = vadd.f32 %v6129_v9, %v6099_v37 }
 0x298   : > { %v6062_v29 = vrot.slane %v6061_v40, 4 }
 0x299   : > { %v6131_v39 = vadd.f32 %v6130_v34, %v6100_v15 }
 0x29a   : > { %v6063_v11 = vadd.f32 %v6062_v29, %v6061_v40 }
 0x29b   : > { %v6132_v52 = vrot.slane %v6131_v39, 4 }
 0x29c   : > { %v6064_v14 = vrot.slane %v6063_v11, 2 }
 0x29d   : > { %v6133_v43 = vadd.f32 %v6132_v52, %v6131_v39 }
 0x29e   : > { %v6065_v58 = vadd.f32 %v6064_v14, %v6063_v11 }
 0x29f   : > { %v6134_v44 = vrot.slane %v6133_v43, 2 }
 0x2a0   : > { %v6066_v28 = vrot.slane %v6065_v58, 1 }
 0x2a1   : > { %v6135_v35 = vadd.f32 %v6134_v44, %v6133_v43 }
 0x2a2   : > { %v6067_v50 = vadd.f32 %v6066_v28, %v6065_v58 }
 0x2a3   : > { %v6136_v49 = vrot.slane %v6135_v35, 1 }
 0x2a4   : > { %6139 = vst [vmem:[%s235_s14] sm:$0x1] %v6067_v50 }
 0x2a5   : > { %v6137_v30 = vadd.f32 %v6136_v49, %v6135_v35 }
 0x2a7   : > { %6140 = vst [vmem:[%s235_s14 + $0x1] sm:$0x1] %v6137_v30 }
 0x2a8 PF: > { %s16_s18 = sadd.s32 1, %s7765_s18  }
 0x2a9   : > { %p13_p4 = scmp.ge.s32.totalorder %s16_s18, 4  }
 0x2ab   :  { %15 = sbr.rel (!%p13_p4) target bundleno = 1 (0x1), region = 89 }

</bundles_post_ra>
